<compile_context>
chip_gen: v6e
topology: v6e:2x2x1
jax: 0.10.0
libtpu: 0.0.40
codegen_flags: <defaults>
</compile_context>

<pallas_src>
import functools

import jax
import jax.numpy as jnp
from jax.experimental import pallas as pl
from jax.experimental.pallas import tpu as pltpu


def block17_kernel(x_ref,
                   w01_ref, s01_ref, b01_ref,
                   w1b_ref, s1b_ref, b1b_ref,
                   w1c_ref, s1c_ref, b1c_ref,
                   wp_ref, bp_ref,
                   out_ref,
                   padw_ref, padh_ref,
                   *, scale, H, W):
    nb, HW, C = x_ref.shape                     # (nb, H*W, 1088) bf16 per grid step
    M = nb * HW

    xb = x_ref[...].reshape(M, C)               # bf16 MXU operand (leading-dim merge)

    # ---- Fused 1x1 convs: [branch1a (128) | branch0 (192)] = 1088 -> 320 ----
    y = jnp.dot(xb, w01_ref[...], preferred_element_type=jnp.float32)
    y = jnp.maximum(y * s01_ref[...] + b01_ref[...], 0.0)          # (M, 320) f32
    t = y[:, :128]                                                  # branch1 stage a
    x0 = y[:, 128:320]                                              # branch0

    # ---- Branch1 stage b: (1,7) conv along W, pad (0,3), 128 -> 160 ----
    # Zero only the 3-column halos (re-zeroed every step on purpose: with a
    # "parallel" grid each core owns its own scratch); interior is overwritten.
    padw_ref[:, :, 0:3, :] = jnp.zeros((nb, H, 3, 128), jnp.bfloat16)
    padw_ref[:, :, W + 3:W + 6, :] = jnp.zeros((nb, H, 3, 128), jnp.bfloat16)
    padw_ref[:, :, 3:W + 3, :] = t.astype(jnp.bfloat16).reshape(nb, H, W, 128)
    # im2col: 7 shifted bf16 views concatenated on the lane axis (128-aligned)
    # -> one (M, 896) @ (896, 160) bf16 matmul.
    cols = [padw_ref[:, :, k:k + W, :].reshape(M, 128) for k in range(7)]
    im2c = jnp.concatenate(cols, axis=-1)                           # (M, 896) bf16
    acc = jnp.dot(im2c, w1b_ref[...], preferred_element_type=jnp.float32)
    t2 = jnp.maximum(acc * s1b_ref[...] + b1b_ref[...], 0.0)       # (M, 160) f32

    # ---- Branch1 stage c: (7,1) conv along H, pad (3,0), 160 -> 192 ----
    padh_ref[:, 0:3, :, :] = jnp.zeros((nb, 3, W, 160), jnp.bfloat16)
    padh_ref[:, H + 3:H + 6, :, :] = jnp.zeros((nb, 3, W, 160), jnp.bfloat16)
    padh_ref[:, 3:H + 3, :, :] = t2.astype(jnp.bfloat16).reshape(nb, H, W, 160)
    acc2 = jnp.zeros((M, 192), jnp.float32)
    for k in range(7):                                              # static unroll
        seg = padh_ref[:, k:k + H, :, :].reshape(M, 160)            # bf16 view
        acc2 = acc2 + jnp.dot(seg, w1c_ref[k], preferred_element_type=jnp.float32)
    x1 = jnp.maximum(acc2 * s1c_ref[...] + b1c_ref[...], 0.0)      # (M, 192) f32

    # ---- concat(x0, x1) -> 1x1 conv (384 -> 1088, with bias), split-K form ----
    proj = (jnp.dot(x0.astype(jnp.bfloat16), wp_ref[0],
                    preferred_element_type=jnp.float32)
            + jnp.dot(x1.astype(jnp.bfloat16), wp_ref[1],
                      preferred_element_type=jnp.float32)
            + bp_ref[...])

    # ---- residual (f32): out = relu(proj * scale + x); re-read x from VMEM ----
    xres = x_ref[...].reshape(M, C).astype(jnp.float32)
    res = jnp.maximum(proj * scale + xres, 0.0)
    out_ref[...] = res.astype(jnp.bfloat16).reshape(nb, HW, C)


def _block17_flat(x3, kparams, scale, nb, H, W):
    N, HW, C = x3.shape
    assert N % nb == 0, (N, nb)
    kernel = functools.partial(block17_kernel, scale=scale, H=H, W=W)

    x_spec = pl.BlockSpec((nb, HW, C), lambda n: (n, 0, 0))
    # Weights / folded-BN params: constant index_map -> fetched once, resident.
    param_specs = [pl.BlockSpec(p.shape, lambda n, nd=p.ndim: (0,) * nd)
                   for p in kparams]

    return pl.pallas_call(
        kernel,
        out_shape=jax.ShapeDtypeStruct((N, HW, C), jnp.bfloat16),
        grid=(N // nb,),
        in_specs=[x_spec] + param_specs,
        out_specs=pl.BlockSpec((nb, HW, C), lambda n: (n, 0, 0)),
        scratch_shapes=[
            pltpu.VMEM((nb, H, W + 6, 128), jnp.bfloat16),   # W-padded (1,7) buffer
            pltpu.VMEM((nb, H + 6, W, 160), jnp.bfloat16),   # H-padded (7,1) buffer
        ],
        compiler_params=pltpu.CompilerParams(
            dimension_semantics=("parallel",),               # megacore batch sharding
            vmem_limit_bytes=48 * 1024 * 1024),
    )(x3, *kparams)


@functools.partial(jax.jit, static_argnames=("scale", "nb"))
def block17_forward_nhwc(x_nhwc, kparams, scale=1.0, nb=1):
    """NHWC in / NHWC (bf16) out."""
    N, H, W, C = x_nhwc.shape
    x3 = x_nhwc.astype(jnp.bfloat16).reshape(N, H * W, C)
    out3 = _block17_flat(x3, kparams, scale, nb, H, W)
    return out3.reshape(N, H, W, C)


@functools.partial(jax.jit, static_argnames=("scale", "nb"))
def block17_forward(x_nchw, kparams, scale=1.0, nb=1):
    """PyTorch-layout (NCHW) wrapper; layout transposes fused under this jit."""
    N, C, H, W = x_nchw.shape
    x3 = jnp.transpose(x_nchw, (0, 2, 3, 1)).astype(jnp.bfloat16).reshape(N, H * W, C)
    out3 = _block17_flat(x3, kparams, scale, nb, H, W)
    return jnp.transpose(out3.reshape(N, H, W, C), (0, 3, 1, 2))


def init_params(key, eps=1e-3):
    """Natural f32 parameters (conv weights + eval-mode folded BN scale/bias)."""
    ks = jax.random.split(key, 10)

    def conv_w(k, cin, cout, taps=None):
        if taps is None:
            return jax.random.normal(k, (cin, cout), jnp.float32) / jnp.sqrt(float(cin))
        return jax.random.normal(k, (taps, cin, cout), jnp.float32) / jnp.sqrt(float(cin * taps))

    def bn(k, c):
        k1, k2, k3, k4 = jax.random.split(k, 4)
        gamma = 1.0 + 0.1 * jax.random.normal(k1, (c,), jnp.float32)
        beta = 0.1 * jax.random.normal(k2, (c,), jnp.float32)
        mean = 0.1 * jax.random.normal(k3, (c,), jnp.float32)
        var = jax.random.uniform(k4, (c,), jnp.float32, 0.5, 1.5)
        s = gamma / jnp.sqrt(var + eps)
        b = beta - mean * s
        return s.reshape(1, c), b.reshape(1, c)

    w0 = conv_w(ks[0], 1088, 192)
    s0, b0 = bn(ks[1], 192)
    w1a = conv_w(ks[2], 1088, 128)
    s1a, b1a = bn(ks[3], 128)
    w1b = conv_w(ks[4], 128, 160, taps=7)       # (1,7) conv taps
    s1b, b1b = bn(ks[5], 160)
    w1c = conv_w(ks[6], 160, 192, taps=7)       # (7,1) conv taps
    s1c, b1c = bn(ks[7], 192)
    wp = jax.random.normal(ks[8], (2, 192, 1088), jnp.float32) / jnp.sqrt(384.0)
    bp = 0.1 * jax.random.normal(ks[9], (1, 1088), jnp.float32)
    return (w0, s0, b0, w1a, s1a, b1a, w1b, s1b, b1b, w1c, s1c, b1c, wp, bp)


def pack_params(params):
    """Kernel-layout params: bf16 MXU weights, fused [1a|0] 1x1 conv, im2col-
    flattened (1,7) taps, and f32 scale/bias."""
    (w0, s0, b0, w1a, s1a, b1a, w1b, s1b, b1b, w1c, s1c, b1c, wp, bp) = params
    bf = lambda a: a.astype(jnp.bfloat16)
    w01 = jnp.concatenate([w1a, w0], axis=1)       # (1088, 320); split at lane 128
    s01 = jnp.concatenate([s1a, s0], axis=1)       # (1, 320)
    b01 = jnp.concatenate([b1a, b0], axis=1)       # (1, 320)
    return (bf(w01), s01, b01,
            bf(w1b.reshape(7 * 128, 160)), s1b, b1b,
            bf(w1c), s1c, b1c,
            bf(wp), bp)


def ref_forward(x_nhwc, params, scale):
    """f32 reference (pure JAX) with the faithful conv/BN/ReLU semantics."""
    (w0, s0, b0, w1a, s1a, b1a, w1b, s1b, b1b, w1c, s1c, b1c, wp, bp) = params
    P = jax.lax.Precision.HIGHEST
    N, H, W, C = x_nhwc.shape

    def pw(inp, w, s, b):
        y = jnp.einsum('nhwc,cd->nhwd', inp, w, precision=P) * s + b
        return jnp.maximum(y, 0.0)

    x0 = pw(x_nhwc, w0, s0[0], b0[0])
    t = pw(x_nhwc, w1a, s1a[0], b1a[0])
    tp = jnp.pad(t, ((0, 0), (0, 0), (3, 3), (0, 0)))
    acc = sum(jnp.einsum('nhwc,cd->nhwd', tp[:, :, k:k + W, :], w1b[k], precision=P)
              for k in range(7))
    t2 = jnp.maximum(acc * s1b[0] + b1b[0], 0.0)
    t2p = jnp.pad(t2, ((0, 0), (3, 3), (0, 0), (0, 0)))
    acc2 = sum(jnp.einsum('nhwc,cd->nhwd', t2p[:, k:k + H, :, :], w1c[k], precision=P)
               for k in range(7))
    x1 = jnp.maximum(acc2 * s1c[0] + b1c[0], 0.0)
    proj = (jnp.einsum('nhwc,cd->nhwd', x0, wp[0], precision=P)
            + jnp.einsum('nhwc,cd->nhwd', x1, wp[1], precision=P)
            + bp[0])
    return jnp.maximum(proj * scale + x_nhwc, 0.0)


if __name__ == "__main__":
    key = jax.random.PRNGKey(0)
    kx, kp = jax.random.split(key)

    # Channels fixed at 1088 by the module; small batch / spatial for the test.
    N, C, H, W = 4, 1088, 8, 8
    nb = 2                                   # batch images per grid step
    x_nchw = jax.random.normal(kx, (N, C, H, W), jnp.float32).astype(jnp.bfloat16)
    params = init_params(kp)
    kparams = pack_params(params)
    scale = 0.17

    out = block17_forward(x_nchw, kparams, scale=scale, nb=nb)
    out = jax.block_until_ready(out)
    assert out.shape == (N, C, H, W), out.shape

    # f32 reference from the same bf16-rounded input.
    x_nhwc = jnp.transpose(x_nchw, (0, 2, 3, 1)).astype(jnp.float32)
    ref = jnp.transpose(ref_forward(x_nhwc, params, scale), (0, 3, 1, 2))

    diff = jnp.abs(out.astype(jnp.float32) - ref)
    max_err = float(jnp.max(diff))
    mean_err = float(jnp.mean(diff))
    assert max_err < 1e-1, f"max abs error {max_err}"
    assert mean_err < 2e-2, f"mean abs error {mean_err}"
    print("KERNEL_OK")
</pallas_src>

<mosaic_0001>
module attributes {stable_mosaic.version = 11 : i64} {
  func.func @block17_kernel(%arg0: i32, %arg1: memref<2x64x1088xbf16, #tpu.memory_space<vmem>>, %arg2: memref<1088x320xbf16, #tpu.memory_space<vmem>>, %arg3: memref<1x320xf32, #tpu.memory_space<vmem>>, %arg4: memref<1x320xf32, #tpu.memory_space<vmem>>, %arg5: memref<896x160xbf16, #tpu.memory_space<vmem>>, %arg6: memref<1x160xf32, #tpu.memory_space<vmem>>, %arg7: memref<1x160xf32, #tpu.memory_space<vmem>>, %arg8: memref<7x160x192xbf16, #tpu.memory_space<vmem>>, %arg9: memref<1x192xf32, #tpu.memory_space<vmem>>, %arg10: memref<1x192xf32, #tpu.memory_space<vmem>>, %arg11: memref<2x192x1088xbf16, #tpu.memory_space<vmem>>, %arg12: memref<1x1088xf32, #tpu.memory_space<vmem>>, %arg13: memref<2x64x1088xbf16, #tpu.memory_space<vmem>>, %arg14: memref<2x8x14x128xbf16, #tpu.memory_space<vmem>>, %arg15: memref<2x14x8x160xbf16, #tpu.memory_space<vmem>>) attributes {dimension_semantics = [#tpu.dimension_semantics<parallel>], iteration_bounds = array<i64: 2>, scalar_prefetch = 0 : i64, scratch_operands = 2 : i64, tpu.core_type = #tpu.core_type<tc>, window_params = [{transform_indices = @transform_0, window_bounds = array<i64: 2, 64, 1088>}, {pipeline_mode = #tpu.pipeline_mode<synchronous>, transform_indices = @transform_1, window_bounds = array<i64: 1088, 320>}, {pipeline_mode = #tpu.pipeline_mode<synchronous>, transform_indices = @transform_2, window_bounds = array<i64: 1, 320>}, {pipeline_mode = #tpu.pipeline_mode<synchronous>, transform_indices = @transform_3, window_bounds = array<i64: 1, 320>}, {pipeline_mode = #tpu.pipeline_mode<synchronous>, transform_indices = @transform_4, window_bounds = array<i64: 896, 160>}, {pipeline_mode = #tpu.pipeline_mode<synchronous>, transform_indices = @transform_5, window_bounds = array<i64: 1, 160>}, {pipeline_mode = #tpu.pipeline_mode<synchronous>, transform_indices = @transform_6, window_bounds = array<i64: 1, 160>}, {pipeline_mode = #tpu.pipeline_mode<synchronous>, transform_indices = @transform_7, window_bounds = array<i64: 7, 160, 192>}, {pipeline_mode = #tpu.pipeline_mode<synchronous>, transform_indices = @transform_8, window_bounds = array<i64: 1, 192>}, {pipeline_mode = #tpu.pipeline_mode<synchronous>, transform_indices = @transform_9, window_bounds = array<i64: 1, 192>}, {pipeline_mode = #tpu.pipeline_mode<synchronous>, transform_indices = @transform_10, window_bounds = array<i64: 2, 192, 1088>}, {pipeline_mode = #tpu.pipeline_mode<synchronous>, transform_indices = @transform_11, window_bounds = array<i64: 1, 1088>}, {transform_indices = @transform_12, window_bounds = array<i64: 2, 64, 1088>}]} {
    %c0 = arith.constant 0 : index
    %c0_0 = arith.constant 0 : index
    %c0_1 = arith.constant 0 : index
    %0 = vector.load %arg1[%c0, %c0_0, %c0_1] : memref<2x64x1088xbf16, #tpu.memory_space<vmem>>, vector<2x64x1088xbf16>
    %1 = vector.shape_cast %0 : vector<2x64x1088xbf16> to vector<128x1088xbf16>
    %c0_2 = arith.constant 0 : index
    %c0_3 = arith.constant 0 : index
    %2 = vector.load %arg2[%c0_2, %c0_3] : memref<1088x320xbf16, #tpu.memory_space<vmem>>, vector<1088x320xbf16>
    %cst = arith.constant dense<0.000000e+00> : vector<128x320xf32>
    %3 = tpu.matmul %1, %2, %cst {dimension_numbers = #tpu.dot_dimension_numbers<[1], [0], [0], [1], [0, 0, 1, 1], [], []>} : vector<128x1088xbf16>, vector<1088x320xbf16>, vector<128x320xf32> -> vector<128x320xf32>
    %c0_4 = arith.constant 0 : index
    %c0_5 = arith.constant 0 : index
    %4 = vector.load %arg3[%c0_4, %c0_5] : memref<1x320xf32, #tpu.memory_space<vmem>>, vector<1x320xf32>
    %5 = vector.broadcast %4 : vector<1x320xf32> to vector<128x320xf32>
    %6 = arith.mulf %3, %5 : vector<128x320xf32>
    %c0_6 = arith.constant 0 : index
    %c0_7 = arith.constant 0 : index
    %7 = vector.load %arg4[%c0_6, %c0_7] : memref<1x320xf32, #tpu.memory_space<vmem>>, vector<1x320xf32>
    %8 = vector.broadcast %7 : vector<1x320xf32> to vector<128x320xf32>
    %9 = arith.addf %6, %8 : vector<128x320xf32>
    %cst_8 = arith.constant 0.000000e+00 : f32
    %10 = vector.broadcast %cst_8 : f32 to vector<128x320xf32>
    %11 = arith.maximumf %9, %10 : vector<128x320xf32>
    %12 = vector.extract_strided_slice %11 {offsets = [0, 0], sizes = [128, 128], strides = [1, 1]} : vector<128x320xf32> to vector<128x128xf32>
    %13 = vector.extract_strided_slice %11 {offsets = [0, 128], sizes = [128, 192], strides = [1, 1]} : vector<128x320xf32> to vector<128x192xf32>
    %cst_9 = arith.constant 0.000000e+00 : bf16
    %14 = vector.broadcast %cst_9 : bf16 to vector<2x8x3x128xbf16>
    %c0_10 = arith.constant 0 : index
    %c0_11 = arith.constant 0 : index
    %c0_12 = arith.constant 0 : index
    %c0_13 = arith.constant 0 : index
    %15 = vector.load %arg14[%c0_10, %c0_11, %c0_12, %c0_13] : memref<2x8x14x128xbf16, #tpu.memory_space<vmem>>, vector<2x8x3x128xbf16>
    tpu.vector_store %arg14[%c0_10, %c0_11, %c0_12, %c0_13], %14 {strides = array<i32>} : memref<2x8x14x128xbf16, #tpu.memory_space<vmem>>, vector<2x8x3x128xbf16>,
    %cst_14 = arith.constant 0.000000e+00 : bf16
    %16 = vector.broadcast %cst_14 : bf16 to vector<2x8x3x128xbf16>
    %c0_15 = arith.constant 0 : index
    %c0_16 = arith.constant 0 : index
    %c11 = arith.constant 11 : index
    %c0_17 = arith.constant 0 : index
    %17 = vector.load %arg14[%c0_15, %c0_16, %c11, %c0_17] : memref<2x8x14x128xbf16, #tpu.memory_space<vmem>>, vector<2x8x3x128xbf16>
    tpu.vector_store %arg14[%c0_15, %c0_16, %c11, %c0_17], %16 {strides = array<i32>} : memref<2x8x14x128xbf16, #tpu.memory_space<vmem>>, vector<2x8x3x128xbf16>,
    %18 = arith.truncf %12 : vector<128x128xf32> to vector<128x128xbf16>
    %19 = vector.shape_cast %18 : vector<128x128xbf16> to vector<2x8x8x128xbf16>
    %c0_18 = arith.constant 0 : index
    %c0_19 = arith.constant 0 : index
    %c3 = arith.constant 3 : index
    %c0_20 = arith.constant 0 : index
    %20 = vector.load %arg14[%c0_18, %c0_19, %c3, %c0_20] : memref<2x8x14x128xbf16, #tpu.memory_space<vmem>>, vector<2x8x8x128xbf16>
    tpu.vector_store %arg14[%c0_18, %c0_19, %c3, %c0_20], %19 {strides = array<i32>} : memref<2x8x14x128xbf16, #tpu.memory_space<vmem>>, vector<2x8x8x128xbf16>,
    %c0_21 = arith.constant 0 : index
    %c0_22 = arith.constant 0 : index
    %c0_23 = arith.constant 0 : index
    %c0_24 = arith.constant 0 : index
    %21 = vector.load %arg14[%c0_21, %c0_22, %c0_23, %c0_24] : memref<2x8x14x128xbf16, #tpu.memory_space<vmem>>, vector<2x8x8x128xbf16>
    %22 = vector.shape_cast %21 : vector<2x8x8x128xbf16> to vector<128x128xbf16>
    %c0_25 = arith.constant 0 : index
    %c0_26 = arith.constant 0 : index
    %c1 = arith.constant 1 : index
    %c0_27 = arith.constant 0 : index
    %23 = vector.load %arg14[%c0_25, %c0_26, %c1, %c0_27] : memref<2x8x14x128xbf16, #tpu.memory_space<vmem>>, vector<2x8x8x128xbf16>
    %24 = vector.shape_cast %23 : vector<2x8x8x128xbf16> to vector<128x128xbf16>
    %c0_28 = arith.constant 0 : index
    %c0_29 = arith.constant 0 : index
    %c2 = arith.constant 2 : index
    %c0_30 = arith.constant 0 : index
    %25 = vector.load %arg14[%c0_28, %c0_29, %c2, %c0_30] : memref<2x8x14x128xbf16, #tpu.memory_space<vmem>>, vector<2x8x8x128xbf16>
    %26 = vector.shape_cast %25 : vector<2x8x8x128xbf16> to vector<128x128xbf16>
    %c0_31 = arith.constant 0 : index
    %c0_32 = arith.constant 0 : index
    %c3_33 = arith.constant 3 : index
    %c0_34 = arith.constant 0 : index
    %27 = vector.load %arg14[%c0_31, %c0_32, %c3_33, %c0_34] : memref<2x8x14x128xbf16, #tpu.memory_space<vmem>>, vector<2x8x8x128xbf16>
    %28 = vector.shape_cast %27 : vector<2x8x8x128xbf16> to vector<128x128xbf16>
    %c0_35 = arith.constant 0 : index
    %c0_36 = arith.constant 0 : index
    %c4 = arith.constant 4 : index
    %c0_37 = arith.constant 0 : index
    %29 = vector.load %arg14[%c0_35, %c0_36, %c4, %c0_37] : memref<2x8x14x128xbf16, #tpu.memory_space<vmem>>, vector<2x8x8x128xbf16>
    %30 = vector.shape_cast %29 : vector<2x8x8x128xbf16> to vector<128x128xbf16>
    %c0_38 = arith.constant 0 : index
    %c0_39 = arith.constant 0 : index
    %c5 = arith.constant 5 : index
    %c0_40 = arith.constant 0 : index
    %31 = vector.load %arg14[%c0_38, %c0_39, %c5, %c0_40] : memref<2x8x14x128xbf16, #tpu.memory_space<vmem>>, vector<2x8x8x128xbf16>
    %32 = vector.shape_cast %31 : vector<2x8x8x128xbf16> to vector<128x128xbf16>
    %c0_41 = arith.constant 0 : index
    %c0_42 = arith.constant 0 : index
    %c6 = arith.constant 6 : index
    %c0_43 = arith.constant 0 : index
    %33 = vector.load %arg14[%c0_41, %c0_42, %c6, %c0_43] : memref<2x8x14x128xbf16, #tpu.memory_space<vmem>>, vector<2x8x8x128xbf16>
    %34 = vector.shape_cast %33 : vector<2x8x8x128xbf16> to vector<128x128xbf16>
    %35 = tpu.concatenate %22, %24, %26, %28, %30, %32, %34 in 1 : vector<128x128xbf16>, vector<128x128xbf16>, vector<128x128xbf16>, vector<128x128xbf16>, vector<128x128xbf16>, vector<128x128xbf16>, vector<128x128xbf16> -> vector<128x896xbf16>
    %c0_44 = arith.constant 0 : index
    %c0_45 = arith.constant 0 : index
    %36 = vector.load %arg5[%c0_44, %c0_45] : memref<896x160xbf16, #tpu.memory_space<vmem>>, vector<896x160xbf16>
    %cst_46 = arith.constant dense<0.000000e+00> : vector<128x160xf32>
    %37 = tpu.matmul %35, %36, %cst_46 {dimension_numbers = #tpu.dot_dimension_numbers<[1], [0], [0], [1], [0, 0, 1, 1], [], []>} : vector<128x896xbf16>, vector<896x160xbf16>, vector<128x160xf32> -> vector<128x160xf32>
    %c0_47 = arith.constant 0 : index
    %c0_48 = arith.constant 0 : index
    %38 = vector.load %arg6[%c0_47, %c0_48] : memref<1x160xf32, #tpu.memory_space<vmem>>, vector<1x160xf32>
    %39 = vector.broadcast %38 : vector<1x160xf32> to vector<128x160xf32>
    %40 = arith.mulf %37, %39 : vector<128x160xf32>
    %c0_49 = arith.constant 0 : index
    %c0_50 = arith.constant 0 : index
    %41 = vector.load %arg7[%c0_49, %c0_50] : memref<1x160xf32, #tpu.memory_space<vmem>>, vector<1x160xf32>
    %42 = vector.broadcast %41 : vector<1x160xf32> to vector<128x160xf32>
    %43 = arith.addf %40, %42 : vector<128x160xf32>
    %cst_51 = arith.constant 0.000000e+00 : f32
    %44 = vector.broadcast %cst_51 : f32 to vector<128x160xf32>
    %45 = arith.maximumf %43, %44 : vector<128x160xf32>
    %cst_52 = arith.constant 0.000000e+00 : bf16
    %46 = vector.broadcast %cst_52 : bf16 to vector<2x3x8x160xbf16>
    %c0_53 = arith.constant 0 : index
    %c0_54 = arith.constant 0 : index
    %c0_55 = arith.constant 0 : index
    %c0_56 = arith.constant 0 : index
    %47 = vector.load %arg15[%c0_53, %c0_54, %c0_55, %c0_56] : memref<2x14x8x160xbf16, #tpu.memory_space<vmem>>, vector<2x3x8x160xbf16>
    tpu.vector_store %arg15[%c0_53, %c0_54, %c0_55, %c0_56], %46 {strides = array<i32>} : memref<2x14x8x160xbf16, #tpu.memory_space<vmem>>, vector<2x3x8x160xbf16>,
    %cst_57 = arith.constant 0.000000e+00 : bf16
    %48 = vector.broadcast %cst_57 : bf16 to vector<2x3x8x160xbf16>
    %c0_58 = arith.constant 0 : index
    %c11_59 = arith.constant 11 : index
    %c0_60 = arith.constant 0 : index
    %c0_61 = arith.constant 0 : index
    %49 = vector.load %arg15[%c0_58, %c11_59, %c0_60, %c0_61] : memref<2x14x8x160xbf16, #tpu.memory_space<vmem>>, vector<2x3x8x160xbf16>
    tpu.vector_store %arg15[%c0_58, %c11_59, %c0_60, %c0_61], %48 {strides = array<i32>} : memref<2x14x8x160xbf16, #tpu.memory_space<vmem>>, vector<2x3x8x160xbf16>,
    %50 = arith.truncf %45 : vector<128x160xf32> to vector<128x160xbf16>
    %51 = vector.shape_cast %50 : vector<128x160xbf16> to vector<2x8x8x160xbf16>
    %c0_62 = arith.constant 0 : index
    %c3_63 = arith.constant 3 : index
    %c0_64 = arith.constant 0 : index
    %c0_65 = arith.constant 0 : index
    %52 = vector.load %arg15[%c0_62, %c3_63, %c0_64, %c0_65] : memref<2x14x8x160xbf16, #tpu.memory_space<vmem>>, vector<2x8x8x160xbf16>
    tpu.vector_store %arg15[%c0_62, %c3_63, %c0_64, %c0_65], %51 {strides = array<i32>} : memref<2x14x8x160xbf16, #tpu.memory_space<vmem>>, vector<2x8x8x160xbf16>,
    %cst_66 = arith.constant 0.000000e+00 : f32
    %53 = vector.broadcast %cst_66 : f32 to vector<128x192xf32>
    %c0_67 = arith.constant 0 : index
    %c0_68 = arith.constant 0 : index
    %c0_69 = arith.constant 0 : index
    %c0_70 = arith.constant 0 : index
    %54 = vector.load %arg15[%c0_67, %c0_68, %c0_69, %c0_70] : memref<2x14x8x160xbf16, #tpu.memory_space<vmem>>, vector<2x8x8x160xbf16>
    %55 = vector.shape_cast %54 : vector<2x8x8x160xbf16> to vector<128x160xbf16>
    %c0_71 = arith.constant 0 : index
    %c0_72 = arith.constant 0 : index
    %c0_73 = arith.constant 0 : index
    %56 = vector.load %arg8[%c0_71, %c0_72, %c0_73] : memref<7x160x192xbf16, #tpu.memory_space<vmem>>, vector<1x160x192xbf16>
    %57 = vector.shape_cast %56 : vector<1x160x192xbf16> to vector<160x192xbf16>
    %cst_74 = arith.constant dense<0.000000e+00> : vector<128x192xf32>
    %58 = tpu.matmul %55, %57, %cst_74 {dimension_numbers = #tpu.dot_dimension_numbers<[1], [0], [0], [1], [0, 0, 1, 1], [], []>} : vector<128x160xbf16>, vector<160x192xbf16>, vector<128x192xf32> -> vector<128x192xf32>
    %59 = arith.addf %53, %58 : vector<128x192xf32>
    %c0_75 = arith.constant 0 : index
    %c1_76 = arith.constant 1 : index
    %c0_77 = arith.constant 0 : index
    %c0_78 = arith.constant 0 : index
    %60 = vector.load %arg15[%c0_75, %c1_76, %c0_77, %c0_78] : memref<2x14x8x160xbf16, #tpu.memory_space<vmem>>, vector<2x8x8x160xbf16>
    %61 = vector.shape_cast %60 : vector<2x8x8x160xbf16> to vector<128x160xbf16>
    %c1_79 = arith.constant 1 : index
    %c0_80 = arith.constant 0 : index
    %c0_81 = arith.constant 0 : index
    %62 = vector.load %arg8[%c1_79, %c0_80, %c0_81] : memref<7x160x192xbf16, #tpu.memory_space<vmem>>, vector<1x160x192xbf16>
    %63 = vector.shape_cast %62 : vector<1x160x192xbf16> to vector<160x192xbf16>
    %cst_82 = arith.constant dense<0.000000e+00> : vector<128x192xf32>
    %64 = tpu.matmul %61, %63, %cst_82 {dimension_numbers = #tpu.dot_dimension_numbers<[1], [0], [0], [1], [0, 0, 1, 1], [], []>} : vector<128x160xbf16>, vector<160x192xbf16>, vector<128x192xf32> -> vector<128x192xf32>
    %65 = arith.addf %59, %64 : vector<128x192xf32>
    %c0_83 = arith.constant 0 : index
    %c2_84 = arith.constant 2 : index
    %c0_85 = arith.constant 0 : index
    %c0_86 = arith.constant 0 : index
    %66 = vector.load %arg15[%c0_83, %c2_84, %c0_85, %c0_86] : memref<2x14x8x160xbf16, #tpu.memory_space<vmem>>, vector<2x8x8x160xbf16>
    %67 = vector.shape_cast %66 : vector<2x8x8x160xbf16> to vector<128x160xbf16>
    %c2_87 = arith.constant 2 : index
    %c0_88 = arith.constant 0 : index
    %c0_89 = arith.constant 0 : index
    %68 = vector.load %arg8[%c2_87, %c0_88, %c0_89] : memref<7x160x192xbf16, #tpu.memory_space<vmem>>, vector<1x160x192xbf16>
    %69 = vector.shape_cast %68 : vector<1x160x192xbf16> to vector<160x192xbf16>
    %cst_90 = arith.constant dense<0.000000e+00> : vector<128x192xf32>
    %70 = tpu.matmul %67, %69, %cst_90 {dimension_numbers = #tpu.dot_dimension_numbers<[1], [0], [0], [1], [0, 0, 1, 1], [], []>} : vector<128x160xbf16>, vector<160x192xbf16>, vector<128x192xf32> -> vector<128x192xf32>
    %71 = arith.addf %65, %70 : vector<128x192xf32>
    %c0_91 = arith.constant 0 : index
    %c3_92 = arith.constant 3 : index
    %c0_93 = arith.constant 0 : index
    %c0_94 = arith.constant 0 : index
    %72 = vector.load %arg15[%c0_91, %c3_92, %c0_93, %c0_94] : memref<2x14x8x160xbf16, #tpu.memory_space<vmem>>, vector<2x8x8x160xbf16>
    %73 = vector.shape_cast %72 : vector<2x8x8x160xbf16> to vector<128x160xbf16>
    %c3_95 = arith.constant 3 : index
    %c0_96 = arith.constant 0 : index
    %c0_97 = arith.constant 0 : index
    %74 = vector.load %arg8[%c3_95, %c0_96, %c0_97] : memref<7x160x192xbf16, #tpu.memory_space<vmem>>, vector<1x160x192xbf16>
    %75 = vector.shape_cast %74 : vector<1x160x192xbf16> to vector<160x192xbf16>
    %cst_98 = arith.constant dense<0.000000e+00> : vector<128x192xf32>
    %76 = tpu.matmul %73, %75, %cst_98 {dimension_numbers = #tpu.dot_dimension_numbers<[1], [0], [0], [1], [0, 0, 1, 1], [], []>} : vector<128x160xbf16>, vector<160x192xbf16>, vector<128x192xf32> -> vector<128x192xf32>
    %77 = arith.addf %71, %76 : vector<128x192xf32>
    %c0_99 = arith.constant 0 : index
    %c4_100 = arith.constant 4 : index
    %c0_101 = arith.constant 0 : index
    %c0_102 = arith.constant 0 : index
    %78 = vector.load %arg15[%c0_99, %c4_100, %c0_101, %c0_102] : memref<2x14x8x160xbf16, #tpu.memory_space<vmem>>, vector<2x8x8x160xbf16>
    %79 = vector.shape_cast %78 : vector<2x8x8x160xbf16> to vector<128x160xbf16>
    %c4_103 = arith.constant 4 : index
    %c0_104 = arith.constant 0 : index
    %c0_105 = arith.constant 0 : index
    %80 = vector.load %arg8[%c4_103, %c0_104, %c0_105] : memref<7x160x192xbf16, #tpu.memory_space<vmem>>, vector<1x160x192xbf16>
    %81 = vector.shape_cast %80 : vector<1x160x192xbf16> to vector<160x192xbf16>
    %cst_106 = arith.constant dense<0.000000e+00> : vector<128x192xf32>
    %82 = tpu.matmul %79, %81, %cst_106 {dimension_numbers = #tpu.dot_dimension_numbers<[1], [0], [0], [1], [0, 0, 1, 1], [], []>} : vector<128x160xbf16>, vector<160x192xbf16>, vector<128x192xf32> -> vector<128x192xf32>
    %83 = arith.addf %77, %82 : vector<128x192xf32>
    %c0_107 = arith.constant 0 : index
    %c5_108 = arith.constant 5 : index
    %c0_109 = arith.constant 0 : index
    %c0_110 = arith.constant 0 : index
    %84 = vector.load %arg15[%c0_107, %c5_108, %c0_109, %c0_110] : memref<2x14x8x160xbf16, #tpu.memory_space<vmem>>, vector<2x8x8x160xbf16>
    %85 = vector.shape_cast %84 : vector<2x8x8x160xbf16> to vector<128x160xbf16>
    %c5_111 = arith.constant 5 : index
    %c0_112 = arith.constant 0 : index
    %c0_113 = arith.constant 0 : index
    %86 = vector.load %arg8[%c5_111, %c0_112, %c0_113] : memref<7x160x192xbf16, #tpu.memory_space<vmem>>, vector<1x160x192xbf16>
    %87 = vector.shape_cast %86 : vector<1x160x192xbf16> to vector<160x192xbf16>
    %cst_114 = arith.constant dense<0.000000e+00> : vector<128x192xf32>
    %88 = tpu.matmul %85, %87, %cst_114 {dimension_numbers = #tpu.dot_dimension_numbers<[1], [0], [0], [1], [0, 0, 1, 1], [], []>} : vector<128x160xbf16>, vector<160x192xbf16>, vector<128x192xf32> -> vector<128x192xf32>
    %89 = arith.addf %83, %88 : vector<128x192xf32>
    %c0_115 = arith.constant 0 : index
    %c6_116 = arith.constant 6 : index
    %c0_117 = arith.constant 0 : index
    %c0_118 = arith.constant 0 : index
    %90 = vector.load %arg15[%c0_115, %c6_116, %c0_117, %c0_118] : memref<2x14x8x160xbf16, #tpu.memory_space<vmem>>, vector<2x8x8x160xbf16>
    %91 = vector.shape_cast %90 : vector<2x8x8x160xbf16> to vector<128x160xbf16>
    %c6_119 = arith.constant 6 : index
    %c0_120 = arith.constant 0 : index
    %c0_121 = arith.constant 0 : index
    %92 = vector.load %arg8[%c6_119, %c0_120, %c0_121] : memref<7x160x192xbf16, #tpu.memory_space<vmem>>, vector<1x160x192xbf16>
    %93 = vector.shape_cast %92 : vector<1x160x192xbf16> to vector<160x192xbf16>
    %cst_122 = arith.constant dense<0.000000e+00> : vector<128x192xf32>
    %94 = tpu.matmul %91, %93, %cst_122 {dimension_numbers = #tpu.dot_dimension_numbers<[1], [0], [0], [1], [0, 0, 1, 1], [], []>} : vector<128x160xbf16>, vector<160x192xbf16>, vector<128x192xf32> -> vector<128x192xf32>
    %95 = arith.addf %89, %94 : vector<128x192xf32>
    %c0_123 = arith.constant 0 : index
    %c0_124 = arith.constant 0 : index
    %96 = vector.load %arg9[%c0_123, %c0_124] : memref<1x192xf32, #tpu.memory_space<vmem>>, vector<1x192xf32>
    %97 = vector.broadcast %96 : vector<1x192xf32> to vector<128x192xf32>
    %98 = arith.mulf %95, %97 : vector<128x192xf32>
    %c0_125 = arith.constant 0 : index
    %c0_126 = arith.constant 0 : index
    %99 = vector.load %arg10[%c0_125, %c0_126] : memref<1x192xf32, #tpu.memory_space<vmem>>, vector<1x192xf32>
    %100 = vector.broadcast %99 : vector<1x192xf32> to vector<128x192xf32>
    %101 = arith.addf %98, %100 : vector<128x192xf32>
    %cst_127 = arith.constant 0.000000e+00 : f32
    %102 = vector.broadcast %cst_127 : f32 to vector<128x192xf32>
    %103 = arith.maximumf %101, %102 : vector<128x192xf32>
    %104 = arith.truncf %13 : vector<128x192xf32> to vector<128x192xbf16>
    %c0_128 = arith.constant 0 : index
    %c0_129 = arith.constant 0 : index
    %c0_130 = arith.constant 0 : index
    %105 = vector.load %arg11[%c0_128, %c0_129, %c0_130] : memref<2x192x1088xbf16, #tpu.memory_space<vmem>>, vector<1x192x1088xbf16>
    %106 = vector.shape_cast %105 : vector<1x192x1088xbf16> to vector<192x1088xbf16>
    %cst_131 = arith.constant dense<0.000000e+00> : vector<128x1088xf32>
    %107 = tpu.matmul %104, %106, %cst_131 {dimension_numbers = #tpu.dot_dimension_numbers<[1], [0], [0], [1], [0, 0, 1, 1], [], []>} : vector<128x192xbf16>, vector<192x1088xbf16>, vector<128x1088xf32> -> vector<128x1088xf32>
    %108 = arith.truncf %103 : vector<128x192xf32> to vector<128x192xbf16>
    %c1_132 = arith.constant 1 : index
    %c0_133 = arith.constant 0 : index
    %c0_134 = arith.constant 0 : index
    %109 = vector.load %arg11[%c1_132, %c0_133, %c0_134] : memref<2x192x1088xbf16, #tpu.memory_space<vmem>>, vector<1x192x1088xbf16>
    %110 = vector.shape_cast %109 : vector<1x192x1088xbf16> to vector<192x1088xbf16>
    %cst_135 = arith.constant dense<0.000000e+00> : vector<128x1088xf32>
    %111 = tpu.matmul %108, %110, %cst_135 {dimension_numbers = #tpu.dot_dimension_numbers<[1], [0], [0], [1], [0, 0, 1, 1], [], []>} : vector<128x192xbf16>, vector<192x1088xbf16>, vector<128x1088xf32> -> vector<128x1088xf32>
    %112 = arith.addf %107, %111 : vector<128x1088xf32>
    %c0_136 = arith.constant 0 : index
    %c0_137 = arith.constant 0 : index
    %113 = vector.load %arg12[%c0_136, %c0_137] : memref<1x1088xf32, #tpu.memory_space<vmem>>, vector<1x1088xf32>
    %114 = vector.broadcast %113 : vector<1x1088xf32> to vector<128x1088xf32>
    %115 = arith.addf %112, %114 : vector<128x1088xf32>
    %c0_138 = arith.constant 0 : index
    %c0_139 = arith.constant 0 : index
    %c0_140 = arith.constant 0 : index
    %116 = vector.load %arg1[%c0_138, %c0_139, %c0_140] : memref<2x64x1088xbf16, #tpu.memory_space<vmem>>, vector<2x64x1088xbf16>
    %117 = vector.shape_cast %116 : vector<2x64x1088xbf16> to vector<128x1088xbf16>
    %118 = arith.extf %117 : vector<128x1088xbf16> to vector<128x1088xf32>
    %cst_141 = arith.constant 1.700000e-01 : f32
    %119 = vector.broadcast %cst_141 : f32 to vector<128x1088xf32>
    %120 = arith.mulf %115, %119 : vector<128x1088xf32>
    %121 = arith.addf %120, %118 : vector<128x1088xf32>
    %cst_142 = arith.constant 0.000000e+00 : f32
    %122 = vector.broadcast %cst_142 : f32 to vector<128x1088xf32>
    %123 = arith.maximumf %121, %122 : vector<128x1088xf32>
    %124 = arith.truncf %123 : vector<128x1088xf32> to vector<128x1088xbf16>
    %125 = vector.shape_cast %124 : vector<128x1088xbf16> to vector<2x64x1088xbf16>
    %c0_143 = arith.constant 0 : index
    %c0_144 = arith.constant 0 : index
    %c0_145 = arith.constant 0 : index
    %126 = vector.load %arg13[%c0_143, %c0_144, %c0_145] : memref<2x64x1088xbf16, #tpu.memory_space<vmem>>, vector<2x64x1088xbf16>
    tpu.vector_store %arg13[%c0_143, %c0_144, %c0_145], %125 {strides = array<i32>} : memref<2x64x1088xbf16, #tpu.memory_space<vmem>>, vector<2x64x1088xbf16>,
    return
  }
  func.func @transform_0(%arg0: i32) -> (i32, i32, i32) {
    %c0_i32 = arith.constant 0 : i32
    %c0_i32_0 = arith.constant 0 : i32
    %c0_i32_1 = arith.constant 0 : i32
    return %arg0, %c0_i32, %c0_i32_0 : i32, i32, i32
  }
  func.func @transform_1(%arg0: i32) -> (i32, i32) {
    %c0_i32 = arith.constant 0 : i32
    %c0_i32_0 = arith.constant 0 : i32
    %c0_i32_1 = arith.constant 0 : i32
    return %c0_i32, %c0_i32_0 : i32, i32
  }
  func.func @transform_2(%arg0: i32) -> (i32, i32) {
    %c0_i32 = arith.constant 0 : i32
    %c0_i32_0 = arith.constant 0 : i32
    %c0_i32_1 = arith.constant 0 : i32
    return %c0_i32, %c0_i32_0 : i32, i32
  }
  func.func @transform_3(%arg0: i32) -> (i32, i32) {
    %c0_i32 = arith.constant 0 : i32
    %c0_i32_0 = arith.constant 0 : i32
    %c0_i32_1 = arith.constant 0 : i32
    return %c0_i32, %c0_i32_0 : i32, i32
  }
  func.func @transform_4(%arg0: i32) -> (i32, i32) {
    %c0_i32 = arith.constant 0 : i32
    %c0_i32_0 = arith.constant 0 : i32
    %c0_i32_1 = arith.constant 0 : i32
    return %c0_i32, %c0_i32_0 : i32, i32
  }
  func.func @transform_5(%arg0: i32) -> (i32, i32) {
    %c0_i32 = arith.constant 0 : i32
    %c0_i32_0 = arith.constant 0 : i32
    %c0_i32_1 = arith.constant 0 : i32
    return %c0_i32, %c0_i32_0 : i32, i32
  }
  func.func @transform_6(%arg0: i32) -> (i32, i32) {
    %c0_i32 = arith.constant 0 : i32
    %c0_i32_0 = arith.constant 0 : i32
    %c0_i32_1 = arith.constant 0 : i32
    return %c0_i32, %c0_i32_0 : i32, i32
  }
  func.func @transform_7(%arg0: i32) -> (i32, i32, i32) {
    %c0_i32 = arith.constant 0 : i32
    %c0_i32_0 = arith.constant 0 : i32
    %c0_i32_1 = arith.constant 0 : i32
    %c0_i32_2 = arith.constant 0 : i32
    return %c0_i32, %c0_i32_0, %c0_i32_1 : i32, i32, i32
  }
  func.func @transform_8(%arg0: i32) -> (i32, i32) {
    %c0_i32 = arith.constant 0 : i32
    %c0_i32_0 = arith.constant 0 : i32
    %c0_i32_1 = arith.constant 0 : i32
    return %c0_i32, %c0_i32_0 : i32, i32
  }
  func.func @transform_9(%arg0: i32) -> (i32, i32) {
    %c0_i32 = arith.constant 0 : i32
    %c0_i32_0 = arith.constant 0 : i32
    %c0_i32_1 = arith.constant 0 : i32
    return %c0_i32, %c0_i32_0 : i32, i32
  }
  func.func @transform_10(%arg0: i32) -> (i32, i32, i32) {
    %c0_i32 = arith.constant 0 : i32
    %c0_i32_0 = arith.constant 0 : i32
    %c0_i32_1 = arith.constant 0 : i32
    %c0_i32_2 = arith.constant 0 : i32
    return %c0_i32, %c0_i32_0, %c0_i32_1 : i32, i32, i32
  }
  func.func @transform_11(%arg0: i32) -> (i32, i32) {
    %c0_i32 = arith.constant 0 : i32
    %c0_i32_0 = arith.constant 0 : i32
    %c0_i32_1 = arith.constant 0 : i32
    return %c0_i32, %c0_i32_0 : i32, i32
  }
  func.func @transform_12(%arg0: i32) -> (i32, i32, i32) {
    %c0_i32 = arith.constant 0 : i32
    %c0_i32_0 = arith.constant 0 : i32
    %c0_i32_1 = arith.constant 0 : i32
    return %arg0, %c0_i32, %c0_i32_0 : i32, i32, i32
  }
}

</mosaic_0001>

<bundles_post_ra>
// kernel: block17_forward.1
= control target key start
LH: loop header
LB: loop body
LE: loop exit
PB: predicated region body
PF: predicated region fallthrough
CT: control target
= control target key end

     0   :  { %s23144_s0 = inlined_call_operand.vmem [shape: bf16[4,64,1088], index: 0, kind: input, shape index: {}]   ;;  %s23145_s1 = inlined_call_operand.vmem [shape: bf16[1088,320], index: 1, kind: input, shape index: {}]   ;;  %s23146_s2 = inlined_call_operand.vmem [shape: f32[1,320], index: 2, kind: input, shape index: {}]   ;;  %s23147_s3 = inlined_call_operand.vmem [shape: f32[1,320], index: 3, kind: input, shape index: {}]   ;;  %s23148_s4 = inlined_call_operand.vmem [shape: bf16[896,160], index: 4, kind: input, shape index: {}]   ;;  %s23149_s5 = inlined_call_operand.vmem [shape: f32[1,160], index: 5, kind: input, shape index: {}]   ;;  %s23150_s6 = inlined_call_operand.vmem [shape: f32[1,160], index: 6, kind: input, shape index: {}]   ;;  %s23151_s7 = inlined_call_operand.hbm [shape: bf16[7,160,192], index: 7, kind: input, shape index: {}]   ;;  %s23152_s8 = inlined_call_operand.vmem [shape: f32[1,192], index: 8, kind: input, shape index: {}]   ;;  %s23153_s9 = inlined_call_operand.vmem [shape: f32[1,192], index: 9, kind: input, shape index: {}]   ;;  %s23154_s10 = inlined_call_operand.vmem [shape: bf16[2,192,1088], index: 10, kind: input, shape index: {}]   ;;  %s23155_s11 = inlined_call_operand.vmem [shape: f32[1,1088], index: 11, kind: input, shape index: {}]   ;;  %s23156_s12 = inlined_call_operand.hbm [shape: bf16[4,64,1088], index: 12, kind: output, shape index: {}]  }
   0x1   :  { %23235 = sst [smem:[#allocation153_spill]] %s23151_s7 }
   0x2   :  { %17 = vsyncpa [#allocation5], 0 }
   0x3   :  { %18 = vsyncpa [#allocation6], 0 }
   0x4   :  { %20 = vsyncpa [#allocation6 + $0x1], 0  ;;  %s16630_s21 = smov 0   ;;  %s16632_s22 = smov 0  }
   0x5   :  { %s16634_s23 = smov 0   ;;  %s16636_s24 = smov 0  }
   0x6 LB: > { %23236 = sst [smem:[#allocation10_spill]] %s16552_s23  ;;  %s16651_s25 = sadd.s32 4294967295, %s16556_s24   ;;  %s16556_s24 = sphi %s16636_s24, %s23961_s24   ;;  %s16552_s23 = sphi %s16634_s23, %s23960_s23   ;;  %s16548_s22 = sphi %s16632_s22, %s23959_s22   ;;  %s16544_s21 = sphi %s16630_s21, %s23958_s21  }
   0x7   : > { %s13437_s26 = sadd.s32 4294967294, %s16556_s24   ;;  %s16655_s27 = sadd.s32 1, %s16556_s24  }
   0x8   : > { %s290_s28 = sadd.s32 1, %s16552_s23  ;;  %s287_s29 = ssub.s32 %s16556_s24, %s16655_s27 }
   0x9   : > { %p300_p0 = scmp.ne.s32.totalorder %s16552_s23, %s16548_s22  ;;  %p288_p1 = scmp.eq.s32.totalorder %s287_s29, 0 }
   0xa   : > { %p301_p2 = scmp.eq.s32.totalorder %s16651_s25, 1  ;;  %p306_p3 = scmp.ne.s32.totalorder %s16548_s22, %s16544_s21 }
   0xb   : > { %p307_p4 = scmp.eq.s32.totalorder %s13437_s26, 1  ;;  %p13438_p7 = scmp.ge.s32.totalorder %s16556_s24, 1 }
   0xc   : > { %s16666_s30 = scalar_select %p288_p1, %s16552_s23, %s290_s28  }
   0xd   : > { %p16668_p5 = por %p301_p2, %p300_p0  ;;  %p16672_p6 = por %p307_p4, %p306_p3 }
   0xe   : > { %23237 = sst [smem:[#allocation11_spill]] %s16666_s30  ;;  %p314_p8 = scmp.lt.s32.totalorder %s16556_s24, 3 }
   0xf   : > { %s23239_s14 = scalar_select %p16672_p6, 1, 0 }
  0x10   : > { %p15224_p9 = scmp.eq.s32.totalorder %s16651_s25, 0  ;;  %p16679_p10 = pnand %p13438_p7, %p314_p8 }
  0x11   : > { %s16558_s16 = smov [#allocation4]  }
  0x12   : > { %s344_s17 = sshll.u32 %s16558_s16, 4  ;;  %p15216_p11 = pneg %p16679_p10  ;;  %s345_s17 = int_to_ptr.vmem [resolvable:$true] %s344_s17 }
  0x13   : > { %s16477_s18 = scalar_lea.vmem %s345_s17, 17920  ;;  %p16485_p3 = scmp.lt.s32.totalorder %s345_s17, %s345_s17 }
  0x14   : > { %p15217_p12 = pnand %p15224_p9, %p15216_p11  ;;  %p16478_p0 = scmp.ne.s32.totalorder %s345_s17, %s16477_s18 }
  0x15   : > { %p16486_p4 = scmp.lt.s32.totalorder %s16477_s18, %s16477_s18 }
  0x16   : > { %p16468_p13 = pneg %p15217_p12 }
  0x17   : > { %p16487_p6 = por %p16486_p4, %p16485_p3 }
  0x18   : > { %p16480_p1 = pnand %p16478_p0, %p16468_p13 }
  0x1a   : > { %p16481_p2 = pneg %p16480_p1 }
  0x1c   : > { %p16488_p7 = pnand %p16487_p6, %p16481_p2 }
  0x1e   : > { %16491 = shalt.err (!%p16488_p7)
}
  0x1f   : > { %s16559_s19 = smov 128   ;;  %s16560_s20 = smov 8  }
  0x20   : > { %s23241_s7 = sld [smem:[#allocation153_spill]] }
  0x22   : > { %382 = sbr.rel (%p16679_p10) target bundleno = 1853 (0x73d), region = 68 }
  0x26   : > { %15219 = dma.hbm_to_vmem [thread:$0]  (!%p15217_p12), %s23241_s7, 17920, %s345_s17, [#allocation5], %s16559_s19, %s16559_s19, %s16560_s20  }
  0x27   : > { %16535 = dma.done.wait (%p15224_p9), [#allocation5], 17920  }
  0x28   : > { %16537 = vsyncadd (%p15224_p9), [#allocation5], 4294949376  ;;  %v15265_v0 = vld [vmem:[%s23145_s1 + $0xac] ss:$12 sps:$4 sm:$0xff]   ;;  %v15269_v2 = vld [vmem:[%s23145_s1 + $0xa8] ss:$12 sps:$4 sm:$0xff]  }
  0x29   : > { %v15267_v1 = vld [vmem:[%s23145_s1 + $0x22c] ss:$12 sps:$4 sm:$0xff]   ;;  %2259 = vmatprep.subr.bf16.mxu0 %v15265_v0  ;;  %v15270_v3 = vld [vmem:[%s23145_s1 + $0x228] ss:$12 sps:$4 sm:$0xff]   ;;  %v15275_v6 = vld [vmem:[%s23145_s1 + $0x90] ss:$12 sps:$4 sm:$0xff]  }
  0x2a   : > { %2372 = vmatprep.subr.bf16.mxu1 %v15267_v1  ;;  %v15271_v4 = vld [vmem:[%s23145_s1 + $0x94] ss:$12 sps:$4 sm:$0xff]   ;;  %2260 = vmatpush1.bf16.msra.mxu0 %v15269_v2  ;;  %v15276_v7 = vld [vmem:[%s23145_s1 + $0x210] ss:$12 sps:$4 sm:$0xff]   ;;  %v15281_v10 = vld [vmem:[%s23145_s1 + $0x78] ss:$12 sps:$4 sm:$0xff]  }
  0x2b   : > { %2373 = vmatpush1.bf16.msra.mxu1 %v15270_v3  ;;  %v15273_v5 = vld [vmem:[%s23145_s1 + $0x214] ss:$12 sps:$4 sm:$0xff]   ;;  %2261 = vmatprep.subr.bf16.mxu0 %v15271_v4  ;;  %v15277_v8 = vld [vmem:[%s23145_s1 + $0x7c] ss:$12 sps:$4 sm:$0xff]   ;;  %v15282_v11 = vld [vmem:[%s23145_s1 + $0x1f8] ss:$12 sps:$4 sm:$0xff]  }
  0x2c   : > { %2374 = vmatprep.subr.bf16.mxu1 %v15273_v5  ;;  %v15279_v9 = vld [vmem:[%s23145_s1 + $0x1fc] ss:$12 sps:$4 sm:$0xff]   ;;  %v15283_v12 = vld [vmem:[%s23145_s1 + $0x64] ss:$12 sps:$4 sm:$0xff]   ;;  %v15287_v14 = vld [vmem:[%s23145_s1 + $0x60] ss:$12 sps:$4 sm:$0xff]  }
  0x2d   : > { %v15285_v13 = vld [vmem:[%s23145_s1 + $0x1e4] ss:$12 sps:$4 sm:$0xff]   ;;  %v15288_v15 = vld [vmem:[%s23145_s1 + $0x1e0] ss:$12 sps:$4 sm:$0xff]   ;;  %v15293_v18 = vld [vmem:[%s23145_s1 + $0x48] ss:$12 sps:$4 sm:$0xff]  }
  0x2e   : > { %2262 = vmatpush1.bf16.msra.mxu0 %v15275_v6  ;;  %v15289_v16 = vld [vmem:[%s23145_s1 + $0x4c] ss:$12 sps:$4 sm:$0xff]   ;;  %v15294_v19 = vld [vmem:[%s23145_s1 + $0x1c8] ss:$12 sps:$4 sm:$0xff]   ;;  %v15299_v22 = vld [vmem:[%s23145_s1 + $0x30] ss:$12 sps:$4 sm:$0xff]  }
  0x2f   : > { %2375 = vmatpush1.bf16.msra.mxu1 %v15276_v7  ;;  %2263 = vmatprep.subr.bf16.mxu0 %v15277_v8  ;;  %v15291_v17 = vld [vmem:[%s23145_s1 + $0x1cc] ss:$12 sps:$4 sm:$0xff]   ;;  %v15295_v20 = vld [vmem:[%s23145_s1 + $0x34] ss:$12 sps:$4 sm:$0xff]   ;;  %v15300_v23 = vld [vmem:[%s23145_s1 + $0x1b0] ss:$12 sps:$4 sm:$0xff]  }
  0x30   : > { %2376 = vmatprep.subr.bf16.mxu1 %v15279_v9  ;;  %v15297_v21 = vld [vmem:[%s23145_s1 + $0x1b4] ss:$12 sps:$4 sm:$0xff]   ;;  %v15301_v24 = vld [vmem:[%s23145_s1 + $0x1c] ss:$12 sps:$4 sm:$0xff]   ;;  %v15305_v26 = vld [vmem:[%s23145_s1 + $0x18] ss:$12 sps:$4 sm:$0xff]  }
  0x31   : > { %v15303_v25 = vld [vmem:[%s23145_s1 + $0x19c] ss:$12 sps:$4 sm:$0xff]   ;;  %v15306_v27 = vld [vmem:[%s23145_s1 + $0x198] ss:$12 sps:$4 sm:$0xff]   ;;  %s13443_s29 = sshll.u32 %s16651_s25, 1  ;;  %vm2234_vm0 = vcmask 523264  }
  0x32   : > { %2264 = vmatpush1.bf16.msra.mxu0 %v15281_v10  ;;  %v15307_v28 = vld [vmem:[%s23145_s1 + $0x4] ss:$12 sps:$4 sm:$0xff]   ;;  %v15311_v30 = vld [vmem:[%s23145_s1] ss:$12 sps:$4 sm:$0xff]   ;;  %p426_p6 = scmp.lt.s32.totalorder %s13443_s29, 3  ;;  %vm3487_vm1 = vcmask 1041408  }
  0x33   : > { %2377 = vmatpush1.bf16.msra.mxu1 %v15282_v11  ;;  %2265 = vmatprep.subr.bf16.mxu0 %v15283_v12  ;;  %v15309_v29 = vld [vmem:[%s23145_s1 + $0x184] ss:$12 sps:$4 sm:$0xff]   ;;  %v15312_v31 = vld [vmem:[%s23145_s1 + $0x180] ss:$12 sps:$4 sm:$0xff]   ;;  %v15317_v34 = vld [vmem:[%s23145_s1 + $0x168] ss:$12 sps:$4 sm:$0xff]  }
  0x34   : > { %2378 = vmatprep.subr.bf16.mxu1 %v15285_v13  ;;  %v15313_v32 = vld [vmem:[%s23145_s1 + $0x16c] ss:$12 sps:$4 sm:$0xff]   ;;  %v15318_v35 = vld [vmem:[%s23145_s1 + $0x2e8] ss:$12 sps:$4 sm:$0xff]   ;;  %s23963_s29 = smov (!%p426_p6, %s13443_s29), 3  ;;  %vm3538_vm4 = vcmask 1042433  }
  0x35   : > { %v15315_v33 = vld [vmem:[%s23145_s1 + $0x2ec] ss:$12 sps:$4 sm:$0xff]   ;;  %v15319_v36 = vld [vmem:[%s23145_s1 + $0x154] ss:$12 sps:$4 sm:$0xff]   ;;  %v15323_v38 = vld [vmem:[%s23145_s1 + $0x150] ss:$12 sps:$4 sm:$0xff]  }
  0x36   : > { %2266 = vmatpush1.bf16.msra.mxu0 %v15287_v14  ;;  %v15321_v37 = vld [vmem:[%s23145_s1 + $0x2d4] ss:$12 sps:$4 sm:$0xff]   ;;  %v15324_v39 = vld [vmem:[%s23145_s1 + $0x2d0] ss:$12 sps:$4 sm:$0xff]   ;;  %s15208_s18 = smul.u32 288, %s23963_s29  ;;  %vm3813_vm7 = vcmask 1043457  }
  0x37   : > { %2379 = vmatpush1.bf16.msra.mxu1 %v15288_v15  ;;  %2267 = vmatprep.subr.bf16.mxu0 %v15289_v16  ;;  %v15325_v40 = vld [vmem:[%s23145_s1 + $0x13c] ss:$12 sps:$4 sm:$0xff]   ;;  %v15329_v42 = vld [vmem:[%s23145_s1 + $0x138] ss:$12 sps:$4 sm:$0xff]   ;;  %v15335_v46 = vld [vmem:[%s23145_s1 + $0x120] ss:$12 sps:$4 sm:$0xff]  }
  0x38   : > { %2380 = vmatprep.subr.bf16.mxu1 %v15291_v17  ;;  %v15327_v41 = vld [vmem:[%s23145_s1 + $0x2bc] ss:$12 sps:$4 sm:$0xff]   ;;  %v15330_v43 = vld [vmem:[%s23145_s1 + $0x2b8] ss:$12 sps:$4 sm:$0xff]   ;;  %s16835_s30 = scalar_lea.vmem %s23144_s0, %s15208_s18  ;;  %v15336_v47 = vld [vmem:[%s23145_s1 + $0x2a0] ss:$12 sps:$4 sm:$0xff]  }
  0x39   : > { %v15331_v44 = vld [vmem:[%s23145_s1 + $0x124] ss:$12 sps:$4 sm:$0xff]   ;;  %v15337_v48 = vld [vmem:[%s23145_s1 + $0x10c] ss:$12 sps:$4 sm:$0xff]   ;;  %v15341_v52 = vld [vmem:[%s23145_s1 + $0x108] ss:$12 sps:$4 sm:$0xff]  }
  0x3a   : > { %2268 = vmatpush1.bf16.msra.mxu0 %v15293_v18  ;;  %v15333_v45 = vld [vmem:[%s23145_s1 + $0x2a4] ss:$12 sps:$4 sm:$0xff]   ;;  %v15339_v50 = vld [vmem:[%s23145_s1 + $0x28c] ss:$12 sps:$4 sm:$0xff]   ;;  %v15342_v53 = vld [vmem:[%s23145_s1 + $0x288] ss:$12 sps:$4 sm:$0xff]  }
  0x3b   : > { %2381 = vmatpush1.bf16.msra.mxu1 %v15294_v19  ;;  %2269 = vmatprep.subr.bf16.mxu0 %v15295_v20  ;;  %v15363_v49 = vld [vmem:[%s16835_s30 + $0x4] ss:$36 sps:$4 sm:$0xff]   ;;  %v15366_v51 = vld [vmem:[%s16835_s30 + $0xc] ss:$36 sps:$4 sm:$0xff]   ;;  %v15343_v54 = vld [vmem:[%s23145_s1 + $0xf4] ss:$12 sps:$4 sm:$0xff]  }
  0x3c   : > { %2382 = vmatprep.subr.bf16.mxu1 %v15297_v21  ;;  %2291 = vmatprep.mubr.bf16.mxu0 %v15363_v49  ;;  %v15345_v55 = vld [vmem:[%s23145_s1 + $0x274] ss:$12 sps:$4 sm:$0xff]   ;;  %v15347_v56 = vld [vmem:[%s23145_s1 + $0xf0] ss:$12 sps:$4 sm:$0xff]   ;;  %v15353_v60 = vld [vmem:[%s23145_s1 + $0xd8] ss:$12 sps:$4 sm:$0xff]  }
  0x3d   : > { %2404 = vmatprep.mubr.bf16.mxu1 %v15366_v51  ;;  %v15348_v57 = vld [vmem:[%s23145_s1 + $0x270] ss:$12 sps:$4 sm:$0xff]   ;;  %v15354_v61 = vld [vmem:[%s23145_s1 + $0x258] ss:$12 sps:$4 sm:$0xff]   ;;  %v15359_v0 = vld [vmem:[%s23145_s1 + $0xc0] ss:$12 sps:$4 sm:$0xff]  }
  0x3e   : > { %2270 = vmatpush1.bf16.msra.mxu0 %v15299_v22  ;;  %v15349_v58 = vld [vmem:[%s23145_s1 + $0xdc] ss:$12 sps:$4 sm:$0xff]   ;;  %v15355_v62 = vld [vmem:[%s23145_s1 + $0xc4] ss:$12 sps:$4 sm:$0xff]   ;;  %v15360_v1 = vld [vmem:[%s23145_s1 + $0x240] ss:$12 sps:$4 sm:$0xff]  }
  0x3f   : > { %2383 = vmatpush1.bf16.msra.mxu1 %v15300_v23  ;;  %2271 = vmatprep.subr.bf16.mxu0 %v15301_v24  ;;  %v15351_v59 = vld [vmem:[%s23145_s1 + $0x25c] ss:$12 sps:$4 sm:$0xff]   ;;  %v15357_v63 = vld [vmem:[%s23145_s1 + $0x244] ss:$12 sps:$4 sm:$0xff]   ;;  %v15369_v2 = vld [vmem:[%s23145_s1 + $0x3ac] ss:$12 sps:$4 sm:$0xff]  }
  0x40   : > { %2384 = vmatprep.subr.bf16.mxu1 %v15303_v25  ;;  %v15372_v3 = vld [vmem:[%s23145_s1 + $0x52c] ss:$12 sps:$4 sm:$0xff]   ;;  %v15361_v4 = vld [vmem:[%s16835_s30] ss:$36 sps:$4 sm:$0xff]   ;;  %v15367_v6 = vld [vmem:[%s23145_s1 + $0x3a8] ss:$12 sps:$4 sm:$0xff]  }
  0x41   : > { %v15364_v5 = vld [vmem:[%s16835_s30 + $0x8] ss:$36 sps:$4 sm:$0xff]   ;;  %v15375_v8 = vld [vmem:[%s23145_s1 + $0x394] ss:$12 sps:$4 sm:$0xff]   ;;  %v15373_v12 = vld [vmem:[%s23145_s1 + $0x390] ss:$12 sps:$4 sm:$0xff]  }
  0x42   : > { %2272 = vmatpush1.bf16.msra.mxu0 %v15305_v26  ;;  %v15370_v7 = vld [vmem:[%s23145_s1 + $0x528] ss:$12 sps:$4 sm:$0xff]   ;;  %v15379_v10 = vld [vmem:[%s16835_s30 + $0x4c] ss:$36 sps:$4 sm:$0xff]   ;;  %v15385_v18 = vld [vmem:[%s23145_s1 + $0x378] ss:$12 sps:$4 sm:$0xff]  }
  0x43   : > { %2385 = vmatpush1.bf16.msra.mxu1 %v15306_v27  ;;  %2273 = vmatprep.subr.bf16.mxu0 %v15307_v28  ;;  %v15378_v9 = vld [vmem:[%s23145_s1 + $0x514] ss:$12 sps:$4 sm:$0xff]   ;;  %v15376_v13 = vld [vmem:[%s23145_s1 + $0x510] ss:$12 sps:$4 sm:$0xff]   ;;  %v15383_v16 = vld [vmem:[%s16835_s30 + $0x48] ss:$36 sps:$4 sm:$0xff]  }
  0x44   : > { %2386 = vmatprep.subr.bf16.mxu1 %v15309_v29  ;;  %v15381_v11 = vld [vmem:[%s16835_s30 + $0x54] ss:$36 sps:$4 sm:$0xff]   ;;  %v15387_v14 = vld [vmem:[%s23145_s1 + $0x37c] ss:$12 sps:$4 sm:$0xff]   ;;  %v15393_v20 = vld [vmem:[%s23145_s1 + $0x364] ss:$12 sps:$4 sm:$0xff]  }
  0x45   : > { %v15390_v15 = vld [vmem:[%s23145_s1 + $0x4fc] ss:$12 sps:$4 sm:$0xff]   ;;  %v15384_v17 = vld [vmem:[%s16835_s30 + $0x50] ss:$36 sps:$4 sm:$0xff]   ;;  %v15388_v19 = vld [vmem:[%s23145_s1 + $0x4f8] ss:$12 sps:$4 sm:$0xff]  }
  0x46   : > { %2274 = vmatpush1.bf16.msra.mxu0 %v15311_v30  ;;  %v15396_v21 = vld [vmem:[%s23145_s1 + $0x4e4] ss:$12 sps:$4 sm:$0xff]   ;;  %v15397_v22 = vld [vmem:[%s16835_s30 + $0x94] ss:$36 sps:$4 sm:$0xff]   ;;  %v15399_v23 = vld [vmem:[%s16835_s30 + $0x9c] ss:$36 sps:$4 sm:$0xff]  }
  0x47   : > { %2387 = vmatpush1.bf16.msra.mxu1 %v15312_v31  ;;  %2275 = vmatprep.subr.bf16.mxu0 %v15313_v32  ;;  %v15391_v24 = vld [vmem:[%s23145_s1 + $0x360] ss:$12 sps:$4 sm:$0xff]   ;;  %v15401_v28 = vld [vmem:[%s16835_s30 + $0x90] ss:$36 sps:$4 sm:$0xff]   ;;  %v15402_v29 = vld [vmem:[%s16835_s30 + $0x98] ss:$36 sps:$4 sm:$0xff]  }
  0x48   : > { %2388 = vmatprep.subr.bf16.mxu1 %v15315_v33  ;;  %v15394_v25 = vld [vmem:[%s23145_s1 + $0x4e0] ss:$12 sps:$4 sm:$0xff]   ;;  %v15403_v30 = vld [vmem:[%s23145_s1 + $0x348] ss:$12 sps:$4 sm:$0xff]   ;;  %vm3488_vm2 = vsmask.f32 1280 }
  0x49   : > { %v15405_v26 = vld [vmem:[%s23145_s1 + $0x34c] ss:$12 sps:$4 sm:$0xff]   ;;  %v15406_v31 = vld [vmem:[%s23145_s1 + $0x4c8] ss:$12 sps:$4 sm:$0xff]   ;;  %vm17431_vm3 = vmand %vm3487_vm1, %vm3488_vm2  ;;  %vm3539_vm5 = vsmask.f32 7942 }
  0x4a   : > { %2276 = vmatpush2.bf16.msra.mxu0 %v15317_v34  ;;  %v15408_v27 = vld [vmem:[%s23145_s1 + $0x4cc] ss:$12 sps:$4 sm:$0xff]   ;;  %v15411_v32 = vld [vmem:[%s23145_s1 + $0x334] ss:$12 sps:$4 sm:$0xff]   ;;  %vm17440_vm6 = vmand %vm3538_vm4, %vm3539_vm5  ;;  %vm3943_vm9 = vsmask.f32 3328 }
  0x4b   : > { %2389 = vmatpush2.bf16.msra.mxu1 %v15318_v35  ;;  %2277 = vmatprep.subr.bf16.mxu0 %v15319_v36  ;;  %v15414_v33 = vld [vmem:[%s23145_s1 + $0x4b4] ss:$12 sps:$4 sm:$0xff]   ;;  %v15417_v35 = vld [vmem:[%s16835_s30 + $0xe4] ss:$36 sps:$4 sm:$0xff]   ;;  %v15409_v36 = vld [vmem:[%s23145_s1 + $0x330] ss:$12 sps:$4 sm:$0xff]  }
  0x4c   : > { %2390 = vmatprep.subr.bf16.mxu1 %v15321_v37  ;;  %v15415_v34 = vld [vmem:[%s16835_s30 + $0xdc] ss:$36 sps:$4 sm:$0xff]   ;;  %v15444_v51 = vld [vmem:[%s23145_s1 + $0x5ec] ss:$12 sps:$4 sm:$0xff]   ;;  %vm18009_vm8 = vmand %vm3813_vm7, %vm3539_vm5  ;;  %vm3944_vm10 = vsmask.f32 7440 }
  0x4d   : > { %v15412_v37 = vld [vmem:[%s23145_s1 + $0x4b0] ss:$12 sps:$4 sm:$0xff]   ;;  %v15430_v49 = vld [vmem:[%s23145_s1 + $0x480] ss:$12 sps:$4 sm:$0xff]   ;;  %vm4301_vm11 = vsmask.f32 2304  ;;  %vm18363_vm15 = vmor %vm3943_vm9, %vm3944_vm10 }
  0x4e   : > { %2278 = vmatpush2.bf16.msra.mxu0 %v15323_v38  ;;  %v15423_v38 = vld [vmem:[%s23145_s1 + $0x31c] ss:$12 sps:$4 sm:$0xff]   ;;  %vm4302_vm12 = vsmask.f32 6416  ;;  %vm4218_vm13 = vcmask 1042432   ;;  %vm4219_vm14 = vcmask 1046532  }
  0x4f   : > { %2391 = vmatpush2.bf16.msra.mxu1 %v15324_v39  ;;  %2279 = vmatprep.subr.bf16.mxu0 %v15325_v40  ;;  %v15426_v39 = vld [vmem:[%s23145_s1 + $0x49c] ss:$12 sps:$4 sm:$0xff]   ;;  %vm18389_vm4 = vmor %vm4218_vm13, %vm4219_vm14  ;;  %vm4722_vm5 = vsmask.f32 5392  ;;  %vm4640_vm7 = vcmask 1045508   ;;  %vm5061_vm9 = vcmask 1044484  }
  0x50   : > { %2392 = vmatprep.subr.bf16.mxu1 %v15327_v41  ;;  %v15419_v40 = vld [vmem:[%s16835_s30 + $0xd8] ss:$36 sps:$4 sm:$0xff]   ;;  %v15420_v41 = vld [vmem:[%s16835_s30 + $0xe0] ss:$36 sps:$4 sm:$0xff]   ;;  %vm6986_vm13 = vcmask 261120   ;;  %s422_s23 = sand.u32 1, %s16548_s22  }
  0x51   : > { %s22021_s15 = smul.u32 576, %s422_s23  ;;  %s16562_s17 = smov [#allocation7]  }
  0x52   : > { %2280 = vmatpush2.bf16.msra.mxu0 %v15329_v42  ;;  %v15421_v42 = vld [vmem:[%s23145_s1 + $0x318] ss:$12 sps:$4 sm:$0xff]  }
  0x53   : > { %2393 = vmatpush2.bf16.msra.mxu1 %v15330_v43  ;;  %2281 = vmatprep.subr.bf16.mxu0 %v15331_v44  ;;  %v15424_v43 = vld [vmem:[%s23145_s1 + $0x498] ss:$12 sps:$4 sm:$0xff]   ;;  %s22065_s19 = scalar_lea.vmem [#allocation7], %s22021_s15  ;;  %s16496_s15 = sshll.u32 %s16562_s17, 4  ;;  %s16497_s15 = int_to_ptr.vmem [resolvable:$false] %s16496_s15 }
  0x54   : > { %2394 = vmatprep.subr.bf16.mxu1 %v15333_v45  ;;  %v15429_v44 = vld [vmem:[%s23145_s1 + $0x304] ss:$12 sps:$4 sm:$0xff]   ;;  %s13363_s28 = sshll.u32 %s22065_s19, 4  ;;  %s16498_s20 = scalar_lea.vmem %s16497_s15, 18432  ;;  %s23099_s28 = int_to_ptr.vmem [resolvable:$true] %s13363_s28 }
  0x55   : > { %v15432_v45 = vld [vmem:[%s23145_s1 + $0x484] ss:$12 sps:$4 sm:$0xff]   ;;  %s16492_s26 = scalar_lea.vmem %s23099_s28, 9216  ;;  %p16499_p11 = scmp.lt.s32.totalorder %s23099_s28, %s16497_s15 }
  0x56   : > { %2282 = vmatpush2.bf16.msra.mxu0 %v15335_v46  ;;  %v15433_v46 = vld [vmem:[%s16835_s30 + $0x124] ss:$36 sps:$4 sm:$0xff]   ;;  %p16493_p8 = scmp.ne.s32.totalorder %s23099_s28, %s16492_s26  ;;  %p16500_p12 = scmp.lt.s32.totalorder %s16498_s20, %s16492_s26 }
  0x57   : > { %2395 = vmatpush2.bf16.msra.mxu1 %v15336_v47  ;;  %2283 = vmatprep.subr.bf16.mxu0 %v15337_v48  ;;  %v15435_v47 = vld [vmem:[%s16835_s30 + $0x12c] ss:$36 sps:$4 sm:$0xff]  }
  0x58   : > { %2396 = vmatprep.subr.bf16.mxu1 %v15339_v50  ;;  %v15427_v48 = vld [vmem:[%s23145_s1 + $0x300] ss:$12 sps:$4 sm:$0xff]   ;;  %p16494_p9 = pnand %p16493_p8, %p16668_p5  ;;  %p16501_p13 = por %p16500_p12, %p16499_p11 }
  0x59   : > { %v15441_v50 = vld [vmem:[%s23145_s1 + $0x46c] ss:$12 sps:$4 sm:$0xff]  }
  0x5a   : > { %2284 = vmatpush2.bf16.msra.mxu0 %v15341_v52  ;;  %v15437_v52 = vld [vmem:[%s16835_s30 + $0x120] ss:$36 sps:$4 sm:$0xff]   ;;  %p16495_p10 = pneg %p16494_p9 }
  0x5b   : > { %2397 = vmatpush2.bf16.msra.mxu1 %v15342_v53  ;;  %2285 = vmatprep.subr.bf16.mxu0 %v15343_v54  ;;  %v15438_v53 = vld [vmem:[%s16835_s30 + $0x128] ss:$36 sps:$4 sm:$0xff]  }
  0x5c   : > { %2398 = vmatprep.subr.bf16.mxu1 %v15345_v55  ;;  %v15439_v54 = vld [vmem:[%s23145_s1 + $0x468] ss:$12 sps:$4 sm:$0xff]   ;;  %p16502_p0 = pnand %p16501_p13, %p16495_p10 }
  0x5d   : > { %v15442_v55 = vld [vmem:[%s23145_s1 + $0x5e8] ss:$12 sps:$4 sm:$0xff]  }
  0x5e   : > { %2286 = vmatpush2.bf16.msra.mxu0 %v15347_v56  ;;  %v15447_v56 = vld [vmem:[%s23145_s1 + $0x454] ss:$12 sps:$4 sm:$0xff]  }
  0x5f   : > { %2399 = vmatpush2.bf16.msra.mxu1 %v15348_v57  ;;  %2287 = vmatprep.subr.bf16.mxu0 %v15349_v58  ;;  %v15450_v57 = vld [vmem:[%s23145_s1 + $0x5d4] ss:$12 sps:$4 sm:$0xff]   ;;  %v15451_v58 = vld [vmem:[%s16835_s30 + $0x16c] ss:$36 sps:$4 sm:$0xff]  }
  0x60   : > { %2400 = vmatprep.subr.bf16.mxu1 %v15351_v59  ;;  %v15453_v59 = vld [vmem:[%s16835_s30 + $0x174] ss:$36 sps:$4 sm:$0xff]  }
  0x62   : > { %2288 = vmatpush2.bf16.msra.mxu0 %v15353_v60  ;;  %v15445_v60 = vld [vmem:[%s23145_s1 + $0x450] ss:$12 sps:$4 sm:$0xff]  }
  0x63   : > { %2401 = vmatpush2.bf16.msra.mxu1 %v15354_v61  ;;  %2289 = vmatprep.subr.bf16.mxu0 %v15355_v62  ;;  %v15448_v61 = vld [vmem:[%s23145_s1 + $0x5d0] ss:$12 sps:$4 sm:$0xff]  }
  0x64   : > { %2402 = vmatprep.subr.bf16.mxu1 %v15357_v63  ;;  %v15459_v62 = vld [vmem:[%s23145_s1 + $0x43c] ss:$12 sps:$4 sm:$0xff]  }
  0x65   : > { %v15462_v63 = vld [vmem:[%s23145_s1 + $0x5bc] ss:$12 sps:$4 sm:$0xff]  }
  0x66   : > { %2290 = vmatpush2.bf16.msra.mxu0 %v15359_v0  ;;  %v15455_v0 = vld [vmem:[%s16835_s30 + $0x168] ss:$36 sps:$4 sm:$0xff]  }
  0x67   : > { %2403 = vmatpush2.bf16.msra.mxu1 %v15360_v1  ;;  %2485 = vmatprep.subr.bf16.mxu0 %v15369_v2  ;;  %v15456_v1 = vld [vmem:[%s16835_s30 + $0x170] ss:$36 sps:$4 sm:$0xff]   ;;  %v15457_v2 = vld [vmem:[%s23145_s1 + $0x438] ss:$12 sps:$4 sm:$0xff]  }
  0x68   : > { %2598 = vmatprep.subr.bf16.mxu1 %v15372_v3  ;;  %v15460_v3 = vld [vmem:[%s23145_s1 + $0x5b8] ss:$12 sps:$4 sm:$0xff]  }
  0x69   : > { %2292 = vmatmul.mubr.bf16.vlgmr.msra.gmra.mxu0 %v15361_v4  ;;  %v15465_v4 = vld [vmem:[%s23145_s1 + $0x424] ss:$12 sps:$4 sm:$0xff]  }
  0x6a   : > { %2405 = vmatmul.mubr.bf16.vlgmr.msra.gmra.mxu1 %v15364_v5  ;;  %2486 = vmatpush1.bf16.msra.mxu0 %v15367_v6  ;;  %v15468_v5 = vld [vmem:[%s23145_s1 + $0x5a4] ss:$12 sps:$4 sm:$0xff]   ;;  %v15469_v6 = vld [vmem:[%s16835_s30 + $0x1b4] ss:$36 sps:$4 sm:$0xff]  }
  0x6b   : > { %2599 = vmatpush1.bf16.msra.mxu1 %v15370_v7  ;;  %2487 = vmatprep.subr.bf16.mxu0 %v15375_v8  ;;  %v15471_v7 = vld [vmem:[%s16835_s30 + $0x1bc] ss:$36 sps:$4 sm:$0xff]  }
  0x6c   : > { %2600 = vmatprep.subr.bf16.mxu1 %v15378_v9  ;;  %2301 = vmatprep.mubr.bf16.mxu0 %v15379_v10  ;;  %v15463_v8 = vld [vmem:[%s23145_s1 + $0x420] ss:$12 sps:$4 sm:$0xff]  }
  0x6d   : > { %2414 = vmatprep.mubr.bf16.mxu1 %v15381_v11  ;;  %v15466_v9 = vld [vmem:[%s23145_s1 + $0x5a0] ss:$12 sps:$4 sm:$0xff]   ;;  %v15473_v11 = vld [vmem:[%s16835_s30 + $0x1b0] ss:$36 sps:$4 sm:$0xff]  }
  0x6e   : > { %2488 = vmatpush1.bf16.msra.mxu0 %v15373_v12  ;;  %v15477_v10 = vld [vmem:[%s23145_s1 + $0x40c] ss:$12 sps:$4 sm:$0xff]  }
  0x6f   : > { %2601 = vmatpush1.bf16.msra.mxu1 %v15376_v13  ;;  %2489 = vmatprep.subr.bf16.mxu0 %v15387_v14  ;;  %v15480_v12 = vld [vmem:[%s23145_s1 + $0x58c] ss:$12 sps:$4 sm:$0xff]   ;;  %v15475_v14 = vld [vmem:[%s23145_s1 + $0x408] ss:$12 sps:$4 sm:$0xff]  }
  0x70   : > { %2602 = vmatprep.subr.bf16.mxu1 %v15390_v15  ;;  %v15474_v13 = vld [vmem:[%s16835_s30 + $0x1b8] ss:$36 sps:$4 sm:$0xff]   ;;  %v15478_v15 = vld [vmem:[%s23145_s1 + $0x588] ss:$12 sps:$4 sm:$0xff]  }
  0x71   : > { %2302 = vmatmul.mubr.bf16.gmra.mxu0 %v15383_v16  ;;  %v15483_v16 = vld [vmem:[%s23145_s1 + $0x3f4] ss:$12 sps:$4 sm:$0xff]  }
  0x72   : > { %2415 = vmatmul.mubr.bf16.gmra.mxu1 %v15384_v17  ;;  %2490 = vmatpush1.bf16.msra.mxu0 %v15385_v18  ;;  %v15486_v17 = vld [vmem:[%s23145_s1 + $0x574] ss:$12 sps:$4 sm:$0xff]  }
  0x73   : > { %2603 = vmatpush1.bf16.msra.mxu1 %v15388_v19  ;;  %2491 = vmatprep.subr.bf16.mxu0 %v15393_v20  ;;  %v15487_v18 = vld [vmem:[%s16835_s30 + $0x1fc] ss:$36 sps:$4 sm:$0xff]   ;;  %v15489_v19 = vld [vmem:[%s16835_s30 + $0x204] ss:$36 sps:$4 sm:$0xff]  }
  0x74   : > { %2604 = vmatprep.subr.bf16.mxu1 %v15396_v21  ;;  %2311 = vmatprep.mubr.bf16.mxu0 %v15397_v22  ;;  %v15481_v20 = vld [vmem:[%s23145_s1 + $0x3f0] ss:$12 sps:$4 sm:$0xff]  }
  0x75   : > { %2424 = vmatprep.mubr.bf16.mxu1 %v15399_v23  ;;  %v15484_v21 = vld [vmem:[%s23145_s1 + $0x570] ss:$12 sps:$4 sm:$0xff]  }
  0x76   : > { %2492 = vmatpush1.bf16.msra.mxu0 %v15391_v24  ;;  %v15495_v22 = vld [vmem:[%s23145_s1 + $0x3dc] ss:$12 sps:$4 sm:$0xff]  }
  0x77   : > { %2605 = vmatpush1.bf16.msra.mxu1 %v15394_v25  ;;  %2493 = vmatprep.subr.bf16.mxu0 %v15405_v26  ;;  %v15498_v23 = vld [vmem:[%s23145_s1 + $0x55c] ss:$12 sps:$4 sm:$0xff]   ;;  %v15492_v25 = vld [vmem:[%s16835_s30 + $0x200] ss:$36 sps:$4 sm:$0xff]  }
  0x78   : > { %2606 = vmatprep.subr.bf16.mxu1 %v15408_v27  ;;  %v15491_v24 = vld [vmem:[%s16835_s30 + $0x1f8] ss:$36 sps:$4 sm:$0xff]  }
  0x79   : > { %2312 = vmatmul.mubr.bf16.gmra.mxu0 %v15401_v28  ;;  %v15493_v26 = vld [vmem:[%s23145_s1 + $0x3d8] ss:$12 sps:$4 sm:$0xff]  }
  0x7a   : > { %2425 = vmatmul.mubr.bf16.gmra.mxu1 %v15402_v29  ;;  %2494 = vmatpush1.bf16.msra.mxu0 %v15403_v30  ;;  %v15496_v27 = vld [vmem:[%s23145_s1 + $0x558] ss:$12 sps:$4 sm:$0xff]  }
  0x7b   : > { %2607 = vmatpush1.bf16.msra.mxu1 %v15406_v31  ;;  %2495 = vmatprep.subr.bf16.mxu0 %v15411_v32  ;;  %v15501_v28 = vld [vmem:[%s23145_s1 + $0x3c4] ss:$12 sps:$4 sm:$0xff]   ;;  %v15507_v30 = vld [vmem:[%s16835_s30 + $0x14] ss:$36 sps:$4 sm:$0xff]   ;;  %v15510_v31 = vld [vmem:[%s16835_s30 + $0x1c] ss:$36 sps:$4 sm:$0xff]  }
  0x7c   : > { %2608 = vmatprep.subr.bf16.mxu1 %v15414_v33  ;;  %2321 = vmatprep.mubr.bf16.mxu0 %v15415_v34  ;;  %v15504_v29 = vld [vmem:[%s23145_s1 + $0x544] ss:$12 sps:$4 sm:$0xff]   ;;  %v15499_v32 = vld [vmem:[%s23145_s1 + $0x3c0] ss:$12 sps:$4 sm:$0xff]  }
  0x7d   : > { %2434 = vmatprep.mubr.bf16.mxu1 %v15417_v35  ;;  %v15502_v33 = vld [vmem:[%s23145_s1 + $0x540] ss:$12 sps:$4 sm:$0xff]   ;;  %v15505_v35 = vld [vmem:[%s16835_s30 + $0x10] ss:$36 sps:$4 sm:$0xff]  }
  0x7e   : > { %2496 = vmatpush1.bf16.msra.mxu0 %v15409_v36  ;;  %v15513_v34 = vld [vmem:[%s23145_s1 + $0x64c] ss:$12 sps:$4 sm:$0xff]  }
  0x7f   : > { %2609 = vmatpush1.bf16.msra.mxu1 %v15412_v37  ;;  %2497 = vmatprep.subr.bf16.mxu0 %v15423_v38  ;;  %v15508_v36 = vld [vmem:[%s16835_s30 + $0x18] ss:$36 sps:$4 sm:$0xff]   ;;  %v15511_v37 = vld [vmem:[%s23145_s1 + $0x648] ss:$12 sps:$4 sm:$0xff]  }
  0x80   : > { %2610 = vmatprep.subr.bf16.mxu1 %v15426_v39  ;;  %v15514_v38 = vld [vmem:[%s16835_s30 + $0x5c] ss:$36 sps:$4 sm:$0xff]   ;;  %v15516_v39 = vld [vmem:[%s16835_s30 + $0x64] ss:$36 sps:$4 sm:$0xff]  }
  0x81   : > { %2322 = vmatmul.mubr.bf16.gmra.mxu0 %v15419_v40  ;;  %v15528_v40 = vld [vmem:[%s23145_s1 + $0x634] ss:$12 sps:$4 sm:$0xff]  }
  0x82   : > { %2435 = vmatmul.mubr.bf16.gmra.mxu1 %v15420_v41  ;;  %2498 = vmatpush1.bf16.msra.mxu0 %v15421_v42  ;;  %v15526_v41 = vld [vmem:[%s23145_s1 + $0x630] ss:$12 sps:$4 sm:$0xff]  }
  0x83   : > { %2611 = vmatpush1.bf16.msra.mxu1 %v15424_v43  ;;  %2499 = vmatprep.subr.bf16.mxu0 %v15429_v44  ;;  %v15518_v42 = vld [vmem:[%s16835_s30 + $0x58] ss:$36 sps:$4 sm:$0xff]   ;;  %v15519_v44 = vld [vmem:[%s16835_s30 + $0x60] ss:$36 sps:$4 sm:$0xff]  }
  0x84   : > { %2612 = vmatprep.subr.bf16.mxu1 %v15432_v45  ;;  %2331 = vmatprep.mubr.bf16.mxu0 %v15433_v46  ;;  %v15543_v43 = vld [vmem:[%s23145_s1 + $0x61c] ss:$12 sps:$4 sm:$0xff]   ;;  %v15522_v46 = vld [vmem:[%s16835_s30 + $0xac] ss:$36 sps:$4 sm:$0xff]  }
  0x85   : > { %2444 = vmatprep.mubr.bf16.mxu1 %v15435_v47  ;;  %v15520_v45 = vld [vmem:[%s16835_s30 + $0xa4] ss:$36 sps:$4 sm:$0xff]  }
  0x86   : > { %2500 = vmatpush1.bf16.msra.mxu0 %v15427_v48  ;;  %v15541_v47 = vld [vmem:[%s23145_s1 + $0x618] ss:$12 sps:$4 sm:$0xff]  }
  0x87   : > { %2613 = vmatpush1.bf16.msra.mxu1 %v15430_v49  ;;  %2501 = vmatprep.subr.bf16.mxu0 %v15441_v50  ;;  %v15558_v48 = vld [vmem:[%s23145_s1 + $0x604] ss:$12 sps:$4 sm:$0xff]   ;;  %v15556_v49 = vld [vmem:[%s23145_s1 + $0x600] ss:$12 sps:$4 sm:$0xff]  }
  0x88   : > { %2614 = vmatprep.subr.bf16.mxu1 %v15444_v51  ;;  %v15524_v50 = vld [vmem:[%s16835_s30 + $0xa0] ss:$36 sps:$4 sm:$0xff]   ;;  %v15525_v51 = vld [vmem:[%s16835_s30 + $0xa8] ss:$36 sps:$4 sm:$0xff]  }
  0x89   : > { %2332 = vmatmul.mubr.bf16.gmra.mxu0 %v15437_v52  ;;  %v15567_v52 = vld [vmem:[%s23145_s1 + $0x170] ss:$12 sps:$4 sm:$0xff]  }
  0x8a   : > { %2445 = vmatmul.mubr.bf16.gmra.mxu1 %v15438_v53  ;;  %2502 = vmatpush2.bf16.msra.mxu0 %v15439_v54  ;;  %v15569_v53 = vld [vmem:[%s23145_s1 + $0x2f0] ss:$12 sps:$4 sm:$0xff]  }
  0x8b   : > { %2615 = vmatpush2.bf16.msra.mxu1 %v15442_v55  ;;  %2503 = vmatprep.subr.bf16.mxu0 %v15447_v56  ;;  %v15529_v54 = vld [vmem:[%s16835_s30 + $0xec] ss:$36 sps:$4 sm:$0xff]   ;;  %v15531_v55 = vld [vmem:[%s16835_s30 + $0xf4] ss:$36 sps:$4 sm:$0xff]  }
  0x8c   : > { %2616 = vmatprep.subr.bf16.mxu1 %v15450_v57  ;;  %2341 = vmatprep.mubr.bf16.mxu0 %v15451_v58  ;;  %v15533_v56 = vld [vmem:[%s16835_s30 + $0xe8] ss:$36 sps:$4 sm:$0xff]   ;;  %v15534_v57 = vld [vmem:[%s16835_s30 + $0xf0] ss:$36 sps:$4 sm:$0xff]  }
  0x8d   : > { %2454 = vmatprep.mubr.bf16.mxu1 %v15453_v59  ;;  %v15535_v58 = vld [vmem:[%s16835_s30 + $0x134] ss:$36 sps:$4 sm:$0xff]   ;;  %v15537_v59 = vld [vmem:[%s16835_s30 + $0x13c] ss:$36 sps:$4 sm:$0xff]  }
  0x8e   : > { %2504 = vmatpush2.bf16.msra.mxu0 %v15445_v60  ;;  %v15539_v60 = vld [vmem:[%s16835_s30 + $0x130] ss:$36 sps:$4 sm:$0xff]  }
  0x8f   : > { %2617 = vmatpush2.bf16.msra.mxu1 %v15448_v61  ;;  %2505 = vmatprep.subr.bf16.mxu0 %v15459_v62  ;;  %v15540_v61 = vld [vmem:[%s16835_s30 + $0x138] ss:$36 sps:$4 sm:$0xff]  }
  0x90   : > { %2618 = vmatprep.subr.bf16.mxu1 %v15462_v63  ;;  %v15544_v62 = vld [vmem:[%s16835_s30 + $0x17c] ss:$36 sps:$4 sm:$0xff]   ;;  %v15546_v63 = vld [vmem:[%s16835_s30 + $0x184] ss:$36 sps:$4 sm:$0xff]  }
  0x91   : > { %2342 = vmatmul.mubr.bf16.gmra.mxu0 %v15455_v0  ;;  %v15548_v0 = vld [vmem:[%s16835_s30 + $0x178] ss:$36 sps:$4 sm:$0xff]  }
  0x92   : > { %2455 = vmatmul.mubr.bf16.gmra.mxu1 %v15456_v1  ;;  %2506 = vmatpush2.bf16.msra.mxu0 %v15457_v2  ;;  %v15549_v1 = vld [vmem:[%s16835_s30 + $0x180] ss:$36 sps:$4 sm:$0xff]  }
  0x93   : > { %2619 = vmatpush2.bf16.msra.mxu1 %v15460_v3  ;;  %2507 = vmatprep.subr.bf16.mxu0 %v15465_v4  ;;  %v15550_v2 = vld [vmem:[%s16835_s30 + $0x1c4] ss:$36 sps:$4 sm:$0xff]   ;;  %v15552_v3 = vld [vmem:[%s16835_s30 + $0x1cc] ss:$36 sps:$4 sm:$0xff]  }
  0x94   : > { %2620 = vmatprep.subr.bf16.mxu1 %v15468_v5  ;;  %2351 = vmatprep.mubr.bf16.mxu0 %v15469_v6  ;;  %v15554_v4 = vld [vmem:[%s16835_s30 + $0x1c0] ss:$36 sps:$4 sm:$0xff]   ;;  %v15555_v5 = vld [vmem:[%s16835_s30 + $0x1c8] ss:$36 sps:$4 sm:$0xff]  }
  0x95   : > { %2464 = vmatprep.mubr.bf16.mxu1 %v15471_v7  ;;  %v15559_v6 = vld [vmem:[%s16835_s30 + $0x20c] ss:$36 sps:$4 sm:$0xff]   ;;  %v15561_v7 = vld [vmem:[%s16835_s30 + $0x214] ss:$36 sps:$4 sm:$0xff]  }
  0x96   : > { %2508 = vmatpush2.bf16.msra.mxu0 %v15463_v8  ;;  %v15563_v8 = vld [vmem:[%s16835_s30 + $0x208] ss:$36 sps:$4 sm:$0xff]  }
  0x97   : > { %2621 = vmatpush2.bf16.msra.mxu1 %v15466_v9  ;;  %2509 = vmatprep.subr.bf16.mxu0 %v15477_v10  ;;  %v15564_v9 = vld [vmem:[%s16835_s30 + $0x210] ss:$36 sps:$4 sm:$0xff]   ;;  %v23158_v10 = vmov 0  }
  0x98   : > { %2622 = vmatprep.subr.bf16.mxu1 %v15480_v12  ;;  %v15566_v12 = vld [vmem:[%s16835_s30 + $0x140] ss:$36 sps:$4 sm:$0xff]  }
  0x99   : > { %2352 = vmatmul.mubr.bf16.gmra.mxu0 %v15473_v11  ;;  %v15565_v11 = vld [vmem:[%s16835_s30 + $0x20] ss:$36 sps:$4 sm:$0xff]  }
  0x9a   : > { %2465 = vmatmul.mubr.bf16.gmra.mxu1 %v15474_v13  ;;  %2510 = vmatpush2.bf16.msra.mxu0 %v15475_v14  ;;  %v15568_v13 = vld [vmem:[%s23145_s1 + $0xb0] ss:$12 sps:$4 sm:$0xff]  }
  0x9b   : > { %2623 = vmatpush2.bf16.msra.mxu1 %v15478_v15  ;;  %2511 = vmatprep.subr.bf16.mxu0 %v15483_v16  ;;  %v15570_v14 = vld [vmem:[%s23145_s1 + $0x230] ss:$12 sps:$4 sm:$0xff]   ;;  %v15571_v15 = vld [vmem:[%s23145_s1 + $0x158] ss:$12 sps:$4 sm:$0xff]  }
  0x9c   : > { %2624 = vmatprep.subr.bf16.mxu1 %v15486_v17  ;;  %2361 = vmatprep.mubr.bf16.mxu0 %v15487_v18  ;;  %v15573_v16 = vld [vmem:[%s23145_s1 + $0x2d8] ss:$12 sps:$4 sm:$0xff]  }
  0x9d   : > { %2474 = vmatprep.mubr.bf16.mxu1 %v15489_v19  ;;  %v15572_v17 = vld [vmem:[%s23145_s1 + $0x98] ss:$12 sps:$4 sm:$0xff]   ;;  %v15577_v19 = vld [vmem:[%s23145_s1 + $0x140] ss:$12 sps:$4 sm:$0xff]  }
  0x9e   : > { %2512 = vmatpush2.bf16.msra.mxu0 %v15481_v20  ;;  %v15574_v18 = vld [vmem:[%s23145_s1 + $0x218] ss:$12 sps:$4 sm:$0xff]   ;;  %v15575_v20 = vld [vmem:[%s16835_s30 + $0x68] ss:$36 sps:$4 sm:$0xff]  }
  0x9f   : > { %2625 = vmatpush2.bf16.msra.mxu1 %v15484_v21  ;;  %2513 = vmatprep.subr.bf16.mxu0 %v15495_v22  ;;  %v15576_v21 = vld [vmem:[%s16835_s30 + $0x188] ss:$36 sps:$4 sm:$0xff]  }
  0xa0   : > { %2626 = vmatprep.subr.bf16.mxu1 %v15498_v23  ;;  %v15579_v22 = vld [vmem:[%s23145_s1 + $0x2c0] ss:$12 sps:$4 sm:$0xff]  }
  0xa1   : > { %2362 = vmatmul.mubr.bf16.gmra.mxu0 %v15491_v24  ;;  %v15578_v23 = vld [vmem:[%s23145_s1 + $0x80] ss:$12 sps:$4 sm:$0xff]  }
  0xa2   : > { %2475 = vmatmul.mubr.bf16.gmra.mxu1 %v15492_v25  ;;  %2514 = vmatpush2.bf16.msra.mxu0 %v15493_v26  ;;  %v15580_v24 = vld [vmem:[%s23145_s1 + $0x200] ss:$12 sps:$4 sm:$0xff]   ;;  %v15581_v25 = vld [vmem:[%s23145_s1 + $0x128] ss:$12 sps:$4 sm:$0xff]  }
  0xa3   : > { %2627 = vmatpush2.bf16.msra.mxu1 %v15496_v27  ;;  %2515 = vmatprep.subr.bf16.mxu0 %v15501_v28  ;;  %v15583_v26 = vld [vmem:[%s23145_s1 + $0x2a8] ss:$12 sps:$4 sm:$0xff]  }
  0xa4   : > { %2628 = vmatprep.subr.bf16.mxu1 %v15504_v29  ;;  %2517 = vmatprep.mubr.bf16.mxu0 %v15507_v30  ;;  %v15582_v27 = vld [vmem:[%s23145_s1 + $0x68] ss:$12 sps:$4 sm:$0xff]   ;;  %v15587_v29 = vld [vmem:[%s23145_s1 + $0x110] ss:$12 sps:$4 sm:$0xff]  }
  0xa5   : > { %2630 = vmatprep.mubr.bf16.mxu1 %v15510_v31  ;;  %v15584_v28 = vld [vmem:[%s23145_s1 + $0x1e8] ss:$12 sps:$4 sm:$0xff]  }
  0xa6   : > { %2516 = vmatpush2.bf16.msra.mxu0 %v15499_v32  ;;  %v15585_v30 = vld [vmem:[%s16835_s30 + $0xb0] ss:$36 sps:$4 sm:$0xff]  }
  0xa7   : > { %2629 = vmatpush2.bf16.msra.mxu1 %v15502_v33  ;;  %2719 = vmatprep.subr.bf16.mxu0 %v15513_v34  ;;  %v15586_v31 = vld [vmem:[%s16835_s30 + $0x1d0] ss:$36 sps:$4 sm:$0xff]  }
  0xa8   : > { %15199 = vmatprep.subr.bf16.mxu1 %v15513_v34  ;;  %v15589_v32 = vld [vmem:[%s23145_s1 + $0x290] ss:$12 sps:$4 sm:$0xff]  }
  0xa9   : > { %2518 = vmatmul.mubr.bf16.vlgmr.msra.gmra.mxu0 %v15505_v35  ;;  %v15588_v33 = vld [vmem:[%s23145_s1 + $0x50] ss:$12 sps:$4 sm:$0xff]   ;;  %v15591_v35 = vld [vmem:[%s23145_s1 + $0xf8] ss:$12 sps:$4 sm:$0xff]  }
  0xaa   : > { %2631 = vmatmul.mubr.bf16.vlgmr.msra.gmra.mxu1 %v15508_v36  ;;  %2720 = vmatpush1.bf16.msra.mxu0 %v15511_v37  ;;  %v15590_v34 = vld [vmem:[%s23145_s1 + $0x1d0] ss:$12 sps:$4 sm:$0xff]   ;;  %v15593_v36 = vld [vmem:[%s23145_s1 + $0x278] ss:$12 sps:$4 sm:$0xff]  }
  0xab   : > { %2527 = vmatprep.mubr.bf16.mxu0 %v15514_v38  ;;  %2640 = vmatprep.mubr.bf16.mxu1 %v15516_v39  ;;  %v15594_v38 = vld [vmem:[%s23145_s1 + $0x1b8] ss:$12 sps:$4 sm:$0xff]   ;;  %v15597_v39 = vld [vmem:[%s23145_s1 + $0xe0] ss:$12 sps:$4 sm:$0xff]  }
  0xac   : > { %15203 = vmatpush1.bf16.msra.mxu1 %v15511_v37  ;;  %2721 = vmatprep.subr.bf16.mxu0 %v15528_v40  ;;  %v15592_v37 = vld [vmem:[%s23145_s1 + $0x38] ss:$12 sps:$4 sm:$0xff]  }
  0xad   : > { %15200 = vmatprep.subr.bf16.mxu1 %v15528_v40  ;;  %v15599_v40 = vld [vmem:[%s23145_s1 + $0x260] ss:$12 sps:$4 sm:$0xff]  }
  0xae   : > { %2722 = vmatpush1.bf16.msra.mxu0 %v15526_v41 }
  0xaf   : > { %2723 = vmatprep.subr.bf16.mxu0 %v15543_v43 }
  0xb0   : > { %15204 = vmatpush1.bf16.msra.mxu1 %v15526_v41  ;;  %v15595_v41 = vld [vmem:[%s16835_s30 + $0xf8] ss:$36 sps:$4 sm:$0xff]  }
  0xb1   : > { %15201 = vmatprep.subr.bf16.mxu1 %v15543_v43  ;;  %2528 = vmatmul.mubr.bf16.gmra.mxu0 %v15518_v42  ;;  %v15596_v42 = vld [vmem:[%s16835_s30 + $0x218] ss:$36 sps:$4 sm:$0xff]   ;;  %v15598_v43 = vld [vmem:[%s23145_s1 + $0x20] ss:$12 sps:$4 sm:$0xff]  }
  0xb2   : > { %2641 = vmatmul.mubr.bf16.gmra.mxu1 %v15519_v44  ;;  %2537 = vmatprep.mubr.bf16.mxu0 %v15520_v45  ;;  %v15600_v44 = vld [vmem:[%s23145_s1 + $0x1a0] ss:$12 sps:$4 sm:$0xff]   ;;  %v15601_v45 = vld [vmem:[%s23145_s1 + $0xc8] ss:$12 sps:$4 sm:$0xff]  }
  0xb3   : > { %2650 = vmatprep.mubr.bf16.mxu1 %v15522_v46  ;;  %2724 = vmatpush1.bf16.msra.mxu0 %v15541_v47  ;;  %v15603_v46 = vld [vmem:[%s23145_s1 + $0x248] ss:$12 sps:$4 sm:$0xff]  }
  0xb4   : > { %15205 = vmatpush1.bf16.msra.mxu1 %v15541_v47  ;;  %2725 = vmatprep.subr.bf16.mxu0 %v15558_v48  ;;  %v15602_v47 = vld [vmem:[%s23145_s1 + $0x8] ss:$12 sps:$4 sm:$0xff]  }
  0xb5   : > { %15202 = vmatprep.subr.bf16.mxu1 %v15558_v48  ;;  %v15604_v48 = vld [vmem:[%s23145_s1 + $0x188] ss:$12 sps:$4 sm:$0xff]  }
  0xb7   : > { %2726 = vmatpush1.bf16.msra.mxu0 %v15556_v49 }
  0xb8   : > { %15206 = vmatpush1.bf16.msra.mxu1 %v15556_v49  ;;  %14971 = vmatprep.subr.bf16.mxu0 %v15569_v53  ;;  %v15605_v49 = vld [vmem:[%s23145_s1 + $0x470] ss:$12 sps:$4 sm:$0xff]  }
  0xb9   : > { %14907 = vmatprep.subr.bf16.mxu1 %v15567_v52  ;;  %2538 = vmatmul.mubr.bf16.gmra.mxu0 %v15524_v50  ;;  %v15611_v50 = vld [vmem:[%s23145_s1 + $0x5f0] ss:$12 sps:$4 sm:$0xff]  }
  0xba   : > { %2651 = vmatmul.mubr.bf16.gmra.mxu1 %v15525_v51  ;;  %2547 = vmatprep.mubr.bf16.mxu0 %v15529_v54  ;;  %v16376_v51 = vld [vmem:[%s16835_s30 + $0x4] ss:$36 sps:$4 sm:$0xff]   ;;  %v16377_v52 = vld [vmem:[%s16835_s30 + $0xc] ss:$36 sps:$4 sm:$0xff]  }
  0xbb   : > { %2660 = vmatprep.mubr.bf16.mxu1 %v15531_v55  ;;  %v15606_v53 = vld [vmem:[%s23145_s1 + $0x3b0] ss:$12 sps:$4 sm:$0xff]   ;;  %v15607_v55 = vld [vmem:[%s23145_s1 + $0x458] ss:$12 sps:$4 sm:$0xff]  }
  0xbc   : > { %v15612_v54 = vld [vmem:[%s23145_s1 + $0x530] ss:$12 sps:$4 sm:$0xff]  }
  0xc1   : > { %2548 = vmatmul.mubr.bf16.gmra.mxu0 %v15533_v56  ;;  %v15615_v56 = vld [vmem:[%s23145_s1 + $0x5d8] ss:$12 sps:$4 sm:$0xff]  }
  0xc2   : > { %2661 = vmatmul.mubr.bf16.gmra.mxu1 %v15534_v57  ;;  %2557 = vmatprep.mubr.bf16.mxu0 %v15535_v58  ;;  %v16378_v57 = vld [vmem:[%s16835_s30] ss:$36 sps:$4 sm:$0xff]   ;;  %v16379_v58 = vld [vmem:[%s16835_s30 + $0x8] ss:$36 sps:$4 sm:$0xff]  }
  0xc3   : > { %2670 = vmatprep.mubr.bf16.mxu1 %v15537_v59  ;;  %v15608_v59 = vld [vmem:[%s23145_s1 + $0x398] ss:$12 sps:$4 sm:$0xff]  }
  0xc9   : > { %2558 = vmatmul.mubr.bf16.gmra.mxu0 %v15539_v60  ;;  %v15616_v60 = vld [vmem:[%s23145_s1 + $0x518] ss:$12 sps:$4 sm:$0xff]  }
  0xca   : > { %2671 = vmatmul.mubr.bf16.gmra.mxu1 %v15540_v61  ;;  %2567 = vmatprep.mubr.bf16.mxu0 %v15544_v62  ;;  %v16380_v61 = vld [vmem:[%s16835_s30 + $0x4c] ss:$36 sps:$4 sm:$0xff]   ;;  %v16381_v62 = vld [vmem:[%s16835_s30 + $0x54] ss:$36 sps:$4 sm:$0xff]  }
  0xcb   : > { %2680 = vmatprep.mubr.bf16.mxu1 %v15546_v63  ;;  %v15609_v63 = vld [vmem:[%s23145_s1 + $0x440] ss:$12 sps:$4 sm:$0xff]  }
  0xd1   : > { %2568 = vmatmul.mubr.bf16.gmra.mxu0 %v15548_v0  ;;  %v15617_v0 = vld [vmem:[%s23145_s1 + $0x5c0] ss:$12 sps:$4 sm:$0xff]  }
  0xd2   : > { %2681 = vmatmul.mubr.bf16.gmra.mxu1 %v15549_v1  ;;  %2577 = vmatprep.mubr.bf16.mxu0 %v15550_v2  ;;  %v15610_v1 = vld [vmem:[%s23145_s1 + $0x380] ss:$12 sps:$4 sm:$0xff]  }
  0xd3   : > { %2690 = vmatprep.mubr.bf16.mxu1 %v15552_v3  ;;  %v15618_v2 = vld [vmem:[%s23145_s1 + $0x500] ss:$12 sps:$4 sm:$0xff]   ;;  %v15613_v3 = vld [vmem:[%s23145_s1 + $0x428] ss:$12 sps:$4 sm:$0xff]  }
  0xd9   : > { %2578 = vmatmul.mubr.bf16.gmra.mxu0 %v15554_v4  ;;  %v15621_v4 = vld [vmem:[%s23145_s1 + $0x5a8] ss:$12 sps:$4 sm:$0xff]  }
  0xda   : > { %2691 = vmatmul.mubr.bf16.gmra.mxu1 %v15555_v5  ;;  %2587 = vmatprep.mubr.bf16.mxu0 %v15559_v6  ;;  %v16382_v5 = vld [vmem:[%s16835_s30 + $0x48] ss:$36 sps:$4 sm:$0xff]   ;;  %v16383_v6 = vld [vmem:[%s16835_s30 + $0x50] ss:$36 sps:$4 sm:$0xff]  }
  0xdb   : > { %2700 = vmatprep.mubr.bf16.mxu1 %v15561_v7  ;;  %v15614_v7 = vld [vmem:[%s23145_s1 + $0x368] ss:$12 sps:$4 sm:$0xff]  }
  0xe1   : > { %2588 = vmatmul.mubr.bf16.gmra.mxu0 %v15563_v8  ;;  %v16384_v8 = vld [vmem:[%s16835_s30 + $0x94] ss:$36 sps:$4 sm:$0xff]  }
  0xe2   : > { %2701 = vmatmul.mubr.bf16.gmra.mxu1 %v15564_v9  ;;  %2743 = vmatprep.mubr.bf16.mxu0 %v23158_v10  ;;  %v16385_v9 = vld [vmem:[%s16835_s30 + $0x9c] ss:$36 sps:$4 sm:$0xff]  }
  0xe3   : > { %2783 = vmatprep.mubr.bf16.mxu1 %v23158_v10 }
  0xe9   : > { %13721 = vmatmul.mubr.msk.bf16.vlgmr.msra.gmra.mxu0 %vm2234_vm0, %v15565_v11  ;;  %v15619_v11 = vld [vmem:[%s23145_s1 + $0x410] ss:$12 sps:$4 sm:$0xff]  }
  0xea   : > { %13725 = vmatmul.mubr.msk.bf16.vlgmr.msra.gmra.mxu1 %vm2234_vm0, %v15566_v12  ;;  %14972 = vmatpush3.bf16.msra.mxu0 %v15570_v14  ;;  %v15622_v12 = vld [vmem:[%s23145_s1 + $0x4e8] ss:$12 sps:$4 sm:$0xff]   ;;  %v15620_v14 = vld [vmem:[%s23145_s1 + $0x350] ss:$12 sps:$4 sm:$0xff]  }
  0xeb   : > { %14908 = vmatpush3.bf16.msra.mxu1 %v15568_v13  ;;  %14973 = vmatprep.subr.bf16.mxu0 %v15573_v16  ;;  %v15623_v13 = vld [vmem:[%s23145_s1 + $0x590] ss:$12 sps:$4 sm:$0xff]   ;;  %v15625_v16 = vld [vmem:[%s23145_s1 + $0x3f8] ss:$12 sps:$4 sm:$0xff]  }
  0xec   : > { %14909 = vmatprep.subr.bf16.mxu1 %v15571_v15  ;;  %2753 = vmatprep.mubr.bf16.mxu0 %v23158_v10  ;;  %v15624_v15 = vld [vmem:[%s23145_s1 + $0x4d0] ss:$12 sps:$4 sm:$0xff]  }
  0xed   : > { %2793 = vmatprep.mubr.bf16.mxu1 %v23158_v10 }
  0xee   : > { %14974 = vmatpush3.bf16.msra.mxu0 %v15574_v18  ;;  %v16386_v18 = vld [vmem:[%s16835_s30 + $0x90] ss:$36 sps:$4 sm:$0xff]  }
  0xef   : > { %14910 = vmatpush3.bf16.msra.mxu1 %v15572_v17  ;;  %14975 = vmatprep.subr.bf16.mxu0 %v15579_v22  ;;  %v15627_v17 = vld [vmem:[%s23145_s1 + $0x578] ss:$12 sps:$4 sm:$0xff]   ;;  %v16388_v22 = vld [vmem:[%s16835_s30 + $0xdc] ss:$36 sps:$4 sm:$0xff]  }
  0xf0   : > { %14911 = vmatprep.subr.bf16.mxu1 %v15577_v19  ;;  %v16387_v19 = vld [vmem:[%s16835_s30 + $0x98] ss:$36 sps:$4 sm:$0xff]  }
  0xf1   : > { %13722 = vmatmul.mubr.msk.bf16.gmra.mxu0 %vm2234_vm0, %v15575_v20  ;;  %v15626_v20 = vld [vmem:[%s23145_s1 + $0x338] ss:$12 sps:$4 sm:$0xff]  }
  0xf2   : > { %13726 = vmatmul.mubr.msk.bf16.gmra.mxu1 %vm2234_vm0, %v15576_v21  ;;  %14976 = vmatpush3.bf16.msra.mxu0 %v15580_v24  ;;  %v15628_v21 = vld [vmem:[%s23145_s1 + $0x4b8] ss:$12 sps:$4 sm:$0xff]   ;;  %v15629_v24 = vld [vmem:[%s23145_s1 + $0x3e0] ss:$12 sps:$4 sm:$0xff]  }
  0xf3   : > { %14912 = vmatpush3.bf16.msra.mxu1 %v15578_v23  ;;  %14977 = vmatprep.subr.bf16.mxu0 %v15583_v26  ;;  %v16389_v23 = vld [vmem:[%s16835_s30 + $0xe4] ss:$36 sps:$4 sm:$0xff]   ;;  %v15630_v26 = vld [vmem:[%s23145_s1 + $0x320] ss:$12 sps:$4 sm:$0xff]  }
  0xf4   : > { %14913 = vmatprep.subr.bf16.mxu1 %v15581_v25  ;;  %2763 = vmatprep.mubr.bf16.mxu0 %v23158_v10  ;;  %v15631_v25 = vld [vmem:[%s23145_s1 + $0x560] ss:$12 sps:$4 sm:$0xff]  }
  0xf5   : > { %2803 = vmatprep.mubr.bf16.mxu1 %v23158_v10 }
  0xf6   : > { %14978 = vmatpush3.bf16.msra.mxu0 %v15584_v28  ;;  %v15633_v28 = vld [vmem:[%s23145_s1 + $0x3c8] ss:$12 sps:$4 sm:$0xff]  }
  0xf7   : > { %14914 = vmatpush3.bf16.msra.mxu1 %v15582_v27  ;;  %14979 = vmatprep.subr.bf16.mxu0 %v15589_v32  ;;  %v15632_v27 = vld [vmem:[%s23145_s1 + $0x4a0] ss:$12 sps:$4 sm:$0xff]   ;;  %v15634_v32 = vld [vmem:[%s23145_s1 + $0x308] ss:$12 sps:$4 sm:$0xff]  }
  0xf8   : > { %14915 = vmatprep.subr.bf16.mxu1 %v15587_v29  ;;  %v15635_v29 = vld [vmem:[%s23145_s1 + $0x548] ss:$12 sps:$4 sm:$0xff]  }
  0xf9   : > { %13723 = vmatmul.mubr.msk.bf16.gmra.mxu0 %vm2234_vm0, %v15585_v30  ;;  %v16390_v30 = vld [vmem:[%s16835_s30 + $0xd8] ss:$36 sps:$4 sm:$0xff]  }
  0xfa   : > { %13727 = vmatmul.mubr.msk.bf16.gmra.mxu1 %vm2234_vm0, %v15586_v31  ;;  %14980 = vmatpush3.bf16.msra.mxu0 %v15590_v34  ;;  %v16391_v31 = vld [vmem:[%s16835_s30 + $0xe0] ss:$36 sps:$4 sm:$0xff]  }
  0xfb   : > { %14916 = vmatpush3.bf16.msra.mxu1 %v15588_v33  ;;  %14981 = vmatprep.subr.bf16.mxu0 %v15593_v36  ;;  %v15636_v33 = vld [vmem:[%s23145_s1 + $0x488] ss:$12 sps:$4 sm:$0xff]   ;;  %v17411_v36 = vld [vmem:[%s23145_s1 + $0x650] ss:$12 sps:$4 sm:$0xff]  }
  0xfc   : > { %14917 = vmatprep.subr.bf16.mxu1 %v15591_v35  ;;  %2773 = vmatprep.mubr.bf16.mxu0 %v23158_v10  ;;  %v16392_v34 = vld [vmem:[%s16835_s30 + $0x124] ss:$36 sps:$4 sm:$0xff]   ;;  %v16393_v35 = vld [vmem:[%s16835_s30 + $0x12c] ss:$36 sps:$4 sm:$0xff]  }
  0xfd   : > { %2813 = vmatprep.mubr.bf16.mxu1 %v23158_v10 }
  0xfe   : > { %14982 = vmatpush3.bf16.msra.mxu0 %v15594_v38 }
  0xff   : > { %14918 = vmatpush3.bf16.msra.mxu1 %v15592_v37  ;;  %14983 = vmatprep.subr.bf16.mxu0 %v15599_v40  ;;  %v15643_v37 = vld [vmem:[%s23148_s4 + $0x74] ss:$8 sps:$4 sm:$0xff]   ;;  %v16394_v40 = vld [vmem:[%s16835_s30 + $0x120] ss:$36 sps:$4 sm:$0xff]  }
 0x100   : > { %14919 = vmatprep.subr.bf16.mxu1 %v15597_v39 }
 0x101   : > { %13724 = vmatmul.mubr.msk.bf16.gmra.mxu0 %vm2234_vm0, %v15595_v41  ;;  %v16395_v41 = vld [vmem:[%s16835_s30 + $0x128] ss:$36 sps:$4 sm:$0xff]  }
 0x102   : > { %13728 = vmatmul.mubr.msk.bf16.gmra.mxu1 %vm2234_vm0, %v15596_v42  ;;  %14984 = vmatpush3.bf16.msra.mxu0 %v15600_v44  ;;  %v16397_v44 = vld [vmem:[%s16835_s30 + $0x174] ss:$36 sps:$4 sm:$0xff]  }
 0x103   : > { %14920 = vmatpush3.bf16.msra.mxu1 %v15598_v43  ;;  %14985 = vmatprep.subr.bf16.mxu0 %v15603_v46  ;;  %v16396_v43 = vld [vmem:[%s16835_s30 + $0x16c] ss:$36 sps:$4 sm:$0xff]  }
 0x104   : > { %14921 = vmatprep.subr.bf16.mxu1 %v15601_v45  ;;  %2856 = vmatprep.mubr.bf16.mxu1 %v16376_v51 }
 0x105   : > { %2953 = vmatprep.mubr.bf16.mxu0 %v16377_v52 }
 0x106   : > { %14986 = vmatpush3.bf16.msra.mxu0 %v15604_v48 }
 0x107   : > { %14922 = vmatpush3.bf16.msra.mxu1 %v15602_v47  ;;  %15099 = vmatprep.subr.bf16.mxu0 %v15611_v50 }
 0x108   : > { %15035 = vmatprep.subr.bf16.mxu1 %v15605_v49 }
 0x109   : > { %2954 = vmatmul.mubr.bf16.vlgmr.msra.gmra.mxu0 %v16379_v58  ;;  %v16398_v58 = vld [vmem:[%s16835_s30 + $0x168] ss:$36 sps:$4 sm:$0xff]  }
 0x10a   : > { %2857 = vmatmul.mubr.bf16.vlgmr.msra.gmra.mxu1 %v16378_v57  ;;  %2961 = vmatprep.mubr.bf16.mxu0 %v16381_v62  ;;  %v3541_v62 = vld [vmem:[#allocation2 + $0x4] sm:$0x6] }
 0x10b   : > { %2864 = vmatprep.mubr.bf16.mxu1 %v16380_v61  ;;  %15036 = vmatpush3.bf16.msra.mxu1 %v15606_v53 }
 0x10c   : > { %15100 = vmatpush3.bf16.msra.mxu0 %v15612_v54  ;;  %15037 = vmatprep.subr.bf16.mxu1 %v15607_v55  ;;  %v3490_v55 = vld [vmem:[#allocation2] sm:$0x3] }
 0x10d   : > { %15101 = vmatprep.subr.bf16.mxu0 %v15615_v56 }
 0x10f   : > { %15038 = vmatpush3.bf16.msra.mxu1 %v15608_v59  ;;  %v16399_v59 = vld [vmem:[%s16835_s30 + $0x170] ss:$36 sps:$4 sm:$0xff]  }
 0x110   : > { %15102 = vmatpush3.bf16.msra.mxu0 %v15616_v60  ;;  %15039 = vmatprep.subr.bf16.mxu1 %v15609_v63  ;;  %v3491_v60 = vsel %vm17431_vm3, 0, %v3490_v55  ;;  %v3514_v63 = vld [vmem:[#allocation2 + $0x40] sm:$0x3]  ;;  %v3547_v55 = vld [vmem:[#allocation2 + $0x14] sm:$0x6] }
 0x111   : > { %15103 = vmatprep.subr.bf16.mxu0 %v15617_v0  ;;  %2962 = vmatmul.mubr.bf16.gmra.mxu0 %v16383_v6  ;;  %3492 = vst [vmem:[#allocation2] sm:$0x3] %v3491_v60  ;;  %v3548_v60 = vsel %vm17440_vm6, 0, %v3547_v55 }
 0x112   : > { %2865 = vmatmul.mubr.bf16.gmra.mxu1 %v16382_v5  ;;  %2969 = vmatprep.mubr.bf16.mxu0 %v16385_v9  ;;  %v3565_v5 = vld [vmem:[#allocation2 + $0x44] sm:$0x6]  ;;  %3549 = vst [vmem:[#allocation2 + $0x14] sm:$0x6] %v3548_v60 }
 0x113   : > { %2872 = vmatprep.mubr.bf16.mxu1 %v16384_v8  ;;  %15040 = vmatpush3.bf16.msra.mxu1 %v15610_v1  ;;  %v16400_v1 = vld [vmem:[%s16835_s30 + $0x1b4] ss:$36 sps:$4 sm:$0xff]   ;;  %v3566_v8 = vsel %vm17440_vm6, 0, %v3565_v5 }
 0x114   : > { %15104 = vmatpush3.bf16.msra.mxu0 %v15618_v2  ;;  %15041 = vmatprep.subr.bf16.mxu1 %v15613_v3  ;;  %v16401_v2 = vld [vmem:[%s16835_s30 + $0x1bc] ss:$36 sps:$4 sm:$0xff]   ;;  %v3542_v3 = vsel %vm17440_vm6, 0, %v3541_v62  ;;  %3567 = vst [vmem:[#allocation2 + $0x44] sm:$0x6] %v3566_v8 }
 0x115   : > { %15105 = vmatprep.subr.bf16.mxu0 %v15621_v4  ;;  %v3515_v4 = vsel %vm17431_vm3, 0, %v3514_v63  ;;  %3543 = vst [vmem:[#allocation2 + $0x4] sm:$0x6] %v3542_v3  ;;  %v15649_v8 = vld [vmem:[%s23148_s4 + $0x64] ss:$8 sps:$4 sm:$0xff]  }
 0x116   : > { %3516 = vst [vmem:[#allocation2 + $0x40] sm:$0x3] %v3515_v4  ;;  %v15641_v4 = vld [vmem:[%s23148_s4 + $0x70] ss:$8 sps:$4 sm:$0xff]  }
 0x117   : > { %15042 = vmatpush3.bf16.msra.mxu1 %v15614_v7 }
 0x118   : > { %15106 = vmatpush3.bf16.msra.mxu0 %v15622_v12  ;;  %15043 = vmatprep.subr.bf16.mxu1 %v15619_v11 }
 0x119   : > { %15107 = vmatprep.subr.bf16.mxu0 %v15623_v13  ;;  %2970 = vmatmul.mubr.bf16.gmra.mxu0 %v16387_v19  ;;  %v3493_v13 = vld [vmem:[#allocation2 + $0x8] sm:$0x3] }
 0x11a   : > { %2873 = vmatmul.mubr.bf16.gmra.mxu1 %v16386_v18  ;;  %2977 = vmatprep.mubr.bf16.mxu0 %v16389_v23 }
 0x11b   : > { %2880 = vmatprep.mubr.bf16.mxu1 %v16388_v22  ;;  %15044 = vmatpush3.bf16.msra.mxu1 %v15620_v14  ;;  %v3517_v14 = vld [vmem:[#allocation2 + $0x48] sm:$0x3] }
 0x11c   : > { %15108 = vmatpush3.bf16.msra.mxu0 %v15624_v15  ;;  %15045 = vmatprep.subr.bf16.mxu1 %v15625_v16  ;;  %v3494_v16 = vsel %vm17431_vm3, 0, %v3493_v13 }
 0x11d   : > { %15109 = vmatprep.subr.bf16.mxu0 %v15627_v17  ;;  %v3518_v17 = vsel %vm17431_vm3, 0, %v3517_v14  ;;  %3495 = vst [vmem:[#allocation2 + $0x8] sm:$0x3] %v3494_v16 }
 0x11e   : > { %3519 = vst [vmem:[#allocation2 + $0x48] sm:$0x3] %v3518_v17 }
 0x11f   : > { %15046 = vmatpush3.bf16.msra.mxu1 %v15626_v20  ;;  %v3544_v20 = vld [vmem:[#allocation2 + $0xc] sm:$0x6] }
 0x120   : > { %15110 = vmatpush3.bf16.msra.mxu0 %v15628_v21  ;;  %15047 = vmatprep.subr.bf16.mxu1 %v15629_v24  ;;  %v3568_v21 = vld [vmem:[#allocation2 + $0x4c] sm:$0x6]  ;;  %v3545_v23 = vsel %vm17440_vm6, 0, %v3544_v20  ;;  %v3574_v20 = vld [vmem:[#allocation2 + $0x5c] sm:$0x6] }
 0x121   : > { %15111 = vmatprep.subr.bf16.mxu0 %v15631_v25  ;;  %2978 = vmatmul.mubr.bf16.gmra.mxu0 %v16391_v31  ;;  %v3569_v24 = vsel %vm17440_vm6, 0, %v3568_v21  ;;  %3546 = vst [vmem:[#allocation2 + $0xc] sm:$0x6] %v3545_v23  ;;  %v16405_v31 = vld [vmem:[%s16835_s30 + $0x204] ss:$36 sps:$4 sm:$0xff]  }
 0x122   : > { %2881 = vmatmul.mubr.bf16.gmra.mxu1 %v16390_v30  ;;  %2985 = vmatprep.mubr.bf16.mxu0 %v16393_v35  ;;  %3570 = vst [vmem:[#allocation2 + $0x4c] sm:$0x6] %v3569_v24  ;;  %v16404_v30 = vld [vmem:[%s16835_s30 + $0x1fc] ss:$36 sps:$4 sm:$0xff]   ;;  %v16410_v24 = vld [vmem:[%s16835_s30 + $0x10] ss:$36 sps:$4 sm:$0xff]  }
 0x123   : > { %2888 = vmatprep.mubr.bf16.mxu1 %v16392_v34  ;;  %15048 = vmatpush3.bf16.msra.mxu1 %v15630_v26 }
 0x124   : > { %15112 = vmatpush3.bf16.msra.mxu0 %v15632_v27  ;;  %15049 = vmatprep.subr.bf16.mxu1 %v15633_v28  ;;  %v16402_v27 = vld [vmem:[%s16835_s30 + $0x1b0] ss:$36 sps:$4 sm:$0xff]   ;;  %v16403_v28 = vld [vmem:[%s16835_s30 + $0x1b8] ss:$36 sps:$4 sm:$0xff]  }
 0x125   : > { %15113 = vmatprep.subr.bf16.mxu0 %v15635_v29 }
 0x127   : > { %15050 = vmatpush3.bf16.msra.mxu1 %v15634_v32 }
 0x128   : > { %15114 = vmatpush3.bf16.msra.mxu0 %v15636_v33  ;;  %15175 = vmatprep.subr.bf16.mxu1 %v17411_v36 }
 0x129   : > { %6039 = vmatprep.subr.bf16.mxu0 %v15643_v37  ;;  %v2293_v38 = vpop.f32.mrf.mxu0  ;;  %2986 = vmatmul.mubr.bf16.gmra.mxu0 %v16395_v41 }
 0x12a   : > { %v2406_v39 = vpop.f32.mrf.mxu1  ;;  %2889 = vmatmul.mubr.bf16.gmra.mxu1 %v16394_v40  ;;  %2993 = vmatprep.mubr.bf16.mxu0 %v16397_v44 }
 0x12b   : > { %v17419_v42 = vadd.f32 %v2406_v39, %v2293_v38  ;;  %2896 = vmatprep.mubr.bf16.mxu1 %v16396_v43  ;;  %v2295_v45 = vpop.f32.mrf.mxu0 }
 0x12c   : > { %v2408_v46 = vpop.f32.mrf.mxu1 }
 0x12d   : > { %v17423_v47 = vadd.f32 %v2408_v46, %v2295_v45  ;;  %v2297_v48 = vpop.f32.mrf.mxu0  ;;  %v16406_v45 = vld [vmem:[%s16835_s30 + $0x1f8] ss:$36 sps:$4 sm:$0xff]   ;;  %v16407_v46 = vld [vmem:[%s16835_s30 + $0x200] ss:$36 sps:$4 sm:$0xff]  }
 0x12e   : > { %v2410_v49 = vpop.f32.mrf.mxu1 }
 0x12f   : > { %v17425_v50 = vadd.f32 %v2410_v49, %v2297_v48  ;;  %v2299_v51 = vpop.f32.mrf.mxu0  ;;  %v16408_v49 = vld [vmem:[%s16835_s30 + $0x14] ss:$36 sps:$4 sm:$0xff]  }
 0x130   : > { %v2412_v52 = vpop.f32.mrf.mxu1 }
 0x131   : > { %v17427_v53 = vadd.f32 %v2412_v52, %v2299_v51  ;;  %v2303_v56 = vpop.f32.mrf.mxu0  ;;  %2994 = vmatmul.mubr.bf16.gmra.mxu0 %v16399_v59  ;;  %v16409_v51 = vld [vmem:[%s16835_s30 + $0x1c] ss:$36 sps:$4 sm:$0xff]   ;;  %v3496_v52 = vld [vmem:[#allocation2 + $0x10] sm:$0x3] }
 0x132   : > { %v2416_v57 = vpop.f32.mrf.mxu1  ;;  %2897 = vmatmul.mubr.bf16.gmra.mxu1 %v16398_v58  ;;  %3001 = vmatprep.mubr.bf16.mxu0 %v16401_v2  ;;  %v3497_v59 = vsel %vm17431_vm3, 0, %v3496_v52  ;;  %v15661_v52 = vld [vmem:[%s23148_s4 + $0x44] ss:$8 sps:$4 sm:$0xff]  }
 0x133   : > { %v17444_v0 = vadd.f32 %v2416_v57, %v2303_v56  ;;  %2904 = vmatprep.mubr.bf16.mxu1 %v16400_v1  ;;  %v2305_v6 = vpop.f32.mrf.mxu0  ;;  %v3520_v56 = vld [vmem:[#allocation2 + $0x50] sm:$0x3]  ;;  %3498 = vst [vmem:[#allocation2 + $0x10] sm:$0x3] %v3497_v59  ;;  %v3571_v1 = vld [vmem:[#allocation2 + $0x54] sm:$0x6] }
 0x134   : > { %v2418_v7 = vpop.f32.mrf.mxu1  ;;  %v3521_v62 = vsel %vm17431_vm3, 0, %v3520_v56  ;;  %v3572_v5 = vsel %vm17440_vm6, 0, %v3571_v1  ;;  %v16415_v59 = vld [vmem:[%s16835_s30 + $0x60] ss:$36 sps:$4 sm:$0xff]   ;;  %v16417_v1 = vld [vmem:[%s16835_s30 + $0xac] ss:$36 sps:$4 sm:$0xff]  }
 0x135   : > { %v17454_v9 = vadd.f32 %v2418_v7, %v2305_v6  ;;  %v2307_v11 = vpop.f32.mrf.mxu0  ;;  %3522 = vst [vmem:[#allocation2 + $0x50] sm:$0x3] %v3521_v62  ;;  %v15638_v7 = vld [vmem:[%s23145_s1 + $0x638] ss:$12 sps:$4 sm:$0xff]   ;;  %3573 = vst [vmem:[#allocation2 + $0x54] sm:$0x6] %v3572_v5 }
 0x136   : > { %v2420_v12 = vpop.f32.mrf.mxu1  ;;  %v16416_v62 = vld [vmem:[%s16835_s30 + $0xa4] ss:$36 sps:$4 sm:$0xff]  }
 0x137   : > { %v17456_v15 = vadd.f32 %v2420_v12, %v2307_v11  ;;  %v2309_v18 = vpop.f32.mrf.mxu0  ;;  %v3499_v11 = vld [vmem:[#allocation2 + $0x18] sm:$0x3] }
 0x138   : > { %v2422_v19 = vpop.f32.mrf.mxu1  ;;  %v3523_v12 = vld [vmem:[#allocation2 + $0x58] sm:$0x3]  ;;  %v3500_v16 = vsel %vm17431_vm3, 0, %v3499_v11  ;;  %v3502_v11 = vld [vmem:[#allocation2 + $0x20] sm:$0x3] }
 0x139   : > { %v17462_v22 = vadd.f32 %v2422_v19, %v2309_v18  ;;  %v2313_v25 = vpop.f32.mrf.mxu0  ;;  %3002 = vmatmul.mubr.bf16.gmra.mxu0 %v16403_v28  ;;  %v3524_v17 = vsel %vm17431_vm3, 0, %v3523_v12  ;;  %3501 = vst [vmem:[#allocation2 + $0x18] sm:$0x3] %v3500_v16  ;;  %v3550_v19 = vld [vmem:[#allocation2 + $0x1c] sm:$0x6] }
 0x13a   : > { %v2426_v26 = vpop.f32.mrf.mxu1  ;;  %2905 = vmatmul.mubr.bf16.gmra.mxu1 %v16402_v27  ;;  %3009 = vmatprep.mubr.bf16.mxu0 %v16405_v31  ;;  %3525 = vst [vmem:[#allocation2 + $0x58] sm:$0x3] %v3524_v17  ;;  %v3575_v27 = vsel %vm17440_vm6, 0, %v3574_v20  ;;  %v16413_v31 = vld [vmem:[%s16835_s30 + $0x64] ss:$36 sps:$4 sm:$0xff]  }
 0x13b   : > { %v17470_v29 = vadd.f32 %v2426_v26, %v2313_v25  ;;  %2912 = vmatprep.mubr.bf16.mxu1 %v16404_v30  ;;  %v2315_v32 = vpop.f32.mrf.mxu0  ;;  %v16411_v25 = vld [vmem:[%s16835_s30 + $0x18] ss:$36 sps:$4 sm:$0xff]   ;;  %v3551_v26 = vsel %vm17440_vm6, 0, %v3550_v19  ;;  %3576 = vst [vmem:[#allocation2 + $0x5c] sm:$0x6] %v3575_v27  ;;  %v3503_v19 = vsel %vm17431_vm3, 0, %v3502_v11 }
 0x13c   : > { %v2428_v33 = vpop.f32.mrf.mxu1  ;;  %v16412_v30 = vld [vmem:[%s16835_s30 + $0x5c] ss:$36 sps:$4 sm:$0xff]   ;;  %3552 = vst [vmem:[#allocation2 + $0x1c] sm:$0x6] %v3551_v26  ;;  %v3553_v12 = vld [vmem:[#allocation2 + $0x24] sm:$0x6] }
 0x13d   : > { %v17474_v34 = vadd.f32 %v2428_v33, %v2315_v32  ;;  %v2317_v35 = vpop.f32.mrf.mxu0  ;;  %v15639_v32 = vld [vmem:[%s23145_s1 + $0x620] ss:$12 sps:$4 sm:$0xff]   ;;  %v15665_v17 = vld [vmem:[%s23148_s4 + $0x30] ss:$8 sps:$4 sm:$0xff]   ;;  %v3554_v20 = vsel %vm17440_vm6, 0, %v3553_v12 }
 0x13e   : > { %v2430_v37 = vpop.f32.mrf.mxu1  ;;  %3504 = vst [vmem:[#allocation2 + $0x20] sm:$0x3] %v3503_v19  ;;  %3555 = vst [vmem:[#allocation2 + $0x24] sm:$0x6] %v3554_v20  ;;  %v16422_v20 = vld [vmem:[%s16835_s30 + $0xe8] ss:$36 sps:$4 sm:$0xff]  }
 0x13f   : > { %v17476_v38 = vadd.f32 %v2430_v37, %v2317_v35  ;;  %v2319_v39 = vpop.f32.mrf.mxu0  ;;  %v15647_v37 = vld [vmem:[%s23148_s4 + $0x60] ss:$8 sps:$4 sm:$0xff]  }
 0x140   : > { %v2432_v40 = vpop.f32.mrf.mxu1 }
 0x141   : > { %v17478_v41 = vadd.f32 %v2432_v40, %v2319_v39  ;;  %v2323_v43 = vpop.f32.mrf.mxu0  ;;  %3010 = vmatmul.mubr.bf16.gmra.mxu0 %v16407_v46  ;;  %v15655_v39 = vld [vmem:[%s23148_s4 + $0x54] ss:$8 sps:$4 sm:$0xff]  }
 0x142   : > { %v2436_v44 = vpop.f32.mrf.mxu1  ;;  %2913 = vmatmul.mubr.bf16.gmra.mxu1 %v16406_v45  ;;  %3147 = vmatprep.mubr.bf16.mxu0 %v16409_v51  ;;  %v15653_v51 = vld [vmem:[%s23148_s4 + $0x50] ss:$8 sps:$4 sm:$0xff]  }
 0x143   : > { %v17482_v48 = vadd.f32 %v2436_v44, %v2323_v43  ;;  %3050 = vmatprep.mubr.bf16.mxu1 %v16408_v49  ;;  %v2325_v57 = vpop.f32.mrf.mxu0 }
 0x144   : > { %v2438_v58 = vpop.f32.mrf.mxu1 }
 0x145   : > { %v17492_v63 = vadd.f32 %v2438_v58, %v2325_v57  ;;  %v2327_v2 = vpop.f32.mrf.mxu0  ;;  %v16414_v58 = vld [vmem:[%s16835_s30 + $0x58] ss:$36 sps:$4 sm:$0xff]  }
 0x146   : > { %v2440_v3 = vpop.f32.mrf.mxu1 }
 0x147   : > { %v17499_v6 = vadd.f32 %v2440_v3, %v2327_v2  ;;  %v2329_v13 = vpop.f32.mrf.mxu0  ;;  %v15646_v2 = vld [vmem:[%s23148_s4 + $0x174] ss:$8 sps:$4 sm:$0xff]   ;;  %v15659_v3 = vld [vmem:[%s23148_s4 + $0x40] ss:$8 sps:$4 sm:$0xff]  }
 0x148   : > { %v2442_v14 = vpop.f32.mrf.mxu1 }
 0x149   : > { %v17511_v18 = vadd.f32 %v2442_v14, %v2329_v13  ;;  %v2333_v21 = vpop.f32.mrf.mxu0  ;;  %3148 = vmatmul.mubr.bf16.vlgmr.msra.gmra.mxu0 %v16411_v25  ;;  %v3526_v13 = vld [vmem:[#allocation2 + $0x60] sm:$0x3]  ;;  %v3577_v25 = vld [vmem:[#allocation2 + $0x64] sm:$0x6] }
 0x14a   : > { %v2446_v23 = vpop.f32.mrf.mxu1  ;;  %3051 = vmatmul.mubr.bf16.vlgmr.msra.gmra.mxu1 %v16410_v24  ;;  %3155 = vmatprep.mubr.bf16.mxu0 %v16413_v31  ;;  %v15673_v24 = vld [vmem:[%s23148_s4 + $0x24] ss:$8 sps:$4 sm:$0xff]  }
 0x14b   : > { %v17519_v28 = vadd.f32 %v2446_v23, %v2333_v21  ;;  %3058 = vmatprep.mubr.bf16.mxu1 %v16412_v30  ;;  %v2335_v33 = vpop.f32.mrf.mxu0  ;;  %15176 = vmatpush3.bf16.msra.mxu1 %v17411_v36  ;;  %v15640_v36 = vld [vmem:[%s23145_s1 + $0x608] ss:$12 sps:$4 sm:$0xff]   ;;  %v3527_v21 = vsel %vm17431_vm3, 0, %v3526_v13  ;;  %v3578_v30 = vsel %vm17440_vm6, 0, %v3577_v25  ;;  %v15677_v13 = vld [vmem:[%s23148_s4 + $0x10] ss:$8 sps:$4 sm:$0xff]  }
 0x14c   : > { %v2448_v35 = vpop.f32.mrf.mxu1  ;;  %6040 = vmatpush1.bf16.msra.mxu0 %v15641_v4  ;;  %15177 = vmatprep.subr.bf16.mxu1 %v15638_v7  ;;  %v15667_v4 = vld [vmem:[%s23148_s4 + $0x34] ss:$8 sps:$4 sm:$0xff]   ;;  %3528 = vst [vmem:[#allocation2 + $0x60] sm:$0x3] %v3527_v21  ;;  %3579 = vst [vmem:[#allocation2 + $0x64] sm:$0x6] %v3578_v30 }
 0x14d   : > { %v17533_v40 = vadd.f32 %v2448_v35, %v2335_v33  ;;  %6041 = vmatprep.subr.bf16.mxu0 %v15649_v8  ;;  %v2337_v43 = vpop.f32.mrf.mxu0  ;;  %v3529_v33 = vld [vmem:[#allocation2 + $0x68] sm:$0x3]  ;;  %v16423_v21 = vld [vmem:[%s16835_s30 + $0xf0] ss:$36 sps:$4 sm:$0xff]  }
 0x14e   : > { %v2450_v44 = vpop.f32.mrf.mxu1  ;;  %v16424_v25 = vld [vmem:[%s16835_s30 + $0x134] ss:$36 sps:$4 sm:$0xff]  }
 0x14f   : > { %v17535_v45 = vadd.f32 %v2450_v44, %v2337_v43  ;;  %v2339_v46 = vpop.f32.mrf.mxu0  ;;  %15178 = vmatpush3.bf16.msra.mxu1 %v15638_v7  ;;  %v16419_v43 = vld [vmem:[%s16835_s30 + $0xa8] ss:$36 sps:$4 sm:$0xff]  }
 0x150   : > { %v2452_v49 = vpop.f32.mrf.mxu1  ;;  %6042 = vmatpush1.bf16.msra.mxu0 %v15647_v37  ;;  %15179 = vmatprep.subr.bf16.mxu1 %v15639_v32  ;;  %v15671_v44 = vld [vmem:[%s23148_s4 + $0x20] ss:$8 sps:$4 sm:$0xff]  }
 0x151   : > { %v17546_v55 = vadd.f32 %v2452_v49, %v2339_v46  ;;  %6043 = vmatprep.subr.bf16.mxu0 %v15655_v39  ;;  %v2343_v56 = vpop.f32.mrf.mxu0  ;;  %3156 = vmatmul.mubr.bf16.gmra.mxu0 %v16415_v59  ;;  %v16418_v39 = vld [vmem:[%s16835_s30 + $0xa0] ss:$36 sps:$4 sm:$0xff]   ;;  %v3530_v46 = vsel %vm17431_vm3, 0, %v3529_v33 }
 0x152   : > { %v2456_v57 = vpop.f32.mrf.mxu1  ;;  %3059 = vmatmul.mubr.bf16.gmra.mxu1 %v16414_v58  ;;  %3163 = vmatprep.mubr.bf16.mxu0 %v16417_v1  ;;  %3531 = vst [vmem:[#allocation2 + $0x68] sm:$0x3] %v3530_v46  ;;  %v3580_v58 = vld [vmem:[#allocation2 + $0x6c] sm:$0x6]  ;;  %v3532_v46 = vld [vmem:[#allocation2 + $0x70] sm:$0x3] }
 0x153   : > { %v17550_v60 = vadd.f32 %v2456_v57, %v2343_v56  ;;  %3066 = vmatprep.mubr.bf16.mxu1 %v16416_v62  ;;  %v2345_v5 = vpop.f32.mrf.mxu0  ;;  %15180 = vmatpush3.bf16.msra.mxu1 %v15639_v32  ;;  %v3505_v32 = vld [vmem:[#allocation2 + $0x28] sm:$0x3]  ;;  %v15679_v56 = vld [vmem:[%s23148_s4 + $0x14] ss:$8 sps:$4 sm:$0xff]   ;;  %v3556_v57 = vld [vmem:[#allocation2 + $0x2c] sm:$0x6] }
 0x154   : > { %v2458_v7 = vpop.f32.mrf.mxu1  ;;  %6044 = vmatpush1.bf16.msra.mxu0 %v15653_v51  ;;  %15181 = vmatprep.subr.bf16.mxu1 %v15640_v36  ;;  %v16420_v51 = vld [vmem:[%s16835_s30 + $0xec] ss:$36 sps:$4 sm:$0xff]   ;;  %v3557_v1 = vsel %vm17440_vm6, 0, %v3556_v57 }
 0x155   : > { %v17563_v8 = vadd.f32 %v2458_v7, %v2345_v5  ;;  %6045 = vmatprep.subr.bf16.mxu0 %v15661_v52  ;;  %v2347_v14 = vpop.f32.mrf.mxu0  ;;  %v16421_v52 = vld [vmem:[%s16835_s30 + $0xf4] ss:$36 sps:$4 sm:$0xff]   ;;  %3558 = vst [vmem:[#allocation2 + $0x2c] sm:$0x6] %v3557_v1  ;;  %v15697_v1 = vld [vmem:[%s23148_s4 + $0xe4] ss:$8 sps:$4 sm:$0xff]  }
 0x156   : > { %v2460_v16 = vpop.f32.mrf.mxu1 }
 0x157   : > { %v17574_v23 = vadd.f32 %v2460_v16, %v2347_v14  ;;  %v2349_v26 = vpop.f32.mrf.mxu0  ;;  %15182 = vmatpush3.bf16.msra.mxu1 %v15640_v36  ;;  %v3506_v36 = vsel %vm17431_vm3, 0, %v3505_v32  ;;  %v15685_v16 = vld [vmem:[%s23148_s4 + $0x4] ss:$8 sps:$4 sm:$0xff]   ;;  %v15683_v32 = vld [vmem:[%s23148_s4] ss:$8 sps:$4 sm:$0xff]  }
 0x158   : > { %v2462_v27 = vpop.f32.mrf.mxu1  ;;  %6046 = vmatpush1.bf16.msra.mxu0 %v15659_v3  ;;  %6152 = vmatprep.subr.bf16.mxu1 %v15646_v2  ;;  %3507 = vst [vmem:[#allocation2 + $0x28] sm:$0x3] %v3506_v36  ;;  %v3581_v2 = vsel %vm17440_vm6, 0, %v3580_v58  ;;  %v3559_v36 = vld [vmem:[#allocation2 + $0x34] sm:$0x6] }
 0x159   : > { %v17581_v31 = vadd.f32 %v2462_v27, %v2349_v26  ;;  %6047 = vmatprep.subr.bf16.mxu0 %v15667_v4  ;;  %v2353_v35 = vpop.f32.mrf.mxu0  ;;  %3164 = vmatmul.mubr.bf16.gmra.mxu0 %v16419_v43  ;;  %3582 = vst [vmem:[#allocation2 + $0x6c] sm:$0x6] %v3581_v2  ;;  %v16425_v26 = vld [vmem:[%s16835_s30 + $0x13c] ss:$36 sps:$4 sm:$0xff]   ;;  %v3560_v58 = vsel %vm17440_vm6, 0, %v3559_v36 }
 0x15a   : > { %v2466_v37 = vpop.f32.mrf.mxu1  ;;  %3067 = vmatmul.mubr.bf16.gmra.mxu1 %v16418_v39  ;;  %3171 = vmatprep.mubr.bf16.mxu0 %v16421_v52  ;;  %3561 = vst [vmem:[#allocation2 + $0x34] sm:$0x6] %v3560_v58  ;;  %v3583_v2 = vld [vmem:[#allocation2 + $0x74] sm:$0x6]  ;;  %v15709_v58 = vld [vmem:[%s23148_s4 + $0xc4] ss:$8 sps:$4 sm:$0xff]  }
 0x15b   : > { %v17592_v49 = vadd.f32 %v2466_v37, %v2353_v35  ;;  %3074 = vmatprep.mubr.bf16.mxu1 %v16420_v51  ;;  %v2355_v59 = vpop.f32.mrf.mxu0  ;;  %v15691_v35 = vld [vmem:[%s23148_s4 + $0xf4] ss:$8 sps:$4 sm:$0xff]  }
 0x15c   : > { %v2468_v62 = vpop.f32.mrf.mxu1  ;;  %6048 = vmatpush1.bf16.msra.mxu0 %v15665_v17 }
 0x15d   : > { %v17603_v3 = vadd.f32 %v2468_v62, %v2355_v59  ;;  %6049 = vmatprep.subr.bf16.mxu0 %v15673_v24  ;;  %v2357_v4 = vpop.f32.mrf.mxu0  ;;  %v3533_v59 = vsel %vm17431_vm3, 0, %v3532_v46 }
 0x15e   : > { %v2470_v5 = vpop.f32.mrf.mxu1  ;;  %3534 = vst [vmem:[#allocation2 + $0x70] sm:$0x3] %v3533_v59 }
 0x15f   : > { %v17605_v7 = vadd.f32 %v2470_v5, %v2357_v4  ;;  %v2359_v11 = vpop.f32.mrf.mxu0 }
 0x160   : > { %v2472_v12 = vpop.f32.mrf.mxu1  ;;  %6050 = vmatpush1.bf16.msra.mxu0 %v15671_v44  ;;  %v3508_v44 = vld [vmem:[#allocation2 + $0x30] sm:$0x3] }
 0x161   : > { %v17610_v14 = vadd.f32 %v2472_v12, %v2359_v11  ;;  %6051 = vmatprep.subr.bf16.mxu0 %v15679_v56  ;;  %v2363_v17 = vpop.f32.mrf.mxu0  ;;  %3172 = vmatmul.mubr.bf16.gmra.mxu0 %v16423_v21  ;;  %v15689_v56 = vld [vmem:[%s23148_s4 + $0xf0] ss:$8 sps:$4 sm:$0xff]   ;;  %v3509_v57 = vsel %vm17431_vm3, 0, %v3508_v44 }
 0x162   : > { %v2476_v19 = vpop.f32.mrf.mxu1  ;;  %3075 = vmatmul.mubr.bf16.gmra.mxu1 %v16422_v20  ;;  %3179 = vmatprep.mubr.bf16.mxu0 %v16425_v26  ;;  %3510 = vst [vmem:[#allocation2 + $0x30] sm:$0x3] %v3509_v57  ;;  %v16426_v11 = vld [vmem:[%s16835_s30 + $0x130] ss:$36 sps:$4 sm:$0xff]   ;;  %v16427_v12 = vld [vmem:[%s16835_s30 + $0x138] ss:$36 sps:$4 sm:$0xff]  }
 0x163   : > { %v17617_v24 = vadd.f32 %v2476_v19, %v2363_v17  ;;  %3082 = vmatprep.mubr.bf16.mxu1 %v16424_v25  ;;  %v2365_v27 = vpop.f32.mrf.mxu0  ;;  %v16429_v17 = vld [vmem:[%s16835_s30 + $0x184] ss:$36 sps:$4 sm:$0xff]   ;;  %v3511_v19 = vld [vmem:[#allocation2 + $0x38] sm:$0x3] }
 0x164   : > { %v2478_v30 = vpop.f32.mrf.mxu1  ;;  %6052 = vmatpush1.bf16.msra.mxu0 %v15677_v13  ;;  %v3584_v13 = vsel %vm17440_vm6, 0, %v3583_v2  ;;  %v3535_v20 = vld [vmem:[#allocation2 + $0x78] sm:$0x3]  ;;  %v15695_v26 = vld [vmem:[%s23148_s4 + $0xe0] ss:$8 sps:$4 sm:$0xff]  }
 0x165   : > { %v17624_v33 = vadd.f32 %v2478_v30, %v2365_v27  ;;  %6053 = vmatprep.subr.bf16.mxu0 %v15685_v16  ;;  %v2367_v37 = vpop.f32.mrf.mxu0  ;;  %v16428_v16 = vld [vmem:[%s16835_s30 + $0x17c] ss:$36 sps:$4 sm:$0xff]   ;;  %3585 = vst [vmem:[#allocation2 + $0x74] sm:$0x6] %v3584_v13  ;;  %v3512_v27 = vsel %vm17431_vm3, 0, %v3511_v19  ;;  %v3536_v30 = vsel %vm17431_vm3, 0, %v3535_v20 }
 0x166   : > { %v2480_v39 = vpop.f32.mrf.mxu1  ;;  %3513 = vst [vmem:[#allocation2 + $0x38] sm:$0x3] %v3512_v27  ;;  %3537 = vst [vmem:[#allocation2 + $0x78] sm:$0x3] %v3536_v30  ;;  %v15701_v57 = vld [vmem:[%s23148_s4 + $0xd0] ss:$8 sps:$4 sm:$0xff]  }
 0x167   : > { %v17629_v43 = vadd.f32 %v2480_v39, %v2367_v37  ;;  %v2369_v51 = vpop.f32.mrf.mxu0  ;;  %v3562_v37 = vld [vmem:[#allocation2 + $0x3c] sm:$0x6]  ;;  %v15713_v30 = vld [vmem:[%s23148_s4 + $0xb0] ss:$8 sps:$4 sm:$0xff]  }
 0x168   : > { %v2482_v52 = vpop.f32.mrf.mxu1  ;;  %6054 = vmatpush1.bf16.msra.mxu0 %v15683_v32  ;;  %v3586_v39 = vld [vmem:[#allocation2 + $0x7c] sm:$0x6]  ;;  %v3563_v46 = vsel %vm17440_vm6, 0, %v3562_v37  ;;  %v15721_v37 = vld [vmem:[%s23148_s4 + $0xa4] ss:$8 sps:$4 sm:$0xff]  }
 0x169   : > { %v17640_v62 = vadd.f32 %v2482_v52, %v2369_v51  ;;  %6055 = vmatprep.subr.bf16.mxu0 %v15691_v35  ;;  %v17645_v4 = vpop.f32.mrf.mxu0  ;;  %3180 = vmatmul.mubr.bf16.gmra.mxu0 %v16427_v12  ;;  %v15703_v35 = vld [vmem:[%s23148_s4 + $0xd4] ss:$8 sps:$4 sm:$0xff]   ;;  %3564 = vst [vmem:[#allocation2 + $0x3c] sm:$0x6] %v3563_v46 }
 0x16a   : > { %v17647_v5 = vpop.f32.mrf.mxu1  ;;  %3083 = vmatmul.mubr.bf16.gmra.mxu1 %v16426_v11  ;;  %3187 = vmatprep.mubr.bf16.mxu0 %v16429_v17  ;;  %v16430_v2 = vld [vmem:[%s16835_s30 + $0x178] ss:$36 sps:$4 sm:$0xff]   ;;  %v16431_v11 = vld [vmem:[%s16835_s30 + $0x180] ss:$36 sps:$4 sm:$0xff]   ;;  %v16433_v17 = vld [vmem:[%s16835_s30 + $0x1cc] ss:$36 sps:$4 sm:$0xff]  }
 0x16b   : > { %3090 = vmatprep.mubr.bf16.mxu1 %v16428_v16  ;;  %v2521_v21 = vpop.f32.mrf.mxu0  ;;  %v16432_v16 = vld [vmem:[%s16835_s30 + $0x1c4] ss:$36 sps:$4 sm:$0xff]  }
 0x16c   : > { %v2634_v25 = vpop.f32.mrf.mxu1  ;;  %6056 = vmatpush2.bf16.msra.mxu0 %v15689_v56  ;;  %v2522_v32 = vadd.f32 %v2521_v21, %v17423_v47  ;;  %v3587_v47 = vsel %vm17440_vm6, 0, %v3586_v39  ;;  %v15715_v21 = vld [vmem:[%s23148_s4 + $0xb4] ss:$8 sps:$4 sm:$0xff]   ;;  %vm19000_vm6 = vmor %vm3488_vm2, %vm4722_vm5 }
 0x16d   : > { %6057 = vmatprep.subr.bf16.mxu0 %v15697_v1  ;;  %v17666_v44 = vpop.f32.mrf.mxu0  ;;  %3588 = vst [vmem:[#allocation2 + $0x7c] sm:$0x6] %v3587_v47  ;;  %vm19011_vm2 = vmor %vm3487_vm1, %vm4640_vm7  ;;  %vm6611_vm1 = vcmask 1043456  }
 0x16e   : > { %v17668_v36 = vpop.f32.mrf.mxu1  ;;  %v17674_v51 = vadd.f32 %v2634_v25, %v2522_v32 }
 0x16f   : > { %v2525_v52 = vpop.f32.mrf.mxu0 }
 0x170   : > { %v2638_v56 = vpop.f32.mrf.mxu1  ;;  %6058 = vmatpush2.bf16.msra.mxu0 %v15695_v26  ;;  %v2526_v61 = vadd.f32 %v2525_v52, %v17427_v53  ;;  %v15707_v53 = vld [vmem:[%s23148_s4 + $0xc0] ss:$8 sps:$4 sm:$0xff]  }
 0x171   : > { %6059 = vmatprep.subr.bf16.mxu0 %v15703_v35  ;;  %v2529_v59 = vpop.f32.mrf.mxu0  ;;  %3188 = vmatmul.mubr.bf16.gmra.mxu0 %v16431_v11 }
 0x172   : > { %v2642_v1 = vpop.f32.mrf.mxu1  ;;  %3091 = vmatmul.mubr.bf16.gmra.mxu1 %v16430_v2  ;;  %v17685_v12 = vadd.f32 %v2638_v56, %v2526_v61  ;;  %v2530_v13 = vadd.f32 %v2529_v59, %v17444_v0  ;;  %3195 = vmatprep.mubr.bf16.mxu0 %v16433_v17  ;;  %v16437_v2 = vld [vmem:[%s16835_s30 + $0x214] ss:$36 sps:$4 sm:$0xff]  }
 0x173   : > { %3098 = vmatprep.mubr.bf16.mxu1 %v16432_v16  ;;  %v2531_v19 = vpop.f32.mrf.mxu0 }
 0x174   : > { %v2644_v20 = vpop.f32.mrf.mxu1  ;;  %6060 = vmatpush2.bf16.msra.mxu0 %v15701_v57  ;;  %v17696_v25 = vadd.f32 %v2642_v1, %v2530_v13  ;;  %v2532_v26 = vadd.f32 %v2531_v19, %v17454_v9  ;;  %v16434_v57 = vld [vmem:[%s16835_s30 + $0x1c0] ss:$36 sps:$4 sm:$0xff]   ;;  %v16436_v1 = vld [vmem:[%s16835_s30 + $0x20c] ss:$36 sps:$4 sm:$0xff]  }
 0x175   : > { %6061 = vmatprep.subr.bf16.mxu0 %v15709_v58  ;;  %v2533_v0 = vpop.f32.mrf.mxu0  ;;  %v16435_v58 = vld [vmem:[%s16835_s30 + $0x1c8] ss:$36 sps:$4 sm:$0xff]  }
 0x176   : > { %v2646_v27 = vpop.f32.mrf.mxu1  ;;  %v17702_v32 = vadd.f32 %v2644_v20, %v2532_v26  ;;  %v2534_v35 = vadd.f32 %v2533_v0, %v17456_v15  ;;  %v15719_v15 = vld [vmem:[%s23148_s4 + $0xa0] ss:$8 sps:$4 sm:$0xff]   ;;  %v15725_v0 = vld [vmem:[%s23148_s4 + $0x90] ss:$8 sps:$4 sm:$0xff]  }
 0x177   : > { %v2535_v39 = vpop.f32.mrf.mxu0 }
 0x178   : > { %v2648_v9 = vpop.f32.mrf.mxu1  ;;  %6062 = vmatpush2.bf16.msra.mxu0 %v15707_v53  ;;  %v17708_v46 = vadd.f32 %v2646_v27, %v2534_v35  ;;  %v2536_v47 = vadd.f32 %v2535_v39, %v17462_v22  ;;  %v15727_v22 = vld [vmem:[%s23148_s4 + $0x94] ss:$8 sps:$4 sm:$0xff]  }
 0x179   : > { %6063 = vmatprep.subr.bf16.mxu0 %v15715_v21  ;;  %v2539_v52 = vpop.f32.mrf.mxu0  ;;  %3196 = vmatmul.mubr.bf16.gmra.mxu0 %v16435_v58  ;;  %v16439_v39 = vld [vmem:[%s16835_s30 + $0x210] ss:$36 sps:$4 sm:$0xff]  }
 0x17a   : > { %v2652_v56 = vpop.f32.mrf.mxu1  ;;  %3099 = vmatmul.mubr.bf16.gmra.mxu1 %v16434_v57  ;;  %v17716_v61 = vadd.f32 %v2648_v9, %v2536_v47  ;;  %v2540_v59 = vadd.f32 %v2539_v52, %v17470_v29  ;;  %3203 = vmatprep.mubr.bf16.mxu0 %v16437_v2  ;;  %v15731_v9 = vld [vmem:[%s23148_s4 + $0x80] ss:$8 sps:$4 sm:$0xff]  }
 0x17b   : > { %3106 = vmatprep.mubr.bf16.mxu1 %v16436_v1  ;;  %v2541_v11 = vpop.f32.mrf.mxu0 }
 0x17c   : > { %23246 = vst [vmem:[#allocation12_spill] sm:$0xff] %v17716_v61  ;;  %v2654_v13 = vpop.f32.mrf.mxu1  ;;  %6064 = vmatpush2.bf16.msra.mxu0 %v15713_v30  ;;  %v17724_v16 = vadd.f32 %v2652_v56, %v2540_v59  ;;  %v2542_v17 = vadd.f32 %v2541_v11, %v17474_v34  ;;  %v15733_v30 = vld [vmem:[%s23148_s4 + $0x84] ss:$8 sps:$4 sm:$0xff]   ;;  %v15644_v59 = vld [vmem:[%s23148_s4 + $0x170] ss:$8 sps:$4 sm:$0xff]  }
 0x17d   : > { %6065 = vmatprep.subr.bf16.mxu0 %v15721_v37  ;;  %v2543_v19 = vpop.f32.mrf.mxu0 }
 0x17e   : > { %23247 = vst [vmem:[#allocation13_spill] sm:$0xff] %v17724_v16  ;;  %v2656_v29 = vpop.f32.mrf.mxu1  ;;  %v17727_v20 = vadd.f32 %v2654_v13, %v2542_v17  ;;  %v2544_v53 = vadd.f32 %v2543_v19, %v17476_v38  ;;  %v16438_v38 = vld [vmem:[%s16835_s30 + $0x208] ss:$36 sps:$4 sm:$0xff]  }
 0x17f   : > { %v2545_v21 = vpop.f32.mrf.mxu0  ;;  %v15652_v17 = vld [vmem:[%s23148_s4 + $0x164] ss:$8 sps:$4 sm:$0xff]  }
 0x180   : > { %23248 = vst [vmem:[#allocation14_spill] sm:$0xff] %v17727_v20  ;;  %v2658_v26 = vpop.f32.mrf.mxu1  ;;  %6066 = vmatpush2.bf16.msra.mxu0 %v15719_v15  ;;  %v17733_v27 = vadd.f32 %v2656_v29, %v2544_v53  ;;  %v2546_v34 = vadd.f32 %v2545_v21, %v17478_v41  ;;  %v16440_v41 = vld [vmem:[%s16835_s30 + $0x20] ss:$36 sps:$4 sm:$0xff]  }
 0x181   : > { %6067 = vmatprep.subr.bf16.mxu0 %v15727_v22  ;;  %v2549_v35 = vpop.f32.mrf.mxu0  ;;  %3204 = vmatmul.mubr.bf16.gmra.mxu0 %v16439_v39 }
 0x182   : > { %23249 = vst [vmem:[#allocation15_spill] sm:$0xff] %v17733_v27  ;;  %v2662_v37 = vpop.f32.mrf.mxu1  ;;  %3107 = vmatmul.mubr.bf16.gmra.mxu1 %v16438_v38  ;;  %v17744_v47 = vadd.f32 %v2658_v26, %v2546_v34  ;;  %v2550_v52 = vadd.f32 %v2549_v35, %v17482_v48  ;;  %v16441_v26 = vld [vmem:[%s16835_s30 + $0x68] ss:$36 sps:$4 sm:$0xff]   ;;  %v15656_v38 = vld [vmem:[%s23148_s4 + $0x150] ss:$8 sps:$4 sm:$0xff]  }
 0x183   : > { %15183 = vmatprep.mubr.msk.bf16.mxu1 %vm2234_vm0, %v16440_v41  ;;  %v2551_v56 = vpop.f32.mrf.mxu0 }
 0x184   : > { %23250 = vst [vmem:[#allocation16_spill] sm:$0xff] %v17744_v47  ;;  %v2664_v57 = vpop.f32.mrf.mxu1  ;;  %6068 = vmatpush2.bf16.msra.mxu0 %v15725_v0  ;;  %v17749_v58 = vadd.f32 %v2662_v37, %v2550_v52  ;;  %v2552_v15 = vadd.f32 %v2551_v56, %v17492_v63  ;;  %v15740_v63 = vld [vmem:[%s23148_s4 + $0x274] ss:$8 sps:$4 sm:$0xff]   ;;  %v15664_v52 = vld [vmem:[%s23148_s4 + $0x144] ss:$8 sps:$4 sm:$0xff]  }
 0x185   : > { %6069 = vmatprep.subr.bf16.mxu0 %v15733_v30  ;;  %v2553_v1 = vpop.f32.mrf.mxu0  ;;  %v15658_v0 = vld [vmem:[%s23148_s4 + $0x154] ss:$8 sps:$4 sm:$0xff]  }
 0x186   : > { %23251 = vst [vmem:[#allocation17_spill] sm:$0xff] %v17749_v58  ;;  %v2666_v2 = vpop.f32.mrf.mxu1  ;;  %v17755_v22 = vadd.f32 %v2664_v57, %v2552_v15  ;;  %v2554_v48 = vadd.f32 %v2553_v1, %v17499_v6  ;;  %v15650_v6 = vld [vmem:[%s23148_s4 + $0x160] ss:$8 sps:$4 sm:$0xff]   ;;  %v16442_v30 = vld [vmem:[%s16835_s30 + $0xb0] ss:$36 sps:$4 sm:$0xff]  }
 0x187   : > { %v2555_v11 = vpop.f32.mrf.mxu0  ;;  %v16443_v1 = vld [vmem:[%s16835_s30 + $0xf8] ss:$36 sps:$4 sm:$0xff]  }
 0x188   : > { %23252 = vst [vmem:[#allocation18_spill] sm:$0xff] %v17755_v22  ;;  %v2668_v13 = vpop.f32.mrf.mxu1  ;;  %6070 = vmatpush2.bf16.msra.mxu0 %v15731_v9  ;;  %v17764_v19 = vadd.f32 %v2666_v2, %v2554_v48  ;;  %v2556_v29 = vadd.f32 %v2555_v11, %v17511_v18  ;;  %v15670_v2 = vld [vmem:[%s23148_s4 + $0x134] ss:$8 sps:$4 sm:$0xff]   ;;  %v16444_v48 = vld [vmem:[%s16835_s30 + $0x140] ss:$36 sps:$4 sm:$0xff]  }
 0x189   : > { %v17770_v53 = vpop.f32.mrf.mxu0  ;;  %6265 = vmatprep.subr.bf16.mxu0 %v15740_v63  ;;  %v16447_v22 = vld [vmem:[%s16835_s30 + $0x218] ss:$36 sps:$4 sm:$0xff]  }
 0x18a   : > { %23253 = vst [vmem:[#allocation19_spill] sm:$0xff] %v17764_v19  ;;  %v17772_v21 = vpop.f32.mrf.mxu1  ;;  %15184 = vmatmul.mubr.msk.bf16.vlgmr.msra.gmra.mxu1 %vm2234_vm0, %v16441_v26  ;;  %v17779_v34 = vadd.f32 %v2668_v13, %v2556_v29  ;;  %v15668_v26 = vld [vmem:[%s23148_s4 + $0x130] ss:$8 sps:$4 sm:$0xff]  }
 0x18b   : > { %15187 = vmatprep.mubr.msk.bf16.mxu1 %vm2234_vm0, %v16442_v30  ;;  %6153 = vmatpush1.bf16.msra.mxu1 %v15644_v59  ;;  %v2561_v18 = vpop.f32.mrf.mxu0 }
 0x18c   : > { %23254 = vst [vmem:[#allocation20_spill] sm:$0xff] %v17779_v34  ;;  %v2674_v35 = vpop.f32.mrf.mxu1  ;;  %6154 = vmatprep.subr.bf16.mxu1 %v15652_v17  ;;  %v2562_v37 = vadd.f32 %v2561_v18, %v17533_v40  ;;  %v15662_v40 = vld [vmem:[%s23148_s4 + $0x140] ss:$8 sps:$4 sm:$0xff]  }
 0x18d   : > { %v17787_v39 = vpop.f32.mrf.mxu0 }
 0x18e   : > { %v17789_v9 = vpop.f32.mrf.mxu1  ;;  %v17794_v41 = vadd.f32 %v2674_v35, %v2562_v37  ;;  %v2564_v20 = vadd.f32 %v17787_v39, %v17535_v45 }
 0x18f   : > { %6155 = vmatpush1.bf16.msra.mxu1 %v15650_v6  ;;  %v17796_v56 = vpop.f32.mrf.mxu0 }
 0x190   : > { %v17798_v57 = vpop.f32.mrf.mxu1  ;;  %6156 = vmatprep.subr.bf16.mxu1 %v15658_v0  ;;  %v15676_v0 = vld [vmem:[%s23148_s4 + $0x124] ss:$8 sps:$4 sm:$0xff]  }
 0x191   : > { %v17803_v15 = vpop.f32.mrf.mxu0 }
 0x192   : > { %v17805_v59 = vpop.f32.mrf.mxu1  ;;  %15188 = vmatmul.mubr.msk.bf16.gmra.mxu1 %vm2234_vm0, %v16443_v1  ;;  %v16446_v1 = vld [vmem:[%s16835_s30 + $0x1d0] ss:$36 sps:$4 sm:$0xff]   ;;  %v2570_v45 = vadd.f32 %v17803_v15, %v17550_v60  ;;  %v2677_v15 = vadd.f32 %v17789_v9, %v2564_v20 }
 0x193   : > { %15191 = vmatprep.mubr.msk.bf16.mxu1 %vm2234_vm0, %v16444_v48  ;;  %6157 = vmatpush1.bf16.msra.mxu1 %v15656_v38  ;;  %v2571_v11 = vpop.f32.mrf.mxu0  ;;  %v16445_v38 = vld [vmem:[%s16835_s30 + $0x188] ss:$36 sps:$4 sm:$0xff]  }
 0x194   : > { %v2684_v13 = vpop.f32.mrf.mxu1  ;;  %6158 = vmatprep.subr.bf16.mxu1 %v15664_v52  ;;  %v2572_v17 = vadd.f32 %v2571_v11, %v17563_v8  ;;  %v15674_v8 = vld [vmem:[%s23148_s4 + $0x120] ss:$8 sps:$4 sm:$0xff]   ;;  %v3311_v52 = vlaneseq }
 0x195   : > { %v2573_v63 = vpop.f32.mrf.mxu0 }
 0x196   : > { %v17815_v29 = vpop.f32.mrf.mxu1  ;;  %v17817_v6 = vadd.f32 %v2684_v13, %v2572_v17  ;;  %v15680_v13 = vld [vmem:[%s23148_s4 + $0x110] ss:$8 sps:$4 sm:$0xff]   ;;  %v17847_v10 = vshrl.u32 %v3311_v52, 7  ;;  %v15686_v52 = vld [vmem:[%s23148_s4 + $0x100] ss:$8 sps:$4 sm:$0xff]  }
 0x197   : > { %6159 = vmatpush1.bf16.msra.mxu1 %v15662_v40  ;;  %v2575_v30 = vpop.f32.mrf.mxu0  ;;  %v15682_v40 = vld [vmem:[%s23148_s4 + $0x114] ss:$8 sps:$4 sm:$0xff]  }
 0x198   : > { %v17825_v18 = vpop.f32.mrf.mxu1  ;;  %6160 = vmatprep.subr.bf16.mxu1 %v15670_v2  ;;  %23255 = vst [vmem:[#allocation21_spill] sm:$0xff] %v17847_v10  ;;  %v17878_v27 = vsub.s32 1, %v17847_v10 }
 0x199   : > { %v17830_v35 = vpop.f32.mrf.mxu0 }
 0x19a   : > { %v17832_v37 = vpop.f32.mrf.mxu1  ;;  %15192 = vmatmul.mubr.msk.bf16.gmra.mxu1 %vm2234_vm0, %v16445_v38  ;;  %23258 = vst [vmem:[#allocation24_spill] sm:$0xff] %v17878_v27 }
 0x19b   : > { %15195 = vmatprep.mubr.msk.bf16.mxu1 %vm2234_vm0, %v16446_v1  ;;  %6161 = vmatpush1.bf16.msra.mxu1 %v15668_v26  ;;  %v2581_v2 = vpop.f32.mrf.mxu0  ;;  %v15688_v1 = vld [vmem:[%s23148_s4 + $0x104] ss:$8 sps:$4 sm:$0xff]  }
 0x19c   : > { %v2694_v48 = vpop.f32.mrf.mxu1  ;;  %6162 = vmatprep.subr.bf16.mxu1 %v15676_v0  ;;  %v2582_v11 = vadd.f32 %v2581_v2, %v17603_v3  ;;  %v3309_v3 = vld [vmem:[%s23146_s2] sm:$0x7] }
 0x19d   : > { %v2583_v17 = vpop.f32.mrf.mxu0 }
 0x19e   : > { %v17845_v38 = vpop.f32.mrf.mxu1  ;;  %v17852_v26 = vadd.f32 %v2694_v48, %v2582_v11  ;;  %v15694_v48 = vld [vmem:[%s23148_s4 + $0x1f4] ss:$8 sps:$4 sm:$0xff]   ;;  %v2520_v11 = vadd.f32 %v17645_v4, %v17419_v42  ;;  %v15692_v4 = vld [vmem:[%s23148_s4 + $0x1f0] ss:$8 sps:$4 sm:$0xff]  }
 0x19f   : > { %6163 = vmatpush1.bf16.msra.mxu1 %v15674_v8  ;;  %v2585_v0 = vpop.f32.mrf.mxu0  ;;  %v17867_v8 = vsub.s32 0, %v17847_v10  ;;  %v17908_v10 = vrot.slane %v3309_v3, %v17878_v27 }
 0x1a0   : > { %23256 = vst [vmem:[#allocation22_spill] sm:$0xff] %v17852_v26  ;;  %v17854_v34 = vpop.f32.mrf.mxu1  ;;  %6164 = vmatprep.subr.bf16.mxu1 %v15682_v40  ;;  %v3374_v40 = vld [vmem:[%s23147_s3] sm:$0x7]  ;;  %v2560_v26 = vadd.f32 %v17770_v53, %v17519_v28  ;;  %v2566_v28 = vadd.f32 %v17796_v56, %v17546_v55  ;;  %v2576_v53 = vadd.f32 %v2575_v30, %v17581_v31 }
 0x1a1   : > { %v2589_v2 = vpop.f32.mrf.mxu0  ;;  %23257 = vst [vmem:[#allocation23_spill] sm:$0xff] %v17867_v8  ;;  %v17888_v42 = vrot.slane %v3309_v3, %v17867_v8  ;;  %v17911_v55 = vrot.slane %v3374_v40, %v17878_v27  ;;  %v2633_v60 = vadd.f32 %v17647_v5, %v2520_v11  ;;  %v2580_v31 = vadd.f32 %v17830_v35, %v17592_v49 }
 0x1a2   : > { %v17862_v19 = vpop.f32.mrf.mxu1  ;;  %15196 = vmatmul.mubr.msk.bf16.gmra.mxu1 %vm2234_vm0, %v16447_v22  ;;  %v2524_v22 = vadd.f32 %v17666_v44, %v17425_v50  ;;  %v15700_v50 = vld [vmem:[%s23148_s4 + $0x1e4] ss:$8 sps:$4 sm:$0xff]   ;;  %v17903_v44 = vrot.slane %v3374_v40, %v17867_v8  ;;  %v2673_v56 = vadd.f32 %v17772_v21, %v2560_v26  ;;  %v2586_v30 = vadd.f32 %v2585_v0, %v17610_v14 }
 0x1a3   : > { %6165 = vmatpush1.bf16.msra.mxu1 %v15680_v13  ;;  %v2591_v58 = vpop.f32.mrf.mxu0  ;;  %v2590_v3 = vadd.f32 %v2589_v2, %v17617_v24  ;;  %v2679_v20 = vadd.f32 %v17798_v57, %v2566_v28  ;;  %v17930_v21 = vadd.f32 %v17805_v59, %v2570_v45 }
 0x1a4   : > { %v2704_v47 = vpop.f32.mrf.mxu1  ;;  %6166 = vmatprep.subr.bf16.mxu1 %v15688_v1  ;;  %v2592_v13 = vadd.f32 %v2591_v58, %v17624_v33  ;;  %v2574_v58 = vadd.f32 %v2573_v63, %v17574_v23  ;;  %v15698_v23 = vld [vmem:[%s23148_s4 + $0x1e0] ss:$8 sps:$4 sm:$0xff]   ;;  %v2584_v63 = vadd.f32 %v2583_v17, %v17605_v7  ;;  %v17936_v7 = vadd.f32 %v17825_v18, %v2576_v53  ;;  %v15704_v18 = vld [vmem:[%s23148_s4 + $0x1d0] ss:$8 sps:$4 sm:$0xff]  }
 0x1a5   : > { %v2593_v16 = vpop.f32.mrf.mxu0  ;;  %v17957_v2 = vadd.f32 %v17862_v19, %v2590_v3  ;;  %v15718_v3 = vld [vmem:[%s23148_s4 + $0x1b4] ss:$8 sps:$4 sm:$0xff]  }
 0x1a6   : > { %v2706_v61 = vpop.f32.mrf.mxu1  ;;  %v17900_v33 = vadd.f32 %v2704_v47, %v2592_v13  ;;  %v2637_v47 = vadd.f32 %v17668_v36, %v2524_v22  ;;  %v15706_v36 = vld [vmem:[%s23148_s4 + $0x1d4] ss:$8 sps:$4 sm:$0xff]   ;;  %v17933_v49 = vadd.f32 %v17815_v29, %v2574_v58  ;;  %v2594_v14 = vadd.f32 %v2593_v16, %v17629_v43 }
 0x1a7   : > { %6167 = vmatpush1.bf16.msra.mxu1 %v15686_v52  ;;  %v2595_v39 = vpop.f32.mrf.mxu0  ;;  %v17948_v43 = vadd.f32 %v17832_v37, %v2580_v31  ;;  %v17954_v16 = vadd.f32 %v17854_v34, %v2586_v30  ;;  %v15710_v30 = vld [vmem:[%s23148_s4 + $0x1c0] ss:$8 sps:$4 sm:$0xff]  }
 0x1a8   : > { %v2708_v1 = vpop.f32.mrf.mxu1  ;;  %6168 = vmatprep.subr.bf16.mxu1 %v15694_v48  ;;  %v2596_v24 = vadd.f32 %v2595_v39, %v17640_v62  ;;  %v17951_v62 = vadd.f32 %v17845_v38, %v2584_v63  ;;  %v17966_v34 = vadd.f32 %v2706_v61, %v2594_v14 }
 0x1a9   : > { %v2745_v5 = vpop.f32.mrf.mxu0 }
 0x1aa   : > { %v2785_v52 = vpop.f32.mrf.mxu1  ;;  %v2746_v9 = vadd.f32 %v2745_v5, %v2633_v60  ;;  %v17968_v22 = vadd.f32 %v2708_v1, %v2596_v24 }
 0x1ab   : > { %v2786_v26 = vadd.f32 %v2785_v52, %v2673_v56  ;;  %6169 = vmatpush2.bf16.msra.mxu1 %v15692_v4  ;;  %v2747_v35 = vpop.f32.mrf.mxu0 }
 0x1ac   : > { %v2787_v17 = vpop.f32.mrf.mxu1  ;;  %6170 = vmatprep.subr.bf16.mxu1 %v15700_v50  ;;  %v3326_v57 = vmul.f32 %v17888_v42, %v2746_v9  ;;  %v2748_v0 = vadd.f32 %v2747_v35, %v17674_v51 }
 0x1ad   : > { %v3350_v59 = vmul.f32 %v17888_v42, %v2786_v26  ;;  %v2788_v29 = vadd.f32 %v2787_v17, %v17794_v41  ;;  %v2749_v40 = vpop.f32.mrf.mxu0  ;;  %v15712_v41 = vld [vmem:[%s23148_s4 + $0x1c4] ss:$8 sps:$4 sm:$0xff]   ;;  %v15716_v17 = vld [vmem:[%s23148_s4 + $0x1b0] ss:$8 sps:$4 sm:$0xff]  }
 0x1ae   : > { %v2789_v51 = vpop.f32.mrf.mxu1  ;;  %v3391_v48 = vadd.f32 %v17903_v44, %v3326_v57  ;;  %v3327_v11 = vmul.f32 %v17908_v10, %v2748_v0  ;;  %v2750_v19 = vadd.f32 %v2749_v40, %v2637_v47  ;;  %v3815_v57 = vld [vmem:[#allocation2] sm:$0xe] }
 0x1af   : > { %v3415_v37 = vadd.f32 %v17903_v44, %v3350_v59  ;;  %v3351_v38 = vmul.f32 %v17908_v10, %v2788_v29  ;;  %6171 = vmatpush2.bf16.msra.mxu1 %v15698_v23  ;;  %v2790_v13 = vadd.f32 %v2789_v51, %v2677_v15  ;;  %v2751_v4 = vpop.f32.mrf.mxu0  ;;  %v3863_v59 = vld [vmem:[#allocation2 + $0x40] sm:$0xe] }
 0x1b0   : > { %v2791_v50 = vpop.f32.mrf.mxu1  ;;  %6172 = vmatprep.subr.bf16.mxu1 %v15706_v36  ;;  %v3439_v28 = vmax.f32 %v3391_v48, 0.0  ;;  %v17971_v58 = vadd.f32 %v17911_v55, %v3327_v11  ;;  %v3329_v39 = vmul.f32 %v17888_v42, %v2750_v19  ;;  %v2752_v1 = vadd.f32 %v2751_v4, %v17685_v12  ;;  %v3818_v4 = vld [vmem:[#allocation2 + $0x4] sm:$0x3] }
 0x1b1   : > { %v3463_v45 = vmax.f32 %v3415_v37, 0.0  ;;  %v17974_v53 = vadd.f32 %v17911_v55, %v3351_v38  ;;  %v3353_v61 = vmul.f32 %v17888_v42, %v2790_v13  ;;  %v2792_v60 = vadd.f32 %v2791_v50, %v2679_v20  ;;  %v2755_v47 = vpop.f32.mrf.mxu0  ;;  %v3866_v50 = vld [vmem:[#allocation2 + $0x44] sm:$0x3] }
 0x1b2   : > { %v2795_v56 = vpop.f32.mrf.mxu1  ;;  %v14795_v15 = vpack.c.bf16 %v3439_v28, %v3439_v28  ;;  %v3440_v31 = vmax.f32 %v17971_v58, 0.0  ;;  %v3394_v12 = vadd.f32 %v17903_v44, %v3329_v39  ;;  %v3330_v52 = vmul.f32 %v17908_v10, %v2752_v1 }
 0x1b3   : > { %v14803_v23 = vpack.c.bf16 %v3463_v45, %v3463_v45  ;;  %v3464_v63 = vmax.f32 %v17974_v53, 0.0  ;;  %6173 = vmatpush2.bf16.msra.mxu1 %v15704_v18  ;;  %v3418_v5 = vadd.f32 %v17903_v44, %v3353_v61  ;;  %v3354_v36 = vmul.f32 %v17908_v10, %v2792_v60  ;;  %v17991_v20 = vpop.f32.mrf.mxu0 }
 0x1b4   : > { %v17993_v9 = vpop.f32.mrf.mxu1  ;;  %6174 = vmatprep.subr.bf16.mxu1 %v15712_v41  ;;  %v3638_v26 = vshrl.u32 %v14795_v15, 16  ;;  %v3641_v14 = vshll.u32 %v14795_v15, 16  ;;  %v3442_v0 = vmax.f32 %v3394_v12, 0.0  ;;  %v3395_v18 = vadd.f32 %v17911_v55, %v3330_v52  ;;  %v15724_v41 = vld [vmem:[%s23148_s4 + $0x1a4] ss:$8 sps:$4 sm:$0xff]  }
 0x1b5   : > { %v3710_v24 = vshrl.u32 %v14803_v23, 16  ;;  %v3713_v35 = vshll.u32 %v14803_v23, 16  ;;  %v3466_v29 = vmax.f32 %v3418_v5, 0.0  ;;  %v3419_v40 = vadd.f32 %v17911_v55, %v3354_v36  ;;  %v18000_v51 = vpop.f32.mrf.mxu0 }
 0x1b6   : > { %v18002_v48 = vpop.f32.mrf.mxu1  ;;  %v3640_v37 = vrot.slane %v3638_v26, 6  ;;  %v3643_v11 = vrot.slane %v3641_v14, 7  ;;  %v14796_v28 = vpack.c.bf16 %v3442_v0, %v3442_v0  ;;  %v3443_v39 = vmax.f32 %v3395_v18, 0.0 }
 0x1b7   : > { %v3712_v19 = vrot.slane %v3710_v24, 6  ;;  %v3715_v13 = vrot.slane %v3713_v35, 7  ;;  %6175 = vmatpush2.bf16.msra.mxu1 %v15710_v30  ;;  %v14804_v45 = vpack.c.bf16 %v3466_v29, %v3466_v29  ;;  %v3467_v61 = vmax.f32 %v3419_v40, 0.0  ;;  %v18013_v1 = vpop.f32.mrf.mxu0  ;;  %v15722_v30 = vld [vmem:[%s23148_s4 + $0x1a0] ss:$8 sps:$4 sm:$0xff]  }
 0x1b8   : > { %v18015_v60 = vpop.f32.mrf.mxu1  ;;  %6176 = vmatprep.subr.bf16.mxu1 %v15718_v3  ;;  %v3644_v15 = vor.u32 %v3643_v11, %v3640_v37  ;;  %v2756_v12 = vadd.f32 %v2755_v47, %v17696_v25  ;;  %v2796_v5 = vadd.f32 %v2795_v56, %v17930_v21  ;;  %v3647_v52 = vshrl.u32 %v14796_v28, 16  ;;  %v15730_v3 = vld [vmem:[%s23148_s4 + $0x194] ss:$8 sps:$4 sm:$0xff]   ;;  %v3821_v56 = vld [vmem:[#allocation2 + $0x8] sm:$0xe] }
 0x1b9   : > { %v3716_v23 = vor.u32 %v3715_v13, %v3712_v19  ;;  %v3650_v36 = vshll.u32 %v14796_v28, 16  ;;  %v3719_v26 = vshrl.u32 %v14804_v45, 16  ;;  %v3722_v14 = vshll.u32 %v14804_v45, 16  ;;  %v18022_v24 = vpop.f32.mrf.mxu0  ;;  %v3869_v29 = vld [vmem:[#allocation2 + $0x48] sm:$0xe] }
 0x1ba   : > { %v18024_v35 = vpop.f32.mrf.mxu1  ;;  %v3645_v0 = vrot.slane %v3644_v15, 4  ;;  %v3816_v25 = vsel %vm18009_vm8, %v3644_v15, %v3815_v57  ;;  %v3649_v18 = vrot.slane %v3647_v52, 6  ;;  %v3824_v28 = vld [vmem:[#allocation2 + $0xc] sm:$0x3]  ;;  %v18047_v15 = vpack.c.bf16 %v3467_v61, %v3464_v63 }
 0x1bb   : > { %v3717_v21 = vrot.slane %v3716_v23, 4  ;;  %v3864_v47 = vsel %vm18009_vm8, %v3716_v23, %v3863_v59  ;;  %6177 = vmatpush2.bf16.msra.mxu1 %v15716_v17  ;;  %3817 = vst [vmem:[#allocation2] sm:$0xe] %v3816_v25  ;;  %v3652_v40 = vrot.slane %v3650_v36, 7  ;;  %v3721_v37 = vrot.slane %v3719_v26, 6  ;;  %v18033_v19 = vpop.f32.mrf.mxu0 }
 0x1bc   : > { %3865 = vst [vmem:[#allocation2 + $0x40] sm:$0xe] %v3864_v47  ;;  %v3724_v11 = vrot.slane %v3722_v14, 7  ;;  %v18035_v13 = vpop.f32.mrf.mxu1  ;;  %6178 = vmatprep.subr.bf16.mxu1 %v15724_v41  ;;  %v3819_v57 = vsel %vm17431_vm3, %v3645_v0, %v3818_v4  ;;  %v3872_v45 = vld [vmem:[#allocation2 + $0x4c] sm:$0x3]  ;;  %v18043_v17 = vpack.c.bf16 %v3443_v39, %v3440_v31  ;;  %23262 = vst [vmem:[#allocation26_spill] sm:$0xff] %v18047_v15 }
 0x1bd   : > { %v3867_v59 = vsel %vm17431_vm3, %v3717_v21, %v3866_v50  ;;  %v15728_v41 = vld [vmem:[%s23148_s4 + $0x190] ss:$8 sps:$4 sm:$0xff]   ;;  %3820 = vst [vmem:[#allocation2 + $0x4] sm:$0x3] %v3819_v57  ;;  %v3653_v4 = vor.u32 %v3652_v40, %v3649_v18  ;;  %v3332_v50 = vmul.f32 %v17888_v42, %v2756_v12  ;;  %v3356_v52 = vmul.f32 %v17888_v42, %v2796_v5  ;;  %v18054_v36 = vpop.f32.mrf.mxu0  ;;  %v15734_v18 = vld [vmem:[%s23148_s4 + $0x180] ss:$8 sps:$4 sm:$0xff]  }
 0x1be   : > { %23261 = vst [vmem:[#allocation25_spill] sm:$0xff] %v18043_v17  ;;  %3868 = vst [vmem:[#allocation2 + $0x44] sm:$0x3] %v3867_v59  ;;  %v3725_v23 = vor.u32 %v3724_v11, %v3721_v37  ;;  %v18056_v58 = vpop.f32.mrf.mxu1  ;;  %v2758_v53 = vadd.f32 %v17991_v20, %v17702_v32  ;;  %v2798_v31 = vadd.f32 %v17993_v9, %v17817_v6  ;;  %v23263_v11 = vld [vmem:[#allocation12_spill] sm:$0xff] }
 0x1bf   : > { %v2760_v63 = vadd.f32 %v18000_v51, %v17708_v46  ;;  %v2800_v39 = vadd.f32 %v18002_v48, %v17933_v49  ;;  %6179 = vmatpush2.bf16.msra.mxu1 %v15722_v30  ;;  %v3654_v61 = vrot.slane %v3653_v4, 4  ;;  %v3822_v12 = vsel %vm18009_vm8, %v3653_v4, %v3821_v56  ;;  %v18070_v14 = vpop.f32.mrf.mxu0  ;;  %v15736_v46 = vld [vmem:[%s23148_s4 + $0x184] ss:$8 sps:$4 sm:$0xff]  }
 0x1c0   : > { %v3726_v5 = vrot.slane %v3725_v23, 4  ;;  %v3870_v26 = vsel %vm18009_vm8, %v3725_v23, %v3869_v29  ;;  %v18072_v32 = vpop.f32.mrf.mxu1  ;;  %6180 = vmatprep.subr.bf16.mxu1 %v15730_v3  ;;  %3823 = vst [vmem:[#allocation2 + $0x8] sm:$0xe] %v3822_v12  ;;  %v3397_v6 = vadd.f32 %v17903_v44, %v3332_v50  ;;  %v3421_v49 = vadd.f32 %v17903_v44, %v3356_v52 }
 0x1c1   : > { %3871 = vst [vmem:[#allocation2 + $0x48] sm:$0xe] %v3870_v26  ;;  %v3333_v20 = vmul.f32 %v17908_v10, %v2758_v53  ;;  %v3357_v9 = vmul.f32 %v17908_v10, %v2798_v31  ;;  %v3825_v51 = vsel %vm17431_vm3, %v3654_v61, %v3824_v28  ;;  %v3335_v30 = vmul.f32 %v17888_v42, %v2760_v63  ;;  %v18087_v0 = vpop.f32.mrf.mxu0 }
 0x1c2   : > { %v3873_v48 = vsel %vm17431_vm3, %v3726_v5, %v3872_v45  ;;  %v3359_v3 = vmul.f32 %v17888_v42, %v2800_v39  ;;  %v18089_v25 = vpop.f32.mrf.mxu1  ;;  %3826 = vst [vmem:[#allocation2 + $0xc] sm:$0x3] %v3825_v51  ;;  %v3445_v21 = vmax.f32 %v3397_v6, 0.0  ;;  %v3469_v47 = vmax.f32 %v3421_v49, 0.0 }
 0x1c3   : > { %3874 = vst [vmem:[#allocation2 + $0x4c] sm:$0x3] %v3873_v48  ;;  %v18092_v56 = vadd.f32 %v17911_v55, %v3333_v20  ;;  %v18095_v29 = vadd.f32 %v17911_v55, %v3357_v9  ;;  %6181 = vmatpush2.bf16.msra.mxu1 %v15728_v41  ;;  %v3400_v40 = vadd.f32 %v17903_v44, %v3335_v30  ;;  %v18106_v28 = vpop.f32.mrf.mxu0  ;;  %v15743_v41 = vld [vmem:[%s23148_s4 + $0x374] ss:$8 sps:$4 sm:$0xff]   ;;  %v3827_v30 = vld [vmem:[#allocation2 + $0x10] sm:$0xe] }
 0x1c4   : > { %v3424_v37 = vadd.f32 %v17903_v44, %v3359_v3  ;;  %v2762_v57 = vadd.f32 %v18013_v1, %v23263_v11  ;;  %v2802_v59 = vadd.f32 %v18015_v60, %v17936_v7  ;;  %v18108_v45 = vpop.f32.mrf.mxu1  ;;  %6182 = vmatprep.subr.bf16.mxu1 %v15736_v46  ;;  %v14797_v4 = vpack.c.bf16 %v3445_v21, %v3445_v21 }
 0x1c5   : > { %v14805_v23 = vpack.c.bf16 %v3469_v47, %v3469_v47  ;;  %v3446_v50 = vmax.f32 %v18092_v56, 0.0  ;;  %v3470_v52 = vmax.f32 %v18095_v29, 0.0  ;;  %v3448_v53 = vmax.f32 %v3400_v40, 0.0  ;;  %v18117_v60 = vpop.f32.mrf.mxu0  ;;  %v3875_v47 = vld [vmem:[#allocation2 + $0x50] sm:$0xe] }
 0x1c6   : > { %v3472_v1 = vmax.f32 %v3424_v37, 0.0  ;;  %v3336_v31 = vmul.f32 %v17908_v10, %v2762_v57  ;;  %v3360_v7 = vmul.f32 %v17908_v10, %v2802_v59  ;;  %v18119_v63 = vpop.f32.mrf.mxu1  ;;  %v3656_v39 = vshrl.u32 %v14797_v4, 16  ;;  %v3830_v59 = vld [vmem:[#allocation2 + $0x14] sm:$0x3] }
 0x1c7   : > { %v3659_v61 = vshll.u32 %v14797_v4, 16  ;;  %v3728_v12 = vshrl.u32 %v14805_v23, 16  ;;  %v3731_v5 = vshll.u32 %v14805_v23, 16  ;;  %6183 = vmatpush2.bf16.msra.mxu1 %v15734_v18  ;;  %v14798_v26 = vpack.c.bf16 %v3448_v53, %v3448_v53  ;;  %v18123_v20 = vpop.f32.mrf.mxu0  ;;  %v3878_v23 = vld [vmem:[#allocation2 + $0x54] sm:$0x3] }
 0x1c8   : > { %v14806_v46 = vpack.c.bf16 %v3472_v1, %v3472_v1  ;;  %v3401_v6 = vadd.f32 %v17911_v55, %v3336_v31  ;;  %v3425_v49 = vadd.f32 %v17911_v55, %v3360_v7  ;;  %v18125_v9 = vpop.f32.mrf.mxu1  ;;  %6378 = vmatprep.subr.bf16.mxu1 %v15743_v41  ;;  %v3658_v51 = vrot.slane %v3656_v39, 6  ;;  %v3833_v7 = vld [vmem:[#allocation2 + $0x18] sm:$0xe] }
 0x1c9   : > { %v3661_v48 = vrot.slane %v3659_v61, 7  ;;  %v3730_v3 = vrot.slane %v3728_v12, 6  ;;  %v3733_v21 = vrot.slane %v3731_v5, 7  ;;  %v3665_v56 = vshrl.u32 %v14798_v26, 16  ;;  %v18129_v11 = vpop.f32.mrf.mxu0 }
 0x1ca   : > { %v3668_v29 = vshll.u32 %v14798_v26, 16  ;;  %v3737_v18 = vshrl.u32 %v14806_v46, 16  ;;  %v3740_v40 = vshll.u32 %v14806_v46, 16  ;;  %v18127_v37 = vpop.f32.mrf.mxu1  ;;  %v3449_v53 = vmax.f32 %v3401_v6, 0.0 }
 0x1cb   : > { %v3662_v57 = vor.u32 %v3661_v48, %v3658_v51  ;;  %v3734_v4 = vor.u32 %v3733_v21, %v3730_v3  ;;  %v3473_v41 = vmax.f32 %v3425_v49, 0.0  ;;  %v3667_v1 = vrot.slane %v3665_v56, 6  ;;  %v18133_v5 = vpop.f32.mrf.mxu0  ;;  %v3881_v48 = vld [vmem:[#allocation2 + $0x58] sm:$0xe] }
 0x1cc   : > { %v3670_v31 = vrot.slane %v3668_v29, 7  ;;  %v3739_v39 = vrot.slane %v3737_v18, 6  ;;  %v3742_v61 = vrot.slane %v3740_v40, 7  ;;  %v18131_v12 = vpop.f32.mrf.mxu1  ;;  %v18139_v3 = vpack.c.bf16 %v3449_v53, %v3446_v50  ;;  %v3884_v40 = vld [vmem:[#allocation2 + $0x5c] sm:$0x3] }
 0x1cd   : > { %v3663_v26 = vrot.slane %v3662_v57, 4  ;;  %v3828_v46 = vsel %vm18009_vm8, %v3662_v57, %v3827_v30  ;;  %v3735_v15 = vrot.slane %v3734_v4, 4  ;;  %v3876_v51 = vsel %vm18009_vm8, %v3734_v4, %v3875_v47  ;;  %v18145_v29 = vpop.f32.mrf.mxu0  ;;  %v3836_v47 = vld [vmem:[#allocation2 + $0x1c] sm:$0x3]  ;;  %v23266_v57 = vld [vmem:[#allocation13_spill] sm:$0xff] }
 0x1ce   : > { %3829 = vst [vmem:[#allocation2 + $0x10] sm:$0xe] %v3828_v46  ;;  %3877 = vst [vmem:[#allocation2 + $0x50] sm:$0xe] %v3876_v51  ;;  %v3671_v6 = vor.u32 %v3670_v31, %v3667_v1  ;;  %v3743_v49 = vor.u32 %v3742_v61, %v3739_v39  ;;  %v18141_v21 = vpack.c.bf16 %v3473_v41, %v3470_v52  ;;  %v18143_v56 = vpop.f32.mrf.mxu1  ;;  %v23268_v31 = vld [vmem:[#allocation22_spill] sm:$0xff] }
 0x1cf   : > { %23264 = vst [vmem:[#allocation12_spill] sm:$0xff] %v18139_v3  ;;  %v3831_v30 = vsel %vm17431_vm3, %v3663_v26, %v3830_v59  ;;  %v3879_v18 = vsel %vm17431_vm3, %v3735_v15, %v3878_v23  ;;  %v2766_v4 = vadd.f32 %v18022_v24, %v23266_v57  ;;  %v2806_v50 = vadd.f32 %v18024_v35, %v17948_v43  ;;  %v18161_v15 = vpop.f32.mrf.mxu0  ;;  %v23267_v35 = vld [vmem:[#allocation14_spill] sm:$0xff]  ;;  %v23269_v26 = vld [vmem:[#allocation15_spill] sm:$0xff] }
 0x1d0   : > { %23265 = vst [vmem:[#allocation27_spill] sm:$0xff] %v18141_v21  ;;  %3832 = vst [vmem:[#allocation2 + $0x14] sm:$0x3] %v3831_v30  ;;  %v3672_v52 = vrot.slane %v3671_v6, 4  ;;  %v3834_v53 = vsel %vm18009_vm8, %v3671_v6, %v3833_v7  ;;  %v3744_v41 = vrot.slane %v3743_v49, 4  ;;  %v3882_v59 = vsel %vm18009_vm8, %v3743_v49, %v3881_v48  ;;  %v18159_v1 = vpop.f32.mrf.mxu1 }
 0x1d1   : > { %3880 = vst [vmem:[#allocation2 + $0x54] sm:$0x3] %v3879_v18  ;;  %3835 = vst [vmem:[#allocation2 + $0x18] sm:$0xe] %v3834_v53  ;;  %v3338_v24 = vmul.f32 %v17888_v42, %v2766_v4  ;;  %v3362_v43 = vmul.f32 %v17888_v42, %v2806_v50  ;;  %v2768_v23 = vadd.f32 %v18033_v19, %v23267_v35 }
 0x1d2   : > { %3883 = vst [vmem:[#allocation2 + $0x58] sm:$0xe] %v3882_v59  ;;  %v2808_v7 = vadd.f32 %v18035_v13, %v23268_v31  ;;  %v3837_v39 = vsel %vm17431_vm3, %v3672_v52, %v3836_v47  ;;  %v3885_v61 = vsel %vm17431_vm3, %v3744_v41, %v3884_v40  ;;  %v2770_v46 = vadd.f32 %v18054_v36, %v23269_v26  ;;  %v18177_v48 = vpop.f32.mrf.mxu1  ;;  %v23270_v36 = vld [vmem:[#allocation16_spill] sm:$0xff]  ;;  %v18191_v40 = vpop.f32.mrf.mxu0 }
 0x1d3   : > { %v2810_v51 = vadd.f32 %v18056_v58, %v17951_v62  ;;  %3838 = vst [vmem:[#allocation2 + $0x1c] sm:$0x3] %v3837_v39  ;;  %3886 = vst [vmem:[#allocation2 + $0x5c] sm:$0x3] %v3885_v61  ;;  %v3403_v19 = vadd.f32 %v17903_v44, %v3338_v24  ;;  %v3427_v13 = vadd.f32 %v17903_v44, %v3362_v43 }
 0x1d4   : > { %v3339_v6 = vmul.f32 %v17908_v10, %v2768_v23  ;;  %v3363_v49 = vmul.f32 %v17908_v10, %v2808_v7  ;;  %v3341_v30 = vmul.f32 %v17888_v42, %v2770_v46  ;;  %v2772_v47 = vadd.f32 %v18070_v14, %v23270_v36  ;;  %v18189_v58 = vpop.f32.mrf.mxu1  ;;  %v18203_v61 = vpop.f32.mrf.mxu0 }
 0x1d5   : > { %v3365_v18 = vmul.f32 %v17888_v42, %v2810_v51  ;;  %v2812_v62 = vadd.f32 %v18072_v32, %v17954_v16  ;;  %v3451_v57 = vmax.f32 %v3403_v19, 0.0  ;;  %v3475_v4 = vmax.f32 %v3427_v13, 0.0 }
 0x1d6   : > { %v3404_v50 = vadd.f32 %v17911_v55, %v3339_v6  ;;  %v3428_v52 = vadd.f32 %v17911_v55, %v3363_v49  ;;  %v3406_v53 = vadd.f32 %v17903_v44, %v3341_v30  ;;  %v3342_v59 = vmul.f32 %v17908_v10, %v2772_v47  ;;  %v18199_v24 = vpop.f32.mrf.mxu1  ;;  %v18209_v21 = vpop.f32.mrf.mxu0 }
 0x1d7   : > { %v3430_v41 = vadd.f32 %v17903_v44, %v3365_v18  ;;  %v3366_v14 = vmul.f32 %v17908_v10, %v2812_v62  ;;  %v14799_v16 = vpack.c.bf16 %v3451_v57, %v3451_v57  ;;  %v14807_v32 = vpack.c.bf16 %v3475_v4, %v3475_v4  ;;  %v3839_v57 = vld [vmem:[#allocation2 + $0x20] sm:$0xe] }
 0x1d8   : > { %v3452_v43 = vmax.f32 %v3404_v50, 0.0  ;;  %v3476_v35 = vmax.f32 %v3428_v52, 0.0  ;;  %v3454_v23 = vmax.f32 %v3406_v53, 0.0  ;;  %v3407_v7 = vadd.f32 %v17911_v55, %v3342_v59  ;;  %v18205_v26 = vpop.f32.mrf.mxu1  ;;  %v3887_v52 = vld [vmem:[#allocation2 + $0x60] sm:$0xe] }
 0x1d9   : > { %v3478_v31 = vmax.f32 %v3430_v41, 0.0  ;;  %v3431_v39 = vadd.f32 %v17911_v55, %v3366_v14  ;;  %v3674_v46 = vshrl.u32 %v14799_v16, 16  ;;  %v3677_v51 = vshll.u32 %v14799_v16, 16 }
 0x1da   : > { %v3746_v19 = vshrl.u32 %v14807_v32, 16  ;;  %v3749_v13 = vshll.u32 %v14807_v32, 16  ;;  %v14800_v6 = vpack.c.bf16 %v3454_v23, %v3454_v23  ;;  %v3455_v30 = vmax.f32 %v3407_v7, 0.0  ;;  %v18207_v36 = vpop.f32.mrf.mxu1  ;;  %v3842_v23 = vld [vmem:[#allocation2 + $0x24] sm:$0x3] }
 0x1db   : > { %v14808_v49 = vpack.c.bf16 %v3478_v31, %v3478_v31  ;;  %v3479_v18 = vmax.f32 %v3431_v39, 0.0  ;;  %v3676_v47 = vrot.slane %v3674_v46, 6  ;;  %v3679_v62 = vrot.slane %v3677_v51, 7  ;;  %v3890_v46 = vld [vmem:[#allocation2 + $0x64] sm:$0x3] }
 0x1dc   : > { %v3748_v4 = vrot.slane %v3746_v19, 6  ;;  %v3751_v50 = vrot.slane %v3749_v13, 7  ;;  %v3683_v53 = vshrl.u32 %v14800_v6, 16  ;;  %v3686_v41 = vshll.u32 %v14800_v6, 16  ;;  %v18211_v16 = vpop.f32.mrf.mxu1 }
 0x1dd   : > { %v3755_v59 = vshrl.u32 %v14808_v49, 16  ;;  %v3758_v14 = vshll.u32 %v14808_v49, 16  ;;  %v3680_v32 = vor.u32 %v3679_v62, %v3676_v47  ;;  %v18213_v7 = vpack.c.bf16 %v3455_v30, %v3452_v43  ;;  %v3845_v62 = vld [vmem:[#allocation2 + $0x28] sm:$0xe]  ;;  %v3848_v30 = vld [vmem:[#allocation2 + $0x2c] sm:$0x3] }
 0x1de   : > { %v3752_v31 = vor.u32 %v3751_v50, %v3748_v4  ;;  %v18215_v39 = vpack.c.bf16 %v3479_v18, %v3476_v35  ;;  %v3685_v51 = vrot.slane %v3683_v53, 6  ;;  %v3688_v19 = vrot.slane %v3686_v41, 7  ;;  %v18217_v17 = vpop.f32.mrf.mxu1  ;;  %v3893_v43 = vld [vmem:[#allocation2 + $0x68] sm:$0xe]  ;;  %v3896_v4 = vld [vmem:[#allocation2 + $0x6c] sm:$0x3] }
 0x1df   : > { %23271 = vst [vmem:[#allocation13_spill] sm:$0xff] %v18213_v7  ;;  %v3757_v13 = vrot.slane %v3755_v59, 6  ;;  %v3760_v3 = vrot.slane %v3758_v14, 7  ;;  %v3681_v6 = vrot.slane %v3680_v32, 4  ;;  %v3840_v49 = vsel %vm18009_vm8, %v3680_v32, %v3839_v57  ;;  %v23273_v50 = vld [vmem:[#allocation17_spill] sm:$0xff]  ;;  %v18227_v59 = vpop.f32.mrf.mxu0  ;;  %v23274_v32 = vld [vmem:[#allocation18_spill] sm:$0xff] }
 0x1e0   : > { %23272 = vst [vmem:[#allocation14_spill] sm:$0xff] %v18215_v39  ;;  %v3753_v27 = vrot.slane %v3752_v31, 4  ;;  %v3888_v47 = vsel %vm18009_vm8, %v3752_v31, %v3887_v52  ;;  %3841 = vst [vmem:[#allocation2 + $0x20] sm:$0xe] %v3840_v49  ;;  %v3689_v35 = vor.u32 %v3688_v19, %v3685_v51  ;;  %v2776_v53 = vadd.f32 %v18087_v0, %v23273_v50  ;;  %v18229_v57 = vpop.f32.mrf.mxu1  ;;  %v23276_v50 = vld [vmem:[#allocation20_spill] sm:$0xff] }
 0x1e1   : > { %3889 = vst [vmem:[#allocation2 + $0x60] sm:$0xe] %v3888_v47  ;;  %v3761_v18 = vor.u32 %v3760_v3, %v3757_v13  ;;  %v2816_v41 = vadd.f32 %v18089_v25, %v17957_v2  ;;  %v3843_v52 = vsel %vm17431_vm3, %v3681_v6, %v3842_v23  ;;  %v2778_v3 = vadd.f32 %v18106_v28, %v23274_v32  ;;  %v23275_v13 = vld [vmem:[#allocation19_spill] sm:$0xff]  ;;  %v18257_v47 = vpop.f32.mrf.mxu0 }
 0x1e2   : > { %v3891_v14 = vsel %vm17431_vm3, %v3753_v27, %v3890_v46  ;;  %v2818_v31 = vadd.f32 %v18108_v45, %v17900_v33  ;;  %3844 = vst [vmem:[#allocation2 + $0x24] sm:$0x3] %v3843_v52  ;;  %v3690_v0 = vrot.slane %v3689_v35, 4  ;;  %v3846_v2 = vsel %vm18009_vm8, %v3689_v35, %v3845_v62  ;;  %v18243_v23 = vpop.f32.mrf.mxu1 }
 0x1e3   : > { %3892 = vst [vmem:[#allocation2 + $0x64] sm:$0x3] %v3891_v14  ;;  %v3762_v25 = vrot.slane %v3761_v18, 4  ;;  %v3894_v51 = vsel %vm18009_vm8, %v3761_v18, %v3893_v43  ;;  %3847 = vst [vmem:[#allocation2 + $0x28] sm:$0xe] %v3846_v2  ;;  %v3344_v27 = vmul.f32 %v17888_v42, %v2776_v53  ;;  %v3368_v28 = vmul.f32 %v17888_v42, %v2816_v41  ;;  %v18277_v2 = vpop.f32.mrf.mxu0 }
 0x1e4   : > { %3895 = vst [vmem:[#allocation2 + $0x68] sm:$0xe] %v3894_v51  ;;  %v3345_v33 = vmul.f32 %v17908_v10, %v2778_v3  ;;  %v3369_v45 = vmul.f32 %v17908_v10, %v2818_v31  ;;  %v3849_v46 = vsel %vm17431_vm3, %v3690_v0, %v3848_v30  ;;  %v2780_v6 = vadd.f32 %v18117_v60, %v23275_v13  ;;  %v18259_v62 = vpop.f32.mrf.mxu1 }
 0x1e5   : > { %v3897_v19 = vsel %vm17431_vm3, %v3762_v25, %v3896_v4  ;;  %v2820_v49 = vadd.f32 %v18119_v63, %v17966_v34  ;;  %3850 = vst [vmem:[#allocation2 + $0x2c] sm:$0x3] %v3849_v46  ;;  %v3409_v43 = vadd.f32 %v17903_v44, %v3344_v27  ;;  %v3433_v35 = vadd.f32 %v17903_v44, %v3368_v28 }
 0x1e6   : > { %3898 = vst [vmem:[#allocation2 + $0x6c] sm:$0x3] %v3897_v19  ;;  %v3410_v30 = vadd.f32 %v17911_v55, %v3345_v33  ;;  %v3434_v18 = vadd.f32 %v17911_v55, %v3369_v45  ;;  %v3347_v4 = vmul.f32 %v17888_v42, %v2780_v6  ;;  %v2782_v34 = vadd.f32 %v18123_v20, %v23276_v50  ;;  %v18271_v53 = vpop.f32.mrf.mxu1 }
 0x1e7   : > { %v3371_v60 = vmul.f32 %v17888_v42, %v2820_v49  ;;  %v2822_v63 = vadd.f32 %v18125_v9, %v17968_v22  ;;  %v3457_v41 = vmax.f32 %v3409_v43, 0.0  ;;  %v3481_v52 = vmax.f32 %v3433_v35, 0.0 }
 0x1e8   : > { %v3458_v14 = vmax.f32 %v3410_v30, 0.0  ;;  %v3482_v32 = vmax.f32 %v3434_v18, 0.0  ;;  %v3412_v3 = vadd.f32 %v17903_v44, %v3347_v4  ;;  %v3348_v0 = vmul.f32 %v17908_v10, %v2782_v34  ;;  %v18279_v20 = vpop.f32.mrf.mxu1  ;;  %v3851_v30 = vld [vmem:[#allocation2 + $0x30] sm:$0xe] }
 0x1e9   : > { %v3436_v31 = vadd.f32 %v17903_v44, %v3371_v60  ;;  %v3372_v42 = vmul.f32 %v17908_v10, %v2822_v63  ;;  %v14801_v25 = vpack.c.bf16 %v3457_v41, %v3457_v41  ;;  %v14809_v22 = vpack.c.bf16 %v3481_v52, %v3481_v52 }
 0x1ea   : > { %v14925_v9 = vadd.f32 %v18131_v12, %v18127_v37  ;;  %v14989_v51 = vadd.f32 %v18133_v5, %v18129_v11  ;;  %v3460_v27 = vmax.f32 %v3412_v3, 0.0  ;;  %v3413_v44 = vadd.f32 %v17911_v55, %v3348_v0  ;;  %v18287_v45 = vpop.f32.mrf.mxu1  ;;  %v18289_v37 = vpop.f32.mrf.mxu0  ;;  %v3854_v3 = vld [vmem:[#allocation2 + $0x34] sm:$0x3] }
 0x1eb   : > { %v3484_v28 = vmax.f32 %v3436_v31, 0.0  ;;  %v3437_v33 = vadd.f32 %v17911_v55, %v3372_v42  ;;  %v3692_v10 = vshrl.u32 %v14801_v25, 16  ;;  %v3695_v46 = vshll.u32 %v14801_v25, 16  ;;  %v3899_v55 = vld [vmem:[#allocation2 + $0x70] sm:$0xe] }
 0x1ec   : > { %v3764_v19 = vshrl.u32 %v14809_v22, 16  ;;  %v3767_v13 = vshll.u32 %v14809_v22, 16  ;;  %v14802_v6 = vpack.c.bf16 %v3460_v27, %v3460_v27  ;;  %v3461_v43 = vmax.f32 %v3413_v44, 0.0  ;;  %v18291_v12 = vpop.f32.mrf.mxu1  ;;  %v3902_v0 = vld [vmem:[#allocation2 + $0x74] sm:$0x3] }
 0x1ed   : > { %v14810_v49 = vpack.c.bf16 %v3484_v28, %v3484_v28  ;;  %v3485_v35 = vmax.f32 %v3437_v33, 0.0  ;;  %v3694_v11 = vrot.slane %v3692_v10, 6  ;;  %v3697_v5 = vrot.slane %v3695_v46, 7  ;;  %v18299_v33 = vld [vmem:[#allocation2] sm:$0xf]  ;;  %v18301_v10 = vpop.f32.mrf.mxu0 }
 0x1ee   : > { %v3766_v18 = vrot.slane %v3764_v19, 6  ;;  %v3769_v4 = vrot.slane %v3767_v13, 7  ;;  %v3701_v60 = vshrl.u32 %v14802_v6, 16  ;;  %v3704_v50 = vshll.u32 %v14802_v6, 16  ;;  %v18293_v41 = vpop.f32.mrf.mxu1  ;;  %v3857_v6 = vld [vmem:[#allocation2 + $0x38] sm:$0xe] }
 0x1ef   : > { %v3773_v34 = vshrl.u32 %v14810_v49, 16  ;;  %v3776_v63 = vshll.u32 %v14810_v49, 16  ;;  %23277 = vst [vmem:[#allocation22_spill] sm:$0xff] %v18293_v41  ;;  %v3698_v52 = vor.u32 %v3697_v5, %v3694_v11  ;;  %v18295_v42 = vpack.c.bf16 %v3461_v43, %v3458_v14  ;;  %v3905_v49 = vld [vmem:[#allocation2 + $0x78] sm:$0xe] }
 0x1f0   : > { %v3770_v31 = vor.u32 %v3769_v4, %v3766_v18  ;;  %v18297_v25 = vpack.c.bf16 %v3485_v35, %v3482_v32  ;;  %v3703_v22 = vrot.slane %v3701_v60, 6  ;;  %v3706_v27 = vrot.slane %v3704_v50, 7  ;;  %v18303_v46 = vpop.f32.mrf.mxu1  ;;  %v3860_v35 = vld [vmem:[#allocation2 + $0x3c] sm:$0x3]  ;;  %v18313_v4 = vld [vmem:[#allocation2 + $0x4] sm:$0x1] }
 0x1f1   : > { %23278 = vst [vmem:[#allocation15_spill] sm:$0xff] %v18295_v42  ;;  %v3775_v28 = vrot.slane %v3773_v34, 6  ;;  %v3778_v44 = vrot.slane %v3776_v63, 7  ;;  %23280 = vst [vmem:[#allocation17_spill] sm:$0xff] %v18303_v46  ;;  %v3699_v19 = vrot.slane %v3698_v52, 4  ;;  %v3852_v13 = vsel %vm18009_vm8, %v3698_v52, %v3851_v30 }
 0x1f2   : > { %23279 = vst [vmem:[#allocation16_spill] sm:$0xff] %v18297_v25  ;;  %v3771_v14 = vrot.slane %v3770_v31, 4  ;;  %v3900_v32 = vsel %vm18009_vm8, %v3770_v31, %v3899_v55  ;;  %3853 = vst [vmem:[#allocation2 + $0x30] sm:$0xe] %v3852_v13  ;;  %v3707_v43 = vor.u32 %v3706_v27, %v3703_v22  ;;  %v18309_v5 = vadd.f32 %v14989_v51, %v14925_v9  ;;  %v18315_v30 = vpop.f32.mrf.mxu1  ;;  %v3908_v50 = vld [vmem:[#allocation2 + $0x7c] sm:$0x3]  ;;  %v18332_v31 = vpop.f32.mrf.mxu0 }
 0x1f3   : > { %3901 = vst [vmem:[#allocation2 + $0x70] sm:$0xe] %v3900_v32  ;;  %v3779_v11 = vor.u32 %v3778_v44, %v3775_v28  ;;  %v14928_v18 = vadd.f32 %v18159_v1, %v18143_v56  ;;  %23281 = vst [vmem:[#allocation18_spill] sm:$0xff] %v18315_v30  ;;  %v3855_v55 = vsel %vm17431_vm3, %v3699_v19, %v3854_v3  ;;  %v18323_v51 = vld [vmem:[#allocation2 + $0x8] sm:$0xf]  ;;  %v3947_v56 = vshrl.u32 %v18299_v33, 16 }
 0x1f4   : > { %v3903_v60 = vsel %vm17431_vm3, %v3771_v14, %v3902_v0  ;;  %v14992_v9 = vadd.f32 %v18161_v15, %v18145_v29  ;;  %3856 = vst [vmem:[#allocation2 + $0x34] sm:$0x3] %v3855_v55  ;;  %v3708_v1 = vrot.slane %v3707_v43, 4  ;;  %v3858_v34 = vsel %vm18009_vm8, %v3707_v43, %v3857_v6  ;;  %v18330_v3 = vld [vmem:[#allocation2 + $0xc] sm:$0x1]  ;;  %v18334_v29 = vpop.f32.mrf.mxu1  ;;  %v18354_v55 = vpop.f32.mrf.mxu0 }
 0x1f5   : > { %3904 = vst [vmem:[#allocation2 + $0x74] sm:$0x3] %v3903_v60  ;;  %v3780_v63 = vrot.slane %v3779_v11, 4  ;;  %v3906_v52 = vsel %vm18009_vm8, %v3779_v11, %v3905_v49  ;;  %23282 = vst [vmem:[#allocation19_spill] sm:$0xff] %v18334_v29  ;;  %v3949_v0 = vrot.slane %v3947_v56, 4  ;;  %v3950_v22 = vshll.u32 %v18299_v33, 16 }
 0x1f6   : > { %3859 = vst [vmem:[#allocation2 + $0x38] sm:$0xe] %v3858_v34  ;;  %3907 = vst [vmem:[#allocation2 + $0x78] sm:$0xe] %v3906_v52  ;;  %v18336_v15 = vadd.f32 %v14992_v9, %v14928_v18  ;;  %v3956_v27 = vshll.u32 %v18313_v4, 16  ;;  %v3861_v28 = vsel %vm17431_vm3, %v3708_v1, %v3860_v35  ;;  %v3961_v44 = vshrl.u32 %v18323_v51, 16  ;;  %v18348_v14 = vpop.f32.mrf.mxu1 }
 0x1f7   : > { %v3909_v38 = vsel %vm17431_vm3, %v3780_v63, %v3908_v50  ;;  %v3964_v19 = vshll.u32 %v18323_v51, 16  ;;  %v18346_v13 = vld [vmem:[#allocation2] sm:$0xe]  ;;  %23283 = vst [vmem:[#allocation20_spill] sm:$0xff] %v18348_v14  ;;  %3862 = vst [vmem:[#allocation2 + $0x3c] sm:$0x3] %v3861_v28  ;;  %v13801_v1 = vcombine.low %v18299_v33, %v18323_v51 }
 0x1f8   : > { %3910 = vst [vmem:[#allocation2 + $0x7c] sm:$0x3] %v3909_v38  ;;  %v3952_v32 = vrot.slane %v3950_v22, 5  ;;  %v3970_v6 = vshll.u32 %v18330_v3, 16  ;;  %v18351_v49 = vld [vmem:[#allocation2 + $0x8] sm:$0xe]  ;;  %v18356_v60 = vpop.f32.mrf.mxu1  ;;  %vm18381_vm3 = vmor %vm4301_vm11, %vm4302_vm12 }
 0x1f9   : > { %v4285_v43 = vld [vmem:[#allocation2 + $0x4] sm:$0x3]  ;;  %v3958_v35 = vrot.slane %v3956_v27, 5  ;;  %v3963_v11 = vrot.slane %v3961_v44, 4  ;;  %v3966_v54 = vrot.slane %v3964_v19, 5  ;;  %v4223_v18 = vrot.slane %v18313_v4, 5 }
 0x1fa   : > { %23284 = vst [vmem:[#allocation28_spill] sm:$0xff] %v18356_v60  ;;  %v3953_v50 = vor.u32 %v3952_v32, %v3949_v0  ;;  %v3972_v9 = vrot.slane %v3970_v6, 5  ;;  %v4227_v56 = vrot.slane %v18330_v3, 5  ;;  %v4305_v4 = vshrl.u32 %v18346_v13, 16  ;;  %v18369_v27 = vpop.f32.mrf.mxu1  ;;  %v4286_v28 = vld [vmem:[#allocation2 + $0xc] sm:$0x3]  ;;  %v18373_v6 = vpop.f32.mrf.mxu0 }
 0x1fb   : > { %v3967_v63 = vor.u32 %v3966_v54, %v3963_v11  ;;  %v4308_v52 = vshll.u32 %v18346_v13, 16  ;;  %v4314_v22 = vshrl.u32 %v4285_v43, 16  ;;  %23287 = vst [vmem:[#allocation29_spill] sm:$0xff] %v18369_v27  ;;  %v4317_v3 = vshll.u32 %v4285_v43, 16 }
 0x1fc   : > { %v3954_v0 = vrot.slane %v3953_v50, 4  ;;  %v4323_v38 = vshrl.u32 %v18351_v49, 16  ;;  %v4326_v33 = vshll.u32 %v18351_v49, 16  ;;  %v4307_v44 = vrot.slane %v4305_v4, 5  ;;  %v18375_v11 = vpop.f32.mrf.mxu1 }
 0x1fd   : > { %v3968_v51 = vrot.slane %v3967_v63, 4  ;;  %v4310_v19 = vrot.slane %v4308_v52, 6  ;;  %v4316_v32 = vrot.slane %v4314_v22, 5  ;;  %23288 = vst [vmem:[#allocation30_spill] sm:$0xff] %v18375_v11  ;;  %v4319_v43 = vrot.slane %v4317_v3, 6 }
 0x1fe   : > { %v3959_v54 = vsel %vm18363_vm15, %v3954_v0, %v3958_v35  ;;  %v4325_v25 = vrot.slane %v4323_v38, 5  ;;  %v4328_v39 = vrot.slane %v4326_v33, 6  ;;  %v4332_v52 = vshrl.u32 %v4286_v28, 16  ;;  %v18393_v35 = vpop.f32.mrf.mxu1  ;;  %v18403_v11 = vld [vmem:[#allocation2 + $0x10] sm:$0xf] }
 0x1ff   : > { %v3973_v63 = vsel %vm18363_vm15, %v3968_v51, %v3972_v9  ;;  %v4311_v4 = vor.u32 %v4310_v19, %v4307_v44  ;;  %v4335_v22 = vshll.u32 %v4286_v28, 16  ;;  %23293 = vst [vmem:[#allocation31_spill] sm:$0xff] %v18393_v35  ;;  %v13753_v7 = vrot.slane %v18346_v13, 9  ;;  %v15738_v9 = vld [vmem:[%s23148_s4 + $0x270] ss:$8 sps:$4 sm:$0xff]  }
 0x200   : > { %v13809_v0 = vcombine.low %v3959_v54, %v3973_v63  ;;  %v4320_v3 = vor.u32 %v4319_v43, %v4316_v32  ;;  %v4329_v38 = vor.u32 %v4328_v39, %v4325_v25  ;;  %v15746_v28 = vld [vmem:[%s23148_s4 + $0x264] ss:$8 sps:$4 sm:$0xff]   ;;  %v13754_v33 = vrot.slane %v18351_v49, 9  ;;  %v18405_v54 = vpop.f32.mrf.mxu0  ;;  %v18407_v13 = vpop.f32.mrf.mxu1  ;;  %v18413_v43 = vld [vmem:[#allocation2 + $0x18] sm:$0xf] }
 0x201   : > { %v4312_v51 = vrot.slane %v4311_v4, 4  ;;  %v4334_v44 = vrot.slane %v4332_v52, 5  ;;  %v4337_v19 = vrot.slane %v4335_v22, 6  ;;  %23294 = vst [vmem:[#allocation32_spill] sm:$0xff] %v18407_v13  ;;  %v14931_v25 = vadd.f32 %v18189_v58, %v18177_v48  ;;  %v18415_v49 = vld [vmem:[#allocation2 + $0x14] sm:$0x1] }
 0x202   : > { %6071 = vmatprep.mubr.bf16.mxu0 %v13809_v0  ;;  %v4330_v39 = vrot.slane %v4329_v38, 4  ;;  %v4224_v32 = vsel %vm18389_vm4, %v13753_v7, %v4223_v18  ;;  %v4228_v52 = vsel %vm18389_vm4, %v13754_v33, %v4227_v56  ;;  %v14995_v22 = vadd.f32 %v18203_v61, %v18191_v40  ;;  %v18423_v0 = vpop.f32.mrf.mxu1  ;;  %v15741_v48 = vld [vmem:[%s23148_s4 + $0x370] ss:$8 sps:$4 sm:$0xff]   ;;  %v15744_v7 = vld [vmem:[%s23148_s4 + $0x260] ss:$8 sps:$4 sm:$0xff]   ;;  %v18450_v38 = vpop.f32.mrf.mxu0 }
 0x203   : > { %v4321_v63 = vsel %vm18381_vm3, %v4312_v51, %v4320_v3  ;;  %v4338_v4 = vor.u32 %v4337_v19, %v4334_v44  ;;  %6072 = vmatmul.mubr.bf16.vlgmr.msra.gmra.mxu0 %v13801_v1  ;;  %23295 = vst [vmem:[#allocation33_spill] sm:$0xff] %v18423_v0  ;;  %v14934_v58 = vadd.f32 %v18205_v26, %v18199_v24  ;;  %v3975_v56 = vshrl.u32 %v18403_v11, 16  ;;  %v15750_v61 = vld [vmem:[%s23148_s4 + $0x254] ss:$8 sps:$4 sm:$0xff]  }
 0x204   : > { %6266 = vmatpush1.bf16.msra.mxu0 %v15738_v9  ;;  %v14998_v18 = vadd.f32 %v18227_v59, %v18209_v21  ;;  %v3978_v40 = vshll.u32 %v18403_v11, 16  ;;  %v18442_v3 = vadd.f32 %v14995_v22, %v14931_v25  ;;  %v18444_v24 = vld [vmem:[#allocation2 + $0x1c] sm:$0x1]  ;;  %v3984_v26 = vshll.u32 %v18415_v49, 16  ;;  %v18448_v59 = vld [vmem:[#allocation2 + $0x10] sm:$0xe]  ;;  %v18452_v9 = vpop.f32.mrf.mxu1 }
 0x205   : > { %v4339_v1 = vsel %vm18381_vm3, %v4330_v39, %v4338_v4  ;;  %6267 = vmatprep.subr.bf16.mxu0 %v15746_v28  ;;  %v3989_v21 = vshrl.u32 %v18413_v43, 16  ;;  %23296 = vst [vmem:[#allocation34_spill] sm:$0xff] %v18450_v38  ;;  %23297 = vst [vmem:[#allocation35_spill] sm:$0xff] %v18452_v9  ;;  %v3977_v44 = vrot.slane %v3975_v56, 4  ;;  %v4287_v39 = vld [vmem:[#allocation2 + $0x14] sm:$0x3]  ;;  %v13817_v4 = vcombine.low %v4224_v32, %v4228_v52 }
 0x206   : > { %v13825_v33 = vcombine.low %v4321_v63, %v4339_v1  ;;  %v18454_v51 = vadd.f32 %v14998_v18, %v14934_v58  ;;  %v3980_v19 = vrot.slane %v3978_v40, 5  ;;  %v15748_v28 = vld [vmem:[%s23148_s4 + $0x250] ss:$8 sps:$4 sm:$0xff]   ;;  %v15753_v25 = vld [vmem:[%s23148_s4 + $0x364] ss:$8 sps:$4 sm:$0xff]   ;;  %v3986_v22 = vrot.slane %v3984_v26, 5  ;;  %v18465_v63 = vpop.f32.mrf.mxu1 }
 0x207   : > { %v3991_v0 = vrot.slane %v3989_v21, 4  ;;  %v3992_v27 = vshll.u32 %v18413_v43, 16  ;;  %v18463_v9 = vld [vmem:[#allocation2 + $0x18] sm:$0xe]  ;;  %23298 = vst [vmem:[#allocation36_spill] sm:$0xff] %v18465_v63  ;;  %v3998_v18 = vshll.u32 %v18444_v24, 16 }
 0x208   : > { %6184 = vmatprep.mubr.bf16.mxu1 %v13825_v33  ;;  %6268 = vmatpush1.bf16.msra.mxu0 %v15744_v7  ;;  %v3981_v58 = vor.u32 %v3980_v19, %v3977_v44  ;;  %v4341_v40 = vshrl.u32 %v18448_v59, 16  ;;  %v15756_v32 = vld [vmem:[%s23148_s4 + $0x244] ss:$8 sps:$4 sm:$0xff]   ;;  %v4288_v26 = vld [vmem:[#allocation2 + $0x1c] sm:$0x3]  ;;  %v4344_v21 = vshll.u32 %v18448_v59, 16  ;;  %v18475_v7 = vpop.f32.mrf.mxu0  ;;  %v18477_v44 = vpop.f32.mrf.mxu1 }
 0x209   : > { %6185 = vmatmul.mubr.bf16.vlgmr.msra.gmra.mxu1 %v13817_v4  ;;  %v3994_v52 = vrot.slane %v3992_v27, 5  ;;  %v4350_v33 = vshrl.u32 %v4287_v39, 16  ;;  %6269 = vmatprep.subr.bf16.mxu0 %v15750_v61  ;;  %23299 = vst [vmem:[#allocation37_spill] sm:$0xff] %v18475_v7  ;;  %23300 = vst [vmem:[#allocation38_spill] sm:$0xff] %v18477_v44  ;;  %v4353_v63 = vshll.u32 %v4287_v39, 16  ;;  %v4359_v13 = vshrl.u32 %v18463_v9, 16 }
 0x20a   : > { %6379 = vmatpush1.bf16.msra.mxu1 %v15741_v48  ;;  %v3982_v19 = vrot.slane %v3981_v58, 4  ;;  %v4343_v56 = vrot.slane %v4341_v40, 5  ;;  %v15751_v27 = vld [vmem:[%s23148_s4 + $0x360] ss:$8 sps:$4 sm:$0xff]   ;;  %v4346_v1 = vrot.slane %v4344_v21, 6  ;;  %v4362_v29 = vshll.u32 %v18463_v9, 16  ;;  %v18487_v48 = vpop.f32.mrf.mxu1  ;;  %v18495_v60 = vpop.f32.mrf.mxu0 }
 0x20b   : > { %v3995_v4 = vor.u32 %v3994_v52, %v3991_v0  ;;  %v4352_v35 = vrot.slane %v4350_v33, 5  ;;  %6380 = vmatprep.subr.bf16.mxu1 %v15753_v25  ;;  %v15763_v61 = vld [vmem:[%s23148_s4 + $0x354] ss:$8 sps:$4 sm:$0xff]   ;;  %v4000_v58 = vrot.slane %v3998_v18, 5  ;;  %v4355_v39 = vrot.slane %v4353_v63, 6  ;;  %23301 = vst [vmem:[#allocation39_spill] sm:$0xff] %v18495_v60 }
 0x20c   : > { %v4361_v40 = vrot.slane %v4359_v13, 5  ;;  %v4368_v44 = vshrl.u32 %v4288_v26, 16  ;;  %6270 = vmatpush1.bf16.msra.mxu0 %v15748_v28  ;;  %v15754_v0 = vld [vmem:[%s23148_s4 + $0x240] ss:$8 sps:$4 sm:$0xff]   ;;  %v4347_v21 = vor.u32 %v4346_v1, %v4343_v56  ;;  %v4364_v33 = vrot.slane %v4362_v29, 6 }
 0x20d   : > { %v3996_v52 = vrot.slane %v3995_v4, 4  ;;  %v4371_v30 = vshll.u32 %v4288_v26, 16  ;;  %6271 = vmatprep.subr.bf16.mxu0 %v15756_v32  ;;  %v15760_v25 = vld [vmem:[%s23148_s4 + $0x234] ss:$8 sps:$4 sm:$0xff]   ;;  %v3987_v13 = vsel %vm18363_vm15, %v3982_v19, %v3986_v22  ;;  %v4356_v63 = vor.u32 %v4355_v39, %v4352_v35  ;;  %v15758_v29 = vld [vmem:[%s23148_s4 + $0x230] ss:$8 sps:$4 sm:$0xff]  }
 0x20e   : > { %v4370_v28 = vrot.slane %v4368_v44, 5  ;;  %v14937_v18 = vadd.f32 %v18211_v16, %v18207_v36  ;;  %6381 = vmatpush1.bf16.msra.mxu1 %v15751_v27  ;;  %v4348_v32 = vrot.slane %v4347_v21, 4  ;;  %v4365_v1 = vor.u32 %v4364_v33, %v4361_v40  ;;  %v15761_v22 = vld [vmem:[%s23148_s4 + $0x350] ss:$8 sps:$4 sm:$0xff]   ;;  %v15766_v36 = vld [vmem:[%s23148_s4 + $0x224] ss:$8 sps:$4 sm:$0xff]   ;;  %v18512_v16 = vpop.f32.mrf.mxu1 }
 0x20f   : > { %v4001_v56 = vsel %vm18363_vm15, %v3996_v52, %v4000_v58  ;;  %v4373_v26 = vrot.slane %v4371_v30, 6  ;;  %6382 = vmatprep.subr.bf16.mxu1 %v15763_v61  ;;  %v13802_v44 = vcombine.low %v18403_v11, %v18413_v43  ;;  %v13756_v19 = vrot.slane %v18463_v9, 9  ;;  %v18519_v27 = vld [vmem:[#allocation2 + $0x20] sm:$0xf]  ;;  %v15773_v4 = vld [vmem:[%s23148_s4 + $0x344] ss:$8 sps:$4 sm:$0xff]  }
 0x210   : > { %v13810_v35 = vcombine.low %v3987_v13, %v4001_v56  ;;  %v15001_v30 = vadd.f32 %v18277_v2, %v18257_v47  ;;  %6272 = vmatpush1.bf16.msra.mxu0 %v15754_v0  ;;  %v4366_v61 = vrot.slane %v4365_v1, 4  ;;  %v13755_v39 = vrot.slane %v18448_v59, 9  ;;  %v18527_v11 = vld [vmem:[#allocation2 + $0x28] sm:$0xf]  ;;  %v18529_v43 = vld [vmem:[#allocation2 + $0x24] sm:$0x1]  ;;  %v18531_v47 = vpop.f32.mrf.mxu0  ;;  %v18567_v56 = vpop.f32.mrf.mxu1 }
 0x211   : > { %v4374_v58 = vor.u32 %v4373_v26, %v4370_v28  ;;  %v14940_v40 = vadd.f32 %v18229_v57, %v18217_v17  ;;  %6273 = vmatprep.subr.bf16.mxu0 %v15760_v25  ;;  %23302 = vst [vmem:[#allocation40_spill] sm:$0xff] %v18531_v47  ;;  %v4357_v2 = vsel %vm18381_vm3, %v4348_v32, %v4356_v63  ;;  %v23303_v9 = vrot.slane %v18444_v24, 5  ;;  %v18543_v57 = vld [vmem:[#allocation2 + $0x2c] sm:$0x1]  ;;  %v18545_v52 = vld [vmem:[#allocation2 + $0x20] sm:$0xe] }
 0x212   : > { %6081 = vmatprep.mubr.bf16.mxu0 %v13810_v35  ;;  %v18539_v59 = vadd.f32 %v15001_v30, %v14937_v18  ;;  %v15004_v17 = vadd.f32 %v18301_v10, %v18289_v37  ;;  %v15764_v21 = vld [vmem:[%s23148_s4 + $0x220] ss:$8 sps:$4 sm:$0xff]   ;;  %v23304_v25 = vrot.slane %v18415_v49, 5  ;;  %v4003_v10 = vshrl.u32 %v18519_v27, 16  ;;  %v4289_v63 = vld [vmem:[#allocation2 + $0x24] sm:$0x3]  ;;  %6383 = vmatpush1.bf16.msra.mxu1 %v15761_v22 }
 0x213   : > { %v4236_v0 = vsel %vm18389_vm4, %v13756_v19, %v23303_v9  ;;  %v15771_v24 = vld [vmem:[%s23148_s4 + $0x340] ss:$8 sps:$4 sm:$0xff]   ;;  %v4375_v33 = vsel %vm18381_vm3, %v4366_v61, %v4374_v58  ;;  %6082 = vmatmul.mubr.bf16.gmra.mxu0 %v13802_v44  ;;  %v4006_v13 = vshll.u32 %v18519_v27, 16  ;;  %v15770_v28 = vld [vmem:[%s23148_s4 + $0x214] ss:$8 sps:$4 sm:$0xff]   ;;  %v4012_v1 = vshll.u32 %v18529_v43, 16  ;;  %6384 = vmatprep.subr.bf16.mxu1 %v15773_v4  ;;  %v18576_v61 = vpop.f32.mrf.mxu0 }
 0x214   : > { %v4232_v37 = vsel %vm18389_vm4, %v13755_v39, %v23304_v25  ;;  %v15783_v18 = vld [vmem:[%s23148_s4 + $0x334] ss:$8 sps:$4 sm:$0xff]   ;;  %v13826_v49 = vcombine.low %v4357_v2, %v4375_v33  ;;  %v18569_v32 = vadd.f32 %v15004_v17, %v14940_v40  ;;  %v4017_v26 = vshrl.u32 %v18527_v11, 16  ;;  %6274 = vmatpush1.bf16.msra.mxu0 %v15758_v29  ;;  %v18574_v30 = vld [vmem:[#allocation2 + $0x28] sm:$0xe]  ;;  %23306 = vst [vmem:[#allocation42_spill] sm:$0xff] %v18576_v61 }
 0x215   : > { %v13818_v22 = vcombine.low %v4232_v37, %v4236_v0  ;;  %v4005_v35 = vrot.slane %v4003_v10, 4  ;;  %v4008_v44 = vrot.slane %v4006_v13, 5  ;;  %v4020_v19 = vshll.u32 %v18527_v11, 16  ;;  %6275 = vmatprep.subr.bf16.mxu0 %v15766_v36  ;;  %v4290_v9 = vld [vmem:[#allocation2 + $0x2c] sm:$0x3]  ;;  %v18591_v37 = vpop.f32.mrf.mxu1 }
 0x216   : > { %23305 = vst [vmem:[#allocation41_spill] sm:$0xff] %v18569_v32  ;;  %6194 = vmatprep.mubr.bf16.mxu1 %v13826_v49  ;;  %v4014_v58 = vrot.slane %v4012_v1, 5  ;;  %v4019_v39 = vrot.slane %v4017_v26, 4  ;;  %v4026_v40 = vshll.u32 %v18543_v57, 16  ;;  %v15768_v29 = vld [vmem:[%s23148_s4 + $0x210] ss:$8 sps:$4 sm:$0xff]   ;;  %6385 = vmatpush1.bf16.msra.mxu1 %v15771_v24 }
 0x217   : > { %v15781_v4 = vld [vmem:[%s23148_s4 + $0x330] ss:$8 sps:$4 sm:$0xff]   ;;  %6195 = vmatmul.mubr.bf16.gmra.mxu1 %v13818_v22  ;;  %v4009_v36 = vor.u32 %v4008_v44, %v4005_v35  ;;  %v4022_v0 = vrot.slane %v4020_v19, 5  ;;  %v4377_v33 = vshrl.u32 %v18545_v52, 16  ;;  %v15776_v25 = vld [vmem:[%s23148_s4 + $0x204] ss:$8 sps:$4 sm:$0xff]   ;;  %v18596_v19 = vpop.f32.mrf.mxu0  ;;  %6386 = vmatprep.subr.bf16.mxu1 %v15783_v18  ;;  %v14943_v18 = vadd.f32 %v18259_v62, %v18243_v23 }
 0x218   : > { %v4380_v10 = vshll.u32 %v18545_v52, 16  ;;  %v4386_v13 = vshrl.u32 %v4289_v63, 16  ;;  %v4389_v49 = vshll.u32 %v4289_v63, 16  ;;  %v4395_v1 = vshrl.u32 %v18574_v30, 16  ;;  %6276 = vmatpush1.bf16.msra.mxu0 %v15764_v21  ;;  %23307 = vst [vmem:[#allocation43_spill] sm:$0xff] %v18596_v19 }
 0x219   : > { %v4010_v26 = vrot.slane %v4009_v36, 4  ;;  %v4023_v22 = vor.u32 %v4022_v0, %v4019_v39  ;;  %v4379_v35 = vrot.slane %v4377_v33, 5  ;;  %v4398_v44 = vshll.u32 %v18574_v30, 16  ;;  %6277 = vmatprep.subr.bf16.mxu0 %v15770_v28  ;;  %v15793_v2 = vld [vmem:[%s23148_s4 + $0x324] ss:$8 sps:$4 sm:$0xff]   ;;  %v18601_v39 = vpop.f32.mrf.mxu1 }
 0x21a   : > { %v4382_v17 = vrot.slane %v4380_v10, 6  ;;  %v4388_v61 = vrot.slane %v4386_v13, 5  ;;  %v4391_v63 = vrot.slane %v4389_v49, 6  ;;  %v4397_v14 = vrot.slane %v4395_v1, 5  ;;  %6387 = vmatpush1.bf16.msra.mxu1 %v15781_v4  ;;  %v15774_v1 = vld [vmem:[%s23148_s4 + $0x200] ss:$8 sps:$4 sm:$0xff]  }
 0x21b   : > { %v4024_v7 = vrot.slane %v4023_v22, 4  ;;  %v4028_v21 = vrot.slane %v4026_v40, 5  ;;  %v4400_v24 = vrot.slane %v4398_v44, 6  ;;  %v4404_v36 = vshrl.u32 %v4290_v9, 16  ;;  %v15791_v23 = vld [vmem:[%s23148_s4 + $0x320] ss:$8 sps:$4 sm:$0xff]   ;;  %6388 = vmatprep.subr.bf16.mxu1 %v15793_v2 }
 0x21c   : > { %v4383_v0 = vor.u32 %v4382_v17, %v4379_v35  ;;  %v4392_v33 = vor.u32 %v4391_v63, %v4388_v61  ;;  %v4407_v28 = vshll.u32 %v4290_v9, 16  ;;  %6278 = vmatpush1.bf16.msra.mxu0 %v15768_v29  ;;  %v4015_v10 = vsel %vm18363_vm15, %v4010_v26, %v4014_v58  ;;  %v18612_v61 = vpop.f32.mrf.mxu0  ;;  %v15803_v29 = vld [vmem:[%s23148_s4 + $0x314] ss:$8 sps:$4 sm:$0xff]  }
 0x21d   : > { %v4029_v13 = vsel %vm18363_vm15, %v4024_v7, %v4028_v21  ;;  %v4401_v49 = vor.u32 %v4400_v24, %v4397_v14  ;;  %v4406_v40 = vrot.slane %v4404_v36, 5  ;;  %6279 = vmatprep.subr.bf16.mxu0 %v15776_v25  ;;  %23308 = vst [vmem:[#allocation44_spill] sm:$0xff] %v18612_v61  ;;  %v13803_v7 = vcombine.low %v18519_v27, %v18527_v11  ;;  %v18619_v14 = vld [vmem:[#allocation2 + $0x30] sm:$0xf]  ;;  %v18629_v26 = vld [vmem:[#allocation2 + $0x34] sm:$0x1]  ;;  %v18634_v11 = vpop.f32.mrf.mxu1 }
 0x21e   : > { %v13811_v62 = vcombine.low %v4015_v10, %v4029_v13  ;;  %v4384_v9 = vrot.slane %v4383_v0, 4  ;;  %v4409_v58 = vrot.slane %v4407_v28, 6  ;;  %v13758_v17 = vrot.slane %v18574_v30, 9  ;;  %v15780_v27 = vld [vmem:[%s23148_s4 + $0x2f4] ss:$8 sps:$4 sm:$0xff]   ;;  %6389 = vmatpush1.bf16.msra.mxu1 %v15791_v23 }
 0x21f   : > { %v4402_v4 = vrot.slane %v4401_v49, 4  ;;  %v15007_v25 = vadd.f32 %v18354_v55, %v18332_v31  ;;  %v14946_v2 = vadd.f32 %v18279_v20, %v18271_v53  ;;  %v13757_v30 = vrot.slane %v18545_v52, 9  ;;  %v18641_v55 = vld [vmem:[#allocation2 + $0x38] sm:$0xf]  ;;  %v15813_v24 = vld [vmem:[%s23148_s4 + $0x304] ss:$8 sps:$4 sm:$0xff]   ;;  %6390 = vmatprep.subr.bf16.mxu1 %v15803_v29 }
 0x220   : > { %6091 = vmatprep.mubr.bf16.mxu0 %v13811_v62  ;;  %v4393_v22 = vsel %vm18381_vm3, %v4384_v9, %v4392_v33  ;;  %v4410_v35 = vor.u32 %v4409_v58, %v4406_v40  ;;  %v15010_v31 = vadd.f32 %v18405_v54, %v18373_v6  ;;  %v15778_v53 = vld [vmem:[%s23148_s4 + $0x2f0] ss:$8 sps:$4 sm:$0xff]   ;;  %v23309_v20 = vrot.slane %v18543_v57, 5  ;;  %v15786_v6 = vld [vmem:[%s23148_s4 + $0x2e4] ss:$8 sps:$4 sm:$0xff]   ;;  %v18657_v54 = vpop.f32.mrf.mxu0  ;;  %6280 = vmatpush1.bf16.msra.mxu0 %v15774_v1 }
 0x221   : > { %6092 = vmatmul.mubr.bf16.gmra.mxu0 %v13803_v7  ;;  %v18650_v63 = vadd.f32 %v15007_v25, %v14943_v18  ;;  %v4031_v21 = vshrl.u32 %v18619_v14, 16  ;;  %v4034_v52 = vshll.u32 %v18619_v14, 16  ;;  %23311 = vst [vmem:[#allocation46_spill] sm:$0xff] %v18657_v54  ;;  %v15801_v57 = vld [vmem:[%s23148_s4 + $0x310] ss:$8 sps:$4 sm:$0xff]   ;;  %v23312_v0 = vrot.slane %v18529_v43, 5  ;;  %6281 = vmatprep.subr.bf16.mxu0 %v15780_v27  ;;  %v18679_v43 = vpop.f32.mrf.mxu1 }
 0x222   : > { %v4244_v44 = vsel %vm18389_vm4, %v13758_v17, %v23309_v20  ;;  %v4411_v36 = vsel %vm18381_vm3, %v4402_v4, %v4410_v35  ;;  %v18671_v28 = vadd.f32 %v15010_v31, %v14946_v2  ;;  %v18673_v18 = vld [vmem:[#allocation2 + $0x3c] sm:$0x1]  ;;  %v4040_v10 = vshll.u32 %v18629_v26, 16  ;;  %v18676_v13 = vld [vmem:[#allocation2 + $0x30] sm:$0xe]  ;;  %v18689_v27 = vpop.f32.mrf.mxu0  ;;  %6391 = vmatpush1.bf16.msra.mxu1 %v15801_v57 }
 0x223   : > { %23310 = vst [vmem:[#allocation45_spill] sm:$0xff] %v18650_v63  ;;  %v4240_v33 = vsel %vm18389_vm4, %v13757_v30, %v23312_v0  ;;  %v13827_v49 = vcombine.low %v4393_v22, %v4411_v36  ;;  %v4033_v40 = vrot.slane %v4031_v21, 4  ;;  %v4036_v23 = vrot.slane %v4034_v52, 5  ;;  %v4291_v9 = vld [vmem:[#allocation2 + $0x34] sm:$0x3]  ;;  %23314 = vst [vmem:[#allocation48_spill] sm:$0xff] %v18689_v27  ;;  %6392 = vmatprep.subr.bf16.mxu1 %v15813_v24 }
 0x224   : > { %23313 = vst [vmem:[#allocation47_spill] sm:$0xff] %v18671_v28  ;;  %v4045_v62 = vshrl.u32 %v18641_v55, 16  ;;  %v13819_v58 = vcombine.low %v4240_v33, %v4244_v44  ;;  %v4042_v7 = vrot.slane %v4040_v10, 5  ;;  %v4048_v4 = vshll.u32 %v18641_v55, 16  ;;  %v18682_v17 = vld [vmem:[#allocation2 + $0x38] sm:$0xe]  ;;  %6282 = vmatpush2.bf16.msra.mxu0 %v15778_v53  ;;  %v18700_v10 = vpop.f32.mrf.mxu1 }
 0x225   : > { %v15784_v1 = vld [vmem:[%s23148_s4 + $0x2e0] ss:$8 sps:$4 sm:$0xff]   ;;  %6204 = vmatprep.mubr.bf16.mxu1 %v13827_v49  ;;  %v4037_v29 = vor.u32 %v4036_v23, %v4033_v40  ;;  %v4054_v2 = vshll.u32 %v18673_v18, 16  ;;  %v4413_v22 = vshrl.u32 %v18676_v13, 16  ;;  %v4251_v31 = vrot.slane %v18673_v18, 5  ;;  %6283 = vmatprep.subr.bf16.mxu0 %v15786_v6 }
 0x226   : > { %v4047_v25 = vrot.slane %v4045_v62, 4  ;;  %v15811_v35 = vld [vmem:[%s23148_s4 + $0x300] ss:$8 sps:$4 sm:$0xff]   ;;  %6205 = vmatmul.mubr.bf16.gmra.mxu1 %v13819_v58  ;;  %v4050_v30 = vrot.slane %v4048_v4, 5  ;;  %v4292_v20 = vld [vmem:[#allocation2 + $0x3c] sm:$0x3] }
 0x227   : > { %v4416_v44 = vshll.u32 %v18676_v13, 16  ;;  %v4422_v21 = vshrl.u32 %v4291_v9, 16  ;;  %v4038_v52 = vrot.slane %v4037_v29, 4  ;;  %v4415_v36 = vrot.slane %v4413_v22, 5  ;;  %v15790_v57 = vld [vmem:[%s23148_s4 + $0x2d4] ss:$8 sps:$4 sm:$0xff]   ;;  %v18705_v29 = vpop.f32.mrf.mxu0  ;;  %6393 = vmatpush1.bf16.msra.mxu1 %v15811_v35 }
 0x228   : > { %v4425_v0 = vshll.u32 %v4291_v9, 16  ;;  %v4431_v33 = vshrl.u32 %v18682_v17, 16  ;;  %v4051_v49 = vor.u32 %v4050_v30, %v4047_v25  ;;  %v4434_v23 = vshll.u32 %v18682_v17, 16  ;;  %v18703_v9 = vld [vmem:[#allocation2 + $0x40] sm:$0xf]  ;;  %23315 = vst [vmem:[#allocation49_spill] sm:$0xff] %v18705_v29  ;;  %6284 = vmatpush2.bf16.msra.mxu0 %v15784_v1 }
 0x229   : > { %v4418_v18 = vrot.slane %v4416_v44, 6  ;;  %v4424_v40 = vrot.slane %v4422_v21, 5  ;;  %v4056_v62 = vrot.slane %v4054_v2, 5  ;;  %v4440_v4 = vshrl.u32 %v4292_v20, 16  ;;  %v15788_v25 = vld [vmem:[%s23148_s4 + $0x2d0] ss:$8 sps:$4 sm:$0xff]   ;;  %6285 = vmatprep.subr.bf16.mxu0 %v15790_v57 }
 0x22a   : > { %v4427_v53 = vrot.slane %v4425_v0, 6  ;;  %v4433_v58 = vrot.slane %v4431_v33, 5  ;;  %v4052_v6 = vrot.slane %v4051_v49, 4  ;;  %v4436_v27 = vrot.slane %v4434_v23, 6  ;;  %v15796_v35 = vld [vmem:[%s23148_s4 + $0x2c4] ss:$8 sps:$4 sm:$0xff]  }
 0x22b   : > { %v4419_v22 = vor.u32 %v4418_v18, %v4415_v36  ;;  %v4443_v24 = vshll.u32 %v4292_v20, 16  ;;  %v4043_v2 = vsel %vm18363_vm15, %v4038_v52, %v4042_v7  ;;  %v4442_v44 = vrot.slane %v4440_v4, 5  ;;  %v18719_v20 = vpop.f32.mrf.mxu1  ;;  %v18723_v7 = vld [vmem:[#allocation2 + $0x44] sm:$0x1]  ;;  %v18730_v18 = vpop.f32.mrf.mxu0 }
 0x22c   : > { %v4428_v30 = vor.u32 %v4427_v53, %v4424_v40  ;;  %v18714_v21 = vadd.f32 %v18291_v12, %v18287_v45  ;;  %v4057_v1 = vsel %vm18363_vm15, %v4052_v6, %v4056_v62  ;;  %v4437_v0 = vor.u32 %v4436_v27, %v4433_v58  ;;  %v18727_v12 = vld [vmem:[#allocation2 + $0x48] sm:$0xf]  ;;  %23317 = vst [vmem:[#allocation51_spill] sm:$0xff] %v18730_v18  ;;  %v18734_v27 = vld [vmem:[#allocation2 + $0x4c] sm:$0x1] }
 0x22d   : > { %v4420_v36 = vrot.slane %v4419_v22, 4  ;;  %v4445_v33 = vrot.slane %v4443_v24, 6  ;;  %v4247_v52 = vrot.slane %v18629_v26, 5  ;;  %v13812_v49 = vcombine.low %v4043_v2, %v4057_v1  ;;  %6286 = vmatpush2.bf16.msra.mxu0 %v15788_v25  ;;  %v15794_v26 = vld [vmem:[%s23148_s4 + $0x2c0] ss:$8 sps:$4 sm:$0xff]  }
 0x22e   : > { %23316 = vst [vmem:[#allocation50_spill] sm:$0xff] %v18714_v21  ;;  %v13760_v45 = vrot.slane %v18682_v17, 9  ;;  %v4059_v57 = vshrl.u32 %v18703_v9, 16  ;;  %v4438_v40 = vrot.slane %v4437_v0, 4  ;;  %v13804_v62 = vcombine.low %v18619_v14, %v18641_v55  ;;  %6287 = vmatprep.subr.bf16.mxu0 %v15796_v35  ;;  %v15800_v14 = vld [vmem:[%s23148_s4 + $0x2b4] ss:$8 sps:$4 sm:$0xff]   ;;  %v18747_v55 = vpop.f32.mrf.mxu1 }
 0x22f   : > { %v4446_v23 = vor.u32 %v4445_v33, %v4442_v44  ;;  %v4062_v53 = vshll.u32 %v18703_v9, 16  ;;  %6101 = vmatprep.mubr.bf16.mxu0 %v13812_v49  ;;  %v13759_v17 = vrot.slane %v18676_v13, 9  ;;  %v4068_v6 = vshll.u32 %v18723_v7, 16  ;;  %v18754_v25 = vld [vmem:[#allocation2 + $0x40] sm:$0xe]  ;;  %v18761_v33 = vpop.f32.mrf.mxu0 }
 0x230   : > { %v4252_v58 = vsel %vm18389_vm4, %v13760_v45, %v4251_v31  ;;  %v4061_v4 = vrot.slane %v4059_v57, 4  ;;  %v4429_v22 = vsel %vm18381_vm3, %v4420_v36, %v4428_v30  ;;  %6102 = vmatmul.mubr.bf16.gmra.mxu0 %v13804_v62  ;;  %v4073_v31 = vshrl.u32 %v18727_v12, 16  ;;  %v18759_v1 = vld [vmem:[#allocation2 + $0x48] sm:$0xe]  ;;  %v4293_v0 = vld [vmem:[#allocation2 + $0x44] sm:$0x3] }
 0x231   : > { %v4447_v24 = vsel %vm18381_vm3, %v4438_v40, %v4446_v23  ;;  %v4064_v13 = vrot.slane %v4062_v53, 5  ;;  %v4248_v44 = vsel %vm18389_vm4, %v13759_v17, %v4247_v52  ;;  %v4076_v35 = vshll.u32 %v18727_v12, 16  ;;  %23318 = vst [vmem:[#allocation52_spill] sm:$0xff] %v18761_v33  ;;  %6288 = vmatpush2.bf16.msra.mxu0 %v15794_v26  ;;  %v15798_v57 = vld [vmem:[%s23148_s4 + $0x2b0] ss:$8 sps:$4 sm:$0xff]   ;;  %v18772_v17 = vpop.f32.mrf.mxu1 }
 0x232   : > { %v13828_v2 = vcombine.low %v4429_v22, %v4447_v24  ;;  %v13820_v30 = vcombine.low %v4248_v44, %v4252_v58  ;;  %v4075_v49 = vrot.slane %v4073_v31, 4  ;;  %v4082_v45 = vshll.u32 %v18734_v27, 16  ;;  %6289 = vmatprep.subr.bf16.mxu0 %v15800_v14  ;;  %v15806_v53 = vld [vmem:[%s23148_s4 + $0x2a4] ss:$8 sps:$4 sm:$0xff]   ;;  %v18776_v44 = vpop.f32.mrf.mxu0 }
 0x233   : > { %v4065_v36 = vor.u32 %v4064_v13, %v4061_v4  ;;  %v4070_v40 = vrot.slane %v4068_v6, 5  ;;  %v4078_v52 = vrot.slane %v4076_v35, 5  ;;  %v4449_v23 = vshrl.u32 %v18754_v25, 16  ;;  %v4294_v58 = vld [vmem:[#allocation2 + $0x4c] sm:$0x3]  ;;  %23319 = vst [vmem:[#allocation53_spill] sm:$0xff] %v18776_v44 }
 0x234   : > { %6214 = vmatprep.mubr.bf16.mxu1 %v13828_v2  ;;  %v4452_v62 = vshll.u32 %v18754_v25, 16  ;;  %v4458_v4 = vshrl.u32 %v4293_v0, 16  ;;  %v4461_v22 = vshll.u32 %v4293_v0, 16  ;;  %v4467_v24 = vshrl.u32 %v18759_v1, 16 }
 0x235   : > { %6215 = vmatmul.mubr.bf16.gmra.mxu1 %v13820_v30  ;;  %v4066_v26 = vrot.slane %v4065_v36, 4  ;;  %v4079_v6 = vor.u32 %v4078_v52, %v4075_v49  ;;  %v4451_v13 = vrot.slane %v4449_v23, 5  ;;  %v4470_v2 = vshll.u32 %v18759_v1, 16  ;;  %6290 = vmatpush2.bf16.msra.mxu0 %v15798_v57  ;;  %v15804_v30 = vld [vmem:[%s23148_s4 + $0x2a0] ss:$8 sps:$4 sm:$0xff]   ;;  %v18784_v52 = vpop.f32.mrf.mxu1 }
 0x236   : > { %v4454_v31 = vrot.slane %v4452_v62, 6  ;;  %v4084_v14 = vrot.slane %v4082_v45, 5  ;;  %v4460_v35 = vrot.slane %v4458_v4, 5  ;;  %v4463_v29 = vrot.slane %v4461_v22, 6  ;;  %6291 = vmatprep.subr.bf16.mxu0 %v15806_v53  ;;  %v15810_v49 = vld [vmem:[%s23148_s4 + $0x294] ss:$8 sps:$4 sm:$0xff]  }
 0x237   : > { %v4469_v33 = vrot.slane %v4467_v24, 5  ;;  %v4080_v36 = vrot.slane %v4079_v6, 4  ;;  %v4472_v18 = vrot.slane %v4470_v2, 6  ;;  %v4476_v19 = vshrl.u32 %v4294_v58, 16  ;;  %v18791_v24 = vld [vmem:[#allocation2 + $0x50] sm:$0xf]  ;;  %v18795_v6 = vpop.f32.mrf.mxu0 }
 0x238   : > { %v4455_v0 = vor.u32 %v4454_v31, %v4451_v13  ;;  %v4259_v45 = vrot.slane %v18734_v27, 5  ;;  %v4479_v23 = vshll.u32 %v4294_v58, 16  ;;  %v4071_v57 = vsel %vm18363_vm15, %v4066_v26, %v4070_v40  ;;  %v18793_v53 = vld [vmem:[#allocation2 + $0x58] sm:$0xf]  ;;  %23320 = vst [vmem:[#allocation54_spill] sm:$0xff] %v18795_v6 }
 0x239   : > { %v4085_v62 = vsel %vm18363_vm15, %v4080_v36, %v4084_v14  ;;  %v4473_v4 = vor.u32 %v4472_v18, %v4469_v33  ;;  %v4478_v22 = vrot.slane %v4476_v19, 5  ;;  %v4464_v2 = vor.u32 %v4463_v29, %v4460_v35  ;;  %v18797_v27 = vld [vmem:[#allocation2 + $0x54] sm:$0x1]  ;;  %6292 = vmatpush2.bf16.msra.mxu0 %v15804_v30  ;;  %v15808_v40 = vld [vmem:[%s23148_s4 + $0x290] ss:$8 sps:$4 sm:$0xff]   ;;  %v18808_v29 = vpop.f32.mrf.mxu1 }
 0x23a   : > { %v13813_v13 = vcombine.low %v4071_v57, %v4085_v62  ;;  %v4456_v31 = vrot.slane %v4455_v0, 4  ;;  %v4481_v44 = vrot.slane %v4479_v23, 6  ;;  %v4255_v18 = vrot.slane %v18723_v7, 5  ;;  %6293 = vmatprep.subr.bf16.mxu0 %v15810_v49  ;;  %v15816_v26 = vld [vmem:[%s23148_s4 + $0x284] ss:$8 sps:$4 sm:$0xff]   ;;  %v18818_v0 = vpop.f32.mrf.mxu0 }
 0x23b   : > { %v4474_v19 = vrot.slane %v4473_v4, 4  ;;  %v13805_v33 = vcombine.low %v18703_v9, %v18727_v12  ;;  %v13761_v14 = vrot.slane %v18754_v25, 9  ;;  %v13762_v35 = vrot.slane %v18759_v1, 9  ;;  %v18812_v30 = vld [vmem:[#allocation2 + $0x5c] sm:$0x1]  ;;  %23321 = vst [vmem:[#allocation55_spill] sm:$0xff] %v18818_v0 }
 0x23c   : > { %6111 = vmatprep.mubr.bf16.mxu0 %v13813_v13  ;;  %v4482_v58 = vor.u32 %v4481_v44, %v4478_v22  ;;  %v4087_v7 = vshrl.u32 %v18791_v24, 16  ;;  %v4090_v9 = vshll.u32 %v18791_v24, 16  ;;  %v4096_v12 = vshll.u32 %v18797_v27, 16  ;;  %v18827_v23 = vld [vmem:[#allocation2 + $0x50] sm:$0xe] }
 0x23d   : > { %6112 = vmatmul.mubr.bf16.gmra.mxu0 %v13805_v33  ;;  %v4101_v36 = vshrl.u32 %v18793_v53, 16  ;;  %v4465_v44 = vsel %vm18381_vm3, %v4456_v31, %v4464_v2  ;;  %v4260_v1 = vsel %vm18389_vm4, %v13762_v35, %v4259_v45  ;;  %v4104_v49 = vshll.u32 %v18793_v53, 16  ;;  %v15814_v57 = vld [vmem:[%s23148_s4 + $0x280] ss:$8 sps:$4 sm:$0xff]   ;;  %v4295_v31 = vld [vmem:[#allocation2 + $0x54] sm:$0x3]  ;;  %v18834_v2 = vpop.f32.mrf.mxu1 }
 0x23e   : > { %v4483_v25 = vsel %vm18381_vm3, %v4474_v19, %v4482_v58  ;;  %6294 = vmatpush2.bf16.msra.mxu0 %v15808_v40  ;;  %v4256_v4 = vsel %vm18389_vm4, %v13761_v14, %v4255_v18  ;;  %v4089_v22 = vrot.slane %v4087_v7, 4  ;;  %v4092_v13 = vrot.slane %v4090_v9, 5  ;;  %v18837_v40 = vld [vmem:[#allocation2 + $0x58] sm:$0xe] }
 0x23f   : > { %v13829_v62 = vcombine.low %v4465_v44, %v4483_v25  ;;  %6295 = vmatprep.subr.bf16.mxu0 %v15816_v26  ;;  %v13821_v45 = vcombine.low %v4256_v4, %v4260_v1  ;;  %v4103_v19 = vrot.slane %v4101_v36, 4  ;;  %v4106_v33 = vrot.slane %v4104_v49, 5  ;;  %v18840_v25 = vpop.f32.mrf.mxu0  ;;  %v4296_v26 = vld [vmem:[#allocation2 + $0x5c] sm:$0x3] }
 0x240   : > { %v4110_v58 = vshll.u32 %v18812_v30, 16  ;;  %v4093_v35 = vor.u32 %v4092_v13, %v4089_v22  ;;  %v4098_v6 = vrot.slane %v4096_v12, 5  ;;  %v4485_v44 = vshrl.u32 %v18827_v23, 16  ;;  %23322 = vst [vmem:[#allocation56_spill] sm:$0xff] %v18840_v25 }
 0x241   : > { %6224 = vmatprep.mubr.bf16.mxu1 %v13829_v62  ;;  %v4107_v18 = vor.u32 %v4106_v33, %v4103_v19  ;;  %v4488_v7 = vshll.u32 %v18827_v23, 16  ;;  %v4494_v9 = vshrl.u32 %v4295_v31, 16  ;;  %v4497_v49 = vshll.u32 %v4295_v31, 16  ;;  %v18844_v62 = vpop.f32.mrf.mxu1  ;;  %v18849_v0 = vpop.f32.mrf.mxu0 }
 0x242   : > { %6225 = vmatmul.mubr.bf16.gmra.mxu1 %v13821_v45  ;;  %v4112_v14 = vrot.slane %v4110_v58, 5  ;;  %6296 = vmatpush2.bf16.msra.mxu0 %v15814_v57  ;;  %v4094_v36 = vrot.slane %v4093_v35, 4  ;;  %v4487_v1 = vrot.slane %v4485_v44, 5  ;;  %v4503_v4 = vshrl.u32 %v18837_v40, 16 }
 0x243   : > { %v4108_v12 = vrot.slane %v4107_v18, 4  ;;  %v4490_v22 = vrot.slane %v4488_v7, 6  ;;  %v4496_v13 = vrot.slane %v4494_v9, 5  ;;  %v4506_v25 = vshll.u32 %v18837_v40, 16  ;;  %v18853_v9 = vpop.f32.mrf.mxu1 }
 0x244   : > { %v4099_v45 = vsel %vm18363_vm15, %v4094_v36, %v4098_v6  ;;  %v4499_v19 = vrot.slane %v4497_v49, 6  ;;  %v4505_v33 = vrot.slane %v4503_v4, 5  ;;  %v4512_v58 = vshrl.u32 %v4296_v26, 16  ;;  %23323 = vst [vmem:[#allocation57_spill] sm:$0xff] %v18853_v9  ;;  %v18856_v49 = vld [vmem:[#allocation2 + $0x60] sm:$0xf] }
 0x245   : > { %v4113_v57 = vsel %vm18363_vm15, %v4108_v12, %v4112_v14  ;;  %v4491_v31 = vor.u32 %v4490_v22, %v4487_v1  ;;  %v4508_v35 = vrot.slane %v4506_v25, 6  ;;  %v4515_v44 = vshll.u32 %v4296_v26, 16  ;;  %v18861_v25 = vld [vmem:[#allocation2 + $0x68] sm:$0xf]  ;;  %v18863_v26 = vld [vmem:[#allocation2 + $0x64] sm:$0x1]  ;;  %v18865_v1 = vpop.f32.mrf.mxu0 }
 0x246   : > { %v13814_v54 = vcombine.low %v4099_v45, %v4113_v57  ;;  %v4500_v18 = vor.u32 %v4499_v19, %v4496_v13  ;;  %v4514_v7 = vrot.slane %v4512_v58, 5  ;;  %v4263_v61 = vrot.slane %v18797_v27, 5 }
 0x247   : > { %v4492_v21 = vrot.slane %v4491_v31, 4  ;;  %v4509_v6 = vor.u32 %v4508_v35, %v4505_v33  ;;  %v4517_v36 = vrot.slane %v4515_v44, 6  ;;  %v4267_v4 = vrot.slane %v18812_v30, 5  ;;  %v18879_v33 = vld [vmem:[#allocation2 + $0x6c] sm:$0x1] }
 0x248   : > { %6121 = vmatprep.mubr.bf16.mxu0 %v13814_v54  ;;  %v13806_v14 = vcombine.low %v18791_v24, %v18793_v53  ;;  %v13763_v27 = vrot.slane %v18827_v23, 9  ;;  %v13764_v30 = vrot.slane %v18837_v40, 9  ;;  %v4115_v54 = vshrl.u32 %v18856_v49, 16  ;;  %v18873_v53 = vpop.f32.mrf.mxu1  ;;  %v18885_v35 = vld [vmem:[#allocation2 + $0x60] sm:$0xe] }
 0x249   : > { %v4510_v12 = vrot.slane %v4509_v6, 4  ;;  %v4518_v22 = vor.u32 %v4517_v36, %v4514_v7  ;;  %v4501_v13 = vsel %vm18381_vm3, %v4492_v21, %v4500_v18  ;;  %v4118_v24 = vshll.u32 %v18856_v49, 16  ;;  %23324 = vst [vmem:[#allocation58_spill] sm:$0xff] %v18873_v53  ;;  %v4297_v44 = vld [vmem:[#allocation2 + $0x64] sm:$0x3]  ;;  %v18887_v18 = vpop.f32.mrf.mxu0 }
 0x24a   : > { %6122 = vmatmul.mubr.bf16.gmra.mxu0 %v13806_v14  ;;  %v4264_v19 = vsel %vm18389_vm4, %v13763_v27, %v4263_v61  ;;  %v4124_v23 = vshll.u32 %v18863_v26, 16  ;;  %v4129_v21 = vshrl.u32 %v18861_v25, 16  ;;  %v4268_v40 = vsel %vm18389_vm4, %v13764_v30, %v4267_v4  ;;  %v4183_v36 = vld [vmem:[#allocation2 + $0x68] sm:$0xe] }
 0x24b   : > { %v4519_v45 = vsel %vm18381_vm3, %v4510_v12, %v4518_v22  ;;  %v4117_v57 = vrot.slane %v4115_v54, 4  ;;  %v4120_v31 = vrot.slane %v4118_v24, 5  ;;  %v13822_v7 = vcombine.low %v4264_v19, %v4268_v40  ;;  %v18891_v22 = vpop.f32.mrf.mxu1  ;;  %v18895_v40 = vpop.f32.mrf.mxu0 }
 0x24c   : > { %v13830_v58 = vcombine.low %v4501_v13, %v4519_v45  ;;  %v4131_v6 = vrot.slane %v4129_v21, 4  ;;  %v4132_v61 = vshll.u32 %v18861_v25, 16  ;;  %v4138_v12 = vshll.u32 %v18879_v33, 16  ;;  %23325 = vst [vmem:[#allocation59_spill] sm:$0xff] %v18891_v22  ;;  %v4298_v45 = vld [vmem:[#allocation2 + $0x6c] sm:$0x3] }
 0x24d   : > { %v4121_v14 = vor.u32 %v4120_v31, %v4117_v57  ;;  %v4521_v27 = vshrl.u32 %v18885_v35, 16  ;;  %v4524_v13 = vshll.u32 %v18885_v35, 16  ;;  %v4530_v30 = vshrl.u32 %v4297_v44, 16  ;;  %v18897_v47 = vpop.f32.mrf.mxu1  ;;  %v18900_v8 = vpop.f32.mrf.mxu0 }
 0x24e   : > { %6234 = vmatprep.mubr.bf16.mxu1 %v13830_v58  ;;  %v4134_v4 = vrot.slane %v4132_v61, 5  ;;  %v4126_v24 = vrot.slane %v4124_v23, 5  ;;  %v4533_v19 = vshll.u32 %v4297_v44, 16  ;;  %v4539_v21 = vshrl.u32 %v4183_v36, 16  ;;  %23326 = vst [vmem:[#allocation60_spill] sm:$0xff] %v18897_v47 }
 0x24f   : > { %6235 = vmatmul.mubr.bf16.gmra.mxu1 %v13822_v7  ;;  %v4122_v54 = vrot.slane %v4121_v14, 4  ;;  %v4140_v57 = vrot.slane %v4138_v12, 5  ;;  %v4523_v31 = vrot.slane %v4521_v27, 5  ;;  %v4526_v53 = vrot.slane %v4524_v13, 6  ;;  %v18906_v13 = vld [vmem:[#allocation2 + $0x70] sm:$0xf] }
 0x250   : > { %v4135_v58 = vor.u32 %v4134_v4, %v4131_v6  ;;  %v4532_v38 = vrot.slane %v4530_v30, 5  ;;  %v4535_v22 = vrot.slane %v4533_v19, 6  ;;  %v4541_v7 = vrot.slane %v4539_v21, 5 }
 0x251   : > { %v4542_v61 = vshll.u32 %v4183_v36, 16  ;;  %v4527_v46 = vor.u32 %v4526_v53, %v4523_v31  ;;  %v4548_v41 = vshrl.u32 %v4298_v45, 16  ;;  %v4551_v14 = vshll.u32 %v4298_v45, 16  ;;  %v18908_v45 = vld [vmem:[#allocation2 + $0x78] sm:$0xf] }
 0x252   : > { %v4136_v60 = vrot.slane %v4135_v58, 4  ;;  %v4275_v23 = vrot.slane %v18879_v33, 5  ;;  %v4127_v6 = vsel %vm18363_vm15, %v4122_v54, %v4126_v24  ;;  %v4536_v53 = vor.u32 %v4535_v22, %v4532_v38  ;;  %v18910_v33 = vld [vmem:[#allocation2 + $0x74] sm:$0x1]  ;;  %v18912_v58 = vpop.f32.mrf.mxu1  ;;  %v18920_v38 = vld [vmem:[#allocation2 + $0x7c] sm:$0x1] }
 0x253   : > { %v4544_v44 = vrot.slane %v4542_v61, 6  ;;  %v4550_v4 = vrot.slane %v4548_v41, 5  ;;  %v4553_v27 = vrot.slane %v4551_v14, 6  ;;  %v4528_v19 = vrot.slane %v4527_v46, 4  ;;  %23327 = vst [vmem:[#allocation61_spill] sm:$0xff] %v18912_v58  ;;  %v18918_v46 = vpop.f32.mrf.mxu0 }
 0x254   : > { %v4141_v12 = vsel %vm18363_vm15, %v4136_v60, %v4140_v57  ;;  %v4271_v31 = vrot.slane %v18863_v26, 5  ;;  %v13807_v60 = vcombine.low %v18856_v49, %v18861_v25  ;;  %v13765_v24 = vrot.slane %v18885_v35, 9  ;;  %v18933_v14 = vld [vmem:[#allocation2 + $0x70] sm:$0xe] }
 0x255   : > { %v13815_v30 = vcombine.low %v4127_v6, %v4141_v12  ;;  %v4545_v21 = vor.u32 %v4544_v44, %v4541_v7  ;;  %v4554_v54 = vor.u32 %v4553_v27, %v4550_v4  ;;  %v13766_v57 = vrot.slane %v4183_v36, 9  ;;  %v18935_v44 = vpop.f32.mrf.mxu1 }
 0x256   : > { %v4143_v22 = vshrl.u32 %v18906_v13, 16  ;;  %v4146_v7 = vshll.u32 %v18906_v13, 16  ;;  %v4152_v26 = vshll.u32 %v18910_v33, 16  ;;  %v4157_v61 = vshrl.u32 %v18908_v45, 16  ;;  %23328 = vst [vmem:[#allocation62_spill] sm:$0xff] %v18935_v44 }
 0x257   : > { %6131 = vmatprep.mubr.bf16.mxu0 %v13815_v30  ;;  %v4546_v41 = vrot.slane %v4545_v21, 4  ;;  %v4537_v49 = vsel %vm18381_vm3, %v4528_v19, %v4536_v53  ;;  %v4276_v35 = vsel %vm18389_vm4, %v13766_v57, %v4275_v23  ;;  %v4160_v36 = vshll.u32 %v18908_v45, 16  ;;  %v4299_v30 = vld [vmem:[#allocation2 + $0x74] sm:$0x3]  ;;  %v18940_v23 = vpop.f32.mrf.mxu0 }
 0x258   : > { %6132 = vmatmul.mubr.bf16.gmra.mxu0 %v13807_v60  ;;  %v4272_v12 = vsel %vm18389_vm4, %v13765_v24, %v4271_v31  ;;  %v4145_v4 = vrot.slane %v4143_v22, 4  ;;  %v4148_v27 = vrot.slane %v4146_v7, 5  ;;  %v4159_v53 = vrot.slane %v4157_v61, 4  ;;  %v4185_v60 = vld [vmem:[#allocation2 + $0x78] sm:$0xe]  ;;  %v18944_v7 = vpop.f32.mrf.mxu1 }
 0x259   : > { %v4555_v25 = vsel %vm18381_vm3, %v4546_v41, %v4554_v54  ;;  %v13823_v19 = vcombine.low %v4272_v12, %v4276_v35  ;;  %v4162_v21 = vrot.slane %v4160_v36, 5  ;;  %v4166_v54 = vshll.u32 %v18920_v38, 16  ;;  %v4300_v31 = vld [vmem:[#allocation2 + $0x7c] sm:$0x3]  ;;  %23329 = vst [vmem:[#allocation63_spill] sm:$0xff] %v18944_v7 }
 0x25a   : > { %v13831_v6 = vcombine.low %v4537_v49, %v4555_v25  ;;  %v4149_v41 = vor.u32 %v4148_v27, %v4145_v4  ;;  %v4154_v57 = vrot.slane %v4152_v26, 5  ;;  %v4557_v44 = vshrl.u32 %v18933_v14, 16  ;;  %v18946_v26 = vpop.f32.mrf.mxu0 }
 0x25b   : > { %v4163_v49 = vor.u32 %v4162_v21, %v4159_v53  ;;  %v4168_v25 = vrot.slane %v4166_v54, 5  ;;  %v4560_v24 = vshll.u32 %v18933_v14, 16  ;;  %v4566_v22 = vshrl.u32 %v4299_v30, 16 }
 0x25c   : > { %6244 = vmatprep.mubr.bf16.mxu1 %v13831_v6  ;;  %v4150_v61 = vrot.slane %v4149_v41, 4  ;;  %v4559_v35 = vrot.slane %v4557_v44, 5  ;;  %v4569_v36 = vshll.u32 %v4299_v30, 16  ;;  %v4575_v12 = vshrl.u32 %v4185_v60, 16  ;;  %v18952_v30 = vpop.f32.mrf.mxu1 }
 0x25d   : > { %6245 = vmatmul.mubr.bf16.gmra.mxu1 %v13823_v19  ;;  %v4164_v58 = vrot.slane %v4163_v49, 4  ;;  %v4562_v47 = vrot.slane %v4560_v24, 6  ;;  %v4568_v6 = vrot.slane %v4566_v22, 5  ;;  %v4578_v4 = vshll.u32 %v4185_v60, 16  ;;  %23330 = vst [vmem:[#allocation64_spill] sm:$0xff] %v18952_v30 }
 0x25e   : > { %v4155_v27 = vsel %vm18363_vm15, %v4150_v61, %v4154_v57  ;;  %v4571_v19 = vrot.slane %v4569_v36, 6  ;;  %v4577_v53 = vrot.slane %v4575_v12, 5  ;;  %v4584_v21 = vshrl.u32 %v4300_v31, 16  ;;  %v18955_v57 = vpop.f32.mrf.mxu0  ;;  %v18967_v36 = vld [vmem:[#allocation2 + $0x4] sm:$0x7] }
 0x25f   : > { %v4169_v54 = vsel %vm18363_vm15, %v4164_v58, %v4168_v25  ;;  %v4563_v7 = vor.u32 %v4562_v47, %v4559_v35  ;;  %v4580_v41 = vrot.slane %v4578_v4, 6  ;;  %v4587_v44 = vshll.u32 %v4300_v31, 16  ;;  %v18961_v31 = vld [vmem:[#allocation2] sm:$0xc]  ;;  %v18965_v35 = vld [vmem:[#allocation2 + $0x8] sm:$0xc] }
 0x260   : > { %v4279_v49 = vrot.slane %v18910_v33, 5  ;;  %v13816_v24 = vcombine.low %v4155_v27, %v4169_v54  ;;  %v4586_v22 = vrot.slane %v4584_v21, 5  ;;  %v4572_v63 = vor.u32 %v4571_v19, %v4568_v6  ;;  %v18963_v33 = vpop.f32.mrf.mxu1 }
 0x261   : > { %v4564_v28 = vrot.slane %v4563_v7, 4  ;;  %v4581_v32 = vor.u32 %v4580_v41, %v4577_v53  ;;  %v4589_v9 = vrot.slane %v4587_v44, 6  ;;  %v4283_v61 = vrot.slane %v18920_v38, 5  ;;  %23331 = vst [vmem:[#allocation65_spill] sm:$0xff] %v18963_v33 }
 0x262   : > { %6141 = vmatprep.mubr.bf16.mxu0 %v13816_v24  ;;  %v13808_v34 = vcombine.low %v18906_v13, %v18908_v45  ;;  %v13767_v25 = vrot.slane %v18933_v14, 9  ;;  %v13768_v7 = vrot.slane %v4185_v60, 9  ;;  %v18977_v45 = vpop.f32.mrf.mxu0  ;;  %v4725_v12 = vshrl.u32 %v18961_v31, 16  ;;  %v18986_v27 = vpop.f32.mrf.mxu1 }
 0x263   : > { %v4582_v47 = vrot.slane %v4581_v32, 4  ;;  %v4590_v58 = vor.u32 %v4589_v9, %v4586_v22  ;;  %v4573_v38 = vsel %vm18381_vm3, %v4564_v28, %v4572_v63  ;;  %v18975_v9 = vld [vmem:[#allocation2 + $0xc] sm:$0x7]  ;;  %v4728_v6 = vshll.u32 %v18961_v31, 16  ;;  %23332 = vst [vmem:[#allocation66_spill] sm:$0xff] %v18986_v27 }
 0x264   : > { %6142 = vmatmul.mubr.bf16.gmra.mxu0 %v13808_v34  ;;  %v4280_v32 = vsel %vm18389_vm4, %v13767_v25, %v4279_v49  ;;  %v4284_v60 = vsel %vm18389_vm4, %v13768_v7, %v4283_v61  ;;  %v4734_v50 = vshrl.u32 %v18967_v36, 16  ;;  %v4737_v28 = vshll.u32 %v18967_v36, 16  ;;  %v18991_v24 = vpop.f32.mrf.mxu0  ;;  %v16448_v25 = vld [vmem:[#allocation2 + $0x4] sm:$0x3] }
 0x265   : > { %v4591_v13 = vsel %vm18381_vm3, %v4582_v47, %v4590_v58  ;;  %v13824_v63 = vcombine.low %v4280_v32, %v4284_v60  ;;  %v4743_v4 = vshrl.u32 %v18965_v35, 16  ;;  %v4727_v19 = vrot.slane %v4725_v12, 6  ;;  %v15819_v58 = vld [vmem:[#allocation4 + $0x114] ss:$8 sps:$4 sm:$0xff]   ;;  %v5012_v60 = vld [vmem:[#allocation2] sm:$0x8]  ;;  %v18994_v12 = vpop.f32.mrf.mxu1 }
 0x266   : > { %v13832_v14 = vcombine.low %v4573_v38, %v4591_v13  ;;  %v4730_v53 = vrot.slane %v4728_v6, 7  ;;  %v4746_v21 = vshll.u32 %v18965_v35, 16  ;;  %v4752_v42 = vshrl.u32 %v18975_v9, 16  ;;  %v16449_v38 = vld [vmem:[#allocation2 + $0xc] sm:$0x3]  ;;  %23334 = vst [vmem:[#allocation67_spill] sm:$0xff] %v18994_v12  ;;  %7011 = vmatprep.subr.bf16.mxu0 %v15819_v58 }
 0x267   : > { %v4736_v54 = vrot.slane %v4734_v50, 6  ;;  %v4739_v41 = vrot.slane %v4737_v28, 7  ;;  %v4745_v44 = vrot.slane %v4743_v4, 6  ;;  %v4755_v49 = vshll.u32 %v18975_v9, 16  ;;  %v19029_v58 = vpop.f32.mrf.mxu1 }
 0x268   : > { %6254 = vmatprep.mubr.bf16.mxu1 %v13832_v14  ;;  %v4731_v22 = vor.u32 %v4730_v53, %v4727_v19  ;;  %v4748_v61 = vrot.slane %v4746_v21, 7  ;;  %v4754_v34 = vrot.slane %v4752_v42, 6  ;;  %v23333_v47 = vmov 0   ;;  %v5013_v19 = vld [vmem:[#allocation2 + $0x8] sm:$0x8]  ;;  %23341 = vst [vmem:[#allocation68_spill] sm:$0xff] %v19029_v58 }
 0x269   : > { %6255 = vmatmul.mubr.bf16.gmra.mxu1 %v13824_v63  ;;  %v4644_v7 = vrot.slane %v16448_v25, 6  ;;  %v4648_v13 = vrot.slane %v16449_v38, 6  ;;  %v4740_v32 = vor.u32 %v4739_v41, %v4736_v54  ;;  %v4757_v14 = vrot.slane %v4755_v49, 7  ;;  %v19005_v42 = vld [vmem:[#allocation2 + $0x10] sm:$0xc] }
 0x26a   : > { %6410 = vmatprep.mubr.bf16.mxu1 %v23333_v47  ;;  %v13769_v6 = vrot.slane %v18961_v31, 10  ;;  %v13770_v63 = vrot.slane %v18965_v35, 10  ;;  %v4732_v28 = vrot.slane %v4731_v22, 4  ;;  %v4749_v4 = vor.u32 %v4748_v61, %v4745_v44  ;;  %v19007_v31 = vpop.f32.mrf.mxu0  ;;  %v19015_v44 = vld [vmem:[#allocation2 + $0x14] sm:$0x7] }
 0x26b   : > { %v4758_v53 = vor.u32 %v4757_v14, %v4754_v34  ;;  %v5065_v21 = vrot.slane %v18967_v36, 7  ;;  %vm5060_vm8 = vcmask 1040384   ;;  %v5069_v54 = vrot.slane %v18975_v9, 7  ;;  %v19027_v34 = vld [vmem:[#allocation2 + $0x18] sm:$0xc] }
 0x26c   : > { %v4750_v35 = vrot.slane %v4749_v4, 4  ;;  %v4741_v36 = vsel %vm19000_vm6, %v4732_v28, %v4740_v32  ;;  %v4645_v49 = vsel %vm19011_vm2, %v13769_v6, %v4644_v7  ;;  %v4649_v22 = vsel %vm19011_vm2, %v13770_v63, %v4648_v13  ;;  %vm19023_vm10 = vmor %vm5060_vm8, %vm5061_vm9  ;;  %v19036_v6 = vld [vmem:[#allocation2 + $0x1c] sm:$0x7]  ;;  %v19040_v28 = vpop.f32.mrf.mxu0  ;;  %v15817_v4 = vld [vmem:[#allocation4 + $0x110] ss:$8 sps:$4 sm:$0xff]  }
 0x26d   : > { %v13785_v9 = vrot.slane %v5012_v60, 11  ;;  %v13833_v38 = vcombine.low %v4645_v49, %v4649_v22  ;;  %v13786_v32 = vrot.slane %v5013_v19, 11  ;;  %v4761_v14 = vshrl.u32 %v19005_v42, 16  ;;  %23342 = vst [vmem:[#allocation69_spill] sm:$0xff] %v19040_v28 }
 0x26e   : > { %v4759_v25 = vsel %vm19000_vm6, %v4750_v35, %v4758_v53  ;;  %v4764_v63 = vshll.u32 %v19005_v42, 16  ;;  %v4770_v60 = vshrl.u32 %v19015_v44, 16  ;;  %v4773_v19 = vshll.u32 %v19015_v44, 16  ;;  %v19051_v33 = vpop.f32.mrf.mxu0 }
 0x26f   : > { %v13841_v7 = vcombine.low %v4741_v36, %v4759_v25  ;;  %v5066_v13 = vsel %vm19023_vm10, %v13785_v9, %v5065_v21  ;;  %v5070_v53 = vsel %vm19023_vm10, %v13786_v32, %v5069_v54  ;;  %v4763_v35 = vrot.slane %v4761_v14, 6  ;;  %v19047_v25 = vpop.f32.mrf.mxu1  ;;  %23344 = vst [vmem:[#allocation71_spill] sm:$0xff] %v19051_v33 }
 0x270   : > { %v4779_v36 = vshrl.u32 %v19027_v34, 16  ;;  %v13849_v49 = vcombine.low %v5066_v13, %v5070_v53  ;;  %v4766_v21 = vrot.slane %v4764_v63, 7  ;;  %v4772_v22 = vrot.slane %v4770_v60, 6  ;;  %23343 = vst [vmem:[#allocation70_spill] sm:$0xff] %v19047_v25  ;;  %v15822_v13 = vld [vmem:[#allocation4 + $0x104] ss:$8 sps:$4 sm:$0xff]  }
 0x271   : > { %6297 = vmatprep.mubr.bf16.mxu0 %v13841_v7  ;;  %v4782_v9 = vshll.u32 %v19027_v34, 16  ;;  %v4775_v12 = vrot.slane %v4773_v19, 7  ;;  %v4788_v58 = vshrl.u32 %v19036_v6, 16  ;;  %v4791_v54 = vshll.u32 %v19036_v6, 16  ;;  %v15820_v7 = vld [vmem:[#allocation4 + $0x100] ss:$8 sps:$4 sm:$0xff]   ;;  %v19054_v30 = vpop.f32.mrf.mxu1 }
 0x272   : > { %6298 = vmatmul.mubr.bf16.vlgmr.msra.gmra.mxu0 %v13833_v38  ;;  %v4781_v27 = vrot.slane %v4779_v36, 6  ;;  %6411 = vmatmul.mubr.bf16.vlgmr.msra.gmra.mxu1 %v13849_v49  ;;  %v4767_v32 = vor.u32 %v4766_v21, %v4763_v35  ;;  %v5014_v36 = vld [vmem:[#allocation2 + $0x10] sm:$0x8]  ;;  %v5015_v25 = vld [vmem:[#allocation2 + $0x18] sm:$0x8]  ;;  %23345 = vst [vmem:[#allocation72_spill] sm:$0xff] %v19054_v30 }
 0x273   : > { %v4784_v14 = vrot.slane %v4782_v9, 7  ;;  %7012 = vmatpush1.bf16.msra.mxu0 %v15817_v4  ;;  %v4776_v63 = vor.u32 %v4775_v12, %v4772_v22  ;;  %v4790_v60 = vrot.slane %v4788_v58, 6  ;;  %v4793_v53 = vrot.slane %v4791_v54, 7  ;;  %6420 = vmatprep.mubr.bf16.mxu1 %v23333_v47  ;;  %v16450_v21 = vld [vmem:[#allocation2 + $0x14] sm:$0x3] }
 0x274   : > { %v4768_v38 = vrot.slane %v4767_v32, 4  ;;  %7013 = vmatprep.subr.bf16.mxu0 %v15822_v13  ;;  %v13771_v35 = vrot.slane %v19005_v42, 10  ;;  %v4652_v9 = vrot.slane %v16450_v21, 6  ;;  %v19057_v4 = vld [vmem:[#allocation2 + $0x20] sm:$0xc]  ;;  %v13772_v22 = vrot.slane %v19027_v34, 10  ;;  %v19062_v32 = vpop.f32.mrf.mxu0  ;;  %v19077_v21 = vpop.f32.mrf.mxu1 }
 0x275   : > { %v4785_v19 = vor.u32 %v4784_v14, %v4781_v27  ;;  %v4794_v49 = vor.u32 %v4793_v53, %v4790_v60  ;;  %v16451_v54 = vld [vmem:[#allocation2 + $0x1c] sm:$0x3]  ;;  %23346 = vst [vmem:[#allocation73_spill] sm:$0xff] %v19062_v32  ;;  %v13787_v13 = vrot.slane %v5014_v36, 11  ;;  %v5073_v42 = vrot.slane %v19015_v44, 7  ;;  %23347 = vst [vmem:[#allocation74_spill] sm:$0xff] %v19077_v21 }
 0x276   : > { %v4777_v12 = vsel %vm19000_vm6, %v4768_v38, %v4776_v63  ;;  %v4656_v27 = vrot.slane %v16451_v54, 6  ;;  %v4653_v14 = vsel %vm19011_vm2, %v13771_v35, %v4652_v9  ;;  %v13788_v60 = vrot.slane %v5015_v25, 11  ;;  %v19067_v53 = vld [vmem:[#allocation2 + $0x24] sm:$0x7]  ;;  %v19081_v25 = vld [vmem:[#allocation2 + $0x2c] sm:$0x7]  ;;  %v19088_v54 = vpop.f32.mrf.mxu0 }
 0x277   : > { %v4786_v58 = vrot.slane %v4785_v19, 4  ;;  %7014 = vmatpush1.bf16.msra.mxu0 %v15820_v7  ;;  %v5077_v38 = vrot.slane %v19036_v6, 7  ;;  %v19074_v19 = vld [vmem:[#allocation2 + $0x28] sm:$0xc]  ;;  %v4797_v7 = vshrl.u32 %v19057_v4, 16  ;;  %v5074_v44 = vsel %vm19023_vm10, %v13787_v13, %v5073_v42  ;;  %23348 = vst [vmem:[#allocation75_spill] sm:$0xff] %v19088_v54 }
 0x278   : > { %v4657_v34 = vsel %vm19011_vm2, %v13772_v22, %v4656_v27  ;;  %v4806_v6 = vshrl.u32 %v19067_v53, 16  ;;  %v4809_v22 = vshll.u32 %v19067_v53, 16  ;;  %v4818_v13 = vshll.u32 %v19074_v19, 16  ;;  %v5016_v32 = vld [vmem:[#allocation2 + $0x20] sm:$0x8] }
 0x279   : > { %v4795_v63 = vsel %vm19000_vm6, %v4786_v58, %v4794_v49  ;;  %v13834_v35 = vcombine.low %v4653_v14, %v4657_v34  ;;  %v4800_v49 = vshll.u32 %v19057_v4, 16  ;;  %v5078_v9 = vsel %vm19023_vm10, %v13788_v60, %v5077_v38  ;;  %v19094_v38 = vpop.f32.mrf.mxu1 }
 0x27a   : > { %v13842_v36 = vcombine.low %v4777_v12, %v4795_v63  ;;  %v4799_v58 = vrot.slane %v4797_v7, 6  ;;  %v13850_v12 = vcombine.low %v5074_v44, %v5078_v9  ;;  %v4815_v14 = vshrl.u32 %v19074_v19, 16  ;;  %23349 = vst [vmem:[#allocation76_spill] sm:$0xff] %v19094_v38  ;;  %v19097_v9 = vpop.f32.mrf.mxu0  ;;  %v16452_v38 = vld [vmem:[#allocation2 + $0x24] sm:$0x3] }
 0x27b   : > { %v4802_v27 = vrot.slane %v4800_v49, 7  ;;  %v4808_v42 = vrot.slane %v4806_v6, 6  ;;  %v4811_v63 = vrot.slane %v4809_v22, 7  ;;  %v4824_v34 = vshrl.u32 %v19081_v25, 16  ;;  %23350 = vst [vmem:[#allocation77_spill] sm:$0xff] %v19097_v9 }
 0x27c   : > { %6307 = vmatprep.mubr.bf16.mxu0 %v13842_v36  ;;  %v4827_v60 = vshll.u32 %v19081_v25, 16  ;;  %6421 = vmatmul.mubr.bf16.gmra.mxu1 %v13850_v12  ;;  %v4817_v21 = vrot.slane %v4815_v14, 6  ;;  %v4820_v30 = vrot.slane %v4818_v13, 7  ;;  %v15825_v6 = vld [vmem:[#allocation4 + $0xf4] ss:$8 sps:$4 sm:$0xff]   ;;  %v13773_v28 = vrot.slane %v19057_v4, 10  ;;  %v19102_v14 = vpop.f32.mrf.mxu1 }
 0x27d   : > { %6308 = vmatmul.mubr.bf16.gmra.mxu0 %v13834_v35  ;;  %v4803_v7 = vor.u32 %v4802_v27, %v4799_v58  ;;  %v4812_v36 = vor.u32 %v4811_v63, %v4808_v42  ;;  %v4826_v44 = vrot.slane %v4824_v34, 6  ;;  %6430 = vmatprep.mubr.bf16.mxu1 %v23333_v47  ;;  %v15823_v35 = vld [vmem:[#allocation4 + $0xf0] ss:$8 sps:$4 sm:$0xff]   ;;  %v4660_v12 = vrot.slane %v16452_v38, 6  ;;  %v5017_v58 = vld [vmem:[#allocation2 + $0x28] sm:$0x8] }
 0x27e   : > { %v4829_v49 = vrot.slane %v4827_v60, 7  ;;  %v4821_v54 = vor.u32 %v4820_v30, %v4817_v21  ;;  %v19100_v27 = vld [vmem:[#allocation2 + $0x30] sm:$0xc]  ;;  %23351 = vst [vmem:[#allocation78_spill] sm:$0xff] %v19102_v14  ;;  %7015 = vmatprep.subr.bf16.mxu0 %v15825_v6  ;;  %v13774_v63 = vrot.slane %v19074_v19, 10  ;;  %v13789_v34 = vrot.slane %v5016_v32, 11 }
 0x27f   : > { %v4804_v22 = vrot.slane %v4803_v7, 4  ;;  %7016 = vmatpush1.bf16.msra.mxu0 %v15823_v35  ;;  %v4661_v30 = vsel %vm19011_vm2, %v13773_v28, %v4660_v12  ;;  %v16453_v21 = vld [vmem:[#allocation2 + $0x2c] sm:$0x3]  ;;  %v5081_v60 = vrot.slane %v19067_v53, 7  ;;  %v19110_v38 = vld [vmem:[#allocation2 + $0x34] sm:$0x7]  ;;  %v19112_v7 = vpop.f32.mrf.mxu0 }
 0x280   : > { %v4830_v33 = vor.u32 %v4829_v49, %v4826_v44  ;;  %v4822_v42 = vrot.slane %v4821_v54, 4  ;;  %v4664_v4 = vrot.slane %v16453_v21, 6  ;;  %23352 = vst [vmem:[#allocation79_spill] sm:$0xff] %v19112_v7  ;;  %v5085_v54 = vrot.slane %v19081_v25, 7  ;;  %v19117_v19 = vld [vmem:[#allocation2 + $0x38] sm:$0xc] }
 0x281   : > { %v4813_v13 = vsel %vm19000_vm6, %v4804_v22, %v4812_v36  ;;  %v13790_v36 = vrot.slane %v5017_v58, 11  ;;  %v4833_v49 = vshrl.u32 %v19100_v27, 16  ;;  %v5082_v53 = vsel %vm19023_vm10, %v13789_v34, %v5081_v60  ;;  %v19124_v35 = vld [vmem:[#allocation2 + $0x3c] sm:$0x7]  ;;  %v19127_v22 = vpop.f32.mrf.mxu1  ;;  %v15826_v7 = vld [vmem:[#allocation4 + $0x70] ss:$8 sps:$4 sm:$0xff]  }
 0x282   : > { %v4831_v44 = vsel %vm19000_vm6, %v4822_v42, %v4830_v33  ;;  %v4665_v32 = vsel %vm19011_vm2, %v13774_v63, %v4664_v4  ;;  %v4836_v6 = vshll.u32 %v19100_v27, 16  ;;  %23353 = vst [vmem:[#allocation80_spill] sm:$0xff] %v19127_v22  ;;  %v4842_v58 = vshrl.u32 %v19110_v38, 16  ;;  %v19134_v4 = vpop.f32.mrf.mxu0  ;;  %v15828_v9 = vld [vmem:[#allocation4 + $0x74] ss:$8 sps:$4 sm:$0xff]  }
 0x283   : > { %v13843_v28 = vcombine.low %v4813_v13, %v4831_v44  ;;  %v13835_v33 = vcombine.low %v4661_v30, %v4665_v32  ;;  %v5086_v25 = vsel %vm19023_vm10, %v13790_v36, %v5085_v54  ;;  %v4835_v12 = vrot.slane %v4833_v49, 6  ;;  %23354 = vst [vmem:[#allocation81_spill] sm:$0xff] %v19134_v4  ;;  %7320 = vmatprep.subr.bf16.mxu1 %v15828_v9 }
 0x284   : > { %v13851_v13 = vcombine.low %v5082_v53, %v5086_v25  ;;  %v4838_v42 = vrot.slane %v4836_v6, 7  ;;  %v4845_v63 = vshll.u32 %v19110_v38, 16  ;;  %v4851_v21 = vshrl.u32 %v19117_v19, 16  ;;  %v5018_v25 = vld [vmem:[#allocation2 + $0x30] sm:$0x8]  ;;  %v19142_v14 = vpop.f32.mrf.mxu0  ;;  %7321 = vmatpush1.bf16.msra.mxu1 %v15826_v7 }
 0x285   : > { %6317 = vmatprep.mubr.bf16.mxu0 %v13843_v28  ;;  %v4844_v34 = vrot.slane %v4842_v58, 6  ;;  %v4854_v60 = vshll.u32 %v19117_v19, 16  ;;  %v4860_v30 = vshrl.u32 %v19124_v35, 16  ;;  %v4863_v44 = vshll.u32 %v19124_v35, 16  ;;  %v19139_v28 = vpop.f32.mrf.mxu1  ;;  %23355 = vst [vmem:[#allocation82_spill] sm:$0xff] %v19142_v14 }
 0x286   : > { %6318 = vmatmul.mubr.bf16.gmra.mxu0 %v13835_v33  ;;  %6431 = vmatmul.mubr.bf16.gmra.mxu1 %v13851_v13  ;;  %v4839_v36 = vor.u32 %v4838_v42, %v4835_v12  ;;  %v4847_v54 = vrot.slane %v4845_v63, 7  ;;  %v4853_v49 = vrot.slane %v4851_v21, 6  ;;  %v13775_v12 = vrot.slane %v19100_v27, 10  ;;  %v5019_v13 = vld [vmem:[#allocation2 + $0x38] sm:$0x8] }
 0x287   : > { %v4856_v32 = vrot.slane %v4854_v60, 7  ;;  %v4862_v53 = vrot.slane %v4860_v30, 6  ;;  %v4865_v6 = vrot.slane %v4863_v44, 7  ;;  %6440 = vmatprep.mubr.bf16.mxu1 %v23333_v47  ;;  %v19145_v42 = vld [vmem:[#allocation2 + $0x40] sm:$0xc]  ;;  %v15053_v63 = vadd.f32 %v18512_v16, %v18487_v48  ;;  %v19152_v44 = vpop.f32.mrf.mxu1 }
 0x288   : > { %v4840_v33 = vrot.slane %v4839_v36, 4  ;;  %v4848_v58 = vor.u32 %v4847_v54, %v4844_v34  ;;  %v16454_v60 = vld [vmem:[#allocation2 + $0x34] sm:$0x3]  ;;  %v13776_v34 = vrot.slane %v19117_v19, 10  ;;  %v15829_v36 = vld [vmem:[#allocation4 + $0xe0] ss:$8 sps:$4 sm:$0xff]  }
 0x289   : > { %v4857_v4 = vor.u32 %v4856_v32, %v4853_v49  ;;  %v4866_v22 = vor.u32 %v4865_v6, %v4862_v53  ;;  %v4668_v30 = vrot.slane %v16454_v60, 6  ;;  %v15831_v54 = vld [vmem:[#allocation4 + $0xe4] ss:$8 sps:$4 sm:$0xff]   ;;  %v16455_v27 = vld [vmem:[#allocation2 + $0x3c] sm:$0x3]  ;;  %v13791_v53 = vrot.slane %v5018_v25, 11 }
 0x28a   : > { %v4849_v21 = vsel %vm19000_vm6, %v4840_v33, %v4848_v58  ;;  %v4672_v32 = vrot.slane %v16455_v27, 6  ;;  %v5089_v6 = vrot.slane %v19110_v38, 7  ;;  %v19155_v14 = vld [vmem:[#allocation2 + $0x48] sm:$0xc]  ;;  %v19157_v48 = vld [vmem:[#allocation2 + $0x44] sm:$0x7]  ;;  %v19163_v58 = vpop.f32.mrf.mxu0  ;;  %7017 = vmatprep.subr.bf16.mxu0 %v15831_v54 }
 0x28b   : > { %v4858_v49 = vrot.slane %v4857_v4, 4  ;;  %v4669_v16 = vsel %vm19011_vm2, %v13775_v12, %v4668_v30  ;;  %v13792_v19 = vrot.slane %v5019_v13, 11  ;;  %v5093_v33 = vrot.slane %v19124_v35, 7  ;;  %23356 = vst [vmem:[#allocation83_spill] sm:$0xff] %v19163_v58  ;;  %v15832_v4 = vld [vmem:[#allocation4 + $0x60] ss:$8 sps:$4 sm:$0xff]   ;;  %7018 = vmatpush1.bf16.msra.mxu0 %v15829_v36  ;;  %v19176_v58 = vpop.f32.mrf.mxu1 }
 0x28c   : > { %v4869_v9 = vshrl.u32 %v19145_v42, 16  ;;  %v4673_v25 = vsel %vm19011_vm2, %v13776_v34, %v4672_v32  ;;  %v5090_v7 = vsel %vm19023_vm10, %v13791_v53, %v5089_v6  ;;  %v19171_v60 = vld [vmem:[#allocation2 + $0x4c] sm:$0x7]  ;;  %v4872_v12 = vshll.u32 %v19145_v42, 16  ;;  %23357 = vst [vmem:[#allocation84_spill] sm:$0xff] %v19176_v58 }
 0x28d   : > { %v4867_v38 = vsel %vm19000_vm6, %v4858_v49, %v4866_v22  ;;  %v15834_v35 = vld [vmem:[#allocation4 + $0x64] ss:$8 sps:$4 sm:$0xff]   ;;  %v13836_v30 = vcombine.low %v4669_v16, %v4673_v25  ;;  %v5094_v54 = vsel %vm19023_vm10, %v13792_v19, %v5093_v33  ;;  %v4878_v34 = vshrl.u32 %v19157_v48, 16  ;;  %v19184_v16 = vpop.f32.mrf.mxu0 }
 0x28e   : > { %v13844_v13 = vcombine.low %v4849_v21, %v4867_v38  ;;  %v4871_v27 = vrot.slane %v4869_v9, 6  ;;  %v13852_v22 = vcombine.low %v5090_v7, %v5094_v54  ;;  %v4874_v49 = vrot.slane %v4872_v12, 7  ;;  %7322 = vmatprep.subr.bf16.mxu1 %v15834_v35  ;;  %23358 = vst [vmem:[#allocation85_spill] sm:$0xff] %v19184_v16  ;;  %v19187_v35 = vpop.f32.mrf.mxu1  ;;  %v5020_v16 = vld [vmem:[#allocation2 + $0x40] sm:$0x8] }
 0x28f   : > { %v4881_v32 = vshll.u32 %v19157_v48, 16  ;;  %v4887_v53 = vshrl.u32 %v19155_v14, 16  ;;  %v4890_v36 = vshll.u32 %v19155_v14, 16  ;;  %v4896_v21 = vshrl.u32 %v19171_v60, 16  ;;  %7323 = vmatpush1.bf16.msra.mxu1 %v15832_v4 }
 0x290   : > { %6327 = vmatprep.mubr.bf16.mxu0 %v13844_v13  ;;  %v4899_v6 = vshll.u32 %v19171_v60, 16  ;;  %6441 = vmatmul.mubr.bf16.gmra.mxu1 %v13852_v22  ;;  %v4875_v19 = vor.u32 %v4874_v49, %v4871_v27  ;;  %v4880_v33 = vrot.slane %v4878_v34, 6  ;;  %v19190_v13 = vadd.f32 %v15053_v63, %v18309_v5  ;;  %v5021_v49 = vld [vmem:[#allocation2 + $0x48] sm:$0x8]  ;;  %v19200_v34 = vpop.f32.mrf.mxu0 }
 0x291   : > { %6328 = vmatmul.mubr.bf16.gmra.mxu0 %v13836_v30  ;;  %v4883_v9 = vrot.slane %v4881_v32, 7  ;;  %v4889_v38 = vrot.slane %v4887_v53, 6  ;;  %v4892_v25 = vrot.slane %v4890_v36, 7  ;;  %v4898_v7 = vrot.slane %v4896_v21, 6  ;;  %6450 = vmatprep.mubr.bf16.mxu1 %v23333_v47  ;;  %23359 = vst [vmem:[#allocation86_spill] sm:$0xff] %v19200_v34 }
 0x292   : > { %v4901_v12 = vrot.slane %v4899_v6, 7  ;;  %v4876_v54 = vrot.slane %v4875_v19, 4  ;;  %v19194_v4 = vadd.f32 %v18865_v1, %v18849_v0  ;;  %v19198_v30 = vadd.f32 %v18591_v37, %v18567_v56  ;;  %v16456_v53 = vld [vmem:[#allocation2 + $0x44] sm:$0x3]  ;;  %v19207_v1 = vld [vmem:[#allocation2 + $0x50] sm:$0xc] }
 0x293   : > { %v4884_v58 = vor.u32 %v4883_v9, %v4880_v33  ;;  %v4893_v27 = vor.u32 %v4892_v25, %v4889_v38  ;;  %v15059_v5 = vadd.f32 %v18634_v11, %v18601_v39  ;;  %v13777_v32 = vrot.slane %v19145_v42, 10  ;;  %v16457_v37 = vld [vmem:[#allocation2 + $0x4c] sm:$0x3]  ;;  %v19210_v19 = vld [vmem:[#allocation2 + $0x58] sm:$0xc]  ;;  %v19214_v39 = vpop.f32.mrf.mxu1 }
 0x294   : > { %v4902_v22 = vor.u32 %v4901_v12, %v4898_v7  ;;  %v4676_v0 = vrot.slane %v16456_v53, 6  ;;  %v13778_v56 = vrot.slane %v19155_v14, 10  ;;  %v4680_v21 = vrot.slane %v16457_v37, 6  ;;  %v19212_v33 = vld [vmem:[#allocation2 + $0x54] sm:$0x7] }
 0x295   : > { %v4885_v63 = vsel %vm19000_vm6, %v4876_v54, %v4884_v58  ;;  %v4894_v36 = vrot.slane %v4893_v27, 4  ;;  %v13793_v6 = vrot.slane %v5020_v16, 11  ;;  %v5097_v42 = vrot.slane %v19157_v48, 7  ;;  %v15835_v38 = vld [vmem:[#allocation4 + $0xd0] ss:$8 sps:$4 sm:$0xff]   ;;  %v19228_v54 = vpop.f32.mrf.mxu0  ;;  %v19235_v37 = vpop.f32.mrf.mxu1 }
 0x296   : > { %v4677_v11 = vsel %vm19011_vm2, %v13777_v32, %v4676_v0  ;;  %v13794_v58 = vrot.slane %v5021_v49, 11  ;;  %v5101_v9 = vrot.slane %v19171_v60, 7  ;;  %v4681_v16 = vsel %vm19011_vm2, %v13778_v56, %v4680_v21  ;;  %v19224_v25 = vld [vmem:[#allocation2 + $0x5c] sm:$0x7]  ;;  %23360 = vst [vmem:[#allocation87_spill] sm:$0xff] %v19228_v54 }
 0x297   : > { %v4903_v14 = vsel %vm19000_vm6, %v4894_v36, %v4902_v22  ;;  %v4905_v7 = vshrl.u32 %v19207_v1, 16  ;;  %v4908_v12 = vshll.u32 %v19207_v1, 16  ;;  %v15837_v27 = vld [vmem:[#allocation4 + $0xd4] ss:$8 sps:$4 sm:$0xff]   ;;  %v13837_v49 = vcombine.low %v4677_v11, %v4681_v16  ;;  %v15838_v21 = vld [vmem:[#allocation4 + $0x50] ss:$8 sps:$4 sm:$0xff]  }
 0x298   : > { %v13845_v48 = vcombine.low %v4885_v63, %v4903_v14  ;;  %v5098_v60 = vsel %vm19023_vm10, %v13793_v6, %v5097_v42  ;;  %v5102_v22 = vsel %vm19023_vm10, %v13794_v58, %v5101_v9  ;;  %v15840_v32 = vld [vmem:[#allocation4 + $0x54] ss:$8 sps:$4 sm:$0xff]   ;;  %v4914_v56 = vshrl.u32 %v19212_v33, 16  ;;  %7019 = vmatprep.subr.bf16.mxu0 %v15837_v27 }
 0x299   : > { %v13853_v53 = vcombine.low %v5098_v60, %v5102_v22  ;;  %v4907_v0 = vrot.slane %v4905_v7, 6  ;;  %v4910_v36 = vrot.slane %v4908_v12, 7  ;;  %v4917_v63 = vshll.u32 %v19212_v33, 16  ;;  %7020 = vmatpush1.bf16.msra.mxu0 %v15835_v38  ;;  %v19246_v7 = vpop.f32.mrf.mxu0  ;;  %v15843_v12 = vld [vmem:[#allocation4 + $0x44] ss:$8 sps:$4 sm:$0xff]   ;;  %7324 = vmatprep.subr.bf16.mxu1 %v15840_v32 }
 0x29a   : > { %6337 = vmatprep.mubr.bf16.mxu0 %v13845_v48  ;;  %v4923_v11 = vshrl.u32 %v19210_v19, 16  ;;  %v4926_v6 = vshll.u32 %v19210_v19, 16  ;;  %v4932_v42 = vshrl.u32 %v19224_v25, 16  ;;  %v19243_v58 = vadd.f32 %v18895_v40, %v18887_v18  ;;  %23361 = vst [vmem:[#allocation88_spill] sm:$0xff] %v19246_v7  ;;  %v15844_v38 = vld [vmem:[#allocation4 + $0xc0] ss:$8 sps:$4 sm:$0xff]   ;;  %7325 = vmatpush1.bf16.msra.mxu1 %v15838_v21 }
 0x29b   : > { %6338 = vmatmul.mubr.bf16.gmra.mxu0 %v13837_v49  ;;  %6451 = vmatmul.mubr.bf16.gmra.mxu1 %v13853_v53  ;;  %v4911_v9 = vor.u32 %v4910_v36, %v4907_v0  ;;  %v4916_v14 = vrot.slane %v4914_v56, 6  ;;  %v4935_v16 = vshll.u32 %v19224_v25, 16  ;;  %v4919_v27 = vrot.slane %v4917_v63, 7  ;;  %v19256_v0 = vpop.f32.mrf.mxu1  ;;  %v15841_v36 = vld [vmem:[#allocation4 + $0x40] ss:$8 sps:$4 sm:$0xff]  }
 0x29c   : > { %v4925_v48 = vrot.slane %v4923_v11, 6  ;;  %v4928_v60 = vrot.slane %v4926_v6, 7  ;;  %v4934_v22 = vrot.slane %v4932_v42, 6  ;;  %6460 = vmatprep.mubr.bf16.mxu1 %v23333_v47  ;;  %v19251_v18 = vadd.f32 %v19198_v30, %v18336_v15  ;;  %v15846_v56 = vld [vmem:[#allocation4 + $0xc4] ss:$8 sps:$4 sm:$0xff]   ;;  %7326 = vmatprep.subr.bf16.mxu1 %v15843_v12 }
 0x29d   : > { %v19254_v40 = vadd.f32 %v15059_v5, %v18442_v3  ;;  %v4912_v49 = vrot.slane %v4911_v9, 4  ;;  %v4937_v53 = vrot.slane %v4935_v16, 7  ;;  %v19260_v63 = vadd.f32 %v18918_v46, %v18900_v8  ;;  %v5022_v11 = vld [vmem:[#allocation2 + $0x50] sm:$0x8]  ;;  %v5023_v3 = vld [vmem:[#allocation2 + $0x58] sm:$0x8]  ;;  %v19273_v46 = vpop.f32.mrf.mxu0  ;;  %7021 = vmatprep.subr.bf16.mxu0 %v15846_v56 }
 0x29e   : > { %v19264_v32 = vadd.f32 %v18700_v10, %v18679_v43  ;;  %v4920_v15 = vor.u32 %v4919_v27, %v4916_v14  ;;  %v4929_v30 = vor.u32 %v4928_v60, %v4925_v48  ;;  %v19268_v5 = vadd.f32 %v18747_v55, %v18719_v20  ;;  %v16458_v42 = vld [vmem:[#allocation2 + $0x54] sm:$0x3]  ;;  %v19271_v8 = vld [vmem:[#allocation2 + $0x60] sm:$0xc]  ;;  %23362 = vst [vmem:[#allocation89_spill] sm:$0xff] %v19273_v46  ;;  %v19283_v60 = vpop.f32.mrf.mxu1 }
 0x29f   : > { %v4938_v21 = vor.u32 %v4937_v53, %v4934_v22  ;;  %v13779_v6 = vrot.slane %v19207_v1, 10  ;;  %v4684_v9 = vrot.slane %v16458_v42, 6  ;;  %v13780_v14 = vrot.slane %v19210_v19, 10  ;;  %v16459_v16 = vld [vmem:[#allocation2 + $0x5c] sm:$0x3]  ;;  %7022 = vmatpush1.bf16.msra.mxu0 %v15844_v38  ;;  %23363 = vst [vmem:[#allocation90_spill] sm:$0xff] %v19283_v60  ;;  %7327 = vmatpush1.bf16.msra.mxu1 %v15841_v36 }
 0x2a0   : > { %v4921_v43 = vsel %vm19000_vm6, %v4912_v49, %v4920_v15  ;;  %v4930_v10 = vrot.slane %v4929_v30, 4  ;;  %v4688_v12 = vrot.slane %v16459_v16, 6  ;;  %v13795_v55 = vrot.slane %v5022_v11, 11  ;;  %v19281_v48 = vld [vmem:[#allocation2 + $0x64] sm:$0x7]  ;;  %v19298_v11 = vpop.f32.mrf.mxu0  ;;  %v19306_v16 = vpop.f32.mrf.mxu1 }
 0x2a1   : > { %v4685_v20 = vsel %vm19011_vm2, %v13779_v6, %v4684_v9  ;;  %v5105_v1 = vrot.slane %v19212_v33, 7  ;;  %v13796_v27 = vrot.slane %v5023_v3, 11  ;;  %v5109_v38 = vrot.slane %v19224_v25, 7  ;;  %v19290_v49 = vld [vmem:[#allocation2 + $0x68] sm:$0xc]  ;;  %23364 = vst [vmem:[#allocation91_spill] sm:$0xff] %v19298_v11 }
 0x2a2   : > { %v4939_v22 = vsel %vm19000_vm6, %v4930_v10, %v4938_v21  ;;  %v4689_v19 = vsel %vm19011_vm2, %v13780_v14, %v4688_v12  ;;  %v4941_v53 = vshrl.u32 %v19271_v8, 16  ;;  %v19295_v30 = vld [vmem:[#allocation2 + $0x6c] sm:$0x7]  ;;  %v4944_v36 = vshll.u32 %v19271_v8, 16  ;;  %v15847_v42 = vld [vmem:[#allocation4 + $0x30] ss:$8 sps:$4 sm:$0xff]  }
 0x2a3   : > { %v13846_v56 = vcombine.low %v4921_v43, %v4939_v22  ;;  %v13838_v33 = vcombine.low %v4685_v20, %v4689_v19  ;;  %v5106_v15 = vsel %vm19023_vm10, %v13795_v55, %v5105_v1  ;;  %v5110_v3 = vsel %vm19023_vm10, %v13796_v27, %v5109_v38  ;;  %23365 = vst [vmem:[#allocation92_spill] sm:$0xff] %v19306_v16  ;;  %v15849_v12 = vld [vmem:[#allocation4 + $0x34] ss:$8 sps:$4 sm:$0xff]   ;;  %v15915_v46 = vld [vmem:[#allocation4 + $0x150] ss:$8 sps:$4 sm:$0xff]  }
 0x2a4   : > { %v4943_v21 = vrot.slane %v4941_v53, 6  ;;  %v4950_v25 = vshrl.u32 %v19281_v48, 16  ;;  %v4953_v6 = vshll.u32 %v19281_v48, 16  ;;  %v13854_v9 = vcombine.low %v5106_v15, %v5110_v3  ;;  %v5024_v15 = vld [vmem:[#allocation2 + $0x60] sm:$0x8]  ;;  %7328 = vmatprep.subr.bf16.mxu1 %v15849_v12 }
 0x2a5   : > { %6347 = vmatprep.mubr.bf16.mxu0 %v13846_v56  ;;  %v4946_v43 = vrot.slane %v4944_v36, 7  ;;  %v4959_v10 = vshrl.u32 %v19290_v49, 16  ;;  %v4962_v14 = vshll.u32 %v19290_v49, 16  ;;  %v4968_v1 = vshrl.u32 %v19295_v30, 16  ;;  %v19314_v56 = vpop.f32.mrf.mxu0  ;;  %7329 = vmatpush1.bf16.msra.mxu1 %v15847_v42  ;;  %v15917_v7 = vld [vmem:[#allocation4 + $0x154] ss:$8 sps:$4 sm:$0xff]  }
 0x2a6   : > { %6348 = vmatmul.mubr.bf16.gmra.mxu0 %v13838_v33  ;;  %v4952_v20 = vrot.slane %v4950_v25, 6  ;;  %v4955_v55 = vrot.slane %v4953_v6, 7  ;;  %v4971_v27 = vshll.u32 %v19295_v30, 16  ;;  %v19312_v22 = vadd.f32 %v18946_v26, %v18940_v23  ;;  %6461 = vmatmul.mubr.bf16.gmra.mxu1 %v13854_v9  ;;  %23366 = vst [vmem:[#allocation93_spill] sm:$0xff] %v19314_v56  ;;  %v15850_v23 = vld [vmem:[#allocation4 + $0xb0] ss:$8 sps:$4 sm:$0xff]  }
 0x2a7   : > { %v4947_v19 = vor.u32 %v4946_v43, %v4943_v21  ;;  %v4961_v38 = vrot.slane %v4959_v10, 6  ;;  %v4964_v53 = vrot.slane %v4962_v14, 7  ;;  %v19318_v33 = vadd.f32 %v19264_v32, %v18454_v51  ;;  %6470 = vmatprep.mubr.bf16.mxu1 %v23333_v47  ;;  %v15852_v26 = vld [vmem:[#allocation4 + $0xb4] ss:$8 sps:$4 sm:$0xff]   ;;  %v19329_v51 = vpop.f32.mrf.mxu1  ;;  %v15853_v32 = vld [vmem:[#allocation4 + $0x20] ss:$8 sps:$4 sm:$0xff]  }
 0x2a8   : > { %v4956_v36 = vor.u32 %v4955_v55, %v4952_v20  ;;  %v4970_v3 = vrot.slane %v4968_v1, 6  ;;  %v4973_v25 = vrot.slane %v4971_v27, 7  ;;  %v19323_v21 = vadd.f32 %v19268_v5, %v18539_v59  ;;  %23367 = vst [vmem:[#allocation94_spill] sm:$0xff] %v19329_v51  ;;  %v15855_v10 = vld [vmem:[#allocation4 + $0x24] ss:$8 sps:$4 sm:$0xff]   ;;  %7023 = vmatprep.subr.bf16.mxu0 %v15852_v26  ;;  %v19340_v27 = vpop.f32.mrf.mxu0 }
 0x2a9   : > { %v19327_v6 = vadd.f32 %v18977_v45, %v18955_v57  ;;  %v4948_v9 = vrot.slane %v4947_v19, 4  ;;  %v4965_v43 = vor.u32 %v4964_v53, %v4961_v38  ;;  %v15068_v14 = vadd.f32 %v18784_v52, %v18772_v17  ;;  %v16460_v20 = vld [vmem:[#allocation2 + $0x64] sm:$0x3]  ;;  %v5025_v59 = vld [vmem:[#allocation2 + $0x68] sm:$0x8]  ;;  %23368 = vst [vmem:[#allocation95_spill] sm:$0xff] %v19340_v27  ;;  %7330 = vmatprep.subr.bf16.mxu1 %v15855_v10 }
 0x2aa   : > { %v4974_v42 = vor.u32 %v4973_v25, %v4970_v3  ;;  %v13781_v12 = vrot.slane %v19271_v8, 10  ;;  %v4692_v55 = vrot.slane %v16460_v20, 6  ;;  %v19334_v5 = vld [vmem:[#allocation2 + $0x70] sm:$0xc]  ;;  %v15071_v57 = vadd.f32 %v18834_v2, %v18808_v29  ;;  %7024 = vmatpush1.bf16.msra.mxu0 %v15850_v23  ;;  %v16461_v8 = vld [vmem:[#allocation2 + $0x6c] sm:$0x3]  ;;  %7331 = vmatpush1.bf16.msra.mxu1 %v15853_v32  ;;  %v19354_v23 = vpop.f32.mrf.mxu1 }
 0x2ab   : > { %v4957_v45 = vsel %vm19000_vm6, %v4948_v9, %v4956_v36  ;;  %v4966_v1 = vrot.slane %v4965_v43, 4  ;;  %v13782_v17 = vrot.slane %v19290_v49, 10  ;;  %v4696_v19 = vrot.slane %v16461_v8, 6  ;;  %v19346_v3 = vld [vmem:[#allocation2 + $0x74] sm:$0x7]  ;;  %23369 = vst [vmem:[#allocation96_spill] sm:$0xff] %v19354_v23 }
 0x2ac   : > { %v4693_v52 = vsel %vm19011_vm2, %v13781_v12, %v4692_v55  ;;  %v13797_v38 = vrot.slane %v5024_v15, 11  ;;  %v5113_v53 = vrot.slane %v19281_v48, 7  ;;  %v13798_v2 = vrot.slane %v5025_v59, 11  ;;  %v19351_v49 = vld [vmem:[#allocation2 + $0x78] sm:$0xc]  ;;  %v19366_v12 = vpop.f32.mrf.mxu0  ;;  %v23398_v23 = vld [vmem:[#allocation24_spill] sm:$0xff] }
 0x2ad   : > { %v4975_v29 = vsel %vm19000_vm6, %v4966_v1, %v4974_v42  ;;  %v5117_v36 = vrot.slane %v19295_v30, 7  ;;  %v4977_v25 = vshrl.u32 %v19334_v5, 16  ;;  %v4697_v15 = vsel %vm19011_vm2, %v13782_v17, %v4696_v19  ;;  %v19360_v9 = vld [vmem:[#allocation2 + $0x7c] sm:$0x7]  ;;  %23370 = vst [vmem:[#allocation97_spill] sm:$0xff] %v19366_v12  ;;  %v19373_v19 = vpop.f32.mrf.mxu1 }
 0x2ae   : > { %v13847_v26 = vcombine.low %v4957_v45, %v4975_v29  ;;  %v5114_v48 = vsel %vm19023_vm10, %v13797_v38, %v5113_v53  ;;  %v4980_v43 = vshll.u32 %v19334_v5, 16  ;;  %v13839_v32 = vcombine.low %v4693_v52, %v4697_v15  ;;  %23371 = vst [vmem:[#allocation98_spill] sm:$0xff] %v19373_v19  ;;  %v23372_v38 = vld [vmem:[#allocation57_spill] sm:$0xff]  ;;  %v23381_v19 = vld [vmem:[#allocation47_spill] sm:$0xff] }
 0x2af   : > { %v5118_v30 = vsel %vm19023_vm10, %v13798_v2, %v5117_v36  ;;  %v4979_v10 = vrot.slane %v4977_v25, 6  ;;  %v4986_v42 = vshrl.u32 %v19346_v3, 16  ;;  %v4989_v59 = vshll.u32 %v19346_v3, 16  ;;  %v23383_v12 = vld [vmem:[#allocation75_spill] sm:$0xff] }
 0x2b0   : > { %6357 = vmatprep.mubr.bf16.mxu0 %v13847_v26  ;;  %v13855_v20 = vcombine.low %v5114_v48, %v5118_v30  ;;  %v4982_v55 = vrot.slane %v4980_v43, 7  ;;  %v4995_v45 = vshrl.u32 %v19351_v49, 16  ;;  %v4998_v17 = vshll.u32 %v19351_v49, 16  ;;  %v19381_v43 = vpop.f32.mrf.mxu0 }
 0x2b1   : > { %6358 = vmatmul.mubr.bf16.gmra.mxu0 %v13839_v32  ;;  %v4988_v1 = vrot.slane %v4986_v42, 6  ;;  %v5004_v52 = vshrl.u32 %v19360_v9, 16  ;;  %v5007_v8 = vshll.u32 %v19360_v9, 16  ;;  %v15074_v53 = vadd.f32 %v23372_v38, %v18844_v62  ;;  %23373 = vst [vmem:[#allocation57_spill] sm:$0xff] %v19381_v43  ;;  %v23374_v32 = vld [vmem:[#allocation41_spill] sm:$0xff] }
 0x2b2   : > { %6471 = vmatmul.mubr.bf16.gmra.mxu1 %v13855_v20  ;;  %v4983_v29 = vor.u32 %v4982_v55, %v4979_v10  ;;  %v4991_v2 = vrot.slane %v4989_v59, 7  ;;  %v4997_v36 = vrot.slane %v4995_v45, 6  ;;  %v19379_v25 = vadd.f32 %v19007_v31, %v18991_v24  ;;  %v23375_v42 = vld [vmem:[#allocation45_spill] sm:$0xff] }
 0x2b3   : > { %v5000_v26 = vrot.slane %v4998_v17, 7  ;;  %v5006_v15 = vrot.slane %v5004_v52, 6  ;;  %v5009_v48 = vrot.slane %v5007_v8, 7  ;;  %6480 = vmatprep.mubr.bf16.mxu1 %v23333_v47  ;;  %v19385_v30 = vadd.f32 %v15068_v14, %v23374_v32  ;;  %v23376_v31 = vld [vmem:[#allocation21_spill] sm:$0xff]  ;;  %v19393_v17 = vpop.f32.mrf.mxu1  ;;  %v23380_v8 = vld [vmem:[#allocation71_spill] sm:$0xff] }
 0x2b4   : > { %v3077_v62 = vadd.f32 %v15071_v57, %v23375_v42  ;;  %v4984_v20 = vrot.slane %v4983_v29, 4  ;;  %v4992_v10 = vor.u32 %v4991_v2, %v4988_v1  ;;  %v3158_v24 = vadd.f32 %v19260_v63, %v19254_v40  ;;  %23378 = vst [vmem:[#allocation45_spill] sm:$0xff] %v19393_v17  ;;  %v23379_v52 = vld [vmem:[#allocation69_spill] sm:$0xff]  ;;  %v5026_v29 = vld [vmem:[#allocation2 + $0x70] sm:$0x8]  ;;  %v23385_v40 = vld [vmem:[#allocation80_spill] sm:$0xff] }
 0x2b5   : > { %v5001_v55 = vor.u32 %v5000_v26, %v4997_v36  ;;  %v5010_v59 = vor.u32 %v5009_v48, %v5006_v15  ;;  %v19391_v45 = vsub.s32 2, %v23376_v31  ;;  %v15135_v38 = vadd.f32 %v23380_v8, %v23379_v52  ;;  %v23382_v32 = vld [vmem:[#allocation73_spill] sm:$0xff]  ;;  %v19402_v36 = vpop.f32.mrf.mxu0  ;;  %v16462_v26 = vld [vmem:[%s23146_s2] sm:$0x7]  ;;  %v15856_v48 = vld [vmem:[#allocation4 + $0x10] ss:$8 sps:$4 sm:$0xff]  }
 0x2b6   : > { %v3080_v14 = vadd.f32 %v15074_v53, %v23381_v19  ;;  %v15138_v57 = vadd.f32 %v23383_v12, %v23382_v32  ;;  %v3150_v1 = vadd.f32 %v19194_v4, %v19190_v13  ;;  %23384 = vst [vmem:[#allocation69_spill] sm:$0xff] %v19402_v36  ;;  %v3255_v63 = vadd.f32 %v23385_v40, %v3158_v24  ;;  %v16463_v19 = vld [vmem:[#allocation2 + $0x74] sm:$0x3]  ;;  %v5027_v24 = vld [vmem:[#allocation2 + $0x78] sm:$0x8] }
 0x2b7   : > { %23377 = vst [vmem:[#allocation41_spill] sm:$0xff] %v19391_v45  ;;  %v5002_v2 = vrot.slane %v5001_v55, 4  ;;  %v19409_v15 = vrot.slane %v16462_v26, %v19391_v45  ;;  %v4700_v53 = vrot.slane %v16463_v19, 6  ;;  %v15858_v12 = vld [vmem:[#allocation4 + $0x14] ss:$8 sps:$4 sm:$0xff]   ;;  %v13783_v13 = vrot.slane %v19334_v5, 10  ;;  %v19425_v5 = vpop.f32.mrf.mxu1 }
 0x2b8   : > { %v3247_v42 = vadd.f32 %v19139_v28, %v3150_v1  ;;  %v13784_v4 = vrot.slane %v19351_v49, 10  ;;  %v16464_v55 = vld [vmem:[#allocation2 + $0x7c] sm:$0x3]  ;;  %v4993_v8 = vsel %vm19000_vm6, %v4984_v20, %v4992_v10  ;;  %v16465_v40 = vld [vmem:[%s23147_s3] sm:$0x7]  ;;  %v5121_v28 = vrot.slane %v19346_v3, 7  ;;  %7332 = vmatprep.subr.bf16.mxu1 %v15858_v12 }
 0x2b9   : > { %23386 = vst [vmem:[#allocation71_spill] sm:$0xff] %v19409_v15  ;;  %v4704_v52 = vrot.slane %v16464_v55, 6  ;;  %v5011_v32 = vsel %vm19000_vm6, %v5002_v2, %v5010_v59  ;;  %v19422_v26 = vrot.slane %v16465_v40, %v19391_v45  ;;  %23388 = vst [vmem:[#allocation73_spill] sm:$0xff] %v19425_v5  ;;  %v4701_v20 = vsel %vm19011_vm2, %v13783_v13, %v4700_v53  ;;  %v19446_v13 = vpop.f32.mrf.mxu1  ;;  %v15901_v45 = vld [vmem:[#allocation4 + $0x174] ss:$8 sps:$4 sm:$0xff]  }
 0x2ba   : > { %v13848_v1 = vcombine.low %v4993_v8, %v5011_v32  ;;  %v13799_v10 = vrot.slane %v5026_v29, 11  ;;  %7333 = vmatpush1.bf16.msra.mxu1 %v15856_v48  ;;  %v3334_v59 = vmul.f32 %v19409_v15, %v3255_v63  ;;  %v13800_v19 = vrot.slane %v5027_v24, 11  ;;  %23389 = vst [vmem:[#allocation75_spill] sm:$0xff] %v19446_v13  ;;  %v15906_v17 = vld [vmem:[#allocation4 + $0x160] ss:$8 sps:$4 sm:$0xff]  }
 0x2bb   : > { %23387 = vst [vmem:[#allocation47_spill] sm:$0xff] %v19422_v26  ;;  %v4705_v50 = vsel %vm19011_vm2, %v13784_v4, %v4704_v52  ;;  %v5125_v3 = vrot.slane %v19360_v9, 7  ;;  %v3328_v55 = vmul.f32 %v19409_v15, %v3247_v42  ;;  %v3161_v53 = vadd.f32 %v19312_v22, %v19318_v33  ;;  %v15859_v4 = vld [vmem:[#allocation4 + $0xa0] ss:$8 sps:$4 sm:$0xff]   ;;  %v15861_v52 = vld [vmem:[#allocation4 + $0xa4] ss:$8 sps:$4 sm:$0xff]  }
 0x2bc   : > { %v13840_v2 = vcombine.low %v4701_v20, %v4705_v50  ;;  %6367 = vmatprep.mubr.bf16.mxu0 %v13848_v1  ;;  %v5122_v12 = vsel %vm19023_vm10, %v13799_v10, %v5121_v28  ;;  %v3153_v41 = vadd.f32 %v19243_v58, %v19251_v18  ;;  %v3174_v63 = vadd.f32 %v15135_v38, %v3077_v62  ;;  %v23390_v33 = vld [vmem:[#allocation84_spill] sm:$0xff]  ;;  %v15865_v20 = vld [vmem:[#allocation4 + $0x130] ss:$8 sps:$4 sm:$0xff]   ;;  %v15867_v50 = vld [vmem:[#allocation4 + $0x134] ss:$8 sps:$4 sm:$0xff]  }
 0x2bd   : > { %v5126_v29 = vsel %vm19023_vm10, %v13800_v19, %v5125_v3  ;;  %v3166_v9 = vadd.f32 %v19327_v6, %v19323_v21  ;;  %v3177_v48 = vadd.f32 %v15138_v57, %v3080_v14  ;;  %v3258_v22 = vadd.f32 %v19152_v44, %v3161_v53  ;;  %v15864_v18 = vld [vmem:[#allocation4 + $0x4] ss:$8 sps:$4 sm:$0xff]   ;;  %7025 = vmatprep.subr.bf16.mxu0 %v15861_v52  ;;  %v15862_v14 = vld [vmem:[#allocation4] ss:$8 sps:$4 sm:$0xff]   ;;  %v15868_v19 = vld [vmem:[#allocation4 + $0x90] ss:$8 sps:$4 sm:$0xff]  }
 0x2be   : > { %6368 = vmatmul.mubr.bf16.gmra.mxu0 %v13840_v2  ;;  %v13856_v24 = vcombine.low %v5122_v12, %v5126_v29  ;;  %v3250_v58 = vadd.f32 %v23390_v33, %v3153_v41  ;;  %v3271_v61 = vadd.f32 %v19187_v35, %v3174_v63  ;;  %v3169_v21 = vadd.f32 %v19379_v25, %v19385_v30  ;;  %v15870_v3 = vld [vmem:[#allocation4 + $0x94] ss:$8 sps:$4 sm:$0xff]  }
 0x2bf   : > { %v3263_v62 = vadd.f32 %v19214_v39, %v3166_v9  ;;  %v3274_v38 = vadd.f32 %v19235_v37, %v3177_v48  ;;  %v3399_v57 = vadd.f32 %v19422_v26, %v3334_v59  ;;  %v3393_v44 = vadd.f32 %v19422_v26, %v3328_v55  ;;  %7026 = vmatpush1.bf16.msra.mxu0 %v15859_v4  ;;  %v15914_v13 = vld [vmem:[#allocation4 + $0x214] ss:$8 sps:$4 sm:$0xff]  }
 0x2c0   : > { %6481 = vmatmul.mubr.bf16.gmra.mxu1 %v13856_v24  ;;  %v3337_v8 = vmul.f32 %v19409_v15, %v3258_v22  ;;  %v3331_v35 = vmul.f32 %v19409_v15, %v3250_v58  ;;  %v3346_v39 = vmul.f32 %v19409_v15, %v3271_v61  ;;  %v3266_v25 = vadd.f32 %v19256_v0, %v3169_v21  ;;  %v15873_v61 = vld [vmem:[#allocation4 + $0x124] ss:$8 sps:$4 sm:$0xff]  }
 0x2c1   : > { %v3340_v37 = vmul.f32 %v19409_v15, %v3263_v62  ;;  %v3349_v32 = vmul.f32 %v19409_v15, %v3274_v38  ;;  %7334 = vmatprep.subr.bf16.mxu1 %v15864_v18  ;;  %v3447_v55 = vmax.f32 %v3399_v57, 0.0  ;;  %v3441_v12 = vmax.f32 %v3393_v44, 0.0  ;;  %7039 = vmatprep.subr.bf16.mxu0 %v15867_v50  ;;  %v15871_v18 = vld [vmem:[#allocation4 + $0x120] ss:$8 sps:$4 sm:$0xff]   ;;  %v15876_v57 = vld [vmem:[#allocation4 + $0x84] ss:$8 sps:$4 sm:$0xff]  }
 0x2c2   : > { %v3402_v28 = vadd.f32 %v19422_v26, %v3337_v8  ;;  %v3396_v1 = vadd.f32 %v19422_v26, %v3331_v35  ;;  %v3411_v10 = vadd.f32 %v19422_v26, %v3346_v39  ;;  %v3343_v0 = vmul.f32 %v19409_v15, %v3266_v25  ;;  %7335 = vmatpush1.bf16.msra.mxu1 %v15862_v14  ;;  %v15874_v14 = vld [vmem:[#allocation4 + $0x80] ss:$8 sps:$4 sm:$0xff]   ;;  %v15883_v50 = vld [vmem:[#allocation4 + $0x1b4] ss:$8 sps:$4 sm:$0xff]  }
 0x2c3   : > { %v19427_v49 = vpop.f32.mrf.mxu0  ;;  %v3405_v59 = vadd.f32 %v19422_v26, %v3340_v37  ;;  %v3414_v2 = vadd.f32 %v19422_v26, %v3349_v32  ;;  %7348 = vmatprep.subr.bf16.mxu1 %v15870_v3  ;;  %7040 = vmatpush2.bf16.msra.mxu0 %v15865_v20  ;;  %vm6612_vm11 = vcmask 261124  }
 0x2c4   : > { %v3450_v53 = vmax.f32 %v3402_v28, 0.0  ;;  %v3444_v41 = vmax.f32 %v3396_v1, 0.0  ;;  %v3459_v29 = vmax.f32 %v3411_v10, 0.0  ;;  %v3408_v9 = vadd.f32 %v19422_v26, %v3343_v0  ;;  %7041 = vmatprep.subr.bf16.mxu0 %v15873_v61  ;;  %vm19502_vm12 = vmor %vm6612_vm11, %vm6611_vm1  ;;  %v15929_v26 = vld [vmem:[#allocation4 + $0x1e0] ss:$8 sps:$4 sm:$0xff]  }
 0x2c5   : > { %v19448_v42 = vpop.f32.mrf.mxu0  ;;  %v3462_v63 = vmax.f32 %v3414_v2, 0.0  ;;  %v3453_v22 = vmax.f32 %v3405_v59, 0.0  ;;  %6614 = vst.msk [vmem:[#allocation3] sm:$0xff] %vm19502_vm12, %v23333_v47  ;;  %6615 = vst.msk [vmem:[#allocation3 + $0x8] sm:$0xff] %vm19502_vm12, %v23333_v47  ;;  %v15951_v1 = vld [vmem:[#allocation4 + $0x2e0] ss:$8 sps:$4 sm:$0xff]  }
 0x2c6   : > { %v19482_v52 = vpack.c.bf16 %v3450_v53, %v3447_v55  ;;  %v19484_v24 = vpack.c.bf16 %v3444_v41, %v3441_v12  ;;  %v3456_v58 = vmax.f32 %v3408_v9, 0.0  ;;  %7349 = vmatpush2.bf16.msra.mxu1 %v15868_v19  ;;  %6616 = vst.msk [vmem:[#allocation3 + $0x10] sm:$0xff] %vm19502_vm12, %v23333_v47  ;;  %6617 = vst.msk [vmem:[#allocation3 + $0x70] sm:$0xff] %vm19502_vm12, %v23333_v47 }
 0x2c7   : > { %v19469_v40 = vpop.f32.mrf.mxu0  ;;  %v19486_v33 = vpack.c.bf16 %v3462_v63, %v3459_v29  ;;  %7350 = vmatprep.subr.bf16.mxu1 %v15876_v57  ;;  %7042 = vmatpush2.bf16.msra.mxu0 %v15871_v18  ;;  %6618 = vst.msk [vmem:[#allocation3 + $0x78] sm:$0xff] %vm19502_vm12, %v23333_v47  ;;  %6619 = vst.msk [vmem:[#allocation3 + $0x80] sm:$0xff] %vm19502_vm12, %v23333_v47  ;;  %v15881_v29 = vld [vmem:[#allocation4 + $0x1b0] ss:$8 sps:$4 sm:$0xff]   ;;  %v15886_v18 = vld [vmem:[#allocation4 + $0x1a4] ss:$8 sps:$4 sm:$0xff]  }
 0x2c8   : > { %23391 = vst [vmem:[#allocation80_spill] sm:$0xff] %v19482_v52  ;;  %23392 = vst [vmem:[#allocation84_spill] sm:$0xff] %v19484_v24  ;;  %v19488_v62 = vpack.c.bf16 %v3456_v58, %v3453_v22  ;;  %7667 = vmatprep.subr.bf16.mxu0 %v15883_v50  ;;  %v15887_v50 = vld [vmem:[#allocation4 + $0x190] ss:$8 sps:$4 sm:$0xff]  }
 0x2c9   : > { %v19457_v6 = vpop.f32.mrf.mxu1  ;;  %v19480_v4 = vpop.f32.mrf.mxu0  ;;  %23393 = vst [vmem:[#allocation99_spill] sm:$0xff] %v19486_v33  ;;  %6621 = vst.msk [vmem:[#allocation3 + $0x58] sm:$0xff] %vm19502_vm12, %v23333_v47 }
 0x2ca   : > { %23394 = vst [vmem:[#allocation100_spill] sm:$0xff] %v19488_v62  ;;  %7351 = vmatpush2.bf16.msra.mxu1 %v15874_v14  ;;  %6622 = vst.msk [vmem:[#allocation3 + $0x60] sm:$0xff] %vm19502_vm12, %v23333_v47  ;;  %v15884_v14 = vld [vmem:[#allocation4 + $0x1a0] ss:$8 sps:$4 sm:$0xff]  }
 0x2cb   : > { %v19467_v30 = vpop.f32.mrf.mxu1  ;;  %6623 = vst.msk [vmem:[#allocation3 + $0x68] sm:$0xff] %vm19502_vm12, %v23333_v47  ;;  %6624 = vst.msk [vmem:[#allocation3 + $0xc8] sm:$0xff] %vm19502_vm12, %v23333_v47 }
 0x2cc   : > { %6625 = vst.msk [vmem:[#allocation3 + $0xd0] sm:$0xff] %vm19502_vm12, %v23333_v47  ;;  %6626 = vst.msk [vmem:[#allocation3 + $0xd8] sm:$0xff] %vm19502_vm12, %v23333_v47  ;;  %v6777_v0 = vld [vmem:[#allocation3 + $0x8] sm:$0xff]  ;;  %v6740_v3 = vld [vmem:[#allocation3] sm:$0xff] }
 0x2cd   : > { %v19478_v48 = vpop.f32.mrf.mxu1  ;;  %v19544_v19 = vld [vmem:[#allocation3 + $0x10] sm:$0xff]  ;;  %v14029_v41 = vcombine.low %v6740_v3, %v6777_v0  ;;  %v14030_v22 = vcombine.high %v6740_v3, %v6777_v0 }
 0x2ce   : > { %v13985_v12 = vcombine.low %v6777_v0, %v19544_v19  ;;  %v13986_v53 = vcombine.high %v6777_v0, %v19544_v19  ;;  %v6191_v62 = vadd.f32 %v19478_v48, %v19469_v40 }
 0x2cf   : > { %v19490_v38 = vpop.f32.mrf.mxu1  ;;  %14065 = vmatprep.mubr.msk.bf16.mxu1 %vm6986_vm13, %v14030_v22 }
 0x2d0   : > { %14021 = vmatprep.mubr.msk.bf16.mxu0 %vm6986_vm13, %v13986_v53  ;;  %7353 = vmatmul.mubr.bf16.vlgmr.msra.gmra.mxu1 %v14029_v41 }
 0x2d1   : > { %7044 = vmatmul.mubr.bf16.vlgmr.msra.gmra.mxu0 %v13985_v12 }
 0x2d2   : > { %7668 = vmatpush1.bf16.msra.mxu0 %v15881_v29 }
 0x2d3   : > { %v6083_v21 = vpop.f32.mrf.mxu0  ;;  %7669 = vmatprep.subr.bf16.mxu0 %v15886_v18  ;;  %v15890_v18 = vld [vmem:[#allocation4 + $0x180] ss:$8 sps:$4 sm:$0xff]  }
 0x2d5   : > { %v19492_v44 = vpop.f32.mrf.mxu0 }
 0x2d6   : > { %7670 = vmatpush1.bf16.msra.mxu0 %v15884_v14  ;;  %v15893_v14 = vld [vmem:[#allocation4 + $0x250] ss:$8 sps:$4 sm:$0xff]  }
 0x2d7   : > { %v6196_v8 = vpop.f32.mrf.mxu1  ;;  %v6087_v37 = vpop.f32.mrf.mxu0 }
 0x2d8   : > { %v19494_v35 = vadd.f32 %v6196_v8, %v6083_v21 }
 0x2d9   : > { %v19496_v39 = vpop.f32.mrf.mxu1  ;;  %v19500_v28 = vpop.f32.mrf.mxu0 }
 0x2db   : > { %v6200_v32 = vpop.f32.mrf.mxu1 }
 0x2dc   : > { %v19498_v25 = vadd.f32 %v6200_v32, %v6087_v37 }
 0x2dd   : > { %v19542_v10 = vpop.f32.mrf.mxu1 }
 0x2e1   : > { %v6093_v20 = vpop.f32.mrf.mxu0 }
 0x2e3   : > { %v6095_v59 = vpop.f32.mrf.mxu0 }
 0x2e5   : > { %v6097_v9 = vpop.f32.mrf.mxu0 }
 0x2e6   : > { %v6206_v2 = vpop.f32.mrf.mxu1 }
 0x2e7   : > { %v19546_v55 = vadd.f32 %v6206_v2, %v6093_v20  ;;  %v19556_v57 = vpop.f32.mrf.mxu0 }
 0x2e8   : > { %v6208_v63 = vpop.f32.mrf.mxu1 }
 0x2e9   : > { %v19550_v58 = vadd.f32 %v6208_v63, %v6095_v59  ;;  %v15889_v59 = vld [vmem:[#allocation4 + $0x194] ss:$8 sps:$4 sm:$0xff]  }
 0x2ea   : > { %v6210_v61 = vpop.f32.mrf.mxu1  ;;  %7671 = vmatprep.subr.bf16.mxu0 %v15889_v59  ;;  %v15896_v59 = vld [vmem:[#allocation4 + $0x240] ss:$8 sps:$4 sm:$0xff]  }
 0x2eb   : > { %v19554_v21 = vadd.f32 %v6210_v61, %v6097_v9  ;;  %7672 = vmatpush1.bf16.msra.mxu0 %v15887_v50  ;;  %v15892_v61 = vld [vmem:[#allocation4 + $0x184] ss:$8 sps:$4 sm:$0xff]  }
 0x2ec   : > { %v19558_v8 = vpop.f32.mrf.mxu1  ;;  %7673 = vmatprep.subr.bf16.mxu0 %v15892_v61 }
 0x2ef   : > { %7674 = vmatpush1.bf16.msra.mxu0 %v15890_v18  ;;  %v15905_v18 = vld [vmem:[#allocation4 + $0x234] ss:$8 sps:$4 sm:$0xff]  }
 0x2f0   : > { %v6103_v37 = vpop.f32.mrf.mxu0  ;;  %7675 = vmatprep.subr.bf16.mxu0 %v15901_v45 }
 0x2f2   : > { %v6105_v32 = vpop.f32.mrf.mxu0 }
 0x2f4   : > { %v6107_v0 = vpop.f32.mrf.mxu0 }
 0x2f5   : > { %v6216_v20 = vpop.f32.mrf.mxu1 }
 0x2f6   : > { %v19560_v2 = vadd.f32 %v6216_v20, %v6103_v37  ;;  %v19566_v29 = vpop.f32.mrf.mxu0  ;;  %v15895_v37 = vld [vmem:[#allocation4 + $0x254] ss:$8 sps:$4 sm:$0xff]  }
 0x2f7   : > { %v6218_v3 = vpop.f32.mrf.mxu1  ;;  %8045 = vmatprep.subr.bf16.mxu1 %v15895_v37 }
 0x2f8   : > { %v19562_v12 = vadd.f32 %v6218_v3, %v6105_v32  ;;  %8046 = vmatpush1.bf16.msra.mxu1 %v15893_v14 }
 0x2f9   : > { %v6220_v53 = vpop.f32.mrf.mxu1 }
 0x2fa   : > { %v19564_v41 = vadd.f32 %v6220_v53, %v6107_v0  ;;  %v15898_v0 = vld [vmem:[#allocation4 + $0x244] ss:$8 sps:$4 sm:$0xff]   ;;  %v15899_v53 = vld [vmem:[#allocation4 + $0x170] ss:$8 sps:$4 sm:$0xff]  }
 0x2fb   : > { %v19568_v9 = vpop.f32.mrf.mxu1  ;;  %8047 = vmatprep.subr.bf16.mxu1 %v15898_v0  ;;  %7676 = vmatpush1.bf16.msra.mxu0 %v15899_v53  ;;  %v15911_v0 = vld [vmem:[#allocation4 + $0x224] ss:$8 sps:$4 sm:$0xff]  }
 0x2fc   : > { %8048 = vmatpush1.bf16.msra.mxu1 %v15896_v59 }
 0x2fd   : > { %v6113_v63 = vpop.f32.mrf.mxu0  ;;  %8049 = vmatprep.subr.bf16.mxu1 %v15905_v18  ;;  %v15912_v18 = vld [vmem:[#allocation4 + $0x210] ss:$8 sps:$4 sm:$0xff]  }
 0x2ff   : > { %v6115_v22 = vpop.f32.mrf.mxu0 }
 0x301   : > { %v6117_v50 = vpop.f32.mrf.mxu0 }
 0x302   : > { %v6226_v20 = vpop.f32.mrf.mxu1 }
 0x303   : > { %v19570_v32 = vadd.f32 %v6226_v20, %v6113_v63  ;;  %v19576_v61 = vpop.f32.mrf.mxu0  ;;  %v15903_v63 = vld [vmem:[#allocation4 + $0x230] ss:$8 sps:$4 sm:$0xff]  }
 0x304   : > { %v6228_v3 = vpop.f32.mrf.mxu1  ;;  %8050 = vmatpush1.bf16.msra.mxu1 %v15903_v63 }
 0x305   : > { %v19572_v31 = vadd.f32 %v6228_v3, %v6115_v22  ;;  %v15908_v22 = vld [vmem:[#allocation4 + $0x164] ss:$8 sps:$4 sm:$0xff]   ;;  %v15909_v3 = vld [vmem:[#allocation4 + $0x220] ss:$8 sps:$4 sm:$0xff]   ;;  %8051 = vmatprep.subr.bf16.mxu1 %v15911_v0 }
 0x306   : > { %v6230_v5 = vpop.f32.mrf.mxu1  ;;  %7677 = vmatprep.subr.bf16.mxu0 %v15908_v22  ;;  %v15924_v0 = vld [vmem:[#allocation4 + $0x140] ss:$8 sps:$4 sm:$0xff]  }
 0x307   : > { %v19574_v27 = vadd.f32 %v6230_v5, %v6117_v50  ;;  %7678 = vmatpush1.bf16.msra.mxu0 %v15906_v17  ;;  %v15918_v17 = vld [vmem:[#allocation4 + $0x200] ss:$8 sps:$4 sm:$0xff]  }
 0x308   : > { %v19578_v14 = vpop.f32.mrf.mxu1  ;;  %8052 = vmatpush1.bf16.msra.mxu1 %v15909_v3  ;;  %7679 = vmatprep.subr.bf16.mxu0 %v15917_v7  ;;  %v15923_v3 = vld [vmem:[#allocation4 + $0x1f4] ss:$8 sps:$4 sm:$0xff]  }
 0x309   : > { %8053 = vmatprep.subr.bf16.mxu1 %v15914_v13  ;;  %v15931_v13 = vld [vmem:[#allocation4 + $0x1e4] ss:$8 sps:$4 sm:$0xff]  }
 0x30a   : > { %v6123_v37 = vpop.f32.mrf.mxu0 }
 0x30b   : > { %7680 = vmatpush1.bf16.msra.mxu0 %v15915_v46  ;;  %v15947_v46 = vld [vmem:[#allocation4 + $0x1c4] ss:$8 sps:$4 sm:$0xff]  }
 0x30c   : > { %v6125_v20 = vpop.f32.mrf.mxu0  ;;  %8054 = vmatpush1.bf16.msra.mxu1 %v15912_v18  ;;  %v15934_v18 = vld [vmem:[#allocation4 + $0x1d0] ss:$8 sps:$4 sm:$0xff]  }
 0x30e   : > { %v6127_v50 = vpop.f32.mrf.mxu0 }
 0x30f   : > { %v6236_v36 = vpop.f32.mrf.mxu1 }
 0x310   : > { %v19580_v45 = vadd.f32 %v6236_v36, %v6123_v37  ;;  %v19586_v63 = vpop.f32.mrf.mxu0  ;;  %v15920_v37 = vld [vmem:[#allocation4 + $0x204] ss:$8 sps:$4 sm:$0xff]  }
 0x311   : > { %v6238_v5 = vpop.f32.mrf.mxu1  ;;  %8055 = vmatprep.subr.bf16.mxu1 %v15920_v37 }
 0x312   : > { %v19582_v59 = vadd.f32 %v6238_v5, %v6125_v20  ;;  %v15926_v5 = vld [vmem:[#allocation4 + $0x144] ss:$8 sps:$4 sm:$0xff]   ;;  %8056 = vmatpush1.bf16.msra.mxu1 %v15918_v17  ;;  %v15939_v17 = vld [vmem:[#allocation4 + $0x274] ss:$8 sps:$4 sm:$0xff]  }
 0x313   : > { %v6240_v53 = vpop.f32.mrf.mxu1  ;;  %7681 = vmatprep.subr.bf16.mxu0 %v15926_v5  ;;  %8057 = vmatprep.subr.bf16.mxu1 %v15923_v3  ;;  %v15945_v5 = vld [vmem:[#allocation4 + $0x1c0] ss:$8 sps:$4 sm:$0xff]  }
 0x314   : > { %v19584_v43 = vadd.f32 %v6240_v53, %v6127_v50  ;;  %v15921_v50 = vld [vmem:[#allocation4 + $0x1f0] ss:$8 sps:$4 sm:$0xff]   ;;  %v15936_v53 = vld [vmem:[#allocation4 + $0x1d4] ss:$8 sps:$4 sm:$0xff]   ;;  %7682 = vmatpush1.bf16.msra.mxu0 %v15924_v0  ;;  %v15944_v0 = vld [vmem:[#allocation4 + $0x264] ss:$8 sps:$4 sm:$0xff]  }
 0x315   : > { %v19588_v36 = vpop.f32.mrf.mxu1  ;;  %7695 = vmatprep.subr.bf16.mxu0 %v15936_v53 }
 0x316   : > { %8058 = vmatpush1.bf16.msra.mxu1 %v15921_v50  ;;  %v15942_v50 = vld [vmem:[#allocation4 + $0x260] ss:$8 sps:$4 sm:$0xff]  }
 0x317   : > { %8059 = vmatprep.subr.bf16.mxu1 %v15931_v13 }
 0x318   : > { %v6133_v22 = vpop.f32.mrf.mxu0  ;;  %7696 = vmatpush2.bf16.msra.mxu0 %v15934_v18 }
 0x319   : > { %7697 = vmatprep.subr.bf16.mxu0 %v15947_v46 }
 0x31a   : > { %v6135_v20 = vpop.f32.mrf.mxu0  ;;  %8060 = vmatpush1.bf16.msra.mxu1 %v15929_v26 }
 0x31b   : > { %8073 = vmatprep.subr.bf16.mxu1 %v15939_v17 }
 0x31c   : > { %v6137_v60 = vpop.f32.mrf.mxu0  ;;  %7698 = vmatpush2.bf16.msra.mxu0 %v15945_v5 }
 0x31d   : > { %v6246_v33 = vpop.f32.mrf.mxu1 }
 0x31e   : > { %v19590_v7 = vadd.f32 %v6246_v33, %v6133_v22  ;;  %v19596_v3 = vpop.f32.mrf.mxu0  ;;  %v15950_v33 = vld [vmem:[#allocation4 + $0x2f4] ss:$8 sps:$4 sm:$0xff]   ;;  %v15937_v22 = vld [vmem:[#allocation4 + $0x270] ss:$8 sps:$4 sm:$0xff]  }
 0x31f   : > { %v6248_v56 = vpop.f32.mrf.mxu1  ;;  %8424 = vmatprep.subr.bf16.mxu0 %v15950_v33  ;;  %8074 = vmatpush2.bf16.msra.mxu1 %v15937_v22  ;;  %v6491_v22 = vld [vmem:[%s23149_s5] sm:$0x3] }
 0x320   : > { %v19592_v11 = vadd.f32 %v6248_v56, %v6135_v20  ;;  %8075 = vmatprep.subr.bf16.mxu1 %v15944_v0  ;;  %v15964_v0 = vld [vmem:[#allocation4 + $0x394] ss:$8 sps:$4 sm:$0xff]  }
 0x321   : > { %v6250_v37 = vpop.f32.mrf.mxu1 }
 0x322   : > { %v19594_v51 = vadd.f32 %v6250_v37, %v6137_v60 }
 0x323   : > { %v19598_v20 = vpop.f32.mrf.mxu1  ;;  %8076 = vmatpush2.bf16.msra.mxu1 %v15942_v50 }
 0x324   : > { %v6143_v56 = vpop.f32.mrf.mxu0  ;;  %8803 = vmatprep.subr.bf16.mxu1 %v15964_v0  ;;  %v19629_v0 = vrot.slane %v6491_v22, %v23398_v23 }
 0x326   : > { %v6145_v53 = vpop.f32.mrf.mxu0 }
 0x328   : > { %v6147_v46 = vpop.f32.mrf.mxu0 }
 0x329   : > { %v6256_v13 = vpop.f32.mrf.mxu1 }
 0x32a   : > { %v19600_v60 = vadd.f32 %v6256_v13, %v6143_v56  ;;  %v19606_v5 = vpop.f32.mrf.mxu0  ;;  %v6187_v56 = vadd.f32 %v19457_v6, %v19427_v49  ;;  %v6189_v13 = vadd.f32 %v19467_v30, %v19448_v42  ;;  %v6193_v42 = vadd.f32 %v19490_v38, %v19480_v4 }
 0x32b   : > { %v6258_v18 = vpop.f32.mrf.mxu1 }
 0x32c   : > { %v19602_v37 = vadd.f32 %v6258_v18, %v6145_v53  ;;  %v6535_v53 = vld [vmem:[%s23150_s6] sm:$0x3] }
 0x32d   : > { %v6260_v26 = vpop.f32.mrf.mxu1  ;;  %v19635_v52 = vrot.slane %v6535_v53, %v23398_v23 }
 0x32e   : > { %v19604_v17 = vadd.f32 %v6260_v26, %v6147_v46  ;;  %v23397_v26 = vld [vmem:[#allocation23_spill] sm:$0xff] }
 0x32f   : > { %v19608_v33 = vpop.f32.mrf.mxu1  ;;  %v19621_v15 = vrot.slane %v6491_v22, %v23397_v26  ;;  %v19626_v49 = vrot.slane %v6535_v53, %v23397_v26 }
 0x332   : > { %v6299_v50 = vpop.f32.mrf.mxu0  ;;  %v6412_v46 = vpop.f32.mrf.mxu1 }
 0x333   : > { %v6300_v18 = vadd.f32 %v6299_v50, %v6187_v56 }
 0x334   : > { %v6301_v16 = vpop.f32.mrf.mxu0  ;;  %v6414_v34 = vpop.f32.mrf.mxu1 }
 0x335   : > { %v6413_v54 = vadd.f32 %v6412_v46, %v6300_v18  ;;  %v6302_v6 = vadd.f32 %v6301_v16, %v6189_v13 }
 0x336   : > { %v6303_v30 = vpop.f32.mrf.mxu0  ;;  %v6416_v48 = vpop.f32.mrf.mxu1 }
 0x337   : > { %v6503_v56 = vmul.f32 %v19621_v15, %v6413_v54  ;;  %v6415_v50 = vadd.f32 %v6414_v34, %v6302_v6  ;;  %v6304_v40 = vadd.f32 %v6303_v30, %v6191_v62  ;;  %v6199_v30 = vadd.f32 %v19496_v39, %v19492_v44 }
 0x338   : > { %v6305_v18 = vpop.f32.mrf.mxu0  ;;  %v6418_v24 = vpop.f32.mrf.mxu1 }
 0x339   : > { %v6547_v46 = vadd.f32 %v19626_v49, %v6503_v56  ;;  %v6504_v16 = vmul.f32 %v19629_v0, %v6415_v50  ;;  %v6417_v13 = vadd.f32 %v6416_v48, %v6304_v40  ;;  %v6306_v22 = vadd.f32 %v6305_v18, %v6193_v42 }
 0x33b   : > { %v6548_v47 = vadd.f32 %v19635_v52, %v6504_v16  ;;  %v6505_v4 = vmul.f32 %v19621_v15, %v6417_v13  ;;  %v6419_v38 = vadd.f32 %v6418_v24, %v6306_v22  ;;  %v6579_v54 = vmax.f32 %v6547_v46, 0.0 }
 0x33c   : > { %v6422_v50 = vpop.f32.mrf.mxu1  ;;  %v6203_v22 = vadd.f32 %v19542_v10, %v19500_v28 }
 0x33d   : > { %v6580_v34 = vmax.f32 %v6548_v47, 0.0  ;;  %v6549_v53 = vadd.f32 %v19626_v49, %v6505_v4  ;;  %v6506_v62 = vmul.f32 %v19629_v0, %v6419_v38  ;;  %v6309_v6 = vpop.f32.mrf.mxu0 }
 0x33e   : > { %v6310_v56 = vadd.f32 %v6309_v6, %v19494_v35  ;;  %v6424_v24 = vpop.f32.mrf.mxu1 }
 0x33f   : > { %v14811_v42 = vpack.c.bf16 %v6580_v34, %v6579_v54  ;;  %v6550_v40 = vadd.f32 %v19635_v52, %v6506_v62  ;;  %v6311_v48 = vpop.f32.mrf.mxu0  ;;  %v6581_v47 = vmax.f32 %v6549_v53, 0.0 }
 0x340   : > { %v6423_v18 = vadd.f32 %v6422_v50, %v6310_v56  ;;  %v6312_v16 = vadd.f32 %v6311_v48, %v6199_v30  ;;  %v6426_v4 = vpop.f32.mrf.mxu1 }
 0x341   : > { %6724 = vst.msk [vmem:[#allocation3 + $0x18] sm:$0xff] %vm19502_vm12, %v14811_v42  ;;  %v6582_v46 = vmax.f32 %v6550_v40, 0.0  ;;  %v6313_v13 = vpop.f32.mrf.mxu0 }
 0x342   : > { %v6507_v44 = vmul.f32 %v19621_v15, %v6423_v18  ;;  %v6425_v35 = vadd.f32 %v6424_v24, %v6312_v16  ;;  %v6314_v39 = vadd.f32 %v6313_v13, %v19498_v25  ;;  %v6428_v53 = vpop.f32.mrf.mxu1 }
 0x343   : > { %v14812_v38 = vpack.c.bf16 %v6582_v46, %v6581_v47  ;;  %v6315_v54 = vpop.f32.mrf.mxu0 }
 0x344   : > { %v6551_v34 = vadd.f32 %v19626_v49, %v6507_v44  ;;  %v6508_v62 = vmul.f32 %v19629_v0, %v6425_v35  ;;  %v6427_v6 = vadd.f32 %v6426_v4, %v6314_v39  ;;  %v6316_v30 = vadd.f32 %v6315_v54, %v6203_v22 }
 0x345   : > { %6725 = vst.msk [vmem:[#allocation3 + $0x20] sm:$0xff] %vm19502_vm12, %v14812_v38 }
 0x346   : > { %v6552_v28 = vadd.f32 %v19635_v52, %v6508_v62  ;;  %v6509_v10 = vmul.f32 %v19621_v15, %v6427_v6  ;;  %v6429_v56 = vadd.f32 %v6428_v53, %v6316_v30  ;;  %v6583_v50 = vmax.f32 %v6551_v34, 0.0  ;;  %v6319_v48 = vpop.f32.mrf.mxu0  ;;  %v6432_v24 = vpop.f32.mrf.mxu1 }
 0x347   : > { %v6320_v16 = vadd.f32 %v6319_v48, %v19546_v55  ;;  %v6213_v55 = vadd.f32 %v19558_v8, %v19556_v57 }
 0x348   : > { %v6584_v25 = vmax.f32 %v6552_v28, 0.0  ;;  %v6553_v42 = vadd.f32 %v19626_v49, %v6509_v10  ;;  %v6510_v40 = vmul.f32 %v19629_v0, %v6429_v56  ;;  %v6743_v18 = vld [vmem:[#allocation3 + $0x18] sm:$0xff]  ;;  %v6321_v44 = vpop.f32.mrf.mxu0  ;;  %v6434_v4 = vpop.f32.mrf.mxu1 }
 0x349   : > { %v19663_v47 = vcombine.high %v19544_v19, %v6743_v18  ;;  %v19666_v46 = vcombine.low %v19544_v19, %v6743_v18  ;;  %v6433_v35 = vadd.f32 %v6432_v24, %v6320_v16  ;;  %v6322_v39 = vadd.f32 %v6321_v44, %v19550_v58 }
 0x34a   : > { %v14813_v13 = vpack.c.bf16 %v6584_v25, %v6583_v50  ;;  %v6554_v22 = vadd.f32 %v19635_v52, %v6510_v40  ;;  %v6585_v38 = vmax.f32 %v6553_v42, 0.0  ;;  %v6323_v54 = vpop.f32.mrf.mxu0  ;;  %v6436_v30 = vpop.f32.mrf.mxu1 }
 0x34b   : > { %14066 = vmatprep.mubr.msk.bf16.mxu1 %vm6986_vm13, %v19663_v47  ;;  %v6511_v62 = vmul.f32 %v19621_v15, %v6433_v35  ;;  %v6435_v6 = vadd.f32 %v6434_v4, %v6322_v39  ;;  %v6324_v58 = vadd.f32 %v6323_v54, %v19554_v21 }
 0x34c   : > { %6726 = vst.msk [vmem:[#allocation3 + $0x28] sm:$0xff] %vm19502_vm12, %v14813_v13  ;;  %v6586_v19 = vmax.f32 %v6554_v22, 0.0  ;;  %7363 = vmatmul.mubr.bf16.gmra.mxu1 %v19666_v46  ;;  %v6780_v34 = vld [vmem:[#allocation3 + $0x20] sm:$0xff]  ;;  %v6325_v10 = vpop.f32.mrf.mxu0  ;;  %v6438_v21 = vpop.f32.mrf.mxu1 }
 0x34d   : > { %v19679_v53 = vcombine.high %v6743_v18, %v6780_v34  ;;  %v19681_v57 = vcombine.low %v6743_v18, %v6780_v34  ;;  %v6555_v8 = vadd.f32 %v19626_v49, %v6511_v62  ;;  %v6512_v56 = vmul.f32 %v19629_v0, %v6435_v6 }
 0x34e   : > { %v14814_v28 = vpack.c.bf16 %v6586_v19, %v6585_v38  ;;  %v6437_v50 = vadd.f32 %v6436_v30, %v6324_v58  ;;  %v6326_v25 = vadd.f32 %v6325_v10, %v6213_v55  ;;  %v6223_v10 = vadd.f32 %v19568_v9, %v19566_v29 }
 0x34f   : > { %14022 = vmatprep.mubr.msk.bf16.mxu0 %vm6986_vm13, %v19679_v53  ;;  %v6556_v42 = vadd.f32 %v19635_v52, %v6512_v56  ;;  %v6587_v18 = vmax.f32 %v6555_v8, 0.0 }
 0x350   : > { %6727 = vst.msk [vmem:[#allocation3 + $0x30] sm:$0xff] %vm19502_vm12, %v14814_v28  ;;  %7054 = vmatmul.mubr.bf16.gmra.mxu0 %v19681_v57  ;;  %v6513_v40 = vmul.f32 %v19621_v15, %v6437_v50  ;;  %v6439_v48 = vadd.f32 %v6438_v21, %v6326_v25  ;;  %v6442_v35 = vpop.f32.mrf.mxu1 }
 0x351   : > { %v6588_v16 = vmax.f32 %v6556_v42, 0.0  ;;  %v6329_v44 = vpop.f32.mrf.mxu0 }
 0x352   : > { %v6557_v24 = vadd.f32 %v19626_v49, %v6513_v40  ;;  %v6514_v13 = vmul.f32 %v19629_v0, %v6439_v48  ;;  %v6330_v19 = vadd.f32 %v6329_v44, %v19560_v2  ;;  %v6444_v62 = vpop.f32.mrf.mxu1 }
 0x353   : > { %v6745_v22 = vld [vmem:[#allocation3 + $0x28] sm:$0xff]  ;;  %v14815_v55 = vpack.c.bf16 %v6588_v16, %v6587_v18  ;;  %v6331_v54 = vpop.f32.mrf.mxu0 }
 0x354   : > { %v19694_v39 = vcombine.high %v6780_v34, %v6745_v22  ;;  %v19696_v4 = vcombine.low %v6780_v34, %v6745_v22  ;;  %v6558_v38 = vadd.f32 %v19635_v52, %v6514_v13  ;;  %v6589_v6 = vmax.f32 %v6557_v24, 0.0  ;;  %v6446_v8 = vpop.f32.mrf.mxu1  ;;  %v6748_v24 = vld [vmem:[#allocation3 + $0x70] sm:$0xff]  ;;  %v19721_v13 = vld [vmem:[#allocation3 + $0x78] sm:$0xff] }
 0x355   : > { %6728 = vst.msk [vmem:[#allocation3 + $0x38] sm:$0xff] %vm19502_vm12, %v14815_v55  ;;  %v6443_v30 = vadd.f32 %v6442_v35, %v6330_v19  ;;  %v6332_v28 = vadd.f32 %v6331_v54, %v19562_v12  ;;  %v6333_v2 = vpop.f32.mrf.mxu0 }
 0x356   : > { %14067 = vmatprep.mubr.msk.bf16.mxu1 %vm6986_vm13, %v19694_v39  ;;  %v6590_v58 = vmax.f32 %v6558_v38, 0.0  ;;  %v6334_v40 = vadd.f32 %v6333_v2, %v19564_v41  ;;  %v6448_v16 = vpop.f32.mrf.mxu1  ;;  %v14038_v38 = vcombine.high %v6748_v24, %v19721_v13 }
 0x357   : > { %7373 = vmatmul.mubr.bf16.gmra.mxu1 %v19696_v4  ;;  %v6782_v34 = vld [vmem:[#allocation3 + $0x30] sm:$0xff]  ;;  %v6515_v21 = vmul.f32 %v19621_v15, %v6443_v30  ;;  %v6445_v42 = vadd.f32 %v6444_v62, %v6332_v28  ;;  %v6335_v48 = vpop.f32.mrf.mxu0  ;;  %v19730_v28 = vld [vmem:[#allocation3 + $0x80] sm:$0xff] }
 0x358   : > { %v19708_v56 = vcombine.high %v6745_v22, %v6782_v34  ;;  %v19710_v50 = vcombine.low %v6745_v22, %v6782_v34  ;;  %v14816_v25 = vpack.c.bf16 %v6590_v58, %v6589_v6  ;;  %v6447_v9 = vadd.f32 %v6446_v8, %v6334_v40 }
 0x359   : > { %v6559_v12 = vadd.f32 %v19626_v49, %v6515_v21  ;;  %v6516_v29 = vmul.f32 %v19629_v0, %v6445_v42  ;;  %v6336_v18 = vadd.f32 %v6335_v48, %v6223_v10 }
 0x35a   : > { %14023 = vmatprep.mubr.msk.bf16.mxu0 %vm6986_vm13, %v19708_v56  ;;  %6729 = vst.msk [vmem:[#allocation3 + $0x40] sm:$0xff] %vm19502_vm12, %v14816_v25  ;;  %v6517_v22 = vmul.f32 %v19621_v15, %v6447_v9 }
 0x35b   : > { %7064 = vmatmul.mubr.bf16.gmra.mxu0 %v19710_v50  ;;  %v6560_v41 = vadd.f32 %v19635_v52, %v6516_v29  ;;  %v6449_v44 = vadd.f32 %v6448_v16, %v6336_v18  ;;  %v6591_v35 = vmax.f32 %v6559_v12, 0.0  ;;  %v6339_v6 = vpop.f32.mrf.mxu0  ;;  %v6452_v58 = vpop.f32.mrf.mxu1 }
 0x35c   : > { %v6747_v55 = vld [vmem:[#allocation3 + $0x38] sm:$0xff]  ;;  %v6561_v54 = vadd.f32 %v19626_v49, %v6517_v22  ;;  %v6340_v10 = vadd.f32 %v6339_v6, %v19570_v32  ;;  %v13994_v32 = vcombine.high %v19721_v13, %v19730_v28 }
 0x35d   : > { %v6592_v19 = vmax.f32 %v6560_v41, 0.0  ;;  %v6518_v62 = vmul.f32 %v19629_v0, %v6449_v44  ;;  %v19728_v30 = vcombine.high %v6782_v34, %v6747_v55  ;;  %v19733_v2 = vcombine.low %v6782_v34, %v6747_v55  ;;  %v6341_v21 = vpop.f32.mrf.mxu0  ;;  %v6454_v42 = vpop.f32.mrf.mxu1 }
 0x35e   : > { %v6453_v40 = vadd.f32 %v6452_v58, %v6340_v10  ;;  %v6342_v48 = vadd.f32 %v6341_v21, %v19572_v31  ;;  %v6593_v34 = vmax.f32 %v6561_v54, 0.0  ;;  %v6233_v31 = vadd.f32 %v19578_v14, %v19576_v61 }
 0x35f   : > { %v14817_v8 = vpack.c.bf16 %v6592_v19, %v6591_v35  ;;  %v6562_v25 = vadd.f32 %v19635_v52, %v6518_v62  ;;  %14068 = vmatprep.mubr.msk.bf16.mxu1 %vm6986_vm13, %v19728_v30  ;;  %v6343_v9 = vpop.f32.mrf.mxu0  ;;  %v6456_v18 = vpop.f32.mrf.mxu1  ;;  %v14037_v62 = vcombine.low %v6748_v24, %v19721_v13  ;;  %v13993_v24 = vcombine.low %v19721_v13, %v19730_v28 }
 0x360   : > { %7383 = vmatmul.mubr.bf16.gmra.mxu1 %v19733_v2  ;;  %v6519_v22 = vmul.f32 %v19621_v15, %v6453_v40  ;;  %v6455_v44 = vadd.f32 %v6454_v42, %v6342_v48  ;;  %v6344_v35 = vadd.f32 %v6343_v9, %v19574_v27 }
 0x361   : > { %v19740_v12 = vld [vmem:[#allocation3 + $0x40] sm:$0xff]  ;;  %6730 = vst.msk [vmem:[#allocation3 + $0x48] sm:$0xff] %vm19502_vm12, %v14817_v8  ;;  %v6594_v29 = vmax.f32 %v6562_v25, 0.0  ;;  %14069 = vmatprep.mubr.msk.bf16.mxu1 %vm6986_vm13, %v14038_v38  ;;  %v6345_v54 = vpop.f32.mrf.mxu0  ;;  %v6458_v61 = vpop.f32.mrf.mxu1 }
 0x362   : > { %v19747_v16 = vcombine.high %v6747_v55, %v19740_v12  ;;  %v19750_v41 = vcombine.low %v6747_v55, %v19740_v12  ;;  %v6563_v55 = vadd.f32 %v19626_v49, %v6519_v22  ;;  %v6520_v6 = vmul.f32 %v19629_v0, %v6455_v44 }
 0x363   : > { %v14818_v19 = vpack.c.bf16 %v6594_v29, %v6593_v34  ;;  %v6457_v38 = vadd.f32 %v6456_v18, %v6344_v35  ;;  %v6346_v58 = vadd.f32 %v6345_v54, %v6233_v31 }
 0x364   : > { %14024 = vmatprep.mubr.msk.bf16.mxu0 %vm6986_vm13, %v19747_v16  ;;  %v6564_v27 = vadd.f32 %v19635_v52, %v6520_v6  ;;  %v6595_v8 = vmax.f32 %v6563_v55, 0.0 }
 0x365   : > { %7074 = vmatmul.mubr.bf16.gmra.mxu0 %v19750_v41  ;;  %6731 = vst.msk [vmem:[#allocation3 + $0x50] sm:$0xff] %vm19502_vm12, %v14818_v19  ;;  %v6521_v14 = vmul.f32 %v19621_v15, %v6457_v38  ;;  %v6459_v10 = vadd.f32 %v6458_v61, %v6346_v58  ;;  %v6243_v19 = vadd.f32 %v19588_v36, %v19586_v63 }
 0x366   : > { %14025 = vmatprep.mubr.msk.bf16.mxu0 %vm6986_vm13, %v13994_v32  ;;  %v6596_v25 = vmax.f32 %v6564_v27, 0.0  ;;  %v6349_v40 = vpop.f32.mrf.mxu0  ;;  %v6462_v34 = vpop.f32.mrf.mxu1 }
 0x367   : > { %v6565_v21 = vadd.f32 %v19626_v49, %v6521_v14  ;;  %v6522_v42 = vmul.f32 %v19629_v0, %v6459_v10  ;;  %v6350_v48 = vadd.f32 %v6349_v40, %v19580_v45 }
 0x368   : > { %7393 = vmatmul.mubr.bf16.gmra.mxu1 %v14037_v62  ;;  %v14819_v32 = vpack.c.bf16 %v6596_v25, %v6595_v8  ;;  %v6351_v9 = vpop.f32.mrf.mxu0  ;;  %v6464_v22 = vpop.f32.mrf.mxu1 }
 0x369   : > { %v6566_v29 = vadd.f32 %v19635_v52, %v6522_v42  ;;  %v6463_v18 = vadd.f32 %v6462_v34, %v6350_v48  ;;  %v6352_v31 = vadd.f32 %v6351_v9, %v19582_v59  ;;  %v6597_v13 = vmax.f32 %v6565_v21, 0.0 }
 0x36a   : > { %6732 = vst.msk [vmem:[#allocation3 + $0x88] sm:$0xff] %vm19502_vm12, %v14819_v32  ;;  %v6353_v35 = vpop.f32.mrf.mxu0  ;;  %v6466_v55 = vpop.f32.mrf.mxu1 }
 0x36b   : > { %v6598_v44 = vmax.f32 %v6566_v29, 0.0  ;;  %v6523_v45 = vmul.f32 %v19621_v15, %v6463_v18  ;;  %v6465_v54 = vadd.f32 %v6464_v22, %v6352_v31  ;;  %v6354_v62 = vadd.f32 %v6353_v35, %v19584_v43 }
 0x36c   : > { %v6355_v38 = vpop.f32.mrf.mxu0  ;;  %v6468_v14 = vpop.f32.mrf.mxu1 }
 0x36d   : > { %7084 = vmatmul.mubr.bf16.gmra.mxu0 %v13993_v24  ;;  %v14820_v6 = vpack.c.bf16 %v6598_v44, %v6597_v13  ;;  %v6567_v59 = vadd.f32 %v19626_v49, %v6523_v45  ;;  %v6524_v58 = vmul.f32 %v19629_v0, %v6465_v54  ;;  %v6467_v61 = vadd.f32 %v6466_v55, %v6354_v62 }
 0x36e   : > { %v6356_v27 = vadd.f32 %v6355_v38, %v6243_v19 }
 0x36f   : > { %6733 = vst.msk [vmem:[#allocation3 + $0x90] sm:$0xff] %vm19502_vm12, %v14820_v6  ;;  %v6568_v63 = vadd.f32 %v19635_v52, %v6524_v58  ;;  %v6525_v36 = vmul.f32 %v19621_v15, %v6467_v61  ;;  %v6599_v24 = vmax.f32 %v6567_v59, 0.0 }
 0x370   : > { %v6469_v10 = vadd.f32 %v6468_v14, %v6356_v27 }
 0x371   : > { %v6600_v43 = vmax.f32 %v6568_v63, 0.0  ;;  %v6569_v8 = vadd.f32 %v19626_v49, %v6525_v36  ;;  %v6359_v21 = vpop.f32.mrf.mxu0  ;;  %v6751_v42 = vld [vmem:[#allocation3 + $0x88] sm:$0xff] }
 0x372   : > { %v6526_v25 = vmul.f32 %v19629_v0, %v6469_v10  ;;  %v6360_v40 = vadd.f32 %v6359_v21, %v19590_v7  ;;  %v6472_v48 = vpop.f32.mrf.mxu1  ;;  %v19791_v34 = vcombine.high %v19730_v28, %v6751_v42  ;;  %v19794_v32 = vcombine.low %v19730_v28, %v6751_v42 }
 0x373   : > { %v14821_v29 = vpack.c.bf16 %v6600_v43, %v6599_v24  ;;  %v6361_v18 = vpop.f32.mrf.mxu0  ;;  %v6253_v7 = vadd.f32 %v19598_v20, %v19596_v3  ;;  %v6601_v44 = vmax.f32 %v6569_v8, 0.0 }
 0x374   : > { %v6570_v9 = vadd.f32 %v19635_v52, %v6526_v25  ;;  %v6473_v31 = vadd.f32 %v6472_v48, %v6360_v40  ;;  %v6362_v22 = vadd.f32 %v6361_v18, %v19592_v11  ;;  %v6474_v13 = vpop.f32.mrf.mxu1  ;;  %14070 = vmatprep.mubr.msk.bf16.mxu1 %vm6986_vm13, %v19791_v34 }
 0x375   : > { %6734 = vst.msk [vmem:[#allocation3 + $0x98] sm:$0xff] %vm19502_vm12, %v14821_v29  ;;  %v6363_v35 = vpop.f32.mrf.mxu0  ;;  %7403 = vmatmul.mubr.bf16.gmra.mxu1 %v19794_v32 }
 0x376   : > { %v6602_v28 = vmax.f32 %v6570_v9, 0.0  ;;  %v6788_v19 = vld [vmem:[#allocation3 + $0x90] sm:$0xff]  ;;  %v6527_v45 = vmul.f32 %v19621_v15, %v6473_v31  ;;  %v6475_v54 = vadd.f32 %v6474_v13, %v6362_v22  ;;  %v6364_v11 = vadd.f32 %v6363_v35, %v19594_v51  ;;  %v6476_v62 = vpop.f32.mrf.mxu1 }
 0x377   : > { %v19807_v55 = vcombine.high %v6751_v42, %v6788_v19  ;;  %v6365_v38 = vpop.f32.mrf.mxu0  ;;  %v19809_v3 = vcombine.low %v6751_v42, %v6788_v19 }
 0x378   : > { %v14822_v6 = vpack.c.bf16 %v6602_v28, %v6601_v44  ;;  %v6571_v20 = vadd.f32 %v19626_v49, %v6527_v45  ;;  %v6528_v59 = vmul.f32 %v19629_v0, %v6475_v54  ;;  %v6477_v58 = vadd.f32 %v6476_v62, %v6364_v11  ;;  %v6478_v51 = vpop.f32.mrf.mxu1 }
 0x379   : > { %v6366_v61 = vadd.f32 %v6365_v38, %v6253_v7  ;;  %14026 = vmatprep.mubr.msk.bf16.mxu0 %vm6986_vm13, %v19807_v55 }
 0x37a   : > { %6735 = vst.msk [vmem:[#allocation3 + $0xa0] sm:$0xff] %vm19502_vm12, %v14822_v6  ;;  %7094 = vmatmul.mubr.bf16.gmra.mxu0 %v19809_v3  ;;  %v6572_v27 = vadd.f32 %v19635_v52, %v6528_v59  ;;  %v6529_v14 = vmul.f32 %v19621_v15, %v6477_v58  ;;  %v6603_v36 = vmax.f32 %v6571_v20, 0.0 }
 0x37b   : > { %v6479_v63 = vadd.f32 %v6478_v51, %v6366_v61 }
 0x37c   : > { %v6604_v10 = vmax.f32 %v6572_v27, 0.0  ;;  %v6573_v24 = vadd.f32 %v19626_v49, %v6529_v14  ;;  %v6753_v8 = vld [vmem:[#allocation3 + $0x98] sm:$0xff] }
 0x37d   : > { %v6530_v43 = vmul.f32 %v19629_v0, %v6479_v63  ;;  %v19822_v21 = vcombine.high %v6788_v19, %v6753_v8  ;;  %v19824_v42 = vcombine.low %v6788_v19, %v6753_v8  ;;  %v6263_v19 = vadd.f32 %v19608_v33, %v19606_v5 }
 0x37e   : > { %v6369_v25 = vpop.f32.mrf.mxu0  ;;  %v14823_v40 = vpack.c.bf16 %v6604_v10, %v6603_v36  ;;  %v6605_v18 = vmax.f32 %v6573_v24, 0.0 }
 0x37f   : > { %v6574_v48 = vadd.f32 %v19635_v52, %v6530_v43  ;;  %v6370_v29 = vadd.f32 %v6369_v25, %v19600_v60  ;;  %14071 = vmatprep.mubr.msk.bf16.mxu1 %vm6986_vm13, %v19822_v21 }
 0x380   : > { %v6371_v9 = vpop.f32.mrf.mxu0  ;;  %6736 = vst.msk [vmem:[#allocation3 + $0xa8] sm:$0xff] %vm19502_vm12, %v14823_v40  ;;  %v6482_v22 = vpop.f32.mrf.mxu1  ;;  %7413 = vmatmul.mubr.bf16.gmra.mxu1 %v19824_v42 }
 0x381   : > { %v6606_v31 = vmax.f32 %v6574_v48, 0.0  ;;  %v6372_v13 = vadd.f32 %v6371_v9, %v19602_v37  ;;  %v6790_v7 = vld [vmem:[#allocation3 + $0xa0] sm:$0xff]  ;;  %v6483_v44 = vadd.f32 %v6482_v22, %v6370_v29  ;;  %v15948_v9 = vld [vmem:[#allocation4 + $0x2f0] ss:$8 sps:$4 sm:$0xff]   ;;  %v15973_v22 = vld [vmem:[#allocation4 + $0x374] ss:$8 sps:$4 sm:$0xff]  }
 0x382   : > { %v6373_v28 = vpop.f32.mrf.mxu0  ;;  %v19834_v35 = vcombine.high %v6753_v8, %v6790_v7  ;;  %v19836_v60 = vcombine.low %v6753_v8, %v6790_v7  ;;  %v6484_v54 = vpop.f32.mrf.mxu1  ;;  %v15967_v29 = vld [vmem:[#allocation4 + $0x384] ss:$8 sps:$4 sm:$0xff]  }
 0x383   : > { %v14824_v45 = vpack.c.bf16 %v6606_v31, %v6605_v18  ;;  %v6374_v11 = vadd.f32 %v6373_v28, %v19604_v17  ;;  %v6531_v62 = vmul.f32 %v19621_v15, %v6483_v44  ;;  %v6485_v6 = vadd.f32 %v6484_v54, %v6372_v13  ;;  %v15953_v18 = vld [vmem:[#allocation4 + $0x2e4] ss:$8 sps:$4 sm:$0xff]   ;;  %v15965_v31 = vld [vmem:[#allocation4 + $0x380] ss:$8 sps:$4 sm:$0xff]   ;;  %v19890_v28 = vld [vmem:[#allocation3 + $0x50] sm:$0xff] }
 0x384   : > { %v6375_v37 = vpop.f32.mrf.mxu0  ;;  %14027 = vmatprep.mubr.msk.bf16.mxu0 %vm6986_vm13, %v19834_v35  ;;  %v6486_v38 = vpop.f32.mrf.mxu1  ;;  %v15979_v13 = vld [vmem:[#allocation4 + $0x364] ss:$8 sps:$4 sm:$0xff]   ;;  %v15977_v44 = vld [vmem:[#allocation4 + $0x360] ss:$8 sps:$4 sm:$0xff]  }
 0x385   : > { %6737 = vst.msk [vmem:[#allocation3 + $0xb0] sm:$0xff] %vm19502_vm12, %v14824_v45  ;;  %v6376_v20 = vadd.f32 %v6375_v37, %v6263_v19  ;;  %7104 = vmatmul.mubr.bf16.gmra.mxu0 %v19836_v60  ;;  %v6575_v5 = vadd.f32 %v19626_v49, %v6531_v62  ;;  %v6532_v33 = vmul.f32 %v19629_v0, %v6485_v6  ;;  %v15959_v19 = vld [vmem:[#allocation4 + $0x2c0] ss:$8 sps:$4 sm:$0xff]   ;;  %v15980_v62 = vld [vmem:[#allocation4 + $0x350] ss:$8 sps:$4 sm:$0xff]  }
 0x386   : > { %v6487_v59 = vadd.f32 %v6486_v38, %v6374_v11  ;;  %v6488_v17 = vpop.f32.mrf.mxu1  ;;  %v19894_v54 = vld [vmem:[#allocation3 + $0x48] sm:$0xff]  ;;  %v15970_v11 = vld [vmem:[#allocation4 + $0x2b4] ss:$8 sps:$4 sm:$0xff]  }
 0x387   : > { %v6576_v58 = vadd.f32 %v19635_v52, %v6532_v33  ;;  %v6489_v51 = vadd.f32 %v6488_v17, %v6376_v20  ;;  %v6755_v27 = vld [vmem:[#allocation3 + $0xa8] sm:$0xff]  ;;  %v6607_v36 = vmax.f32 %v6575_v5, 0.0  ;;  %v19898_v37 = vcombine.high %v19894_v54, %v19890_v28  ;;  %v15968_v33 = vld [vmem:[#allocation4 + $0x2b0] ss:$8 sps:$4 sm:$0xff]  }
 0x388   : > { %v6533_v61 = vmul.f32 %v19621_v15, %v6487_v59  ;;  %v19851_v14 = vcombine.high %v6790_v7, %v6755_v27  ;;  %v19853_v63 = vcombine.low %v6790_v7, %v6755_v27  ;;  %v15955_v7 = vld [vmem:[#allocation4 + $0x2d0] ss:$8 sps:$4 sm:$0xff]   ;;  %v15976_v17 = vld [vmem:[#allocation4 + $0x2a4] ss:$8 sps:$4 sm:$0xff]  }
 0x389   : > { %v6608_v10 = vmax.f32 %v6576_v58, 0.0  ;;  %v6534_v43 = vmul.f32 %v19629_v0, %v6489_v51  ;;  %v15986_v58 = vld [vmem:[#allocation4 + $0x340] ss:$8 sps:$4 sm:$0xff]  }
 0x38a   : > { %v6577_v24 = vadd.f32 %v19626_v49, %v6533_v61  ;;  %14072 = vmatprep.mubr.msk.bf16.mxu1 %vm6986_vm13, %v19851_v14 }
 0x38b   : > { %v14825_v8 = vpack.c.bf16 %v6608_v10, %v6607_v36  ;;  %v6578_v25 = vadd.f32 %v19635_v52, %v6534_v43  ;;  %7423 = vmatmul.mubr.bf16.gmra.mxu1 %v19853_v63  ;;  %v15991_v36 = vld [vmem:[#allocation4 + $0x334] ss:$8 sps:$4 sm:$0xff]   ;;  %v19918_v43 = vcombine.low %v19894_v54, %v19890_v28 }
 0x38c   : > { %v19861_v15 = vld [vmem:[#allocation3 + $0xb0] sm:$0xff]  ;;  %14153 = vmatprep.mubr.msk.bf16.mxu1 %vm6986_vm13, %v19679_v53  ;;  %v6609_v0 = vmax.f32 %v6577_v24, 0.0  ;;  %v15974_v24 = vld [vmem:[#allocation4 + $0x2a0] ss:$8 sps:$4 sm:$0xff]  }
 0x38d   : > { %v19866_v40 = vcombine.high %v6755_v27, %v19861_v15  ;;  %v19869_v49 = vcombine.low %v6755_v27, %v19861_v15  ;;  %6738 = vst.msk [vmem:[#allocation3 + $0xb8] sm:$0xff] %vm19502_vm12, %v14825_v8  ;;  %v6610_v48 = vmax.f32 %v6578_v25, 0.0  ;;  %v15962_v53 = vld [vmem:[#allocation4 + $0x390] ss:$8 sps:$4 sm:$0xff]   ;;  %v19909_v27 = vcombine.high %v19740_v12, %v19894_v54  ;;  %v15985_v8 = vld [vmem:[#allocation4 + $0x294] ss:$8 sps:$4 sm:$0xff]  }
 0x38e   : > { %v15989_v25 = vld [vmem:[#allocation4 + $0x330] ss:$8 sps:$4 sm:$0xff]  }
 0x38f   : > { %14028 = vmatprep.mubr.msk.bf16.mxu0 %vm6986_vm13, %v19866_v40  ;;  %v14826_v52 = vpack.c.bf16 %v6610_v48, %v6609_v0  ;;  %v15998_v0 = vld [vmem:[#allocation4 + $0x324] ss:$8 sps:$4 sm:$0xff]   ;;  %v15983_v48 = vld [vmem:[#allocation4 + $0x290] ss:$8 sps:$4 sm:$0xff]  }
 0x390   : > { %7114 = vmatmul.mubr.bf16.gmra.mxu0 %v19869_v49  ;;  %v7354_v6 = vpop.f32.mrf.mxu1 }
 0x391   : > { %14109 = vmatprep.mubr.msk.bf16.mxu0 %vm6986_vm13, %v19663_v47  ;;  %6739 = vst.msk [vmem:[#allocation3 + $0xc0] sm:$0xff] %vm19502_vm12, %v14826_v52  ;;  %v15957_v47 = vld [vmem:[#allocation4 + $0x2d4] ss:$8 sps:$4 sm:$0xff]   ;;  %v7045_v45 = vpop.f32.mrf.mxu0  ;;  %v19925_v52 = vcombine.low %v19740_v12, %v19894_v54  ;;  %v16010_v12 = vld [vmem:[#allocation4 + $0x3a4] ss:$8 sps:$4 sm:$0xff]  }
 0x392   : > { %v19900_v38 = vadd.f32 %v7354_v6, %v7045_v45  ;;  %v7356_v5 = vpop.f32.mrf.mxu1  ;;  %v16011_v45 = vld [vmem:[#allocation3 + $0x20] ss:$8 sps:$4 sm:$0xff]   ;;  %v8198_v6 = vld [vmem:[#allocation3 + $0x58] sm:$0xff] }
 0x393   : > { %8078 = vmatmul.mubr.bf16.vlgmr.msra.gmra.mxu1 %v19681_v57  ;;  %v15971_v57 = vld [vmem:[#allocation4 + $0x370] ss:$8 sps:$4 sm:$0xff]   ;;  %v7047_v20 = vpop.f32.mrf.mxu0 }
 0x394   : > { %14154 = vmatprep.mubr.msk.bf16.mxu1 %vm6986_vm13, %v19708_v56  ;;  %8804 = vmatpush1.bf16.msra.mxu1 %v15962_v53  ;;  %v19905_v59 = vadd.f32 %v7356_v5, %v7047_v20  ;;  %v7358_v51 = vpop.f32.mrf.mxu1  ;;  %v15995_v53 = vld [vmem:[#allocation4 + $0x284] ss:$8 sps:$4 sm:$0xff]  }
 0x395   : > { %8805 = vmatprep.subr.bf16.mxu1 %v15967_v29  ;;  %v7049_v61 = vpop.f32.mrf.mxu0  ;;  %v15996_v29 = vld [vmem:[#allocation4 + $0x320] ss:$8 sps:$4 sm:$0xff]   ;;  %v16038_v20 = vld [vmem:[#allocation4 + $0x3e4] ss:$8 sps:$4 sm:$0xff]  }
 0x396   : > { %v19911_v10 = vadd.f32 %v7358_v51, %v7049_v61  ;;  %v19993_v61 = vcombine.low %v19890_v28, %v8198_v6  ;;  %v16044_v51 = vld [vmem:[#allocation4 + $0x3c4] ss:$8 sps:$4 sm:$0xff]  }
 0x398   : > { %7700 = vmatmul.mubr.bf16.vlgmr.msra.gmra.mxu0 %v19666_v46  ;;  %8806 = vmatpush1.bf16.msra.mxu1 %v15965_v31  ;;  %v15961_v46 = vld [vmem:[#allocation4 + $0x2c4] ss:$8 sps:$4 sm:$0xff]   ;;  %v16004_v31 = vld [vmem:[#allocation4 + $0x3b0] ss:$8 sps:$4 sm:$0xff]  }
 0x399   : > { %14110 = vmatprep.mubr.msk.bf16.mxu0 %vm6986_vm13, %v19694_v39  ;;  %8425 = vmatpush1.bf16.msra.mxu0 %v15948_v9  ;;  %v15982_v39 = vld [vmem:[#allocation4 + $0x354] ss:$8 sps:$4 sm:$0xff]  }
 0x39a   : > { %8426 = vmatprep.subr.bf16.mxu0 %v15953_v18  ;;  %8807 = vmatprep.subr.bf16.mxu1 %v15973_v22  ;;  %v16006_v9 = vld [vmem:[#allocation4 + $0x3b4] ss:$8 sps:$4 sm:$0xff]   ;;  %v15993_v18 = vld [vmem:[#allocation4 + $0x280] ss:$8 sps:$4 sm:$0xff]   ;;  %v16001_v22 = vld [vmem:[#allocation4 + $0x310] ss:$8 sps:$4 sm:$0xff]  }
 0x39b   : > { %8088 = vmatmul.mubr.bf16.gmra.mxu1 %v19710_v50 }
 0x39c   : > { %14155 = vmatprep.mubr.msk.bf16.mxu1 %vm6986_vm13, %v19747_v16  ;;  %8808 = vmatpush1.bf16.msra.mxu1 %v15971_v57  ;;  %v19940_v57 = vld [vmem:[#allocation3 + $0xc0] sm:$0xff] }
 0x39d   : > { %8427 = vmatpush1.bf16.msra.mxu0 %v15951_v1  ;;  %8809 = vmatprep.subr.bf16.mxu1 %v15979_v13  ;;  %v16008_v1 = vld [vmem:[#allocation4 + $0x3a0] ss:$8 sps:$4 sm:$0xff]  }
 0x39e   : > { %8428 = vmatprep.subr.bf16.mxu0 %v15957_v47  ;;  %v16016_v47 = vld [vmem:[#allocation4 + $0x304] ss:$8 sps:$4 sm:$0xff]  }
 0x3a0   : > { %7710 = vmatmul.mubr.bf16.gmra.mxu0 %v19696_v4  ;;  %8810 = vmatpush1.bf16.msra.mxu1 %v15977_v44  ;;  %v15988_v4 = vld [vmem:[#allocation4 + $0x344] ss:$8 sps:$4 sm:$0xff]  }
 0x3a1   : > { %14111 = vmatprep.mubr.msk.bf16.mxu0 %vm6986_vm13, %v19728_v30  ;;  %8429 = vmatpush1.bf16.msra.mxu0 %v15955_v7 }
 0x3a2   : > { %8430 = vmatprep.subr.bf16.mxu0 %v15961_v46  ;;  %8811 = vmatprep.subr.bf16.mxu1 %v15982_v39  ;;  %v16013_v39 = vld [vmem:[#allocation3 + $0x24] ss:$8 sps:$4 sm:$0xff]  }
 0x3a3   : > { %8098 = vmatmul.mubr.bf16.gmra.mxu1 %v19750_v41 }
 0x3a4   : > { %14156 = vmatprep.mubr.msk.bf16.mxu1 %vm6986_vm13, %v19898_v37  ;;  %8812 = vmatpush1.bf16.msra.mxu1 %v15980_v62  ;;  %v16031_v62 = vld [vmem:[#allocation4 + $0x404] ss:$8 sps:$4 sm:$0xff]  }
 0x3a5   : > { %8431 = vmatpush1.bf16.msra.mxu0 %v15959_v19  ;;  %8813 = vmatprep.subr.bf16.mxu1 %v15988_v4  ;;  %v16017_v19 = vld [vmem:[#allocation4 + $0x430] ss:$8 sps:$4 sm:$0xff]   ;;  %v16029_v4 = vld [vmem:[#allocation4 + $0x400] ss:$8 sps:$4 sm:$0xff]  }
 0x3a6   : > { %8432 = vmatprep.subr.bf16.mxu0 %v15970_v11  ;;  %v16022_v11 = vld [vmem:[#allocation4 + $0x424] ss:$8 sps:$4 sm:$0xff]  }
 0x3a8   : > { %7720 = vmatmul.mubr.bf16.gmra.mxu0 %v19733_v2  ;;  %8814 = vmatpush1.bf16.msra.mxu1 %v15986_v58  ;;  %v16039_v58 = vld [vmem:[#allocation4 + $0x3d0] ss:$8 sps:$4 sm:$0xff]  }
 0x3a9   : > { %14112 = vmatprep.mubr.msk.bf16.mxu0 %vm6986_vm13, %v19909_v27  ;;  %8433 = vmatpush1.bf16.msra.mxu0 %v15968_v33  ;;  %v16036_v33 = vld [vmem:[#allocation4 + $0x3e0] ss:$8 sps:$4 sm:$0xff]  }
 0x3aa   : > { %8434 = vmatprep.subr.bf16.mxu0 %v15976_v17  ;;  %8815 = vmatprep.subr.bf16.mxu1 %v15991_v36  ;;  %v16041_v17 = vld [vmem:[#allocation4 + $0x3d4] ss:$8 sps:$4 sm:$0xff]  }
 0x3ab   : > { %8108 = vmatmul.mubr.bf16.gmra.mxu1 %v19918_v43  ;;  %v16048_v36 = vld [vmem:[#allocation4 + $0x454] ss:$8 sps:$4 sm:$0xff]  }
 0x3ac   : > { %14157 = vmatprep.mubr.msk.bf16.mxu1 %vm6986_vm13, %v19807_v55  ;;  %8816 = vmatpush1.bf16.msra.mxu1 %v15989_v25  ;;  %v16003_v55 = vld [vmem:[#allocation4 + $0x314] ss:$8 sps:$4 sm:$0xff]   ;;  %v20024_v25 = vpop.f32.mrf.mxu0 }
 0x3ad   : > { %8435 = vmatpush1.bf16.msra.mxu0 %v15974_v24  ;;  %8817 = vmatprep.subr.bf16.mxu1 %v15998_v0  ;;  %v20018_v24 = vpop.f32.mrf.mxu1 }
 0x3ae   : > { %8436 = vmatprep.subr.bf16.mxu0 %v15985_v8 }
 0x3b0   : > { %7730 = vmatmul.mubr.bf16.gmra.mxu0 %v19925_v52  ;;  %8818 = vmatpush1.bf16.msra.mxu1 %v15996_v29 }
 0x3b1   : > { %14113 = vmatprep.mubr.msk.bf16.mxu0 %vm6986_vm13, %v19791_v34  ;;  %8437 = vmatpush1.bf16.msra.mxu0 %v15983_v48  ;;  %v16014_v34 = vld [vmem:[#allocation4 + $0x300] ss:$8 sps:$4 sm:$0xff]  }
 0x3b2   : > { %8438 = vmatprep.subr.bf16.mxu0 %v15995_v53  ;;  %8831 = vmatprep.subr.bf16.mxu1 %v16006_v9  ;;  %v16053_v9 = vld [vmem:[#allocation3 + $0x34] ss:$8 sps:$4 sm:$0xff]  }
 0x3b3   : > { %8118 = vmatmul.mubr.bf16.gmra.mxu1 %v19809_v3  ;;  %v16019_v3 = vld [vmem:[#allocation4 + $0x434] ss:$8 sps:$4 sm:$0xff]  }
 0x3b4   : > { %14158 = vmatprep.mubr.msk.bf16.mxu1 %vm6986_vm13, %v19834_v35  ;;  %8832 = vmatpush2.bf16.msra.mxu1 %v16004_v31 }
 0x3b5   : > { %8439 = vmatpush1.bf16.msra.mxu0 %v15993_v18  ;;  %8833 = vmatprep.subr.bf16.mxu1 %v16010_v12 }
 0x3b6   : > { %8452 = vmatprep.subr.bf16.mxu0 %v16003_v55 }
 0x3b8   : > { %7740 = vmatmul.mubr.bf16.gmra.mxu0 %v19794_v32  ;;  %8834 = vmatpush2.bf16.msra.mxu1 %v16008_v1  ;;  %v7826_v32 = vld [vmem:[#allocation3 + $0xb8] sm:$0xff] }
 0x3b9   : > { %14114 = vmatprep.mubr.msk.bf16.mxu0 %vm6986_vm13, %v19822_v21  ;;  %8453 = vmatpush2.bf16.msra.mxu0 %v16001_v22  ;;  %v19945_v13 = vcombine.high %v7826_v32, %v19940_v57  ;;  %v19951_v7 = vcombine.high %v19861_v15, %v7826_v32  ;;  %v19957_v46 = vcombine.low %v7826_v32, %v19940_v57 }
 0x3ba   : > { %8454 = vmatprep.subr.bf16.mxu0 %v16016_v47  ;;  %v19963_v44 = vcombine.low %v19861_v15, %v7826_v32  ;;  %v16025_v15 = vld [vmem:[#allocation4 + $0x414] ss:$8 sps:$4 sm:$0xff]  }
 0x3bb   : > { %8128 = vmatmul.mubr.bf16.gmra.mxu1 %v19836_v60 }
 0x3bc   : > { %14159 = vmatprep.mubr.msk.bf16.mxu1 %vm6986_vm13, %v19866_v40 }
 0x3bd   : > { %8455 = vmatpush2.bf16.msra.mxu0 %v16014_v34  ;;  %v16051_v34 = vld [vmem:[#allocation3 + $0x30] ss:$8 sps:$4 sm:$0xff]  }
 0x3be   : > { %9182 = vmatprep.subr.bf16.mxu0 %v16019_v3  ;;  %v8951_v3 = vld [vmem:[#allocation3 + $0x40] sm:$0xff] }
 0x3bf   : > { %v14252_v32 = vcombine.high %v8951_v3, %v19894_v54 }
 0x3c0   : > { %7750 = vmatmul.mubr.bf16.gmra.mxu0 %v19824_v42 }
 0x3c1   : > { %14115 = vmatprep.mubr.msk.bf16.mxu0 %vm6986_vm13, %v19851_v14 }
 0x3c3   : > { %8138 = vmatmul.mubr.bf16.gmra.mxu1 %v19869_v49 }
 0x3c4   : > { %14160 = vmatprep.mubr.msk.bf16.mxu1 %vm6986_vm13, %v19945_v13 }
 0x3c8   : > { %7760 = vmatmul.mubr.bf16.gmra.mxu0 %v19853_v63 }
 0x3c9   : > { %14116 = vmatprep.mubr.msk.bf16.mxu0 %vm6986_vm13, %v19951_v7 }
 0x3cb   : > { %8148 = vmatmul.mubr.bf16.gmra.mxu1 %v19957_v46 }
 0x3cc   : > { %14241 = vmatprep.mubr.msk.bf16.mxu1 %vm6986_vm13, %v19708_v56  ;;  %v16020_v56 = vld [vmem:[#allocation4 + $0x420] ss:$8 sps:$4 sm:$0xff]  }
 0x3d0   : > { %7770 = vmatmul.mubr.bf16.gmra.mxu0 %v19963_v44 }
 0x3d1   : > { %14197 = vmatprep.mubr.msk.bf16.mxu0 %vm6986_vm13, %v16013_v39 }
 0x3d3   : > { %8836 = vmatmul.mubr.bf16.vlgmr.msra.gmra.mxu1 %v19710_v50  ;;  %v16023_v50 = vld [vmem:[#allocation4 + $0x410] ss:$8 sps:$4 sm:$0xff]  }
 0x3d4   : > { %14242 = vmatprep.mubr.msk.bf16.mxu1 %vm6986_vm13, %v19747_v16  ;;  %v19975_v16 = vld [vmem:[#allocation3 + $0x60] sm:$0xff] }
 0x3d5   : > { %v14211_v5 = vcombine.low %v8198_v6, %v19975_v16 }
 0x3d8   : > { %8457 = vmatmul.mubr.bf16.vlgmr.msra.gmra.mxu0 %v16011_v45 }
 0x3d9   : > { %14198 = vmatprep.mubr.msk.bf16.mxu0 %vm6986_vm13, %v19728_v30  ;;  %9183 = vmatpush1.bf16.msra.mxu0 %v16017_v19  ;;  %v14212_v30 = vcombine.high %v8198_v6, %v19975_v16 }
 0x3da   : > { %9184 = vmatprep.subr.bf16.mxu0 %v16022_v11 }
 0x3db   : > { %8846 = vmatmul.mubr.bf16.gmra.mxu1 %v19750_v41  ;;  %v16035_v41 = vld [vmem:[#allocation4 + $0x3f4] ss:$8 sps:$4 sm:$0xff]  }
 0x3dc   : > { %14243 = vmatprep.mubr.msk.bf16.mxu1 %vm6986_vm13, %v19898_v37  ;;  %v16033_v37 = vld [vmem:[#allocation4 + $0x3f0] ss:$8 sps:$4 sm:$0xff]  }
 0x3dd   : > { %9185 = vmatpush1.bf16.msra.mxu0 %v16020_v56 }
 0x3de   : > { %9186 = vmatprep.subr.bf16.mxu0 %v16025_v15 }
 0x3e0   : > { %8467 = vmatmul.mubr.bf16.gmra.mxu0 %v19733_v2  ;;  %v19984_v2 = vcombine.high %v19890_v28, %v8198_v6  ;;  %v16057_v28 = vld [vmem:[#allocation4 + $0x444] ss:$8 sps:$4 sm:$0xff]  }
 0x3e1   : > { %14199 = vmatprep.mubr.msk.bf16.mxu0 %vm6986_vm13, %v19909_v27  ;;  %9187 = vmatpush1.bf16.msra.mxu0 %v16023_v50  ;;  %v16042_v27 = vld [vmem:[#allocation4 + $0x3c0] ss:$8 sps:$4 sm:$0xff]   ;;  %v14251_v50 = vcombine.low %v8951_v3, %v19894_v54  ;;  %v16078_v3 = vld [vmem:[%s23154_s10 + $0x4cc] ss:$36 sps:$4 sm:$0xff]  }
 0x3e2   : > { %9188 = vmatprep.subr.bf16.mxu0 %v16031_v62 }
 0x3e3   : > { %8856 = vmatmul.mubr.bf16.gmra.mxu1 %v19918_v43 }
 0x3e4   : > { %14244 = vmatprep.mubr.msk.bf16.mxu1 %vm6986_vm13, %v14212_v30 }
 0x3e5   : > { %9189 = vmatpush1.bf16.msra.mxu0 %v16029_v4  ;;  %v8956_v4 = vld [vmem:[#allocation3 + $0x68] sm:$0xff] }
 0x3e6   : > { %9190 = vmatprep.subr.bf16.mxu0 %v16035_v41 }
 0x3e8   : > { %8477 = vmatmul.mubr.bf16.gmra.mxu0 %v19925_v52 }
 0x3e9   : > { %14200 = vmatprep.mubr.msk.bf16.mxu0 %vm6986_vm13, %v19984_v2  ;;  %9191 = vmatpush1.bf16.msra.mxu0 %v16033_v37 }
 0x3ea   : > { %9192 = vmatprep.subr.bf16.mxu0 %v16038_v20 }
 0x3eb   : > { %8866 = vmatmul.mubr.bf16.gmra.mxu1 %v14211_v5  ;;  %v14256_v5 = vcombine.high %v19975_v16, %v8956_v4 }
 0x3ec   : > { %14245 = vmatprep.mubr.msk.bf16.mxu1 %vm6986_vm13, %v19834_v35  ;;  %v16046_v35 = vld [vmem:[#allocation4 + $0x450] ss:$8 sps:$4 sm:$0xff]  }
 0x3ed   : > { %9193 = vmatpush1.bf16.msra.mxu0 %v16036_v33 }
 0x3ee   : > { %9194 = vmatprep.subr.bf16.mxu0 %v16041_v17 }
 0x3f0   : > { %8487 = vmatmul.mubr.bf16.gmra.mxu0 %v19993_v61 }
 0x3f1   : > { %14201 = vmatprep.mubr.msk.bf16.mxu0 %vm6986_vm13, %v19822_v21  ;;  %9195 = vmatpush1.bf16.msra.mxu0 %v16039_v58  ;;  %v16055_v21 = vld [vmem:[#allocation4 + $0x440] ss:$8 sps:$4 sm:$0xff]  }
 0x3f2   : > { %9196 = vmatprep.subr.bf16.mxu0 %v16044_v51 }
 0x3f3   : > { %8876 = vmatmul.mubr.bf16.gmra.mxu1 %v19836_v60  ;;  %v20007_v60 = vld [vmem:[#allocation3 + $0xd0] sm:$0xff] }
 0x3f4   : > { %14246 = vmatprep.mubr.msk.bf16.mxu1 %vm6986_vm13, %v19866_v40  ;;  %v8206_v40 = vld [vmem:[#allocation3 + $0xc8] sm:$0xff] }
 0x3f5   : > { %9197 = vmatpush1.bf16.msra.mxu0 %v16042_v27  ;;  %v14219_v43 = vcombine.low %v8206_v40, %v20007_v60  ;;  %v20027_v53 = vcombine.low %v19940_v57, %v8206_v40 }
 0x3f6   : > { %9210 = vmatprep.subr.bf16.mxu0 %v16048_v36 }
 0x3f8   : > { %8497 = vmatmul.mubr.bf16.gmra.mxu0 %v19824_v42  ;;  %v14220_v42 = vcombine.high %v8206_v40, %v20007_v60 }
 0x3f9   : > { %14202 = vmatprep.mubr.msk.bf16.mxu0 %vm6986_vm13, %v19851_v14  ;;  %9211 = vmatpush2.bf16.msra.mxu0 %v16046_v35 }
 0x3fa   : > { %9212 = vmatprep.subr.bf16.mxu0 %v16057_v28  ;;  %v16064_v28 = vld [vmem:[%s23154_s10 + $0x558] ss:$36 sps:$4 sm:$0xff]  }
 0x3fb   : > { %8886 = vmatmul.mubr.bf16.gmra.mxu1 %v19869_v49  ;;  %v20016_v49 = vcombine.high %v19940_v57, %v8206_v40  ;;  %v14255_v40 = vcombine.low %v19975_v16, %v8956_v4  ;;  %v16084_v4 = vld [vmem:[%s23154_s10 + $0x484] ss:$36 sps:$4 sm:$0xff]  }
 0x3fc   : > { %14247 = vmatprep.mubr.msk.bf16.mxu1 %vm6986_vm13, %v19945_v13 }
 0x3fd   : > { %9213 = vmatpush2.bf16.msra.mxu0 %v16055_v21  ;;  %v16066_v21 = vld [vmem:[%s23154_s10 + $0x55c] ss:$36 sps:$4 sm:$0xff]  }
 0x3fe   : > { %10296 = vmatprep.subr.bf16.mxu1 %v16066_v21  ;;  %v8964_v21 = vld [vmem:[#allocation3 + $0xd8] sm:$0xff] }
 0x3ff   : > { %10297 = vmatpush1.bf16.msra.mxu1 %v16064_v28  ;;  %v16090_v28 = vld [vmem:[%s23154_s10 + $0x43c] ss:$36 sps:$4 sm:$0xff]  }
 0x400   : > { %8507 = vmatmul.mubr.bf16.gmra.mxu0 %v19853_v63 }
 0x401   : > { %14203 = vmatprep.mubr.msk.bf16.mxu0 %vm6986_vm13, %v19951_v7 }
 0x403   : > { %8896 = vmatmul.mubr.bf16.gmra.mxu1 %v19957_v46 }
 0x404   : > { %14248 = vmatprep.mubr.msk.bf16.mxu1 %vm6986_vm13, %v14220_v42 }
 0x408   : > { %8517 = vmatmul.mubr.bf16.gmra.mxu0 %v19963_v44 }
 0x409   : > { %14204 = vmatprep.mubr.msk.bf16.mxu0 %vm6986_vm13, %v20016_v49 }
 0x40b   : > { %8906 = vmatmul.mubr.bf16.gmra.mxu1 %v14219_v43  ;;  %v16067_v43 = vld [vmem:[%s23154_s10 + $0x560] ss:$36 sps:$4 sm:$0xff]  }
 0x40c   : > { %v7364_v8 = vpop.f32.mrf.mxu1 }
 0x40e   : > { %v7366_v0 = vpop.f32.mrf.mxu1 }
 0x410   : > { %v7055_v48 = vpop.f32.mrf.mxu0  ;;  %v7368_v52 = vpop.f32.mrf.mxu1  ;;  %8527 = vmatmul.mubr.bf16.gmra.mxu0 %v20027_v53 }
 0x411   : > { %v20029_v29 = vadd.f32 %v7364_v8, %v7055_v48  ;;  %14285 = vmatprep.mubr.msk.bf16.mxu0 %vm6986_vm13, %v16053_v9  ;;  %v16069_v8 = vld [vmem:[%s23154_s10 + $0x564] ss:$36 sps:$4 sm:$0xff]   ;;  %v16070_v9 = vld [vmem:[%s23154_s10 + $0x510] ss:$36 sps:$4 sm:$0xff]  }
 0x412   : > { %v7057_v18 = vpop.f32.mrf.mxu0  ;;  %v20034_v31 = vpop.f32.mrf.mxu1  ;;  %10409 = vmatprep.subr.bf16.mxu0 %v16069_v8  ;;  %v14264_v8 = vcombine.high %v20007_v60, %v8964_v21 }
 0x413   : > { %v20032_v55 = vadd.f32 %v7366_v0, %v7057_v18  ;;  %v16072_v18 = vld [vmem:[%s23154_s10 + $0x514] ss:$36 sps:$4 sm:$0xff]  }
 0x414   : > { %v7059_v12 = vpop.f32.mrf.mxu0  ;;  %10298 = vmatprep.subr.bf16.mxu1 %v16072_v18 }
 0x415   : > { %v20037_v22 = vadd.f32 %v7368_v52, %v7059_v12  ;;  %10299 = vmatpush1.bf16.msra.mxu1 %v16070_v9 }
 0x416   : > { %v20039_v47 = vpop.f32.mrf.mxu0  ;;  %10300 = vmatprep.subr.bf16.mxu1 %v16078_v3 }
 0x417   : > { %v7374_v1 = vpop.f32.mrf.mxu1 }
 0x418   : > { %9215 = vmatmul.mubr.bf16.vlgmr.msra.gmra.mxu0 %v16051_v34  ;;  %v16076_v34 = vld [vmem:[%s23154_s10 + $0x4c8] ss:$36 sps:$4 sm:$0xff]  }
 0x419   : > { %v7376_v57 = vpop.f32.mrf.mxu1  ;;  %14286 = vmatprep.mubr.msk.bf16.mxu0 %vm6986_vm13, %v14252_v32  ;;  %10410 = vmatpush1.bf16.msra.mxu0 %v16067_v43 }
 0x41a   : > { %10301 = vmatpush1.bf16.msra.mxu1 %v16076_v34 }
 0x41b   : > { %v7065_v13 = vpop.f32.mrf.mxu0  ;;  %v7378_v46 = vpop.f32.mrf.mxu1  ;;  %10302 = vmatprep.subr.bf16.mxu1 %v16084_v4  ;;  %v16105_v4 = vld [vmem:[%s23154_s10 + $0x3b4] ss:$36 sps:$4 sm:$0xff]  }
 0x41c   : > { %v20043_v39 = vadd.f32 %v7374_v1, %v7065_v13  ;;  %v16073_v1 = vld [vmem:[%s23154_s10 + $0x518] ss:$36 sps:$4 sm:$0xff]   ;;  %v16079_v13 = vld [vmem:[%s23154_s10 + $0x4d0] ss:$36 sps:$4 sm:$0xff]  }
 0x41d   : > { %v7067_v19 = vpop.f32.mrf.mxu0  ;;  %v20047_v11 = vpop.f32.mrf.mxu1 }
 0x41e   : > { %v20045_v45 = vadd.f32 %v7376_v57, %v7067_v19 }
 0x41f   : > { %v7069_v56 = vpop.f32.mrf.mxu0 }
 0x420   : > { %v20049_v15 = vadd.f32 %v7378_v46, %v7069_v56  ;;  %v7384_v62 = vpop.f32.mrf.mxu1  ;;  %9225 = vmatmul.mubr.bf16.gmra.mxu0 %v14251_v50  ;;  %v16081_v46 = vld [vmem:[%s23154_s10 + $0x4d4] ss:$36 sps:$4 sm:$0xff]  }
 0x421   : > { %v20052_v6 = vpop.f32.mrf.mxu0  ;;  %14287 = vmatprep.mubr.msk.bf16.mxu0 %vm6986_vm13, %v19984_v2 }
 0x422   : > { %v7386_v30 = vpop.f32.mrf.mxu1 }
 0x424   : > { %v7388_v37 = vpop.f32.mrf.mxu1 }
 0x425   : > { %v7075_v41 = vpop.f32.mrf.mxu0 }
 0x426   : > { %v20056_v20 = vadd.f32 %v7384_v62, %v7075_v41  ;;  %v20059_v17 = vpop.f32.mrf.mxu1 }
 0x427   : > { %v7077_v33 = vpop.f32.mrf.mxu0 }
 0x428   : > { %v20061_v58 = vadd.f32 %v7386_v30, %v7077_v33  ;;  %v7394_v51 = vpop.f32.mrf.mxu1  ;;  %9235 = vmatmul.mubr.bf16.gmra.mxu0 %v19993_v61  ;;  %v16082_v30 = vld [vmem:[%s23154_s10 + $0x480] ss:$36 sps:$4 sm:$0xff]  }
 0x429   : > { %v7079_v54 = vpop.f32.mrf.mxu0  ;;  %14288 = vmatprep.mubr.msk.bf16.mxu0 %vm6986_vm13, %v14256_v5  ;;  %v16087_v5 = vld [vmem:[%s23154_s10 + $0x48c] ss:$36 sps:$4 sm:$0xff]   ;;  %10303 = vmatpush1.bf16.msra.mxu1 %v16082_v30 }
 0x42a   : > { %v20064_v27 = vadd.f32 %v7388_v37, %v7079_v54  ;;  %v7396_v36 = vpop.f32.mrf.mxu1  ;;  %10304 = vmatprep.subr.bf16.mxu1 %v16090_v28  ;;  %v16103_v30 = vld [vmem:[%s23154_s10 + $0x3b0] ss:$36 sps:$4 sm:$0xff]  }
 0x42b   : > { %v20067_v2 = vpop.f32.mrf.mxu0 }
 0x42c   : > { %v7398_v0 = vpop.f32.mrf.mxu1 }
 0x42d   : > { %v7085_v35 = vpop.f32.mrf.mxu0 }
 0x42e   : > { %v20076_v42 = vadd.f32 %v7394_v51, %v7085_v35  ;;  %v20096_v12 = vpop.f32.mrf.mxu1  ;;  %v16088_v35 = vld [vmem:[%s23154_s10 + $0x438] ss:$36 sps:$4 sm:$0xff]  }
 0x42f   : > { %v7087_v61 = vpop.f32.mrf.mxu0  ;;  %23399 = vst [vmem:[#allocation23_spill] sm:$0xff] %v20096_v12  ;;  %10305 = vmatpush1.bf16.msra.mxu1 %v16088_v35 }
 0x430   : > { %v20084_v48 = vadd.f32 %v7396_v36, %v7087_v61  ;;  %9245 = vmatmul.mubr.bf16.gmra.mxu0 %v14255_v40 }
 0x431   : > { %v7089_v52 = vpop.f32.mrf.mxu0  ;;  %14289 = vmatprep.mubr.msk.bf16.mxu0 %vm6986_vm13, %v19851_v14  ;;  %v16075_v14 = vld [vmem:[%s23154_s10 + $0x51c] ss:$36 sps:$4 sm:$0xff]  }
 0x432   : > { %v20086_v16 = vadd.f32 %v7398_v0, %v7089_v52  ;;  %10411 = vmatprep.subr.bf16.mxu0 %v16075_v14  ;;  %v16094_v0 = vld [vmem:[%s23154_s10 + $0x3f0] ss:$36 sps:$4 sm:$0xff]   ;;  %v16099_v14 = vld [vmem:[%s23154_s10 + $0x3fc] ss:$36 sps:$4 sm:$0xff]  }
 0x433   : > { %v20110_v32 = vpop.f32.mrf.mxu0  ;;  %10412 = vmatpush1.bf16.msra.mxu0 %v16073_v1  ;;  %v16096_v52 = vld [vmem:[%s23154_s10 + $0x3f4] ss:$36 sps:$4 sm:$0xff]  }
 0x434   : > { %23400 = vst [vmem:[#allocation24_spill] sm:$0xff] %v20110_v32  ;;  %10413 = vmatprep.subr.bf16.mxu0 %v16081_v46  ;;  %10306 = vmatprep.subr.bf16.mxu1 %v16096_v52  ;;  %v16097_v1 = vld [vmem:[%s23154_s10 + $0x3f8] ss:$36 sps:$4 sm:$0xff]   ;;  %v16100_v46 = vld [vmem:[%s23154_s10 + $0x3a8] ss:$36 sps:$4 sm:$0xff]  }
 0x435   : > { %v7404_v57 = vpop.f32.mrf.mxu1  ;;  %10307 = vmatpush1.bf16.msra.mxu1 %v16094_v0  ;;  %v16114_v0 = vld [vmem:[%s23154_s10 + $0x67c] ss:$36 sps:$4 sm:$0xff]  }
 0x437   : > { %v7406_v19 = vpop.f32.mrf.mxu1  ;;  %10414 = vmatpush1.bf16.msra.mxu0 %v16079_v13 }
 0x438   : > { %9255 = vmatmul.mubr.bf16.gmra.mxu0 %v19853_v63  ;;  %10415 = vmatprep.subr.bf16.mxu0 %v16087_v5 }
 0x439   : > { %14290 = vmatprep.mubr.msk.bf16.mxu0 %vm6986_vm13, %v19951_v7  ;;  %v7408_v50 = vpop.f32.mrf.mxu1  ;;  %v16085_v7 = vld [vmem:[%s23154_s10 + $0x488] ss:$36 sps:$4 sm:$0xff]  }
 0x43a   : > { %v7095_v56 = vpop.f32.mrf.mxu0 }
 0x43b   : > { %v20121_v62 = vadd.f32 %v7404_v57, %v7095_v56  ;;  %v20131_v37 = vpop.f32.mrf.mxu1  ;;  %10416 = vmatpush1.bf16.msra.mxu0 %v16085_v7 }
 0x43c   : > { %v7097_v63 = vpop.f32.mrf.mxu0  ;;  %23401 = vst [vmem:[#allocation101_spill] sm:$0xff] %v20131_v37 }
 0x43d   : > { %v20129_v41 = vadd.f32 %v7406_v19, %v7097_v63 }
 0x43e   : > { %v7099_v33 = vpop.f32.mrf.mxu0 }
 0x43f   : > { %v20139_v54 = vadd.f32 %v7408_v50, %v7099_v33  ;;  %v14263_v50 = vcombine.low %v20007_v60, %v8964_v21  ;;  %v16106_v60 = vld [vmem:[%s23154_s10 + $0x360] ss:$36 sps:$4 sm:$0xff]  }
 0x440   : > { %9265 = vmatmul.mubr.bf16.gmra.mxu0 %v19963_v44  ;;  %v7414_v51 = vpop.f32.mrf.mxu1  ;;  %v20144_v36 = vpop.f32.mrf.mxu0  ;;  %v16091_v44 = vld [vmem:[%s23154_s10 + $0x440] ss:$36 sps:$4 sm:$0xff]  }
 0x441   : > { %14291 = vmatprep.mubr.msk.bf16.mxu0 %vm6986_vm13, %v20016_v49  ;;  %23402 = vst [vmem:[#allocation102_spill] sm:$0xff] %v20144_v36  ;;  %v16093_v49 = vld [vmem:[%s23154_s10 + $0x444] ss:$36 sps:$4 sm:$0xff]  }
 0x442   : > { %v7416_v40 = vpop.f32.mrf.mxu1  ;;  %10417 = vmatprep.subr.bf16.mxu0 %v16093_v49 }
 0x443   : > { %10418 = vmatpush1.bf16.msra.mxu0 %v16091_v44  ;;  %v16111_v44 = vld [vmem:[%s23154_s10 + $0x36c] ss:$36 sps:$4 sm:$0xff]  }
 0x444   : > { %v7418_v43 = vpop.f32.mrf.mxu1  ;;  %10419 = vmatprep.subr.bf16.mxu0 %v16099_v14  ;;  %v16117_v14 = vld [vmem:[%s23154_s10 + $0x684] ss:$36 sps:$4 sm:$0xff]  }
 0x445   : > { %v7105_v61 = vpop.f32.mrf.mxu0 }
 0x446   : > { %v20165_v9 = vadd.f32 %v7414_v51, %v7105_v61  ;;  %v20176_v3 = vpop.f32.mrf.mxu1  ;;  %v16108_v51 = vld [vmem:[%s23154_s10 + $0x364] ss:$36 sps:$4 sm:$0xff]  }
 0x447   : > { %v7107_v18 = vpop.f32.mrf.mxu0  ;;  %23403 = vst [vmem:[#allocation103_spill] sm:$0xff] %v20176_v3  ;;  %10420 = vmatpush1.bf16.msra.mxu0 %v16097_v1  ;;  %v16115_v1 = vld [vmem:[%s23154_s10 + $0x680] ss:$36 sps:$4 sm:$0xff]  }
 0x448   : > { %9275 = vmatmul.mubr.bf16.gmra.mxu0 %v20027_v53  ;;  %v20174_v34 = vadd.f32 %v7416_v40, %v7107_v18  ;;  %v16102_v53 = vld [vmem:[%s23154_s10 + $0x3ac] ss:$36 sps:$4 sm:$0xff]   ;;  %10421 = vmatprep.subr.bf16.mxu0 %v16105_v4 }
 0x449   : > { %v7109_v57 = vpop.f32.mrf.mxu0  ;;  %14292 = vmatprep.mubr.msk.bf16.mxu0 %vm6986_vm13, %v14264_v8  ;;  %10308 = vmatprep.subr.bf16.mxu1 %v16102_v53  ;;  %v16109_v40 = vld [vmem:[%s23154_s10 + $0x368] ss:$36 sps:$4 sm:$0xff]   ;;  %v16112_v8 = vld [vmem:[%s23154_s10 + $0x678] ss:$36 sps:$4 sm:$0xff]  }
 0x44a   : > { %v20179_v13 = vadd.f32 %v7418_v43, %v7109_v57  ;;  %10309 = vmatpush1.bf16.msra.mxu1 %v16100_v46 }
 0x44b   : > { %v7424_v19 = vpop.f32.mrf.mxu1  ;;  %v20187_v56 = vpop.f32.mrf.mxu0  ;;  %10422 = vmatpush1.bf16.msra.mxu0 %v16103_v30  ;;  %10310 = vmatprep.subr.bf16.mxu1 %v16108_v51 }
 0x44c   : > { %23404 = vst [vmem:[#allocation104_spill] sm:$0xff] %v20187_v56  ;;  %10423 = vmatprep.subr.bf16.mxu0 %v16111_v44 }
 0x44d   : > { %v7426_v63 = vpop.f32.mrf.mxu1 }
 0x44e   : > { %10311 = vmatpush1.bf16.msra.mxu1 %v16106_v60 }
 0x44f   : > { %v7428_v5 = vpop.f32.mrf.mxu1  ;;  %10424 = vmatpush1.bf16.msra.mxu0 %v16109_v40  ;;  %10320 = vmatprep.subr.bf16.mxu1 %v16114_v0 }
 0x450   : > { %v7115_v7 = vpop.f32.mrf.mxu0  ;;  %9285 = vmatmul.mubr.bf16.gmra.mxu0 %v14263_v50  ;;  %10433 = vmatprep.subr.bf16.mxu0 %v16117_v14 }
 0x451   : > { %v20196_v33 = vadd.f32 %v7424_v19, %v7115_v7  ;;  %v20204_v28 = vpop.f32.mrf.mxu1 }
 0x452   : > { %v7117_v35 = vpop.f32.mrf.mxu0  ;;  %23405 = vst [vmem:[#allocation105_spill] sm:$0xff] %v20204_v28  ;;  %10321 = vmatpush2.bf16.msra.mxu1 %v16112_v8  ;;  %v16130_v28 = vld [vmem:[%s23154_s10 + $0x5a0] ss:$36 sps:$4 sm:$0xff]  }
 0x453   : > { %v20206_v21 = vadd.f32 %v7426_v63, %v7117_v35  ;;  %v8079_v61 = vpop.f32.mrf.mxu1  ;;  %10434 = vmatpush2.bf16.msra.mxu0 %v16115_v1 }
 0x454   : > { %v7119_v49 = vpop.f32.mrf.mxu0 }
 0x455   : > { %v20214_v43 = vadd.f32 %v7428_v5, %v7119_v49  ;;  %v8081_v18 = vpop.f32.mrf.mxu1  ;;  %v16120_v49 = vld [vmem:[%s23154_s10 + $0x634] ss:$36 sps:$4 sm:$0xff]  }
 0x456   : > { %v20222_v52 = vpop.f32.mrf.mxu0  ;;  %10322 = vmatprep.subr.bf16.mxu1 %v16120_v49 }
 0x457   : > { %23406 = vst [vmem:[#allocation106_spill] sm:$0xff] %v20222_v52  ;;  %v20230_v46 = vpop.f32.mrf.mxu1 }
 0x458   : > { %v7701_v57 = vpop.f32.mrf.mxu0 }
 0x459   : > { %v7780_v53 = vadd.f32 %v7701_v57, %v19900_v38  ;;  %v20233_v50 = vpop.f32.mrf.mxu1  ;;  %v16121_v57 = vld [vmem:[%s23154_s10 + $0x638] ss:$36 sps:$4 sm:$0xff]  }
 0x45a   : > { %v7703_v19 = vpop.f32.mrf.mxu0 }
 0x45b   : > { %v7781_v30 = vadd.f32 %v7703_v19, %v19905_v59  ;;  %v20236_v4 = vadd.f32 %v8079_v61, %v7780_v53  ;;  %v8089_v7 = vpop.f32.mrf.mxu1  ;;  %v16118_v59 = vld [vmem:[%s23154_s10 + $0x630] ss:$36 sps:$4 sm:$0xff]   ;;  %v16123_v53 = vld [vmem:[%s23154_s10 + $0x63c] ss:$36 sps:$4 sm:$0xff]  }
 0x45c   : > { %v7705_v63 = vpop.f32.mrf.mxu0  ;;  %10323 = vmatpush2.bf16.msra.mxu1 %v16118_v59  ;;  %10435 = vmatprep.subr.bf16.mxu0 %v16123_v53 }
 0x45d   : > { %v20239_v5 = vadd.f32 %v7705_v63, %v19911_v10  ;;  %v20241_v60 = vadd.f32 %v8081_v18, %v7781_v30  ;;  %v8091_v35 = vpop.f32.mrf.mxu1  ;;  %v16124_v30 = vld [vmem:[%s23154_s10 + $0x5e8] ss:$36 sps:$4 sm:$0xff]   ;;  %10436 = vmatpush2.bf16.msra.mxu0 %v16121_v57 }
 0x45e   : > { %v20243_v51 = vpop.f32.mrf.mxu0 }
 0x45f   : > { %v20245_v40 = vpop.f32.mrf.mxu1 }
 0x460   : > { %v7711_v38 = vpop.f32.mrf.mxu0 }
 0x461   : > { %v7784_v44 = vadd.f32 %v7711_v38, %v20029_v29  ;;  %v20254_v61 = vpop.f32.mrf.mxu1  ;;  %v16127_v38 = vld [vmem:[%s23154_s10 + $0x5f0] ss:$36 sps:$4 sm:$0xff]  }
 0x462   : > { %v7713_v10 = vpop.f32.mrf.mxu0 }
 0x463   : > { %v7785_v8 = vadd.f32 %v7713_v10, %v20032_v55  ;;  %v20257_v0 = vadd.f32 %v8089_v7, %v7784_v44  ;;  %v8099_v1 = vpop.f32.mrf.mxu1  ;;  %v16129_v44 = vld [vmem:[%s23154_s10 + $0x5f4] ss:$36 sps:$4 sm:$0xff]  }
 0x464   : > { %v7715_v18 = vpop.f32.mrf.mxu0  ;;  %10437 = vmatprep.subr.bf16.mxu0 %v16129_v44 }
 0x465   : > { %v20260_v29 = vadd.f32 %v7715_v18, %v20037_v22  ;;  %v20262_v14 = vadd.f32 %v8091_v35, %v7785_v8  ;;  %v8101_v19 = vpop.f32.mrf.mxu1  ;;  %v16126_v22 = vld [vmem:[%s23154_s10 + $0x5ec] ss:$36 sps:$4 sm:$0xff]   ;;  %10438 = vmatpush2.bf16.msra.mxu0 %v16127_v38 }
 0x466   : > { %v20270_v55 = vpop.f32.mrf.mxu0  ;;  %10324 = vmatprep.subr.bf16.mxu1 %v16126_v22 }
 0x467   : > { %v8103_v7 = vpop.f32.mrf.mxu1  ;;  %10325 = vmatpush2.bf16.msra.mxu1 %v16124_v30  ;;  %v16133_v30 = vld [vmem:[%s23154_s10 + $0x5a8] ss:$36 sps:$4 sm:$0xff]  }
 0x468   : > { %v7721_v63 = vpop.f32.mrf.mxu0 }
 0x469   : > { %v7788_v35 = vadd.f32 %v7721_v63, %v20043_v39  ;;  %v20285_v49 = vpop.f32.mrf.mxu1 }
 0x46a   : > { %v7723_v59 = vpop.f32.mrf.mxu0 }
 0x46b   : > { %v7789_v10 = vadd.f32 %v7723_v59, %v20045_v45  ;;  %v20288_v8 = vadd.f32 %v8099_v1, %v7788_v35  ;;  %v8109_v39 = vpop.f32.mrf.mxu1  ;;  %v16132_v45 = vld [vmem:[%s23154_s10 + $0x5a4] ss:$36 sps:$4 sm:$0xff]  }
 0x46c   : > { %v7725_v18 = vpop.f32.mrf.mxu0  ;;  %10326 = vmatprep.subr.bf16.mxu1 %v16132_v45 }
 0x46d   : > { %v7790_v57 = vadd.f32 %v7725_v18, %v20049_v15  ;;  %v20291_v53 = vadd.f32 %v8101_v19, %v7789_v10  ;;  %v8111_v63 = vpop.f32.mrf.mxu1  ;;  %v16135_v15 = vld [vmem:[%s23154_s10 + $0x5ac] ss:$36 sps:$4 sm:$0xff]   ;;  %10327 = vmatpush2.bf16.msra.mxu1 %v16130_v28  ;;  %v16141_v28 = vld [vmem:[%s23154_s10 + $0x574] ss:$36 sps:$4 sm:$0xff]  }
 0x46e   : > { %v20293_v22 = vpop.f32.mrf.mxu0  ;;  %10439 = vmatprep.subr.bf16.mxu0 %v16135_v15 }
 0x46f   : > { %v20301_v1 = vadd.f32 %v8103_v7, %v7790_v57  ;;  %v8113_v35 = vpop.f32.mrf.mxu1  ;;  %v16138_v7 = vld [vmem:[%s23154_s10 + $0x56c] ss:$36 sps:$4 sm:$0xff]   ;;  %10440 = vmatpush2.bf16.msra.mxu0 %v16133_v30 }
 0x470   : > { %v7731_v19 = vpop.f32.mrf.mxu0  ;;  %10522 = vmatprep.subr.bf16.mxu1 %v16138_v7  ;;  %10635 = vmatprep.subr.bf16.mxu0 %v16141_v28 }
 0x471   : > { %v7792_v38 = vadd.f32 %v7731_v19, %v20056_v20  ;;  %v20313_v59 = vpop.f32.mrf.mxu1 }
 0x472   : > { %v7733_v44 = vpop.f32.mrf.mxu0  ;;  %23407 = vst [vmem:[#allocation107_spill] sm:$0xff] %v20313_v59 }
 0x473   : > { %v7793_v10 = vadd.f32 %v7733_v44, %v20061_v58  ;;  %v20316_v18 = vadd.f32 %v8109_v39, %v7792_v38  ;;  %v8119_v52 = vpop.f32.mrf.mxu1 }
 0x474   : > { %v7735_v57 = vpop.f32.mrf.mxu0 }
 0x475   : > { %v7794_v45 = vadd.f32 %v7735_v57, %v20064_v27  ;;  %v20319_v20 = vadd.f32 %v8111_v63, %v7793_v10  ;;  %v8121_v19 = vpop.f32.mrf.mxu1 }
 0x476   : > { %v20324_v15 = vpop.f32.mrf.mxu0 }
 0x477   : > { %v20326_v3 = vadd.f32 %v8113_v35, %v7794_v45  ;;  %v8123_v39 = vpop.f32.mrf.mxu1 }
 0x478   : > { %v7741_v58 = vpop.f32.mrf.mxu0 }
 0x479   : > { %v7796_v30 = vadd.f32 %v7741_v58, %v20076_v42  ;;  %v20329_v7 = vpop.f32.mrf.mxu1 }
 0x47a   : > { %v7743_v38 = vpop.f32.mrf.mxu0  ;;  %23408 = vst [vmem:[#allocation108_spill] sm:$0xff] %v20329_v7 }
 0x47b   : > { %v7797_v27 = vadd.f32 %v7743_v38, %v20084_v48  ;;  %v20332_v63 = vadd.f32 %v8119_v52, %v7796_v30  ;;  %v8129_v10 = vpop.f32.mrf.mxu1 }
 0x47c   : > { %v7745_v44 = vpop.f32.mrf.mxu0 }
 0x47d   : > { %v7798_v57 = vadd.f32 %v7745_v44, %v20086_v16  ;;  %v20335_v56 = vadd.f32 %v8121_v19, %v7797_v27  ;;  %v8131_v45 = vpop.f32.mrf.mxu1 }
 0x47e   : > { %v20337_v35 = vpop.f32.mrf.mxu0 }
 0x47f   : > { %23409 = vst [vmem:[#allocation109_spill] sm:$0xff] %v20337_v35  ;;  %v20339_v28 = vadd.f32 %v8123_v39, %v7798_v57  ;;  %v8133_v42 = vpop.f32.mrf.mxu1 }
 0x480   : > { %v7751_v37 = vpop.f32.mrf.mxu0 }
 0x481   : > { %v7800_v58 = vadd.f32 %v7751_v37, %v20121_v62  ;;  %v20342_v36 = vpop.f32.mrf.mxu1 }
 0x482   : > { %v7753_v7 = vpop.f32.mrf.mxu0  ;;  %23410 = vst [vmem:[#allocation110_spill] sm:$0xff] %v20342_v36 }
 0x483   : > { %v7801_v48 = vadd.f32 %v7753_v7, %v20129_v41  ;;  %v20345_v52 = vadd.f32 %v8129_v10, %v7800_v58  ;;  %v8139_v16 = vpop.f32.mrf.mxu1 }
 0x484   : > { %v7755_v30 = vpop.f32.mrf.mxu0 }
 0x485   : > { %v7802_v19 = vadd.f32 %v7755_v30, %v20139_v54  ;;  %v20348_v38 = vadd.f32 %v8131_v45, %v7801_v48  ;;  %v8141_v39 = vpop.f32.mrf.mxu1 }
 0x486   : > { %v20350_v27 = vpop.f32.mrf.mxu0 }
 0x487   : > { %23411 = vst [vmem:[#allocation111_spill] sm:$0xff] %v20350_v27  ;;  %v20352_v44 = vadd.f32 %v8133_v42, %v7802_v19  ;;  %v8143_v62 = vpop.f32.mrf.mxu1 }
 0x488   : > { %v7761_v57 = vpop.f32.mrf.mxu0 }
 0x489   : > { %v7804_v37 = vadd.f32 %v7761_v57, %v20165_v9  ;;  %v20355_v35 = vpop.f32.mrf.mxu1 }
 0x48a   : > { %v7763_v36 = vpop.f32.mrf.mxu0  ;;  %23412 = vst [vmem:[#allocation112_spill] sm:$0xff] %v20355_v35 }
 0x48b   : > { %v7805_v41 = vadd.f32 %v7763_v36, %v20174_v34  ;;  %v20358_v7 = vadd.f32 %v8139_v16, %v7804_v37  ;;  %v8149_v54 = vpop.f32.mrf.mxu1 }
 0x48c   : > { %v7765_v10 = vpop.f32.mrf.mxu0 }
 0x48d   : > { %v7806_v45 = vadd.f32 %v7765_v10, %v20179_v13  ;;  %v20361_v58 = vadd.f32 %v8141_v39, %v7805_v41  ;;  %v8151_v42 = vpop.f32.mrf.mxu1 }
 0x48e   : > { %v20363_v48 = vpop.f32.mrf.mxu0 }
 0x48f   : > { %23413 = vst [vmem:[#allocation113_spill] sm:$0xff] %v20363_v48  ;;  %v20365_v30 = vadd.f32 %v8143_v62, %v7806_v45  ;;  %v8153_v9 = vpop.f32.mrf.mxu1 }
 0x490   : > { %v7771_v19 = vpop.f32.mrf.mxu0 }
 0x491   : > { %v7808_v57 = vadd.f32 %v7771_v19, %v20196_v33  ;;  %v20369_v34 = vpop.f32.mrf.mxu1 }
 0x492   : > { %v7773_v35 = vpop.f32.mrf.mxu0  ;;  %23414 = vst [vmem:[#allocation114_spill] sm:$0xff] %v20369_v34 }
 0x493   : > { %v7809_v36 = vadd.f32 %v7773_v35, %v20206_v21  ;;  %v20371_v16 = vadd.f32 %v8149_v54, %v7808_v57  ;;  %v20378_v62 = vpop.f32.mrf.mxu1 }
 0x494   : > { %v7775_v37 = vpop.f32.mrf.mxu0 }
 0x495   : > { %v7810_v13 = vadd.f32 %v7775_v37, %v20214_v43  ;;  %v20374_v39 = vadd.f32 %v8151_v42, %v7809_v36  ;;  %v20385_v35 = vpop.f32.mrf.mxu1 }
 0x496   : > { %v20376_v41 = vpop.f32.mrf.mxu0 }
 0x497   : > { %23415 = vst [vmem:[#allocation115_spill] sm:$0xff] %v20376_v41  ;;  %v20380_v10 = vadd.f32 %v8153_v9, %v7810_v13  ;;  %v20394_v42 = vpop.f32.mrf.mxu1 }
 0x498   : > { %v8458_v45 = vpop.f32.mrf.mxu0 }
 0x499   : > { %v20383_v33 = vadd.f32 %v8458_v45, %v20236_v4  ;;  %v20399_v37 = vpop.f32.mrf.mxu1 }
 0x49a   : > { %v8460_v21 = vpop.f32.mrf.mxu0 }
 0x49b   : > { %v20388_v54 = vadd.f32 %v8460_v21, %v20241_v60  ;;  %v20408_v45 = vpop.f32.mrf.mxu1 }
 0x49c   : > { %v20390_v19 = vpop.f32.mrf.mxu0 }
 0x49d   : > { %v20413_v48 = vpop.f32.mrf.mxu1 }
 0x49e   : > { %v20392_v43 = vpop.f32.mrf.mxu0 }
 0x49f   : > { %v20423_v27 = vpop.f32.mrf.mxu1 }
 0x4a0   : > { %v8468_v57 = vpop.f32.mrf.mxu0 }
 0x4a1   : > { %v20397_v9 = vadd.f32 %v8468_v57, %v20257_v0 }
 0x4a2   : > { %v8470_v36 = vpop.f32.mrf.mxu0 }
 0x4a3   : > { %v20402_v4 = vadd.f32 %v8470_v36, %v20262_v14 }
 0x4a4   : > { %v20404_v13 = vpop.f32.mrf.mxu0 }
 0x4a6   : > { %v20406_v60 = vpop.f32.mrf.mxu0 }
 0x4a8   : > { %v8478_v21 = vpop.f32.mrf.mxu0 }
 0x4a9   : > { %v20411_v34 = vadd.f32 %v8478_v21, %v20288_v8  ;;  %v20428_v21 = vpop.f32.mrf.mxu1 }
 0x4aa   : > { %v8480_v41 = vpop.f32.mrf.mxu0 }
 0x4ab   : > { %v20416_v0 = vadd.f32 %v8480_v41, %v20291_v53 }
 0x4ac   : > { %v8482_v57 = vpop.f32.mrf.mxu0 }
 0x4ad   : > { %v20419_v14 = vadd.f32 %v8482_v57, %v20301_v1  ;;  %v20438_v57 = vpop.f32.mrf.mxu1 }
 0x4ae   : > { %v20421_v36 = vpop.f32.mrf.mxu0 }
 0x4af   : > { %23416 = vst [vmem:[#allocation116_spill] sm:$0xff] %v20419_v14  ;;  %23417 = vst [vmem:[#allocation117_spill] sm:$0xff] %v20421_v36 }
 0x4b0   : > { %v8488_v59 = vpop.f32.mrf.mxu0 }
 0x4b1   : > { %v20426_v12 = vadd.f32 %v8488_v59, %v20316_v18  ;;  %v20443_v18 = vpop.f32.mrf.mxu1 }
 0x4b2   : > { %v8490_v8 = vpop.f32.mrf.mxu0 }
 0x4b3   : > { %23418 = vst [vmem:[#allocation118_spill] sm:$0xff] %v20426_v12  ;;  %v20431_v32 = vadd.f32 %v8490_v8, %v20319_v20 }
 0x4b4   : > { %v8492_v53 = vpop.f32.mrf.mxu0 }
 0x4b5   : > { %v20434_v41 = vadd.f32 %v8492_v53, %v20326_v3  ;;  %v20453_v53 = vpop.f32.mrf.mxu1 }
 0x4b6   : > { %v20436_v1 = vpop.f32.mrf.mxu0 }
 0x4b7   : > { %23419 = vst [vmem:[#allocation119_spill] sm:$0xff] %v20434_v41  ;;  %23420 = vst [vmem:[#allocation120_spill] sm:$0xff] %v20436_v1 }
 0x4b8   : > { %v8498_v14 = vpop.f32.mrf.mxu0 }
 0x4b9   : > { %v20441_v36 = vadd.f32 %v8498_v14, %v20332_v63  ;;  %v20458_v14 = vpop.f32.mrf.mxu1 }
 0x4ba   : > { %v8500_v59 = vpop.f32.mrf.mxu0 }
 0x4bb   : > { %23421 = vst [vmem:[#allocation121_spill] sm:$0xff] %v20441_v36  ;;  %v20446_v12 = vadd.f32 %v8500_v59, %v20335_v56 }
 0x4bc   : > { %v8502_v20 = vpop.f32.mrf.mxu0 }
 0x4bd   : > { %23422 = vst [vmem:[#allocation122_spill] sm:$0xff] %v20446_v12  ;;  %v20449_v8 = vadd.f32 %v8502_v20, %v20339_v28  ;;  %v20468_v20 = vpop.f32.mrf.mxu1 }
 0x4be   : > { %v20451_v3 = vpop.f32.mrf.mxu0 }
 0x4bf   : > { %23423 = vst [vmem:[#allocation123_spill] sm:$0xff] %v20449_v8 }
 0x4c0   : > { %v8508_v41 = vpop.f32.mrf.mxu0 }
 0x4c1   : > { %v20456_v1 = vadd.f32 %v8508_v41, %v20345_v52  ;;  %v20473_v41 = vpop.f32.mrf.mxu1 }
 0x4c2   : > { %v8510_v63 = vpop.f32.mrf.mxu0 }
 0x4c3   : > { %23424 = vst [vmem:[#allocation124_spill] sm:$0xff] %v20456_v1  ;;  %v20461_v36 = vadd.f32 %v8510_v63, %v20348_v38 }
 0x4c4   : > { %v8512_v56 = vpop.f32.mrf.mxu0 }
 0x4c5   : > { %v20464_v59 = vadd.f32 %v8512_v56, %v20352_v44  ;;  %v20483_v56 = vpop.f32.mrf.mxu1 }
 0x4c6   : > { %v20466_v28 = vpop.f32.mrf.mxu0 }
 0x4c7   : > { %23425 = vst [vmem:[#allocation125_spill] sm:$0xff] %v20464_v59  ;;  %23426 = vst [vmem:[#allocation126_spill] sm:$0xff] %v20466_v28  ;;  %v7361_v28 = vadd.f32 %v20018_v24, %v20024_v25 }
 0x4c8   : > { %v8518_v8 = vpop.f32.mrf.mxu0 }
 0x4c9   : > { %v20471_v12 = vadd.f32 %v8518_v8, %v20358_v7 }
 0x4ca   : > { %v8520_v52 = vpop.f32.mrf.mxu0 }
 0x4cb   : > { %23427 = vst [vmem:[#allocation127_spill] sm:$0xff] %v20471_v12  ;;  %v20476_v1 = vadd.f32 %v8520_v52, %v20361_v58  ;;  %v7783_v12 = vadd.f32 %v20243_v51, %v7361_v28  ;;  %v20491_v58 = vpop.f32.mrf.mxu1 }
 0x4cc   : > { %v8522_v38 = vpop.f32.mrf.mxu0 }
 0x4cd   : > { %v20479_v63 = vadd.f32 %v8522_v38, %v20365_v30  ;;  %v9327_v38 = vld [vmem:[%s23152_s8] sm:$0x3] }
 0x4ce   : > { %v20481_v44 = vpop.f32.mrf.mxu0  ;;  %v20513_v28 = vrot.slane %v9327_v38, %v23397_v26 }
 0x4cf   : > { %23428 = vst [vmem:[#allocation128_spill] sm:$0xff] %v20479_v63  ;;  %v8160_v63 = vadd.f32 %v20230_v46, %v20239_v5  ;;  %v7371_v46 = vadd.f32 %v20034_v31, %v20039_v47 }
 0x4d0   : > { %v8528_v59 = vpop.f32.mrf.mxu0 }
 0x4d1   : > { %v20488_v7 = vadd.f32 %v8528_v59, %v20371_v16  ;;  %v8539_v51 = vadd.f32 %v20390_v19, %v8160_v63  ;;  %v8161_v16 = vadd.f32 %v20233_v50, %v7783_v12  ;;  %v20508_v59 = vpop.f32.mrf.mxu1  ;;  %v8917_v12 = vadd.f32 %v20385_v35, %v20388_v54 }
 0x4d2   : > { %v8530_v8 = vpop.f32.mrf.mxu0  ;;  %v20524_v50 = vrot.slane %v9327_v38, %v23398_v23  ;;  %v8164_v38 = vadd.f32 %v20245_v40, %v20260_v29 }
 0x4d3   : > { %v20494_v52 = vadd.f32 %v8530_v8, %v20374_v39  ;;  %v8916_v39 = vadd.f32 %v20378_v62, %v20383_v33  ;;  %v8540_v19 = vadd.f32 %v20392_v43, %v8161_v16  ;;  %v7787_v62 = vadd.f32 %v20270_v55, %v7371_v46  ;;  %v20527_v8 = vpop.f32.mrf.mxu1 }
 0x4d4   : > { %v8532_v30 = vpop.f32.mrf.mxu0  ;;  %v8918_v43 = vadd.f32 %v20394_v42, %v8539_v51 }
 0x4d5   : > { %v20502_v24 = vadd.f32 %v8532_v30, %v20380_v10  ;;  %v9371_v10 = vld [vmem:[%s23153_s9] sm:$0x3]  ;;  %v8919_v55 = vadd.f32 %v20399_v37, %v8540_v19  ;;  %v8165_v46 = vadd.f32 %v20254_v61, %v7787_v62  ;;  %v8543_v37 = vadd.f32 %v20404_v13, %v8164_v38 }
 0x4d6   : > { %v20504_v25 = vpop.f32.mrf.mxu0  ;;  %v20531_v47 = vrot.slane %v9371_v10, %v23397_v26  ;;  %v20536_v35 = vrot.slane %v9371_v10, %v23398_v23  ;;  %v8920_v10 = vadd.f32 %v20408_v45, %v20397_v9  ;;  %v8921_v61 = vadd.f32 %v20413_v48, %v20402_v4 }
 0x4d7   : > { %v8544_v40 = vadd.f32 %v20406_v60, %v8165_v46  ;;  %v8922_v48 = vadd.f32 %v20423_v27, %v8543_v37  ;;  %v7391_v46 = vadd.f32 %v20059_v17, %v20067_v2  ;;  %v16139_v17 = vld [vmem:[%s23154_s10 + $0x570] ss:$36 sps:$4 sm:$0xff]  }
 0x4d8   : > { %v9216_v5 = vpop.f32.mrf.mxu0 }
 0x4d9   : > { %v9295_v63 = vadd.f32 %v9216_v5, %v8916_v39  ;;  %v7795_v2 = vadd.f32 %v20324_v15, %v7391_v46  ;;  %v16153_v46 = vld [vmem:[%s23154_s10 + $0x4e4] ss:$36 sps:$4 sm:$0xff]  }
 0x4da   : > { %v9218_v33 = vpop.f32.mrf.mxu0 }
 0x4db   : > { %v9339_v31 = vmul.f32 %v20513_v28, %v9295_v63  ;;  %v9296_v30 = vadd.f32 %v9218_v33, %v8917_v12  ;;  %v20542_v63 = vpop.f32.mrf.mxu1  ;;  %v7381_v33 = vadd.f32 %v20047_v11, %v20052_v6 }
 0x4dc   : > { %v9220_v16 = vpop.f32.mrf.mxu0 }
 0x4dd   : > { %v9340_v39 = vmul.f32 %v20524_v50, %v9296_v30  ;;  %v9297_v54 = vadd.f32 %v9220_v16, %v8918_v43  ;;  %v9383_v12 = vadd.f32 %v20531_v47, %v9339_v31  ;;  %v7791_v9 = vadd.f32 %v20293_v22, %v7381_v33  ;;  %v20558_v43 = vpop.f32.mrf.mxu1  ;;  %v16136_v33 = vld [vmem:[%s23154_s10 + $0x568] ss:$36 sps:$4 sm:$0xff]  }
 0x4de   : > { %v9222_v5 = vpop.f32.mrf.mxu0 }
 0x4df   : > { %v9341_v42 = vmul.f32 %v20513_v28, %v9297_v54  ;;  %v9298_v51 = vadd.f32 %v9222_v5, %v8919_v55  ;;  %v9384_v19 = vadd.f32 %v20536_v35, %v9340_v39  ;;  %v9415_v11 = vmax.f32 %v9383_v12, 0.0 }
 0x4e0   : > { %v9226_v29 = vpop.f32.mrf.mxu0  ;;  %v8923_v39 = vadd.f32 %v20428_v21, %v8544_v40  ;;  %v8924_v21 = vadd.f32 %v20438_v57, %v20411_v34  ;;  %v16144_v34 = vld [vmem:[%s23154_s10 + $0x524] ss:$36 sps:$4 sm:$0xff]   ;;  %v16147_v57 = vld [vmem:[%s23154_s10 + $0x52c] ss:$36 sps:$4 sm:$0xff]  }
 0x4e1   : > { %v9385_v62 = vadd.f32 %v20531_v47, %v9341_v42  ;;  %v9342_v31 = vmul.f32 %v20524_v50, %v9298_v51  ;;  %v9299_v30 = vadd.f32 %v9226_v29, %v8920_v10  ;;  %v9416_v54 = vmax.f32 %v9384_v19, 0.0  ;;  %v20570_v51 = vpop.f32.mrf.mxu1 }
 0x4e2   : > { %v9228_v45 = vpop.f32.mrf.mxu0  ;;  %v8169_v42 = vadd.f32 %v20285_v49, %v7791_v9  ;;  %v8925_v29 = vadd.f32 %v20443_v18, %v20416_v0  ;;  %v23429_v0 = vld [vmem:[#allocation117_spill] sm:$0xff] }
 0x4e3   : > { %v9417_v6 = vmax.f32 %v9385_v62, 0.0  ;;  %v9386_v13 = vadd.f32 %v20536_v35, %v9342_v31  ;;  %v9300_v60 = vadd.f32 %v9228_v45, %v8921_v61  ;;  %v9343_v16 = vmul.f32 %v20513_v28, %v9299_v30  ;;  %v23430_v30 = vld [vmem:[#allocation116_spill] sm:$0xff]  ;;  %v20605_v45 = vpop.f32.mrf.mxu1 }
 0x4e4   : > { %v9230_v4 = vpop.f32.mrf.mxu0  ;;  %v8548_v18 = vadd.f32 %v23429_v0, %v8169_v42  ;;  %v8926_v9 = vadd.f32 %v20453_v53, %v23430_v30  ;;  %v16159_v30 = vld [vmem:[%s23154_s10 + $0x49c] ss:$36 sps:$4 sm:$0xff]  }
 0x4e5   : > { %v20564_v55 = vpack.c.bf16 %v9417_v6, %v9415_v11  ;;  %v9418_v38 = vmax.f32 %v9386_v13, 0.0  ;;  %v9344_v22 = vmul.f32 %v20524_v50, %v9300_v60  ;;  %v9301_v5 = vadd.f32 %v9230_v4, %v8922_v48  ;;  %v16142_v60 = vld [vmem:[%s23154_s10 + $0x520] ss:$36 sps:$4 sm:$0xff]   ;;  %v23432_v4 = vld [vmem:[#allocation23_spill] sm:$0xff] }
 0x4e6   : > { %v9232_v12 = vpop.f32.mrf.mxu0  ;;  %v9387_v49 = vadd.f32 %v20531_v47, %v9343_v16  ;;  %v16145_v16 = vld [vmem:[%s23154_s10 + $0x528] ss:$36 sps:$4 sm:$0xff]   ;;  %v23431_v48 = vld [vmem:[#allocation24_spill] sm:$0xff] }
 0x4e7   : > { %v20572_v10 = vpack.c.bf16 %v9418_v38, %v9416_v54  ;;  %v9302_v27 = vadd.f32 %v9232_v12, %v8923_v39  ;;  %v9345_v37 = vmul.f32 %v20513_v28, %v9301_v5  ;;  %v9388_v61 = vadd.f32 %v20536_v35, %v9344_v22  ;;  %v16150_v22 = vld [vmem:[%s23154_s10 + $0x4dc] ss:$36 sps:$4 sm:$0xff]  }
 0x4e8   : > { %v9236_v40 = vpop.f32.mrf.mxu0  ;;  %v7401_v53 = vadd.f32 %v23432_v4, %v23431_v48  ;;  %v9419_v39 = vmax.f32 %v9387_v49, 0.0  ;;  %v23433_v5 = vld [vmem:[#allocation107_spill] sm:$0xff]  ;;  %v8927_v49 = vadd.f32 %v20458_v14, %v8548_v18  ;;  %v16151_v14 = vld [vmem:[%s23154_s10 + $0x4e0] ss:$36 sps:$4 sm:$0xff]  }
 0x4e9   : > { %v9346_v15 = vmul.f32 %v20524_v50, %v9302_v27  ;;  %v9303_v19 = vadd.f32 %v9236_v40, %v8924_v21  ;;  %14521 = vmatprep.mubr.msk.bf16.mxu1 %vm2234_vm0, %v20572_v10  ;;  %14529 = vmatprep.mubr.msk.bf16.mxu0 %vm2234_vm0, %v20572_v10  ;;  %v9389_v62 = vadd.f32 %v20531_v47, %v9345_v37  ;;  %v9420_v42 = vmax.f32 %v9388_v61, 0.0  ;;  %v23434_v40 = vld [vmem:[#allocation118_spill] sm:$0xff]  ;;  %v16148_v61 = vld [vmem:[%s23154_s10 + $0x4d8] ss:$36 sps:$4 sm:$0xff]  }
 0x4ea   : > { %v9238_v31 = vpop.f32.mrf.mxu0  ;;  %10329 = vmatmul.mubr.bf16.vlgmr.msra.gmra.mxu1 %v20564_v55  ;;  %10442 = vmatmul.mubr.bf16.vlgmr.msra.gmra.mxu0 %v20564_v55  ;;  %v8173_v12 = vadd.f32 %v23433_v5, %v7795_v2  ;;  %v23438_v5 = vld [vmem:[#allocation102_spill] sm:$0xff] }
 0x4eb   : > { %v9390_v11 = vadd.f32 %v20536_v35, %v9346_v15  ;;  %v9347_v6 = vmul.f32 %v20513_v28, %v9303_v19  ;;  %v9304_v13 = vadd.f32 %v9238_v31, %v8925_v29  ;;  %10523 = vmatpush1.bf16.msra.mxu1 %v16136_v33  ;;  %10636 = vmatpush1.bf16.msra.mxu0 %v16139_v17  ;;  %v9421_v54 = vmax.f32 %v9389_v62, 0.0  ;;  %v23435_v19 = vld [vmem:[#allocation109_spill] sm:$0xff]  ;;  %v16156_v31 = vld [vmem:[%s23154_s10 + $0x494] ss:$36 sps:$4 sm:$0xff]  }
 0x4ec   : > { %v9240_v38 = vpop.f32.mrf.mxu0  ;;  %10524 = vmatprep.subr.bf16.mxu1 %v16144_v34  ;;  %10637 = vmatprep.subr.bf16.mxu0 %v16147_v57  ;;  %v8928_v29 = vadd.f32 %v20468_v20, %v23434_v40  ;;  %v20630_v34 = vpop.f32.mrf.mxu1  ;;  %v7799_v20 = vadd.f32 %v23435_v19, %v7401_v53  ;;  %v8929_v62 = vadd.f32 %v20473_v41, %v20431_v32 }
 0x4ed   : > { %v9422_v27 = vmax.f32 %v9390_v11, 0.0  ;;  %v9305_v21 = vadd.f32 %v9240_v38, %v8926_v9  ;;  %v20624_v33 = vpack.c.bf16 %v9421_v54, %v9419_v39  ;;  %v9348_v17 = vmul.f32 %v20524_v50, %v9304_v13  ;;  %v23436_v9 = vld [vmem:[#allocation120_spill] sm:$0xff] }
 0x4ee   : > { %v9242_v37 = vpop.f32.mrf.mxu0  ;;  %v9391_v15 = vadd.f32 %v20531_v47, %v9347_v6  ;;  %v8552_v11 = vadd.f32 %v23436_v9, %v8173_v12  ;;  %v20663_v4 = vpop.f32.mrf.mxu1  ;;  %v23439_v12 = vld [vmem:[#allocation101_spill] sm:$0xff] }
 0x4ef   : > { %v20632_v57 = vpack.c.bf16 %v9422_v27, %v9420_v42  ;;  %v9349_v2 = vmul.f32 %v20513_v28, %v9305_v21  ;;  %10525 = vmatpush1.bf16.msra.mxu1 %v16142_v60  ;;  %10638 = vmatpush1.bf16.msra.mxu0 %v16145_v16  ;;  %v9306_v0 = vadd.f32 %v9242_v37, %v8927_v49  ;;  %v23437_v16 = vld [vmem:[#allocation119_spill] sm:$0xff]  ;;  %v16162_v21 = vld [vmem:[%s23154_s10 + $0x44c] ss:$36 sps:$4 sm:$0xff]  }
 0x4f0   : > { %v9246_v18 = vpop.f32.mrf.mxu0  ;;  %10526 = vmatprep.subr.bf16.mxu1 %v16150_v22  ;;  %10639 = vmatprep.subr.bf16.mxu0 %v16153_v46  ;;  %v9392_v32 = vadd.f32 %v20536_v35, %v9348_v17  ;;  %v8930_v48 = vadd.f32 %v20483_v56, %v23437_v16  ;;  %v9423_v53 = vmax.f32 %v9391_v15, 0.0  ;;  %v16154_v22 = vld [vmem:[%s23154_s10 + $0x490] ss:$36 sps:$4 sm:$0xff]   ;;  %v16157_v46 = vld [vmem:[%s23154_s10 + $0x498] ss:$36 sps:$4 sm:$0xff]   ;;  %v7411_v56 = vadd.f32 %v23439_v12, %v23438_v5  ;;  %v23440_v15 = vld [vmem:[#allocation108_spill] sm:$0xff] }
 0x4f1   : > { %v9393_v6 = vadd.f32 %v20531_v47, %v9349_v2  ;;  %v9307_v13 = vadd.f32 %v9246_v18, %v8928_v29  ;;  %14522 = vmatprep.mubr.msk.bf16.mxu1 %vm2234_vm0, %v20632_v57  ;;  %14530 = vmatprep.mubr.msk.bf16.mxu0 %vm2234_vm0, %v20632_v57  ;;  %v9350_v41 = vmul.f32 %v20524_v50, %v9306_v0  ;;  %v16165_v17 = vld [vmem:[%s23154_s10 + $0x454] ss:$36 sps:$4 sm:$0xff]   ;;  %v23441_v0 = vld [vmem:[#allocation121_spill] sm:$0xff] }
 0x4f2   : > { %v9248_v60 = vpop.f32.mrf.mxu0  ;;  %10339 = vmatmul.mubr.bf16.gmra.mxu1 %v20624_v33  ;;  %10452 = vmatmul.mubr.bf16.gmra.mxu0 %v20624_v33  ;;  %v8931_v29 = vadd.f32 %v20491_v58, %v8552_v11  ;;  %v8177_v2 = vadd.f32 %v23440_v15, %v7799_v20  ;;  %v8932_v18 = vadd.f32 %v20508_v59, %v23441_v0  ;;  %v23442_v11 = vld [vmem:[#allocation122_spill] sm:$0xff]  ;;  %v16160_v59 = vld [vmem:[%s23154_s10 + $0x448] ss:$36 sps:$4 sm:$0xff]   ;;  %v16166_v15 = vld [vmem:[%s23154_s10 + $0x400] ss:$36 sps:$4 sm:$0xff]  }
 0x4f3   : > { %v9425_v39 = vmax.f32 %v9393_v6, 0.0  ;;  %v9351_v54 = vmul.f32 %v20513_v28, %v9307_v13  ;;  %v9308_v38 = vadd.f32 %v9248_v60, %v8929_v62  ;;  %10527 = vmatpush1.bf16.msra.mxu1 %v16148_v61  ;;  %10640 = vmatpush1.bf16.msra.mxu0 %v16151_v14  ;;  %v9394_v42 = vadd.f32 %v20536_v35, %v9350_v41  ;;  %v20688_v62 = vpop.f32.mrf.mxu1 }
 0x4f4   : > { %v9250_v27 = vpop.f32.mrf.mxu0  ;;  %10528 = vmatprep.subr.bf16.mxu1 %v16156_v31  ;;  %10641 = vmatprep.subr.bf16.mxu0 %v16159_v30  ;;  %v9424_v61 = vmax.f32 %v9392_v32, 0.0  ;;  %v8556_v6 = vadd.f32 %v20451_v3, %v8177_v2  ;;  %v8933_v13 = vadd.f32 %v20527_v8, %v23442_v11  ;;  %v16163_v32 = vld [vmem:[%s23154_s10 + $0x450] ss:$36 sps:$4 sm:$0xff]   ;;  %v16168_v8 = vld [vmem:[%s23154_s10 + $0x404] ss:$36 sps:$4 sm:$0xff]  }
 0x4f5   : > { %v20681_v49 = vpack.c.bf16 %v9425_v39, %v9423_v53  ;;  %v9352_v37 = vmul.f32 %v20524_v50, %v9308_v38  ;;  %v9309_v40 = vadd.f32 %v9250_v27, %v8930_v48  ;;  %v9426_v14 = vmax.f32 %v9394_v42, 0.0  ;;  %v16171_v48 = vld [vmem:[%s23154_s10 + $0x40c] ss:$36 sps:$4 sm:$0xff]   ;;  %v23443_v53 = vld [vmem:[#allocation104_spill] sm:$0xff]  ;;  %v23444_v39 = vld [vmem:[#allocation103_spill] sm:$0xff]  ;;  %v20719_v5 = vpop.f32.mrf.mxu1 }
 0x4f6   : > { %v9252_v19 = vpop.f32.mrf.mxu0  ;;  %v9395_v31 = vadd.f32 %v20531_v47, %v9351_v54  ;;  %v7421_v54 = vadd.f32 %v23444_v39, %v23443_v53  ;;  %v23445_v38 = vld [vmem:[#allocation111_spill] sm:$0xff]  ;;  %v16169_v2 = vld [vmem:[%s23154_s10 + $0x408] ss:$36 sps:$4 sm:$0xff]   ;;  %v16175_v53 = vld [vmem:[%s23154_s10 + $0x3c0] ss:$36 sps:$4 sm:$0xff]  }
 0x4f7   : > { %v9353_v30 = vmul.f32 %v20513_v28, %v9309_v40  ;;  %v9310_v9 = vadd.f32 %v9252_v19, %v8931_v29  ;;  %10529 = vmatpush1.bf16.msra.mxu1 %v16154_v22  ;;  %10642 = vmatpush1.bf16.msra.mxu0 %v16157_v46  ;;  %v20693_v58 = vpack.c.bf16 %v9426_v14, %v9424_v61  ;;  %v20745_v11 = vpop.f32.mrf.mxu1 }
 0x4f8   : > { %v9256_v20 = vpop.f32.mrf.mxu0  ;;  %10530 = vmatprep.subr.bf16.mxu1 %v16162_v21  ;;  %10643 = vmatprep.subr.bf16.mxu0 %v16165_v17  ;;  %v9396_v41 = vadd.f32 %v20536_v35, %v9352_v37  ;;  %v7803_v22 = vadd.f32 %v23445_v38, %v7411_v56  ;;  %v9427_v12 = vmax.f32 %v9395_v31, 0.0  ;;  %v23446_v17 = vld [vmem:[#allocation123_spill] sm:$0xff]  ;;  %v8935_v29 = vadd.f32 %v20558_v43, %v8556_v6  ;;  %v23448_v6 = vld [vmem:[#allocation113_spill] sm:$0xff]  ;;  %v23450_v38 = vld [vmem:[#allocation126_spill] sm:$0xff] }
 0x4f9   : > { %v9397_v3 = vadd.f32 %v20531_v47, %v9353_v30  ;;  %v9354_v60 = vmul.f32 %v20524_v50, %v9310_v9  ;;  %v9311_v16 = vadd.f32 %v9256_v20, %v8932_v18  ;;  %14523 = vmatprep.mubr.msk.bf16.mxu1 %vm2234_vm0, %v20693_v58  ;;  %14531 = vmatprep.mubr.msk.bf16.mxu0 %vm2234_vm0, %v20693_v58  ;;  %v16174_v30 = vld [vmem:[%s23154_s10 + $0x3bc] ss:$36 sps:$4 sm:$0xff]   ;;  %v16177_v9 = vld [vmem:[%s23154_s10 + $0x3c4] ss:$36 sps:$4 sm:$0xff]  }
 0x4fa   : > { %v9258_v46 = vpop.f32.mrf.mxu0  ;;  %10349 = vmatmul.mubr.bf16.gmra.mxu1 %v20681_v49  ;;  %10462 = vmatmul.mubr.bf16.gmra.mxu0 %v20681_v49  ;;  %v8934_v37 = vadd.f32 %v20542_v63, %v23446_v17  ;;  %v9428_v61 = vmax.f32 %v9396_v41, 0.0  ;;  %v23447_v63 = vld [vmem:[#allocation110_spill] sm:$0xff]  ;;  %v7807_v20 = vadd.f32 %v23448_v6, %v7421_v54 }
 0x4fb   : > { %v9429_v42 = vmax.f32 %v9397_v3, 0.0  ;;  %v9398_v27 = vadd.f32 %v20536_v35, %v9354_v60  ;;  %v9312_v21 = vadd.f32 %v9258_v46, %v8933_v13  ;;  %v9355_v56 = vmul.f32 %v20513_v28, %v9311_v16  ;;  %10531 = vmatpush1.bf16.msra.mxu1 %v16160_v59  ;;  %10644 = vmatpush1.bf16.msra.mxu0 %v16163_v32  ;;  %v23449_v32 = vld [vmem:[#allocation124_spill] sm:$0xff] }
 0x4fc   : > { %v9260_v40 = vpop.f32.mrf.mxu0  ;;  %10532 = vmatprep.subr.bf16.mxu1 %v16168_v8  ;;  %10645 = vmatprep.subr.bf16.mxu0 %v16171_v48  ;;  %v8181_v43 = vadd.f32 %v23447_v63, %v7803_v22  ;;  %v8936_v41 = vadd.f32 %v20570_v51, %v23449_v32  ;;  %v8937_v8 = vadd.f32 %v20605_v45, %v20461_v36  ;;  %v16172_v48 = vld [vmem:[%s23154_s10 + $0x3b8] ss:$36 sps:$4 sm:$0xff]  }
 0x4fd   : > { %v20734_v14 = vpack.c.bf16 %v9429_v42, %v9427_v12  ;;  %v9430_v19 = vmax.f32 %v9398_v27, 0.0  ;;  %v9356_v0 = vmul.f32 %v20524_v50, %v9312_v21  ;;  %v9313_v18 = vadd.f32 %v9260_v40, %v8934_v37  ;;  %v16180_v36 = vld [vmem:[%s23154_s10 + $0x374] ss:$36 sps:$4 sm:$0xff]   ;;  %v16183_v45 = vld [vmem:[%s23154_s10 + $0x37c] ss:$36 sps:$4 sm:$0xff]   ;;  %v23451_v42 = vld [vmem:[#allocation125_spill] sm:$0xff]  ;;  %v20777_v21 = vpop.f32.mrf.mxu1 }
 0x4fe   : > { %v9262_v31 = vpop.f32.mrf.mxu0  ;;  %v9399_v3 = vadd.f32 %v20531_v47, %v9355_v56  ;;  %v8560_v22 = vadd.f32 %v23450_v38, %v8181_v43  ;;  %v8938_v27 = vadd.f32 %v20630_v34, %v23451_v42  ;;  %v16178_v34 = vld [vmem:[%s23154_s10 + $0x370] ss:$36 sps:$4 sm:$0xff]  }
 0x4ff   : > { %v20747_v13 = vpack.c.bf16 %v9430_v19, %v9428_v61  ;;  %v9314_v59 = vadd.f32 %v9262_v31, %v8935_v29  ;;  %v9357_v60 = vmul.f32 %v20513_v28, %v9313_v18  ;;  %10533 = vmatpush1.bf16.msra.mxu1 %v16166_v15  ;;  %10646 = vmatpush1.bf16.msra.mxu0 %v16169_v2  ;;  %v16181_v2 = vld [vmem:[%s23154_s10 + $0x378] ss:$36 sps:$4 sm:$0xff]   ;;  %v23452_v61 = vld [vmem:[#allocation106_spill] sm:$0xff]  ;;  %v23453_v19 = vld [vmem:[#allocation105_spill] sm:$0xff]  ;;  %v8907_v63 = vpop.f32.mrf.mxu1 }
 0x500   : > { %v9266_v16 = vpop.f32.mrf.mxu0  ;;  %v9400_v51 = vadd.f32 %v20536_v35, %v9356_v0  ;;  %10534 = vmatprep.subr.bf16.mxu1 %v16174_v30  ;;  %10647 = vmatprep.subr.bf16.mxu0 %v16177_v9  ;;  %v9431_v40 = vmax.f32 %v9399_v3, 0.0  ;;  %v7431_v0 = vadd.f32 %v23453_v19, %v23452_v61  ;;  %v23454_v30 = vld [vmem:[#allocation112_spill] sm:$0xff]  ;;  %v8939_v32 = vadd.f32 %v20663_v4, %v8560_v22  ;;  %v16186_v3 = vld [vmem:[%s23154_s10 + $0x68c] ss:$36 sps:$4 sm:$0xff]  }
 0x501   : > { %v9358_v39 = vmul.f32 %v20524_v50, %v9314_v59  ;;  %v9315_v54 = vadd.f32 %v9266_v16, %v8936_v41  ;;  %14524 = vmatprep.mubr.msk.bf16.mxu1 %vm2234_vm0, %v20747_v13  ;;  %14532 = vmatprep.mubr.msk.bf16.mxu0 %vm2234_vm0, %v20747_v13  ;;  %v9401_v46 = vadd.f32 %v20531_v47, %v9357_v60  ;;  %v16189_v60 = vld [vmem:[%s23154_s10 + $0x694] ss:$36 sps:$4 sm:$0xff]   ;;  %v16193_v61 = vld [vmem:[%s23154_s10 + $0x648] ss:$36 sps:$4 sm:$0xff]  }
 0x502   : > { %v9268_v12 = vpop.f32.mrf.mxu0  ;;  %10359 = vmatmul.mubr.bf16.gmra.mxu1 %v20734_v14  ;;  %10472 = vmatmul.mubr.bf16.gmra.mxu0 %v20734_v14  ;;  %v9432_v43 = vmax.f32 %v9400_v51, 0.0  ;;  %v8185_v9 = vadd.f32 %v23454_v30, %v7807_v20  ;;  %v23456_v51 = vld [vmem:[#allocation115_spill] sm:$0xff]  ;;  %v16187_v38 = vld [vmem:[%s23154_s10 + $0x690] ss:$36 sps:$4 sm:$0xff]  }
 0x503   : > { %v9402_v56 = vadd.f32 %v20536_v35, %v9358_v39  ;;  %v9359_v17 = vmul.f32 %v20513_v28, %v9315_v54  ;;  %v9316_v37 = vadd.f32 %v9268_v12, %v8937_v8  ;;  %v9433_v29 = vmax.f32 %v9401_v46, 0.0  ;;  %10535 = vmatpush1.bf16.msra.mxu1 %v16172_v48  ;;  %10648 = vmatpush1.bf16.msra.mxu0 %v16175_v53  ;;  %v23455_v48 = vld [vmem:[#allocation127_spill] sm:$0xff] }
 0x504   : > { %v9270_v15 = vpop.f32.mrf.mxu0  ;;  %10536 = vmatprep.subr.bf16.mxu1 %v16180_v36  ;;  %10649 = vmatprep.subr.bf16.mxu0 %v16183_v45  ;;  %v8940_v53 = vadd.f32 %v20688_v62, %v23455_v48  ;;  %v7811_v4 = vadd.f32 %v23456_v51, %v7431_v0  ;;  %v8941_v36 = vadd.f32 %v20719_v5, %v20476_v1  ;;  %v16184_v45 = vld [vmem:[%s23154_s10 + $0x688] ss:$36 sps:$4 sm:$0xff]   ;;  %v8909_v62 = vpop.f32.mrf.mxu1  ;;  %v16198_v30 = vld [vmem:[%s23154_s10 + $0x5fc] ss:$36 sps:$4 sm:$0xff]  }
 0x505   : > { %v9434_v18 = vmax.f32 %v9402_v56, 0.0  ;;  %v9317_v31 = vadd.f32 %v9270_v15, %v8938_v27  ;;  %v20792_v6 = vpack.c.bf16 %v9433_v29, %v9431_v40  ;;  %v9360_v59 = vmul.f32 %v20524_v50, %v9316_v37  ;;  %v16192_v1 = vld [vmem:[%s23154_s10 + $0x644] ss:$36 sps:$4 sm:$0xff]  }
 0x506   : > { %v9272_v41 = vpop.f32.mrf.mxu0  ;;  %v9403_v8 = vadd.f32 %v20531_v47, %v9359_v17  ;;  %v8564_v22 = vadd.f32 %v20481_v44, %v8185_v9  ;;  %v23457_v44 = vld [vmem:[#allocation128_spill] sm:$0xff]  ;;  %v16195_v17 = vld [vmem:[%s23154_s10 + $0x64c] ss:$36 sps:$4 sm:$0xff]   ;;  %v8911_v19 = vpop.f32.mrf.mxu1 }
 0x507   : > { %v20802_v16 = vpack.c.bf16 %v9434_v18, %v9432_v43  ;;  %v9361_v20 = vmul.f32 %v20513_v28, %v9317_v31  ;;  %v9318_v39 = vadd.f32 %v9272_v41, %v8939_v32  ;;  %10537 = vmatpush1.bf16.msra.mxu1 %v16178_v34  ;;  %10650 = vmatpush1.bf16.msra.mxu0 %v16181_v2  ;;  %v16201_v9 = vld [vmem:[%s23154_s10 + $0x604] ss:$36 sps:$4 sm:$0xff]   ;;  %v23458_v32 = vld [vmem:[#allocation114_spill] sm:$0xff] }
 0x508   : > { %v9276_v54 = vpop.f32.mrf.mxu0  ;;  %v9404_v5 = vadd.f32 %v20536_v35, %v9360_v59  ;;  %v8942_v56 = vadd.f32 %v20745_v11, %v23457_v44  ;;  %10546 = vmatprep.subr.bf16.mxu1 %v16186_v3  ;;  %10659 = vmatprep.subr.bf16.mxu0 %v16189_v60  ;;  %v9435_v37 = vmax.f32 %v9403_v8, 0.0  ;;  %v16190_v11 = vld [vmem:[%s23154_s10 + $0x640] ss:$36 sps:$4 sm:$0xff]   ;;  %v8943_v31 = vadd.f32 %v20777_v21, %v8564_v22 }
 0x509   : > { %v9405_v46 = vadd.f32 %v20531_v47, %v9361_v20  ;;  %v9319_v12 = vadd.f32 %v9276_v54, %v8940_v53  ;;  %14525 = vmatprep.mubr.msk.bf16.mxu1 %vm2234_vm0, %v20802_v16  ;;  %14533 = vmatprep.mubr.msk.bf16.mxu0 %vm2234_vm0, %v20802_v16  ;;  %v9362_v42 = vmul.f32 %v20524_v50, %v9318_v39  ;;  %v16207_v22 = vld [vmem:[%s23154_s10 + $0x5bc] ss:$36 sps:$4 sm:$0xff]  }
 0x50a   : > { %v9278_v27 = vpop.f32.mrf.mxu0  ;;  %10369 = vmatmul.mubr.bf16.gmra.mxu1 %v20792_v6  ;;  %10482 = vmatmul.mubr.bf16.gmra.mxu0 %v20792_v6  ;;  %v8944_v59 = vadd.f32 %v8907_v63, %v20488_v7  ;;  %v8189_v41 = vadd.f32 %v23458_v32, %v7811_v4  ;;  %v9436_v3 = vmax.f32 %v9404_v5, 0.0  ;;  %v8945_v20 = vadd.f32 %v8909_v62, %v20494_v52  ;;  %v16196_v63 = vld [vmem:[%s23154_s10 + $0x5f8] ss:$36 sps:$4 sm:$0xff]   ;;  %v16199_v52 = vld [vmem:[%s23154_s10 + $0x600] ss:$36 sps:$4 sm:$0xff]   ;;  %v8913_v4 = vpop.f32.mrf.mxu1 }
 0x50b   : > { %v9437_v40 = vmax.f32 %v9405_v46, 0.0  ;;  %v9363_v29 = vmul.f32 %v20513_v28, %v9319_v12  ;;  %v9320_v15 = vadd.f32 %v9278_v27, %v8941_v36  ;;  %v9406_v34 = vadd.f32 %v20536_v35, %v9362_v42  ;;  %10547 = vmatpush2.bf16.msra.mxu1 %v16184_v45  ;;  %10660 = vmatpush2.bf16.msra.mxu0 %v16187_v38  ;;  %v16204_v38 = vld [vmem:[%s23154_s10 + $0x5b4] ss:$36 sps:$4 sm:$0xff]  }
 0x50c   : > { %v9280_v2 = vpop.f32.mrf.mxu0  ;;  %10548 = vmatprep.subr.bf16.mxu1 %v16192_v1  ;;  %10661 = vmatprep.subr.bf16.mxu0 %v16195_v17  ;;  %v8568_v51 = vadd.f32 %v20504_v25, %v8189_v41  ;;  %v8946_v42 = vadd.f32 %v8911_v19, %v20502_v24  ;;  %v16202_v17 = vld [vmem:[%s23154_s10 + $0x5b0] ss:$36 sps:$4 sm:$0xff]  }
 0x50d   : > { %v20843_v0 = vpack.c.bf16 %v9437_v40, %v9435_v37  ;;  %v9364_v43 = vmul.f32 %v20524_v50, %v9320_v15  ;;  %v9321_v18 = vadd.f32 %v9280_v2, %v8942_v56  ;;  %v9438_v60 = vmax.f32 %v9406_v34, 0.0  ;;  %v16205_v37 = vld [vmem:[%s23154_s10 + $0x5b8] ss:$36 sps:$4 sm:$0xff]  }
 0x50e   : > { %v9282_v8 = vpop.f32.mrf.mxu0  ;;  %v9407_v21 = vadd.f32 %v20531_v47, %v9363_v29  ;;  %v8947_v27 = vadd.f32 %v8913_v4, %v8568_v51  ;;  %v16216_v51 = vld [vmem:[%s23154_s10 + $0x4e8] ss:$36 sps:$4 sm:$0xff]   ;;  %v16227_v4 = vld [vmem:[%s23154_s10 + $0xdc] ss:$36 sps:$4 sm:$0xff]  }
 0x50f   : > { %v9365_v48 = vmul.f32 %v20513_v28, %v9321_v18  ;;  %v9322_v53 = vadd.f32 %v9282_v8, %v8943_v31  ;;  %v20859_v39 = vpack.c.bf16 %v9438_v60, %v9436_v3  ;;  %v9408_v54 = vadd.f32 %v20536_v35, %v9364_v43  ;;  %10549 = vmatpush2.bf16.msra.mxu1 %v16190_v11  ;;  %v16211_v11 = vld [vmem:[%s23154_s10 + $0x1fc] ss:$36 sps:$4 sm:$0xff]  }
 0x510   : > { %v9286_v7 = vpop.f32.mrf.mxu0  ;;  %10662 = vmatpush2.bf16.msra.mxu0 %v16193_v61  ;;  %10550 = vmatprep.subr.bf16.mxu1 %v16198_v30  ;;  %v9439_v46 = vmax.f32 %v9407_v21, 0.0  ;;  %v16212_v21 = vld [vmem:[%s23154_s10 + $0x530] ss:$36 sps:$4 sm:$0xff]  }
 0x511   : > { %v9409_v36 = vadd.f32 %v20531_v47, %v9365_v48  ;;  %v9366_v25 = vmul.f32 %v20524_v50, %v9322_v53  ;;  %v9323_v45 = vadd.f32 %v9286_v7, %v8944_v59  ;;  %10663 = vmatprep.subr.bf16.mxu0 %v16201_v9  ;;  %14526 = vmatprep.mubr.msk.bf16.mxu1 %vm2234_vm0, %v20859_v39  ;;  %v9440_v40 = vmax.f32 %v9408_v54, 0.0  ;;  %v16213_v48 = vld [vmem:[%s23154_s10 + $0x1b0] ss:$36 sps:$4 sm:$0xff]   ;;  %v16217_v54 = vld [vmem:[%s23154_s10 + $0x168] ss:$36 sps:$4 sm:$0xff]  }
 0x512   : > { %14534 = vmatprep.mubr.msk.bf16.mxu0 %vm2234_vm0, %v20859_v39  ;;  %v9288_v62 = vpop.f32.mrf.mxu0  ;;  %10379 = vmatmul.mubr.bf16.gmra.mxu1 %v20843_v0  ;;  %v23459_v59 = vmov 0   ;;  %v16219_v53 = vld [vmem:[%s23154_s10 + $0x16c] ss:$36 sps:$4 sm:$0xff]   ;;  %v16223_v7 = vld [vmem:[%s23154_s10 + $0x124] ss:$36 sps:$4 sm:$0xff]  }
 0x513   : > { %v9441_v12 = vmax.f32 %v9409_v36, 0.0  ;;  %v9410_v1 = vadd.f32 %v20536_v35, %v9366_v25  ;;  %v9324_v5 = vadd.f32 %v9288_v62, %v8945_v20  ;;  %10492 = vmatmul.mubr.bf16.gmra.mxu0 %v20843_v0  ;;  %v9367_v44 = vmul.f32 %v20513_v28, %v9323_v45  ;;  %10551 = vmatpush2.bf16.msra.mxu1 %v16196_v63  ;;  %v16215_v20 = vld [vmem:[%s23154_s10 + $0x1b4] ss:$36 sps:$4 sm:$0xff]   ;;  %v16220_v63 = vld [vmem:[%s23154_s10 + $0x4a0] ss:$36 sps:$4 sm:$0xff]  }
 0x514   : > { %v9290_v56 = vpop.f32.mrf.mxu0  ;;  %10664 = vmatpush2.bf16.msra.mxu0 %v16199_v52  ;;  %10552 = vmatprep.subr.bf16.mxu1 %v16204_v38  ;;  %v16221_v52 = vld [vmem:[%s23154_s10 + $0x120] ss:$36 sps:$4 sm:$0xff]   ;;  %v16224_v36 = vld [vmem:[%s23154_s10 + $0x458] ss:$36 sps:$4 sm:$0xff]   ;;  %v16228_v38 = vld [vmem:[%s23154_s10 + $0x410] ss:$36 sps:$4 sm:$0xff]  }
 0x515   : > { %v20891_v29 = vpack.c.bf16 %v9441_v12, %v9439_v46  ;;  %v9442_v15 = vmax.f32 %v9410_v1, 0.0  ;;  %v9368_v24 = vmul.f32 %v20524_v50, %v9324_v5  ;;  %10665 = vmatprep.subr.bf16.mxu0 %v16207_v22  ;;  %v9325_v34 = vadd.f32 %v9290_v56, %v8946_v42  ;;  %v16225_v25 = vld [vmem:[%s23154_s10 + $0xd8] ss:$36 sps:$4 sm:$0xff]   ;;  %v16229_v22 = vld [vmem:[%s23154_s10 + $0x90] ss:$36 sps:$4 sm:$0xff]  }
 0x516   : > { %v9292_v2 = vpop.f32.mrf.mxu0  ;;  %v9411_v43 = vadd.f32 %v20531_v47, %v9367_v44  ;;  %v16231_v45 = vld [vmem:[%s23154_s10 + $0x94] ss:$36 sps:$4 sm:$0xff]   ;;  %v16235_v62 = vld [vmem:[%s23154_s10 + $0x4c] ss:$36 sps:$4 sm:$0xff]   ;;  %v16239_v1 = vld [vmem:[%s23154_s10 + $0x4] ss:$36 sps:$4 sm:$0xff]  }
 0x517   : > { %v20897_v61 = vpack.c.bf16 %v9442_v15, %v9440_v40  ;;  %v9326_v19 = vadd.f32 %v9292_v2, %v8947_v27  ;;  %v9369_v18 = vmul.f32 %v20513_v28, %v9325_v34  ;;  %10553 = vmatpush2.bf16.msra.mxu1 %v16202_v17  ;;  %v9412_v31 = vadd.f32 %v20536_v35, %v9368_v24  ;;  %v16232_v46 = vld [vmem:[%s23154_s10 + $0x3c8] ss:$36 sps:$4 sm:$0xff]   ;;  %v16236_v5 = vld [vmem:[%s23154_s10 + $0x380] ss:$36 sps:$4 sm:$0xff]   ;;  %v16240_v44 = vld [vmem:[%s23154_s10 + $0x698] ss:$36 sps:$4 sm:$0xff]  }
 0x518   : > { %10666 = vmatpush2.bf16.msra.mxu0 %v16205_v37  ;;  %10748 = vmatprep.subr.bf16.mxu1 %v23459_v59  ;;  %v9443_v28 = vmax.f32 %v9411_v43, 0.0  ;;  %v16233_v12 = vld [vmem:[%s23154_s10 + $0x48] ss:$36 sps:$4 sm:$0xff]   ;;  %v16237_v42 = vld [vmem:[%s23154_s10] ss:$36 sps:$4 sm:$0xff]  }
 0x519   : > { %v9370_v30 = vmul.f32 %v20524_v50, %v9326_v19  ;;  %14527 = vmatprep.mubr.msk.bf16.mxu1 %vm2234_vm0, %v20897_v61  ;;  %14535 = vmatprep.mubr.msk.bf16.mxu0 %vm2234_vm0, %v20897_v61  ;;  %v9413_v9 = vadd.f32 %v20531_v47, %v9369_v18  ;;  %v9444_v50 = vmax.f32 %v9412_v31, 0.0  ;;  %v16208_v47 = vld [vmem:[%s23154_s10 + $0x578] ss:$36 sps:$4 sm:$0xff]   ;;  %v16244_v37 = vld [vmem:[%s23154_s10 + $0x650] ss:$36 sps:$4 sm:$0xff]   ;;  %v23460_v31 = vld [vmem:[#allocation84_spill] sm:$0xff] }
 0x51a   : > { %11421 = vmatprep.subr.bf16.mxu0 %v16211_v11  ;;  %10389 = vmatmul.mubr.bf16.gmra.mxu1 %v20891_v29  ;;  %v16243_v27 = vld [vmem:[%s23154_s10 + $0x31c] ss:$36 sps:$4 sm:$0xff]   ;;  %v16247_v17 = vld [vmem:[%s23154_s10 + $0x2d4] ss:$36 sps:$4 sm:$0xff]   ;;  %v16251_v15 = vld [vmem:[%s23154_s10 + $0x28c] ss:$36 sps:$4 sm:$0xff]  }
 0x51b   : > { %v9414_v32 = vadd.f32 %v20536_v35, %v9370_v30  ;;  %10502 = vmatmul.mubr.bf16.gmra.mxu0 %v20891_v29  ;;  %v9445_v41 = vmax.f32 %v9413_v9, 0.0  ;;  %v16209_v35 = vld [vmem:[%s23154_s10 + $0x1f8] ss:$36 sps:$4 sm:$0xff]   ;;  %v16245_v40 = vld [vmem:[%s23154_s10 + $0x2d0] ss:$36 sps:$4 sm:$0xff]   ;;  %v23462_v9 = vld [vmem:[#allocation17_spill] sm:$0xff] }
 0x51c   : > { %v16241_v56 = vld [vmem:[%s23154_s10 + $0x318] ss:$36 sps:$4 sm:$0xff]   ;;  %v16248_v24 = vld [vmem:[%s23154_s10 + $0x608] ss:$36 sps:$4 sm:$0xff]   ;;  %v16252_v11 = vld [vmem:[%s23154_s10 + $0x5c0] ss:$36 sps:$4 sm:$0xff]  }
 0x51d   : > { %v9446_v3 = vmax.f32 %v9414_v32, 0.0  ;;  %v20912_v60 = vpack.c.bf16 %v9445_v41, %v9443_v28  ;;  %v16249_v34 = vld [vmem:[%s23154_s10 + $0x288] ss:$36 sps:$4 sm:$0xff]   ;;  %v16253_v19 = vld [vmem:[%s23154_s10 + $0x240] ss:$36 sps:$4 sm:$0xff]   ;;  %v23461_v30 = vld [vmem:[#allocation22_spill] sm:$0xff] }
 0x51e   : > { %v16255_v2 = vld [vmem:[%s23154_s10 + $0x244] ss:$36 sps:$4 sm:$0xff]   ;;  %v16261_v18 = vld [vmem:[%s23154_s10 + $0x20c] ss:$36 sps:$4 sm:$0xff]   ;;  %v14952_v32 = vadd.f32 %v23462_v9, %v23461_v30  ;;  %v23463_v28 = vld [vmem:[#allocation39_spill] sm:$0xff] }
 0x51f   : > { %v20914_v8 = vpack.c.bf16 %v9446_v3, %v9444_v50  ;;  %v16258_v43 = vld [vmem:[%s23154_s10 + $0x204] ss:$36 sps:$4 sm:$0xff]   ;;  %v23465_v3 = vld [vmem:[#allocation34_spill] sm:$0xff] }
 0x520   : > { %v23464_v41 = vld [vmem:[#allocation40_spill] sm:$0xff] }
 0x521   : > { %14528 = vmatprep.mubr.msk.bf16.mxu1 %vm2234_vm0, %v20914_v8  ;;  %14536 = vmatprep.mubr.msk.bf16.mxu0 %vm2234_vm0, %v20914_v8  ;;  %v15016_v50 = vadd.f32 %v23464_v41, %v23463_v28  ;;  %v23486_v9 = vld [vmem:[#allocation64_spill] sm:$0xff] }
 0x522   : > { %10399 = vmatmul.mubr.bf16.gmra.mxu1 %v20912_v60 }
 0x523   : > { %10512 = vmatmul.mubr.bf16.gmra.mxu0 %v20912_v60  ;;  %14537 = vmatprep.mubr.msk.bf16.mxu1 %vm2234_vm0, %v20572_v10 }
 0x524   : > { %14545 = vmatprep.mubr.msk.bf16.mxu0 %vm2234_vm0, %v20572_v10 }
 0x52a   : > { %10555 = vmatmul.mubr.bf16.vlgmr.msra.gmra.mxu1 %v20564_v55 }
 0x52b   : > { %10668 = vmatmul.mubr.bf16.vlgmr.msra.gmra.mxu0 %v20564_v55  ;;  %14538 = vmatprep.mubr.msk.bf16.mxu1 %vm2234_vm0, %v20632_v57 }
 0x52c   : > { %14546 = vmatprep.mubr.msk.bf16.mxu0 %vm2234_vm0, %v20632_v57  ;;  %10749 = vmatpush1.bf16.msra.mxu1 %v16208_v47  ;;  %v23466_v47 = vld [vmem:[#allocation37_spill] sm:$0xff] }
 0x52d   : > { %11422 = vmatpush1.bf16.msra.mxu0 %v16209_v35  ;;  %10750 = vmatprep.subr.bf16.mxu1 %v23459_v59  ;;  %v15013_v35 = vadd.f32 %v23466_v47, %v23465_v3  ;;  %v16268_v3 = vld [vmem:[%s23154_s10 + $0x170] ss:$36 sps:$4 sm:$0xff]   ;;  %v16271_v47 = vld [vmem:[%s23154_s10 + $0x178] ss:$36 sps:$4 sm:$0xff]  }
 0x52e   : > { %11423 = vmatprep.subr.bf16.mxu0 %v16215_v20  ;;  %v23467_v20 = vld [vmem:[#allocation60_spill] sm:$0xff] }
 0x530   : > { %10751 = vmatpush1.bf16.msra.mxu1 %v16212_v21  ;;  %v23468_v21 = vld [vmem:[#allocation61_spill] sm:$0xff] }
 0x531   : > { %11424 = vmatpush1.bf16.msra.mxu0 %v16213_v48  ;;  %10752 = vmatprep.subr.bf16.mxu1 %v23459_v59  ;;  %v15080_v48 = vadd.f32 %v23468_v21, %v23467_v20  ;;  %v23489_v20 = vld [vmem:[#allocation63_spill] sm:$0xff] }
 0x532   : > { %11425 = vmatprep.subr.bf16.mxu0 %v16219_v53  ;;  %10565 = vmatmul.mubr.bf16.gmra.mxu1 %v20624_v33  ;;  %v16256_v53 = vld [vmem:[%s23154_s10 + $0x200] ss:$36 sps:$4 sm:$0xff]  }
 0x533   : > { %10678 = vmatmul.mubr.bf16.gmra.mxu0 %v20624_v33  ;;  %14539 = vmatprep.mubr.msk.bf16.mxu1 %vm2234_vm0, %v20693_v58 }
 0x534   : > { %14547 = vmatprep.mubr.msk.bf16.mxu0 %vm2234_vm0, %v20693_v58  ;;  %10753 = vmatpush1.bf16.msra.mxu1 %v16216_v51  ;;  %v2991_v51 = vadd.f32 %v15016_v50, %v14952_v32  ;;  %v23487_v32 = vld [vmem:[#allocation65_spill] sm:$0xff] }
 0x535   : > { %11426 = vmatpush1.bf16.msra.mxu0 %v16217_v54  ;;  %10754 = vmatprep.subr.bf16.mxu1 %v23459_v59  ;;  %v23469_v54 = vld [vmem:[#allocation58_spill] sm:$0xff]  ;;  %v15086_v28 = vadd.f32 %v23487_v32, %v23486_v9 }
 0x536   : > { %11427 = vmatprep.subr.bf16.mxu0 %v16223_v7  ;;  %v23470_v7 = vld [vmem:[#allocation59_spill] sm:$0xff]  ;;  %v23508_v9 = vld [vmem:[#allocation70_spill] sm:$0xff] }
 0x538   : > { %10755 = vmatpush1.bf16.msra.mxu1 %v16220_v63  ;;  %v15077_v63 = vadd.f32 %v23470_v7, %v23469_v54  ;;  %v16279_v54 = vld [vmem:[%s23154_s10 + $0x134] ss:$36 sps:$4 sm:$0xff]  }
 0x539   : > { %11428 = vmatpush1.bf16.msra.mxu0 %v16221_v52  ;;  %10756 = vmatprep.subr.bf16.mxu1 %v23459_v59  ;;  %v16264_v52 = vld [vmem:[%s23154_s10 + $0x1bc] ss:$36 sps:$4 sm:$0xff]  }
 0x53a   : > { %11429 = vmatprep.subr.bf16.mxu0 %v16227_v4  ;;  %10575 = vmatmul.mubr.bf16.gmra.mxu1 %v20681_v49  ;;  %v16267_v4 = vld [vmem:[%s23154_s10 + $0x1c4] ss:$36 sps:$4 sm:$0xff]  }
 0x53b   : > { %10688 = vmatmul.mubr.bf16.gmra.mxu0 %v20681_v49  ;;  %14540 = vmatprep.mubr.msk.bf16.mxu1 %vm2234_vm0, %v20747_v13 }
 0x53c   : > { %14548 = vmatprep.mubr.msk.bf16.mxu0 %vm2234_vm0, %v20747_v13  ;;  %10757 = vmatpush1.bf16.msra.mxu1 %v16224_v36  ;;  %v23471_v36 = vld [vmem:[#allocation25_spill] sm:$0xff] }
 0x53d   : > { %11430 = vmatpush1.bf16.msra.mxu0 %v16225_v25  ;;  %10758 = vmatprep.subr.bf16.mxu1 %v23459_v59  ;;  %v23472_v25 = vld [vmem:[#allocation50_spill] sm:$0xff] }
 0x53e   : > { %11431 = vmatprep.subr.bf16.mxu0 %v16231_v45  ;;  %v2988_v45 = vadd.f32 %v15013_v35, %v23472_v25  ;;  %v23488_v35 = vld [vmem:[#allocation62_spill] sm:$0xff]  ;;  %v23493_v25 = vld [vmem:[#allocation87_spill] sm:$0xff] }
 0x53f   : > { %v15083_v21 = vadd.f32 %v23489_v20, %v23488_v35  ;;  %v16280_v20 = vld [vmem:[%s23154_s10 + $0xe0] ss:$36 sps:$4 sm:$0xff]  }
 0x540   : > { %10759 = vmatpush1.bf16.msra.mxu1 %v16228_v38  ;;  %v3088_v38 = vadd.f32 %v15080_v48, %v2991_v51  ;;  %v16276_v51 = vld [vmem:[%s23154_s10 + $0x12c] ss:$36 sps:$4 sm:$0xff]  }
 0x541   : > { %11432 = vmatpush1.bf16.msra.mxu0 %v16229_v22  ;;  %10760 = vmatprep.subr.bf16.mxu1 %v23459_v59  ;;  %v23473_v22 = vld [vmem:[#allocation81_spill] sm:$0xff] }
 0x542   : > { %11433 = vmatprep.subr.bf16.mxu0 %v16235_v62  ;;  %10585 = vmatmul.mubr.bf16.gmra.mxu1 %v20734_v14  ;;  %v23474_v62 = vld [vmem:[#allocation82_spill] sm:$0xff] }
 0x543   : > { %10698 = vmatmul.mubr.bf16.gmra.mxu0 %v20734_v14  ;;  %14541 = vmatprep.mubr.msk.bf16.mxu1 %vm2234_vm0, %v20802_v16 }
 0x544   : > { %14549 = vmatprep.mubr.msk.bf16.mxu0 %vm2234_vm0, %v20802_v16  ;;  %10761 = vmatpush1.bf16.msra.mxu1 %v16232_v46  ;;  %v15144_v46 = vadd.f32 %v23474_v62, %v23473_v22  ;;  %v23495_v62 = vld [vmem:[#allocation100_spill] sm:$0xff] }
 0x545   : > { %11434 = vmatpush1.bf16.msra.mxu0 %v16233_v12  ;;  %10762 = vmatprep.subr.bf16.mxu1 %v23459_v59  ;;  %v23475_v12 = vld [vmem:[#allocation80_spill] sm:$0xff] }
 0x546   : > { %11435 = vmatprep.subr.bf16.mxu0 %v16239_v1  ;;  %v23476_v1 = vld [vmem:[#allocation20_spill] sm:$0xff]  ;;  %v3185_v41 = vadd.f32 %v15144_v46, %v3088_v38  ;;  %v23496_v46 = vld [vmem:[#allocation31_spill] sm:$0xff] }
 0x547   : > { %v23494_v38 = vld [vmem:[#allocation92_spill] sm:$0xff] }
 0x548   : > { %10763 = vmatpush1.bf16.msra.mxu1 %v16236_v5  ;;  %v23477_v5 = vld [vmem:[#allocation28_spill] sm:$0xff] }
 0x549   : > { %11436 = vmatpush1.bf16.msra.mxu0 %v16237_v42  ;;  %10772 = vmatprep.subr.bf16.mxu1 %v23459_v59  ;;  %v14958_v42 = vadd.f32 %v23477_v5, %v23476_v1  ;;  %v23497_v1 = vld [vmem:[#allocation32_spill] sm:$0xff] }
 0x54a   : > { %11445 = vmatprep.subr.bf16.mxu0 %v16243_v27  ;;  %10595 = vmatmul.mubr.bf16.gmra.mxu1 %v20792_v6  ;;  %v23478_v27 = vld [vmem:[#allocation44_spill] sm:$0xff]  ;;  %v14964_v5 = vadd.f32 %v23497_v1, %v23496_v46  ;;  %v23516_v46 = vld [vmem:[#allocation93_spill] sm:$0xff] }
 0x54b   : > { %10708 = vmatmul.mubr.bf16.gmra.mxu0 %v20792_v6  ;;  %14542 = vmatprep.mubr.msk.bf16.mxu1 %vm2234_vm0, %v20859_v39 }
 0x54c   : > { %14550 = vmatprep.mubr.msk.bf16.mxu0 %vm2234_vm0, %v20859_v39  ;;  %10773 = vmatpush2.bf16.msra.mxu1 %v16240_v44  ;;  %v23479_v44 = vld [vmem:[#allocation46_spill] sm:$0xff] }
 0x54d   : > { %11446 = vmatpush2.bf16.msra.mxu0 %v16241_v56  ;;  %10774 = vmatprep.subr.bf16.mxu1 %v23459_v59  ;;  %v16262_v56 = vld [vmem:[%s23154_s10 + $0x1b8] ss:$36 sps:$4 sm:$0xff]  }
 0x54e   : > { %11447 = vmatprep.subr.bf16.mxu0 %v16247_v17  ;;  %v16265_v17 = vld [vmem:[%s23154_s10 + $0x1c0] ss:$36 sps:$4 sm:$0xff]  }
 0x550   : > { %10775 = vmatpush2.bf16.msra.mxu1 %v16244_v37  ;;  %v23480_v37 = vld [vmem:[#allocation77_spill] sm:$0xff] }
 0x551   : > { %11448 = vmatpush2.bf16.msra.mxu0 %v16245_v40  ;;  %10776 = vmatprep.subr.bf16.mxu1 %v23459_v59  ;;  %v23481_v40 = vld [vmem:[#allocation79_spill] sm:$0xff] }
 0x552   : > { %11449 = vmatprep.subr.bf16.mxu0 %v16251_v15  ;;  %10605 = vmatmul.mubr.bf16.gmra.mxu1 %v20843_v0  ;;  %v15141_v15 = vadd.f32 %v23481_v40, %v23480_v37  ;;  %v23502_v37 = vld [vmem:[#allocation71_spill] sm:$0xff] }
 0x553   : > { %10718 = vmatmul.mubr.bf16.gmra.mxu0 %v20843_v0  ;;  %14543 = vmatprep.mubr.msk.bf16.mxu1 %vm2234_vm0, %v20897_v61 }
 0x554   : > { %14551 = vmatprep.mubr.msk.bf16.mxu0 %vm2234_vm0, %v20897_v61  ;;  %10777 = vmatpush2.bf16.msra.mxu1 %v16248_v24  ;;  %v16270_v24 = vld [vmem:[%s23154_s10 + $0x174] ss:$36 sps:$4 sm:$0xff]  }
 0x555   : > { %11450 = vmatpush2.bf16.msra.mxu0 %v16249_v34  ;;  %10778 = vmatprep.subr.bf16.mxu1 %v23459_v59  ;;  %v16273_v34 = vld [vmem:[%s23154_s10 + $0x17c] ss:$36 sps:$4 sm:$0xff]  }
 0x556   : > { %11451 = vmatprep.subr.bf16.mxu0 %v16255_v2  ;;  %v23482_v2 = vld [vmem:[#allocation18_spill] sm:$0xff] }
 0x558   : > { %10779 = vmatpush2.bf16.msra.mxu1 %v16252_v11  ;;  %v23483_v11 = vld [vmem:[#allocation19_spill] sm:$0xff] }
 0x559   : > { %11452 = vmatpush2.bf16.msra.mxu0 %v16253_v19  ;;  %11534 = vmatprep.subr.bf16.mxu1 %v16258_v43  ;;  %v14955_v19 = vadd.f32 %v23483_v11, %v23482_v2  ;;  %v23484_v43 = vld [vmem:[#allocation42_spill] sm:$0xff] }
 0x55a   : > { %11647 = vmatprep.subr.bf16.mxu0 %v16261_v18  ;;  %10615 = vmatmul.mubr.bf16.gmra.mxu1 %v20891_v29  ;;  %v23485_v18 = vld [vmem:[#allocation43_spill] sm:$0xff]  ;;  %v23504_v2 = vld [vmem:[#allocation30_spill] sm:$0xff] }
 0x55b   : > { %10728 = vmatmul.mubr.bf16.gmra.mxu0 %v20891_v29  ;;  %14544 = vmatprep.mubr.msk.bf16.mxu1 %vm2234_vm0, %v20914_v8  ;;  %v15019_v30 = vadd.f32 %v23485_v18, %v23484_v43  ;;  %v23506_v43 = vld [vmem:[#allocation49_spill] sm:$0xff] }
 0x55c   : > { %14552 = vmatprep.mubr.msk.bf16.mxu0 %vm2234_vm0, %v20914_v8 }
 0x55d   : > { %v2996_v7 = vadd.f32 %v15019_v30, %v14955_v19  ;;  %v23505_v19 = vld [vmem:[#allocation48_spill] sm:$0xff] }
 0x55e   : > { %v15025_v18 = vadd.f32 %v23506_v43, %v23505_v19  ;;  %v23507_v30 = vld [vmem:[#allocation68_spill] sm:$0xff]  ;;  %v23524_v43 = vld [vmem:[#allocation33_spill] sm:$0xff] }
 0x55f   : > { %v15092_v32 = vadd.f32 %v23508_v9, %v23507_v30  ;;  %v16297_v19 = vld [vmem:[%s23154_s10 + $0x5c] ss:$36 sps:$4 sm:$0xff]   ;;  %v23526_v9 = vld [vmem:[#allocation53_spill] sm:$0xff] }
 0x562   : > { %10625 = vmatmul.mubr.bf16.gmra.mxu1 %v20912_v60 }
 0x563   : > { %10738 = vmatmul.mubr.bf16.gmra.mxu0 %v20912_v60  ;;  %14553 = vmatprep.mubr.msk.bf16.mxu1 %vm2234_vm0, %v20572_v10  ;;  %v16259_v10 = vld [vmem:[%s23154_s10 + $0x208] ss:$36 sps:$4 sm:$0xff]  }
 0x564   : > { %14669 = vmatprep.mubr.msk.bf16.mxu0 %vm2234_vm0, %v23460_v31 }
 0x56a   : > { %10781 = vmatmul.mubr.bf16.vlgmr.msra.gmra.mxu1 %v20564_v55  ;;  %v15022_v55 = vadd.f32 %v23479_v44, %v23478_v27  ;;  %v23499_v27 = vld [vmem:[#allocation52_spill] sm:$0xff]  ;;  %v16274_v44 = vld [vmem:[%s23154_s10 + $0x128] ss:$36 sps:$4 sm:$0xff]  }
 0x56b   : > { %11454 = vmatmul.mubr.bf16.vlgmr.msra.gmra.mxu0 %v23471_v36  ;;  %14554 = vmatprep.mubr.msk.bf16.mxu1 %vm2234_vm0, %v20632_v57  ;;  %v3085_v57 = vadd.f32 %v15077_v63, %v2988_v45  ;;  %v23491_v63 = vld [vmem:[#allocation12_spill] sm:$0xff] }
 0x56c   : > { %14670 = vmatprep.mubr.msk.bf16.mxu0 %vm2234_vm0, %v23475_v12  ;;  %11535 = vmatpush1.bf16.msra.mxu1 %v16256_v53  ;;  %v2999_v50 = vadd.f32 %v15022_v55, %v14958_v42  ;;  %v23490_v53 = vld [vmem:[#allocation96_spill] sm:$0xff]  ;;  %v23498_v42 = vld [vmem:[#allocation51_spill] sm:$0xff]  ;;  %v16277_v55 = vld [vmem:[%s23154_s10 + $0x130] ss:$36 sps:$4 sm:$0xff]  }
 0x56d   : > { %11648 = vmatpush1.bf16.msra.mxu0 %v16259_v10  ;;  %11536 = vmatprep.subr.bf16.mxu1 %v16264_v52  ;;  %v3182_v48 = vadd.f32 %v15141_v15, %v3085_v57  ;;  %v3282_v10 = vadd.f32 %v23490_v53, %v3185_v41  ;;  %v16282_v15 = vld [vmem:[%s23154_s10 + $0xe4] ss:$36 sps:$4 sm:$0xff]   ;;  %v23511_v53 = vld [vmem:[#allocation94_spill] sm:$0xff] }
 0x56e   : > { %11649 = vmatprep.subr.bf16.mxu0 %v16267_v4  ;;  %v3096_v52 = vadd.f32 %v15086_v28, %v2999_v50  ;;  %v23492_v4 = vld [vmem:[#allocation86_spill] sm:$0xff] }
 0x56f   : > { %v15150_v45 = vadd.f32 %v23493_v25, %v23492_v4  ;;  %v3279_v22 = vadd.f32 %v23494_v38, %v3182_v48  ;;  %v3355_v40 = vmul.f32 %v23502_v37, %v3282_v10  ;;  %v23513_v25 = vld [vmem:[#allocation36_spill] sm:$0xff] }
 0x570   : > { %11537 = vmatpush1.bf16.msra.mxu1 %v16262_v56  ;;  %v23500_v56 = vld [vmem:[#allocation83_spill] sm:$0xff] }
 0x571   : > { %11650 = vmatpush1.bf16.msra.mxu0 %v16265_v17  ;;  %11538 = vmatprep.subr.bf16.mxu1 %v16270_v24  ;;  %v23501_v17 = vld [vmem:[#allocation85_spill] sm:$0xff]  ;;  %v3352_v28 = vmul.f32 %v23502_v37, %v3279_v22  ;;  %v3193_v41 = vadd.f32 %v15150_v45, %v3096_v52  ;;  %v23514_v45 = vld [vmem:[#allocation38_spill] sm:$0xff]  ;;  %v23515_v22 = vld [vmem:[#allocation91_spill] sm:$0xff] }
 0x572   : > { %11651 = vmatprep.subr.bf16.mxu0 %v16273_v34  ;;  %10789 = vmatmul.mubr.bf16.gmra.mxu1 %v20624_v33  ;;  %v15028_v33 = vadd.f32 %v23499_v27, %v23498_v42  ;;  %v15147_v57 = vadd.f32 %v23501_v17, %v23500_v56  ;;  %v16285_v24 = vld [vmem:[%s23154_s10 + $0xec] ss:$36 sps:$4 sm:$0xff]   ;;  %v16291_v52 = vld [vmem:[%s23154_s10 + $0xa4] ss:$36 sps:$4 sm:$0xff]   ;;  %v14970_v38 = vadd.f32 %v23514_v45, %v23513_v25  ;;  %v23532_v45 = vld [vmem:[#allocation75_spill] sm:$0xff] }
 0x573   : > { %11464 = vmatmul.mubr.bf16.gmra.mxu0 %v23491_v63  ;;  %14555 = vmatprep.mubr.msk.bf16.mxu1 %vm2234_vm0, %v20693_v58  ;;  %v3093_v58 = vadd.f32 %v15083_v21, %v2996_v7  ;;  %v23503_v34 = vld [vmem:[#allocation29_spill] sm:$0xff]  ;;  %v3290_v10 = vadd.f32 %v23511_v53, %v3193_v41  ;;  %v16288_v7 = vld [vmem:[%s23154_s10 + $0x9c] ss:$36 sps:$4 sm:$0xff]   ;;  %v15156_v1 = vadd.f32 %v23516_v46, %v23515_v22  ;;  %v23518_v27 = vld [vmem:[#allocation90_spill] sm:$0xff] }
 0x574   : > { %14671 = vmatprep.mubr.msk.bf16.mxu0 %vm2234_vm0, %v23495_v62  ;;  %11539 = vmatpush1.bf16.msra.mxu1 %v16268_v3  ;;  %v14961_v11 = vadd.f32 %v23504_v2, %v23503_v34  ;;  %v3007_v50 = vadd.f32 %v15028_v33, %v14964_v5  ;;  %v23509_v3 = vld [vmem:[#allocation66_spill] sm:$0xff]  ;;  %v16283_v21 = vld [vmem:[%s23154_s10 + $0xe8] ss:$36 sps:$4 sm:$0xff]   ;;  %v23521_v56 = vld [vmem:[#allocation56_spill] sm:$0xff] }
 0x575   : > { %11652 = vmatpush1.bf16.msra.mxu0 %v16271_v47  ;;  %11540 = vmatprep.subr.bf16.mxu1 %v16276_v51  ;;  %v23510_v47 = vld [vmem:[#allocation67_spill] sm:$0xff]  ;;  %v3190_v48 = vadd.f32 %v15147_v57, %v3093_v58  ;;  %v23517_v5 = vld [vmem:[#allocation13_spill] sm:$0xff]  ;;  %v3361_v34 = vmul.f32 %v23502_v37, %v3290_v10  ;;  %v23528_v41 = vld [vmem:[#allocation76_spill] sm:$0xff] }
 0x576   : > { %11653 = vmatprep.subr.bf16.mxu0 %v16279_v54  ;;  %v15089_v35 = vadd.f32 %v23510_v47, %v23509_v3  ;;  %v23512_v51 = vld [vmem:[#allocation47_spill] sm:$0xff]  ;;  %v3004_v4 = vadd.f32 %v15025_v18, %v14961_v11  ;;  %v3104_v42 = vadd.f32 %v15092_v32, %v3007_v50  ;;  %v23527_v32 = vld [vmem:[#allocation54_spill] sm:$0xff] }
 0x577   : > { %v3420_v54 = vadd.f32 %v23512_v51, %v3355_v40  ;;  %v3287_v33 = vadd.f32 %v23518_v27, %v3190_v48  ;;  %v23520_v58 = vld [vmem:[#allocation55_spill] sm:$0xff]  ;;  %v23522_v40 = vld [vmem:[#allocation88_spill] sm:$0xff]  ;;  %v23529_v50 = vld [vmem:[#allocation78_spill] sm:$0xff] }
 0x578   : > { %11541 = vmatpush1.bf16.msra.mxu1 %v16274_v44  ;;  %v3417_v44 = vadd.f32 %v23512_v51, %v3352_v28  ;;  %v15034_v17 = vadd.f32 %v23521_v56, %v23520_v58  ;;  %v3101_v57 = vadd.f32 %v15089_v35, %v3004_v4  ;;  %v16294_v11 = vld [vmem:[%s23154_s10 + $0x54] ss:$36 sps:$4 sm:$0xff]   ;;  %v15031_v28 = vadd.f32 %v23527_v32, %v23526_v9  ;;  %v23530_v48 = vld [vmem:[#allocation72_spill] sm:$0xff]  ;;  %v16300_v22 = vld [vmem:[%s23154_s10 + $0xc] ss:$36 sps:$4 sm:$0xff]  }
 0x579   : > { %11654 = vmatpush1.bf16.msra.mxu0 %v16277_v55  ;;  %11542 = vmatprep.subr.bf16.mxu1 %v16282_v15  ;;  %v23519_v55 = vld [vmem:[#allocation99_spill] sm:$0xff]  ;;  %v23523_v15 = vld [vmem:[#allocation89_spill] sm:$0xff]  ;;  %v3468_v2 = vmax.f32 %v3420_v54, 0.0  ;;  %v15098_v3 = vadd.f32 %v23529_v50, %v23528_v41  ;;  %v3358_v47 = vmul.f32 %v23502_v37, %v3287_v33  ;;  %v23531_v53 = vld [vmem:[#allocation74_spill] sm:$0xff]  ;;  %v3426_v4 = vadd.f32 %v23512_v51, %v3361_v34 }
 0x57a   : > { %11655 = vmatprep.subr.bf16.mxu0 %v16285_v24  ;;  %10797 = vmatmul.mubr.bf16.gmra.mxu1 %v20681_v49  ;;  %v15153_v49 = vadd.f32 %v23523_v15, %v23522_v40  ;;  %v16286_v24 = vld [vmem:[%s23154_s10 + $0x98] ss:$36 sps:$4 sm:$0xff]   ;;  %v3465_v35 = vmax.f32 %v3417_v44, 0.0  ;;  %v15095_v10 = vadd.f32 %v23531_v53, %v23530_v48  ;;  %v23534_v27 = vld [vmem:[#allocation69_spill] sm:$0xff]  ;;  %v16304_v9 = vld [vmem:[%s23154_s10 + $0x320] ss:$36 sps:$4 sm:$0xff]  }
 0x57b   : > { %11474 = vmatmul.mubr.bf16.gmra.mxu0 %v23517_v5  ;;  %14556 = vmatprep.mubr.msk.bf16.mxu1 %vm2234_vm0, %v20747_v13  ;;  %v16289_v13 = vld [vmem:[%s23154_s10 + $0xa0] ss:$36 sps:$4 sm:$0xff]   ;;  %v23525_v18 = vld [vmem:[#allocation35_spill] sm:$0xff]  ;;  %v3423_v56 = vadd.f32 %v23512_v51, %v3358_v47  ;;  %v3474_v34 = vmax.f32 %v3426_v4, 0.0  ;;  %v16307_v32 = vld [vmem:[%s23154_s10 + $0x328] ss:$36 sps:$4 sm:$0xff]  }
 0x57c   : > { %14672 = vmatprep.mubr.msk.bf16.mxu0 %vm2234_vm0, %v23519_v55  ;;  %11543 = vmatpush1.bf16.msra.mxu1 %v16280_v20  ;;  %v14967_v30 = vadd.f32 %v23525_v18, %v23524_v43  ;;  %v3201_v20 = vadd.f32 %v15156_v1, %v3104_v42  ;;  %v3198_v54 = vadd.f32 %v15153_v49, %v3101_v57  ;;  %v16303_v46 = vld [vmem:[%s23154_s10 + $0x14] ss:$36 sps:$4 sm:$0xff]   ;;  %v23533_v42 = vld [vmem:[#allocation57_spill] sm:$0xff]  ;;  %v16312_v47 = vld [vmem:[%s23154_s10 + $0x2dc] ss:$36 sps:$4 sm:$0xff]  }
 0x57d   : > { %11656 = vmatpush1.bf16.msra.mxu0 %v16283_v21  ;;  %11544 = vmatprep.subr.bf16.mxu1 %v16288_v7  ;;  %v3015_v21 = vadd.f32 %v15034_v17, %v14970_v38  ;;  %v16292_v7 = vld [vmem:[%s23154_s10 + $0x50] ss:$36 sps:$4 sm:$0xff]   ;;  %v21262_v25 = vpack.c.bf16 %v3468_v2, %v3465_v35  ;;  %v15162_v33 = vadd.f32 %v23534_v27, %v23533_v42  ;;  %v23535_v44 = vld [vmem:[#allocation15_spill] sm:$0xff]  ;;  %v23536_v17 = vld [vmem:[#allocation45_spill] sm:$0xff] }
 0x57e   : > { %11657 = vmatprep.subr.bf16.mxu0 %v16291_v52  ;;  %v16295_v52 = vld [vmem:[%s23154_s10 + $0x58] ss:$36 sps:$4 sm:$0xff]   ;;  %v3298_v38 = vadd.f32 %v23532_v45, %v3201_v20  ;;  %v3012_v1 = vadd.f32 %v15031_v28, %v14967_v30  ;;  %v3295_v57 = vadd.f32 %v23536_v17, %v3198_v54  ;;  %v23538_v49 = vld [vmem:[#allocation97_spill] sm:$0xff]  ;;  %v23540_v20 = vld [vmem:[#allocation26_spill] sm:$0xff] }
 0x57f   : > { %v3112_v58 = vadd.f32 %v15098_v3, %v3015_v21  ;;  %v23537_v15 = vld [vmem:[#allocation95_spill] sm:$0xff]  ;;  %v16306_v2 = vld [vmem:[%s23154_s10 + $0x324] ss:$36 sps:$4 sm:$0xff]   ;;  %v23541_v21 = vld [vmem:[#allocation98_spill] sm:$0xff] }
 0x580   : > { %11545 = vmatpush1.bf16.msra.mxu1 %v16286_v24  ;;  %v3109_v40 = vadd.f32 %v15095_v10, %v3012_v1  ;;  %v15159_v24 = vadd.f32 %v23538_v49, %v23537_v15  ;;  %v3364_v43 = vmul.f32 %v23502_v37, %v3295_v57  ;;  %v23539_v41 = vld [vmem:[#allocation73_spill] sm:$0xff]  ;;  %v16310_v10 = vld [vmem:[%s23154_s10 + $0x2d8] ss:$36 sps:$4 sm:$0xff]   ;;  %v23543_v57 = vld [vmem:[#allocation14_spill] sm:$0xff] }
 0x581   : > { %11658 = vmatpush1.bf16.msra.mxu0 %v16289_v13  ;;  %11546 = vmatprep.subr.bf16.mxu1 %v16294_v11  ;;  %v16301_v13 = vld [vmem:[%s23154_s10 + $0x10] ss:$36 sps:$4 sm:$0xff]   ;;  %v3209_v18 = vadd.f32 %v15162_v33, %v3112_v58  ;;  %v16315_v35 = vld [vmem:[%s23154_s10 + $0x2e4] ss:$36 sps:$4 sm:$0xff]   ;;  %v23542_v27 = vld [vmem:[#allocation27_spill] sm:$0xff] }
 0x582   : > { %11659 = vmatprep.subr.bf16.mxu0 %v16297_v19  ;;  %10805 = vmatmul.mubr.bf16.gmra.mxu1 %v20734_v14  ;;  %v16298_v14 = vld [vmem:[%s23154_s10 + $0x8] ss:$36 sps:$4 sm:$0xff]   ;;  %v3471_v19 = vmax.f32 %v3423_v56, 0.0  ;;  %v3206_v30 = vadd.f32 %v15159_v24, %v3109_v40  ;;  %v3429_v53 = vadd.f32 %v23512_v51, %v3364_v43  ;;  %v16327_v42 = vld [vmem:[%s23154_s10 + $0x254] ss:$36 sps:$4 sm:$0xff]   ;;  %v23544_v40 = vld [vmem:[#allocation16_spill] sm:$0xff] }
 0x583   : > { %11484 = vmatmul.mubr.bf16.gmra.mxu0 %v23535_v44  ;;  %14557 = vmatprep.mubr.msk.bf16.mxu1 %vm2234_vm0, %v20802_v16  ;;  %v3367_v16 = vmul.f32 %v23502_v37, %v3298_v38  ;;  %v16309_v11 = vld [vmem:[%s23154_s10 + $0x32c] ss:$36 sps:$4 sm:$0xff]   ;;  %v3306_v50 = vadd.f32 %v23539_v41, %v3209_v18  ;;  %v16336_v18 = vld [vmem:[%s23154_s10 + $0x180] ss:$36 sps:$4 sm:$0xff]  }
 0x584   : > { %14673 = vmatprep.mubr.msk.bf16.mxu0 %vm2234_vm0, %v21262_v25  ;;  %11547 = vmatpush1.bf16.msra.mxu1 %v16292_v7  ;;  %v21303_v28 = vpack.c.bf16 %v3474_v34, %v3471_v19  ;;  %v3303_v48 = vadd.f32 %v23541_v21, %v3206_v30  ;;  %v3477_v45 = vmax.f32 %v3429_v53, 0.0  ;;  %v16316_v38 = vld [vmem:[%s23154_s10 + $0x290] ss:$36 sps:$4 sm:$0xff]   ;;  %v16322_v58 = vld [vmem:[%s23154_s10 + $0x248] ss:$36 sps:$4 sm:$0xff]  }
 0x585   : > { %11660 = vmatpush1.bf16.msra.mxu0 %v16295_v52  ;;  %11548 = vmatprep.subr.bf16.mxu1 %v16300_v22  ;;  %v3432_v3 = vadd.f32 %v23512_v51, %v3367_v16  ;;  %v3373_v54 = vmul.f32 %v23502_v37, %v3306_v50  ;;  %v16321_v52 = vld [vmem:[%s23154_s10 + $0x29c] ss:$36 sps:$4 sm:$0xff]   ;;  %v16335_v34 = vld [vmem:[%s23154_s10 + $0x1d0] ss:$36 sps:$4 sm:$0xff]   ;;  %v16339_v30 = vld [vmem:[%s23154_s10 + $0x188] ss:$36 sps:$4 sm:$0xff]  }
 0x586   : > { %11661 = vmatprep.subr.bf16.mxu0 %v16303_v46  ;;  %v3370_v4 = vmul.f32 %v23502_v37, %v3303_v48  ;;  %v16319_v22 = vld [vmem:[%s23154_s10 + $0x298] ss:$36 sps:$4 sm:$0xff]   ;;  %v16324_v37 = vld [vmem:[%s23154_s10 + $0x24c] ss:$36 sps:$4 sm:$0xff]  }
 0x587   : > { %v3480_v7 = vmax.f32 %v3432_v3, 0.0  ;;  %v3438_v46 = vadd.f32 %v23512_v51, %v3373_v54  ;;  %v16342_v41 = vld [vmem:[%s23154_s10 + $0x13c] ss:$36 sps:$4 sm:$0xff]   ;;  %v16346_v53 = vld [vmem:[%s23154_s10 + $0xf4] ss:$36 sps:$4 sm:$0xff]  }
 0x588   : > { %11549 = vmatpush1.bf16.msra.mxu1 %v16298_v14  ;;  %v3435_v33 = vadd.f32 %v23512_v51, %v3370_v4  ;;  %v16344_v54 = vld [vmem:[%s23154_s10 + $0xf0] ss:$36 sps:$4 sm:$0xff]  }
 0x589   : > { %11662 = vmatpush1.bf16.msra.mxu0 %v16301_v13  ;;  %11558 = vmatprep.subr.bf16.mxu1 %v16306_v2  ;;  %v21342_v1 = vpack.c.bf16 %v3480_v7, %v3477_v45  ;;  %v3486_v56 = vmax.f32 %v3438_v46, 0.0  ;;  %v16332_v13 = vld [vmem:[%s23154_s10 + $0x1c8] ss:$36 sps:$4 sm:$0xff]   ;;  %v16347_v7 = vld [vmem:[%s23154_s10 + $0xf8] ss:$36 sps:$4 sm:$0xff]  }
 0x58a   : > { %11671 = vmatprep.subr.bf16.mxu0 %v16309_v11  ;;  %10813 = vmatmul.mubr.bf16.gmra.mxu1 %v20792_v6  ;;  %v16313_v6 = vld [vmem:[%s23154_s10 + $0x2e0] ss:$36 sps:$4 sm:$0xff]   ;;  %v3483_v51 = vmax.f32 %v3435_v33, 0.0  ;;  %v16351_v46 = vld [vmem:[%s23154_s10 + $0xb0] ss:$36 sps:$4 sm:$0xff]  }
 0x58b   : > { %11494 = vmatmul.mubr.bf16.gmra.mxu0 %v23540_v20  ;;  %14558 = vmatprep.mubr.msk.bf16.mxu1 %vm2234_vm0, %v20859_v39  ;;  %v16318_v39 = vld [vmem:[%s23154_s10 + $0x294] ss:$36 sps:$4 sm:$0xff]   ;;  %v16338_v11 = vld [vmem:[%s23154_s10 + $0x184] ss:$36 sps:$4 sm:$0xff]  }
 0x58c   : > { %14674 = vmatprep.mubr.msk.bf16.mxu0 %vm2234_vm0, %v21303_v28  ;;  %11559 = vmatpush2.bf16.msra.mxu1 %v16304_v9  ;;  %v21366_v17 = vpack.c.bf16 %v3486_v56, %v3483_v51  ;;  %v16352_v56 = vld [vmem:[%s23154_s10 + $0x60] ss:$36 sps:$4 sm:$0xff]  }
 0x58d   : > { %11672 = vmatpush2.bf16.msra.mxu0 %v16307_v32  ;;  %11560 = vmatprep.subr.bf16.mxu1 %v16312_v47  ;;  %v16340_v47 = vld [vmem:[%s23154_s10 + $0x138] ss:$36 sps:$4 sm:$0xff]  }
 0x58e   : > { %11673 = vmatprep.subr.bf16.mxu0 %v16315_v35  ;;  %v16343_v35 = vld [vmem:[%s23154_s10 + $0x140] ss:$36 sps:$4 sm:$0xff]  }
 0x58f   : > { %v16358_v51 = vld [vmem:[%s23154_s10 + $0x1c] ss:$36 sps:$4 sm:$0xff]  }
 0x590   : > { %11561 = vmatpush2.bf16.msra.mxu1 %v16310_v10 }
 0x591   : > { %11674 = vmatpush2.bf16.msra.mxu0 %v16313_v6  ;;  %11562 = vmatprep.subr.bf16.mxu1 %v16318_v39  ;;  %v16350_v39 = vld [vmem:[%s23154_s10 + $0xac] ss:$36 sps:$4 sm:$0xff]  }
 0x592   : > { %11675 = vmatprep.subr.bf16.mxu0 %v16321_v52  ;;  %10821 = vmatmul.mubr.bf16.gmra.mxu1 %v20843_v0  ;;  %v16325_v0 = vld [vmem:[%s23154_s10 + $0x250] ss:$36 sps:$4 sm:$0xff]  }
 0x593   : > { %11504 = vmatmul.mubr.bf16.gmra.mxu0 %v23542_v27  ;;  %14559 = vmatprep.mubr.msk.bf16.mxu1 %vm2234_vm0, %v20897_v61  ;;  %v16330_v61 = vld [vmem:[%s23154_s10 + $0x214] ss:$36 sps:$4 sm:$0xff]  }
 0x594   : > { %14675 = vmatprep.mubr.msk.bf16.mxu0 %vm2234_vm0, %v21342_v1  ;;  %11563 = vmatpush2.bf16.msra.mxu1 %v16316_v38 }
 0x595   : > { %11676 = vmatpush2.bf16.msra.mxu0 %v16319_v22  ;;  %11564 = vmatprep.subr.bf16.mxu1 %v16324_v37  ;;  %v16348_v22 = vld [vmem:[%s23154_s10 + $0xa8] ss:$36 sps:$4 sm:$0xff]  }
 0x596   : > { %11677 = vmatprep.subr.bf16.mxu0 %v16327_v42  ;;  %v16354_v37 = vld [vmem:[%s23154_s10 + $0x64] ss:$36 sps:$4 sm:$0xff]  }
 0x598   : > { %11565 = vmatpush2.bf16.msra.mxu1 %v16322_v58 }
 0x599   : > { %11678 = vmatpush2.bf16.msra.mxu0 %v16325_v0  ;;  %11760 = vmatprep.subr.bf16.mxu1 %v16330_v61  ;;  %v16355_v61 = vld [vmem:[%s23154_s10 + $0x68] ss:$36 sps:$4 sm:$0xff]  }
 0x59a   : > { %11873 = vmatprep.subr.bf16.mxu0 %v23459_v59  ;;  %10829 = vmatmul.mubr.bf16.gmra.mxu1 %v20891_v29  ;;  %v16328_v29 = vld [vmem:[%s23154_s10 + $0x210] ss:$36 sps:$4 sm:$0xff]  }
 0x59b   : > { %11514 = vmatmul.mubr.bf16.gmra.mxu0 %v23543_v57  ;;  %14560 = vmatprep.mubr.msk.bf16.mxu1 %vm2234_vm0, %v20914_v8  ;;  %v16331_v8 = vld [vmem:[%s23154_s10 + $0x218] ss:$36 sps:$4 sm:$0xff]  }
 0x59c   : > { %14676 = vmatprep.mubr.msk.bf16.mxu0 %vm2234_vm0, %v21366_v17 }
 0x5a2   : > { %10837 = vmatmul.mubr.bf16.gmra.mxu1 %v20912_v60  ;;  %v16334_v60 = vld [vmem:[%s23154_s10 + $0x1cc] ss:$36 sps:$4 sm:$0xff]  }
 0x5a3   : > { %11524 = vmatmul.mubr.bf16.gmra.mxu0 %v23544_v40  ;;  %14677 = vmatprep.mubr.msk.bf16.mxu1 %vm2234_vm0, %v23460_v31 }
 0x5a4   : > { %14685 = vmatprep.mubr.msk.bf16.mxu0 %vm2234_vm0, %v23460_v31 }
 0x5aa   : > { %v21387_v15 = vpop.f32.mrf.mxu1  ;;  %v21389_v49 = vpop.f32.mrf.mxu0  ;;  %11567 = vmatmul.mubr.bf16.vlgmr.msra.gmra.mxu1 %v23471_v36 }
 0x5ab   : > { %23545 = vst [vmem:[#allocation117_spill] sm:$0xff] %v21389_v49  ;;  %11680 = vmatmul.mubr.bf16.vlgmr.msra.gmra.mxu0 %v23471_v36  ;;  %14678 = vmatprep.mubr.msk.bf16.mxu1 %vm2234_vm0, %v23475_v12 }
 0x5ac   : > { %14686 = vmatprep.mubr.msk.bf16.mxu0 %vm2234_vm0, %v23475_v12  ;;  %v21400_v24 = vpop.f32.mrf.mxu1  ;;  %v21402_v14 = vpop.f32.mrf.mxu0  ;;  %11761 = vmatpush1.bf16.msra.mxu1 %v16328_v29 }
 0x5ad   : > { %23546 = vst [vmem:[#allocation116_spill] sm:$0xff] %v21402_v14  ;;  %11874 = vmatpush1.bf16.msra.mxu0 %v16331_v8  ;;  %11762 = vmatprep.subr.bf16.mxu1 %v16334_v60 }
 0x5ae   : > { %v21410_v16 = vpop.f32.mrf.mxu1  ;;  %v21412_v2 = vpop.f32.mrf.mxu0  ;;  %11875 = vmatprep.subr.bf16.mxu0 %v23459_v59 }
 0x5af   : > { %23547 = vst [vmem:[#allocation24_spill] sm:$0xff] %v21412_v2  ;;  %v23648_v2 = vld [vmem:[#allocation21_spill] sm:$0xff] }
 0x5b0   : > { %v21418_v19 = vpop.f32.mrf.mxu1  ;;  %v21420_v43 = vpop.f32.mrf.mxu0  ;;  %11763 = vmatpush1.bf16.msra.mxu1 %v16332_v13 }
 0x5b1   : > { %23548 = vst [vmem:[#allocation23_spill] sm:$0xff] %v21420_v43  ;;  %11876 = vmatpush1.bf16.msra.mxu0 %v16335_v34  ;;  %11764 = vmatprep.subr.bf16.mxu1 %v16338_v11  ;;  %v16356_v34 = vld [vmem:[%s23154_s10 + $0x18] ss:$36 sps:$4 sm:$0xff]   ;;  %v16359_v11 = vld [vmem:[%s23154_s10 + $0x20] ss:$36 sps:$4 sm:$0xff]   ;;  %v11988_v43 = vsub.s32 3, %v23648_v2 }
 0x5b2   : > { %v21428_v9 = vpop.f32.mrf.mxu1  ;;  %v21430_v32 = vpop.f32.mrf.mxu0  ;;  %11877 = vmatprep.subr.bf16.mxu0 %v23459_v59  ;;  %11577 = vmatmul.mubr.bf16.gmra.mxu1 %v23491_v63 }
 0x5b3   : > { %23549 = vst [vmem:[#allocation107_spill] sm:$0xff] %v21430_v32  ;;  %11690 = vmatmul.mubr.bf16.gmra.mxu0 %v23491_v63  ;;  %14679 = vmatprep.mubr.msk.bf16.mxu1 %vm2234_vm0, %v23495_v62 }
 0x5b4   : > { %14687 = vmatprep.mubr.msk.bf16.mxu0 %vm2234_vm0, %v23495_v62  ;;  %v21442_v50 = vpop.f32.mrf.mxu1  ;;  %v21444_v3 = vpop.f32.mrf.mxu0  ;;  %11765 = vmatpush1.bf16.msra.mxu1 %v16336_v18  ;;  %v16362_v18 = vld [vmem:[%s23154_s10 + $0x334] ss:$36 sps:$4 sm:$0xff]  }
 0x5b5   : > { %23550 = vst [vmem:[#allocation118_spill] sm:$0xff] %v21444_v3  ;;  %11878 = vmatpush1.bf16.msra.mxu0 %v16339_v30  ;;  %11766 = vmatprep.subr.bf16.mxu1 %v16342_v41 }
 0x5b6   : > { %v21452_v21 = vpop.f32.mrf.mxu1  ;;  %v21454_v48 = vpop.f32.mrf.mxu0  ;;  %11879 = vmatprep.subr.bf16.mxu0 %v23459_v59 }
 0x5b7   : > { %23551 = vst [vmem:[#allocation109_spill] sm:$0xff] %v21454_v48 }
 0x5b8   : > { %v21460_v10 = vpop.f32.mrf.mxu1  ;;  %v21462_v6 = vpop.f32.mrf.mxu0  ;;  %11767 = vmatpush1.bf16.msra.mxu1 %v16340_v47 }
 0x5b9   : > { %23552 = vst [vmem:[#allocation120_spill] sm:$0xff] %v21462_v6  ;;  %11880 = vmatpush1.bf16.msra.mxu0 %v16343_v35  ;;  %11768 = vmatprep.subr.bf16.mxu1 %v16346_v53  ;;  %v16360_v53 = vld [vmem:[%s23154_s10 + $0x330] ss:$36 sps:$4 sm:$0xff]  }
 0x5ba   : > { %11881 = vmatprep.subr.bf16.mxu0 %v23459_v59  ;;  %v21474_v52 = vpop.f32.mrf.mxu1  ;;  %v21476_v4 = vpop.f32.mrf.mxu0  ;;  %11587 = vmatmul.mubr.bf16.gmra.mxu1 %v23517_v5 }
 0x5bb   : > { %23553 = vst [vmem:[#allocation119_spill] sm:$0xff] %v21476_v4  ;;  %11700 = vmatmul.mubr.bf16.gmra.mxu0 %v23517_v5  ;;  %14680 = vmatprep.mubr.msk.bf16.mxu1 %vm2234_vm0, %v23519_v55 }
 0x5bc   : > { %14688 = vmatprep.mubr.msk.bf16.mxu0 %vm2234_vm0, %v23519_v55  ;;  %v21484_v45 = vpop.f32.mrf.mxu1  ;;  %v21486_v38 = vpop.f32.mrf.mxu0  ;;  %11769 = vmatpush1.bf16.msra.mxu1 %v16344_v54  ;;  %v16363_v54 = vld [vmem:[%s23154_s10 + $0x338] ss:$36 sps:$4 sm:$0xff]  }
 0x5bd   : > { %23554 = vst [vmem:[#allocation102_spill] sm:$0xff] %v21486_v38  ;;  %11882 = vmatpush1.bf16.msra.mxu0 %v16347_v7  ;;  %11770 = vmatprep.subr.bf16.mxu1 %v16350_v39  ;;  %v16366_v7 = vld [vmem:[%s23154_s10 + $0x2ec] ss:$36 sps:$4 sm:$0xff]  }
 0x5be   : > { %11883 = vmatprep.subr.bf16.mxu0 %v23459_v59  ;;  %v21498_v42 = vpop.f32.mrf.mxu1  ;;  %v21500_v33 = vpop.f32.mrf.mxu0 }
 0x5bf   : > { %23555 = vst [vmem:[#allocation101_spill] sm:$0xff] %v21500_v33 }
 0x5c0   : > { %v21502_v58 = vpop.f32.mrf.mxu1  ;;  %v21504_v0 = vpop.f32.mrf.mxu0  ;;  %11771 = vmatpush1.bf16.msra.mxu1 %v16348_v22 }
 0x5c1   : > { %23556 = vst [vmem:[#allocation108_spill] sm:$0xff] %v21504_v0  ;;  %11884 = vmatpush1.bf16.msra.mxu0 %v16351_v46  ;;  %11772 = vmatprep.subr.bf16.mxu1 %v16354_v37 }
 0x5c2   : > { %11885 = vmatprep.subr.bf16.mxu0 %v23459_v59  ;;  %v21516_v29 = vpop.f32.mrf.mxu1  ;;  %v21518_v8 = vpop.f32.mrf.mxu0  ;;  %11597 = vmatmul.mubr.bf16.gmra.mxu1 %v23535_v44 }
 0x5c3   : > { %23557 = vst [vmem:[#allocation121_spill] sm:$0xff] %v21518_v8  ;;  %11710 = vmatmul.mubr.bf16.gmra.mxu0 %v23535_v44  ;;  %14681 = vmatprep.mubr.msk.bf16.mxu1 %vm2234_vm0, %v21262_v25 }
 0x5c4   : > { %14689 = vmatprep.mubr.msk.bf16.mxu0 %vm2234_vm0, %v21262_v25  ;;  %v21526_v60 = vpop.f32.mrf.mxu1  ;;  %v21528_v13 = vpop.f32.mrf.mxu0  ;;  %11773 = vmatpush1.bf16.msra.mxu1 %v16352_v56  ;;  %v16364_v56 = vld [vmem:[%s23154_s10 + $0x2e8] ss:$36 sps:$4 sm:$0xff]  }
 0x5c5   : > { %23558 = vst [vmem:[#allocation122_spill] sm:$0xff] %v21528_v13  ;;  %11886 = vmatpush1.bf16.msra.mxu0 %v16355_v61  ;;  %11774 = vmatprep.subr.bf16.mxu1 %v16358_v51  ;;  %v16367_v61 = vld [vmem:[%s23154_s10 + $0x2f0] ss:$36 sps:$4 sm:$0xff]   ;;  %v16370_v51 = vld [vmem:[%s23154_s10 + $0x2a4] ss:$36 sps:$4 sm:$0xff]  }
 0x5c6   : > { %11887 = vmatprep.subr.bf16.mxu0 %v23459_v59  ;;  %v21540_v30 = vpop.f32.mrf.mxu1  ;;  %v21542_v41 = vpop.f32.mrf.mxu0 }
 0x5c7   : > { %23559 = vst [vmem:[#allocation104_spill] sm:$0xff] %v21542_v41 }
 0x5c8   : > { %v21544_v47 = vpop.f32.mrf.mxu1  ;;  %v21546_v35 = vpop.f32.mrf.mxu0  ;;  %11775 = vmatpush1.bf16.msra.mxu1 %v16356_v34 }
 0x5c9   : > { %23560 = vst [vmem:[#allocation103_spill] sm:$0xff] %v21546_v35  ;;  %11888 = vmatpush1.bf16.msra.mxu0 %v16359_v11  ;;  %11784 = vmatprep.subr.bf16.mxu1 %v16362_v18 }
 0x5ca   : > { %11897 = vmatprep.subr.bf16.mxu0 %v23459_v59  ;;  %v21558_v39 = vpop.f32.mrf.mxu1  ;;  %v21560_v22 = vpop.f32.mrf.mxu0  ;;  %11607 = vmatmul.mubr.bf16.gmra.mxu1 %v23540_v20 }
 0x5cb   : > { %23561 = vst [vmem:[#allocation111_spill] sm:$0xff] %v21560_v22  ;;  %11720 = vmatmul.mubr.bf16.gmra.mxu0 %v23540_v20  ;;  %14682 = vmatprep.mubr.msk.bf16.mxu1 %vm2234_vm0, %v21303_v28 }
 0x5cc   : > { %14690 = vmatprep.mubr.msk.bf16.mxu0 %vm2234_vm0, %v21303_v28  ;;  %v21568_v46 = vpop.f32.mrf.mxu1  ;;  %v21570_v37 = vpop.f32.mrf.mxu0  ;;  %11785 = vmatpush2.bf16.msra.mxu1 %v16360_v53 }
 0x5cd   : > { %23562 = vst [vmem:[#allocation123_spill] sm:$0xff] %v21570_v37  ;;  %11898 = vmatpush2.bf16.msra.mxu0 %v16363_v54  ;;  %11786 = vmatprep.subr.bf16.mxu1 %v16366_v7  ;;  %v16368_v54 = vld [vmem:[%s23154_s10 + $0x2a0] ss:$36 sps:$4 sm:$0xff]   ;;  %v16371_v7 = vld [vmem:[%s23154_s10 + $0x2a8] ss:$36 sps:$4 sm:$0xff]  }
 0x5ce   : > { %11899 = vmatprep.subr.bf16.mxu0 %v23459_v59  ;;  %v21582_v34 = vpop.f32.mrf.mxu1  ;;  %v21584_v11 = vpop.f32.mrf.mxu0 }
 0x5cf   : > { %23563 = vst [vmem:[#allocation110_spill] sm:$0xff] %v21584_v11  ;;  %v16374_v11 = vld [vmem:[%s23154_s10 + $0x25c] ss:$36 sps:$4 sm:$0xff]  }
 0x5d0   : > { %v21586_v18 = vpop.f32.mrf.mxu1  ;;  %v21588_v53 = vpop.f32.mrf.mxu0  ;;  %11787 = vmatpush2.bf16.msra.mxu1 %v16364_v56 }
 0x5d1   : > { %23564 = vst [vmem:[#allocation113_spill] sm:$0xff] %v21588_v53  ;;  %11900 = vmatpush2.bf16.msra.mxu0 %v16367_v61  ;;  %11788 = vmatprep.subr.bf16.mxu1 %v16370_v51  ;;  %v16372_v51 = vld [vmem:[%s23154_s10 + $0x258] ss:$36 sps:$4 sm:$0xff]  }
 0x5d2   : > { %11901 = vmatprep.subr.bf16.mxu0 %v23459_v59  ;;  %v21600_v37 = vpop.f32.mrf.mxu1  ;;  %11617 = vmatmul.mubr.bf16.gmra.mxu1 %v23542_v27 }
 0x5d3   : > { %v21602_v53 = vpop.f32.mrf.mxu0  ;;  %11730 = vmatmul.mubr.bf16.gmra.mxu0 %v23542_v27  ;;  %14683 = vmatprep.mubr.msk.bf16.mxu1 %vm2234_vm0, %v21342_v1 }
 0x5d4   : > { %23565 = vst [vmem:[#allocation124_spill] sm:$0xff] %v21602_v53  ;;  %14691 = vmatprep.mubr.msk.bf16.mxu0 %vm2234_vm0, %v21342_v1  ;;  %v21610_v56 = vpop.f32.mrf.mxu1  ;;  %11789 = vmatpush2.bf16.msra.mxu1 %v16368_v54  ;;  %v16375_v53 = vld [vmem:[%s23154_s10 + $0x260] ss:$36 sps:$4 sm:$0xff]  }
 0x5d5   : > { %v21612_v61 = vpop.f32.mrf.mxu0  ;;  %11902 = vmatpush2.bf16.msra.mxu0 %v16371_v7  ;;  %11790 = vmatprep.subr.bf16.mxu1 %v16374_v11 }
 0x5d6   : > { %23566 = vst [vmem:[#allocation126_spill] sm:$0xff] %v21612_v61  ;;  %11903 = vmatprep.subr.bf16.mxu0 %v23459_v59  ;;  %v21621_v22 = vpop.f32.mrf.mxu1 }
 0x5d7   : > { %v21623_v35 = vpop.f32.mrf.mxu0 }
 0x5d8   : > { %23567 = vst [vmem:[#allocation125_spill] sm:$0xff] %v21623_v35  ;;  %v21625_v41 = vpop.f32.mrf.mxu1  ;;  %11791 = vmatpush2.bf16.msra.mxu1 %v16372_v51 }
 0x5d9   : > { %v21627_v61 = vpop.f32.mrf.mxu0  ;;  %11904 = vmatpush2.bf16.msra.mxu0 %v16375_v53 }
 0x5da   : > { %23568 = vst [vmem:[#allocation106_spill] sm:$0xff] %v21627_v61  ;;  %v21629_v54 = vpop.f32.mrf.mxu1  ;;  %11627 = vmatmul.mubr.bf16.gmra.mxu1 %v23543_v57 }
 0x5db   : > { %v21631_v7 = vpop.f32.mrf.mxu0  ;;  %11740 = vmatmul.mubr.bf16.gmra.mxu0 %v23543_v57  ;;  %14684 = vmatprep.mubr.msk.bf16.mxu1 %vm2234_vm0, %v21366_v17 }
 0x5dc   : > { %23569 = vst [vmem:[#allocation105_spill] sm:$0xff] %v21631_v7  ;;  %14692 = vmatprep.mubr.msk.bf16.mxu0 %vm2234_vm0, %v21366_v17  ;;  %v21639_v59 = vpop.f32.mrf.mxu1 }
 0x5dd   : > { %v21641_v11 = vpop.f32.mrf.mxu0 }
 0x5de   : > { %23570 = vst [vmem:[#allocation112_spill] sm:$0xff] %v21641_v11  ;;  %v21643_v51 = vpop.f32.mrf.mxu1 }
 0x5df   : > { %v21645_v53 = vpop.f32.mrf.mxu0 }
 0x5e0   : > { %23571 = vst [vmem:[#allocation127_spill] sm:$0xff] %v21645_v53  ;;  %v21647_v61 = vpop.f32.mrf.mxu1 }
 0x5e1   : > { %v21649_v7 = vpop.f32.mrf.mxu0 }
 0x5e2   : > { %23572 = vst [vmem:[#allocation115_spill] sm:$0xff] %v21649_v7  ;;  %v21651_v35 = vpop.f32.mrf.mxu1  ;;  %11637 = vmatmul.mubr.bf16.gmra.mxu1 %v23544_v40 }
 0x5e3   : > { %23573 = vst [vmem:[#allocation128_spill] sm:$0xff] %v21651_v35  ;;  %v21653_v13 = vpop.f32.mrf.mxu0  ;;  %11750 = vmatmul.mubr.bf16.gmra.mxu0 %v23544_v40  ;;  %14693 = vmatprep.mubr.msk.bf16.mxu1 %vm2234_vm0, %v23460_v31  ;;  %v21954_v35 = vld [vmem:[%s16835_s30 + $0x2c] sm:$0xff] }
 0x5e4   : > { %23574 = vst [vmem:[#allocation114_spill] sm:$0xff] %v21653_v13  ;;  %14701 = vmatprep.mubr.msk.bf16.mxu0 %vm2234_vm0, %v23460_v31  ;;  %v21661_v11 = vpop.f32.mrf.mxu1  ;;  %23653 = vst [vmem:[#allocation45_spill] sm:$0xff] %v21954_v35 }
 0x5e5   : > { %23575 = vst [vmem:[#allocation84_spill] sm:$0xff] %v21661_v11  ;;  %v21663_v53 = vpop.f32.mrf.mxu0  ;;  %v23651_v11 = vld [vmem:[#allocation41_spill] sm:$0xff] }
 0x5e6   : > { %23576 = vst [vmem:[#allocation22_spill] sm:$0xff] %v21663_v53  ;;  %v21665_v8 = vpop.f32.mrf.mxu1 }
 0x5e7   : > { %23577 = vst [vmem:[#allocation17_spill] sm:$0xff] %v21665_v8  ;;  %v21667_v7 = vpop.f32.mrf.mxu0  ;;  %v21967_v8 = vld [vmem:[%s16835_s30 + $0x58] sm:$0xff] }
 0x5e8   : > { %23578 = vst [vmem:[#allocation39_spill] sm:$0xff] %v21667_v7  ;;  %v21669_v0 = vpop.f32.mrf.mxu1  ;;  %23656 = vst [vmem:[#allocation73_spill] sm:$0xff] %v21967_v8  ;;  %v22034_v8 = vld [vmem:[%s16835_s30 + $0xe0] sm:$0xff] }
 0x5e9   : > { %23579 = vst [vmem:[#allocation40_spill] sm:$0xff] %v21669_v0  ;;  %v21671_v13 = vpop.f32.mrf.mxu0 }
 0x5ea   : > { %23580 = vst [vmem:[#allocation34_spill] sm:$0xff] %v21671_v13  ;;  %v21673_v33 = vpop.f32.mrf.mxu1  ;;  %11793 = vmatmul.mubr.bf16.vlgmr.msra.gmra.mxu1 %v23471_v36 }
 0x5eb   : > { %23581 = vst [vmem:[#allocation37_spill] sm:$0xff] %v21673_v33  ;;  %v21675_v38 = vpop.f32.mrf.mxu0  ;;  %11906 = vmatmul.mubr.bf16.vlgmr.msra.gmra.mxu0 %v23471_v36  ;;  %14694 = vmatprep.mubr.msk.bf16.mxu1 %vm2234_vm0, %v23475_v12 }
 0x5ec   : > { %23582 = vst [vmem:[#allocation60_spill] sm:$0xff] %v21675_v38  ;;  %14702 = vmatprep.mubr.msk.bf16.mxu0 %vm2234_vm0, %v23475_v12  ;;  %v21683_v31 = vpop.f32.mrf.mxu1 }
 0x5ed   : > { %23583 = vst [vmem:[#allocation61_spill] sm:$0xff] %v21683_v31  ;;  %v21685_v7 = vpop.f32.mrf.mxu0  ;;  %v21936_v31 = vld [vmem:[%s16835_s30 + $0x10] sm:$0xff] }
 0x5ee   : > { %23584 = vst [vmem:[#allocation58_spill] sm:$0xff] %v21685_v7  ;;  %v21687_v53 = vpop.f32.mrf.mxu1  ;;  %23649 = vst [vmem:[#allocation57_spill] sm:$0xff] %v21936_v31  ;;  %v22000_v31 = vld [vmem:[%s16835_s30 + $0x98] sm:$0xff] }
 0x5ef   : > { %23585 = vst [vmem:[#allocation59_spill] sm:$0xff] %v21687_v53  ;;  %v21689_v13 = vpop.f32.mrf.mxu0 }
 0x5f0   : > { %23586 = vst [vmem:[#allocation25_spill] sm:$0xff] %v21689_v13  ;;  %v21691_v4 = vpop.f32.mrf.mxu1 }
 0x5f1   : > { %23587 = vst [vmem:[#allocation50_spill] sm:$0xff] %v21691_v4  ;;  %v21693_v38 = vpop.f32.mrf.mxu0  ;;  %v21914_v4 = vld [vmem:[%s16835_s30 + $0x1d4] sm:$0xff] }
 0x5f2   : > { %23588 = vst [vmem:[#allocation81_spill] sm:$0xff] %v21693_v38  ;;  %v21695_v6 = vpop.f32.mrf.mxu1  ;;  %11803 = vmatmul.mubr.bf16.gmra.mxu1 %v23491_v63 }
 0x5f3   : > { %23589 = vst [vmem:[#allocation82_spill] sm:$0xff] %v21695_v6  ;;  %v21697_v36 = vpop.f32.mrf.mxu0  ;;  %11914 = vmatmul.mubr.bf16.gmra.mxu0 %v23491_v63  ;;  %14695 = vmatprep.mubr.msk.bf16.mxu1 %vm2234_vm0, %v23495_v62 }
 0x5f4   : > { %23590 = vst [vmem:[#allocation80_spill] sm:$0xff] %v21697_v36  ;;  %14703 = vmatprep.mubr.msk.bf16.mxu0 %vm2234_vm0, %v23495_v62  ;;  %v21705_v12 = vpop.f32.mrf.mxu1 }
 0x5f5   : > { %23591 = vst [vmem:[#allocation20_spill] sm:$0xff] %v21705_v12  ;;  %v21707_v13 = vpop.f32.mrf.mxu0  ;;  %v21932_v12 = vld [vmem:[%s16835_s30 + $0x8] sm:$0xff] }
 0x5f6   : > { %23592 = vst [vmem:[#allocation28_spill] sm:$0xff] %v21707_v13  ;;  %v21709_v7 = vpop.f32.mrf.mxu1  ;;  %23647 = vst [vmem:[#allocation75_spill] sm:$0xff] %v21932_v12 }
 0x5f7   : > { %23593 = vst [vmem:[#allocation44_spill] sm:$0xff] %v21709_v7  ;;  %v21711_v38 = vpop.f32.mrf.mxu0  ;;  %v21903_v7 = vld [vmem:[%s16835_s30 + $0x1b0] sm:$0xff] }
 0x5f8   : > { %23594 = vst [vmem:[#allocation46_spill] sm:$0xff] %v21711_v38  ;;  %v21713_v48 = vpop.f32.mrf.mxu1 }
 0x5f9   : > { %23595 = vst [vmem:[#allocation77_spill] sm:$0xff] %v21713_v48  ;;  %v21715_v36 = vpop.f32.mrf.mxu0 }
 0x5fa   : > { %23596 = vst [vmem:[#allocation79_spill] sm:$0xff] %v21715_v36  ;;  %v21717_v3 = vpop.f32.mrf.mxu1  ;;  %11813 = vmatmul.mubr.bf16.gmra.mxu1 %v23517_v5 }
 0x5fb   : > { %23597 = vst [vmem:[#allocation18_spill] sm:$0xff] %v21717_v3  ;;  %v21719_v63 = vpop.f32.mrf.mxu0  ;;  %11922 = vmatmul.mubr.bf16.gmra.mxu0 %v23517_v5  ;;  %14696 = vmatprep.mubr.msk.bf16.mxu1 %vm2234_vm0, %v23519_v55 }
 0x5fc   : > { %23598 = vst [vmem:[#allocation19_spill] sm:$0xff] %v21719_v63  ;;  %14704 = vmatprep.mubr.msk.bf16.mxu0 %vm2234_vm0, %v23519_v55  ;;  %v21727_v62 = vpop.f32.mrf.mxu1 }
 0x5fd   : > { %23599 = vst [vmem:[#allocation42_spill] sm:$0xff] %v21727_v62  ;;  %v21729_v38 = vpop.f32.mrf.mxu0  ;;  %v11992_v62 = vsub.s32 4, %v23648_v2 }
 0x5fe   : > { %23600 = vst [vmem:[#allocation43_spill] sm:$0xff] %v21729_v38  ;;  %v21731_v13 = vpop.f32.mrf.mxu1 }
 0x5ff   : > { %23601 = vst [vmem:[#allocation64_spill] sm:$0xff] %v21731_v13  ;;  %v21733_v36 = vpop.f32.mrf.mxu0 }
 0x600   : > { %23602 = vst [vmem:[#allocation65_spill] sm:$0xff] %v21733_v36  ;;  %v21735_v3 = vpop.f32.mrf.mxu1 }
 0x601   : > { %23603 = vst [vmem:[#allocation62_spill] sm:$0xff] %v21735_v3  ;;  %v21737_v63 = vpop.f32.mrf.mxu0 }
 0x602   : > { %23604 = vst [vmem:[#allocation63_spill] sm:$0xff] %v21737_v63  ;;  %v21739_v48 = vpop.f32.mrf.mxu1  ;;  %11823 = vmatmul.mubr.bf16.gmra.mxu1 %v23535_v44 }
 0x603   : > { %23605 = vst [vmem:[#allocation96_spill] sm:$0xff] %v21739_v48  ;;  %v21741_v5 = vpop.f32.mrf.mxu0  ;;  %11930 = vmatmul.mubr.bf16.gmra.mxu0 %v23535_v44  ;;  %14697 = vmatprep.mubr.msk.bf16.mxu1 %vm2234_vm0, %v21262_v25 }
 0x604   : > { %23606 = vst [vmem:[#allocation12_spill] sm:$0xff] %v21741_v5  ;;  %14705 = vmatprep.mubr.msk.bf16.mxu0 %vm2234_vm0, %v21262_v25  ;;  %v21749_v55 = vpop.f32.mrf.mxu1 }
 0x605   : > { %23607 = vst [vmem:[#allocation86_spill] sm:$0xff] %v21749_v55  ;;  %v21751_v36 = vpop.f32.mrf.mxu0  ;;  %v21924_v55 = vld [vmem:[%s16835_s30 + $0x21c] sm:$0xff] }
 0x606   : > { %23608 = vst [vmem:[#allocation87_spill] sm:$0xff] %v21751_v36  ;;  %v21753_v38 = vpop.f32.mrf.mxu1  ;;  %23644 = vst [vmem:[#allocation78_spill] sm:$0xff] %v21924_v55 }
 0x607   : > { %23609 = vst [vmem:[#allocation92_spill] sm:$0xff] %v21753_v38  ;;  %v21755_v63 = vpop.f32.mrf.mxu0  ;;  %v21869_v38 = vld [vmem:[%s16835_s30 + $0xd8] sm:$0xff] }
 0x608   : > { %23610 = vst [vmem:[#allocation100_spill] sm:$0xff] %v21755_v63  ;;  %v21757_v48 = vpop.f32.mrf.mxu1 }
 0x609   : > { %23611 = vst [vmem:[#allocation31_spill] sm:$0xff] %v21757_v48  ;;  %v21759_v5 = vpop.f32.mrf.mxu0 }
 0x60a   : > { %23612 = vst [vmem:[#allocation32_spill] sm:$0xff] %v21759_v5  ;;  %v21761_v3 = vpop.f32.mrf.mxu1  ;;  %11833 = vmatmul.mubr.bf16.gmra.mxu1 %v23540_v20 }
 0x60b   : > { %23613 = vst [vmem:[#allocation51_spill] sm:$0xff] %v21761_v3  ;;  %v21763_v44 = vpop.f32.mrf.mxu0  ;;  %11938 = vmatmul.mubr.bf16.gmra.mxu0 %v23540_v20  ;;  %14698 = vmatprep.mubr.msk.bf16.mxu1 %vm2234_vm0, %v21303_v28 }
 0x60c   : > { %23614 = vst [vmem:[#allocation52_spill] sm:$0xff] %v21763_v44  ;;  %14706 = vmatprep.mubr.msk.bf16.mxu0 %vm2234_vm0, %v21303_v28  ;;  %v21771_v25 = vpop.f32.mrf.mxu1 }
 0x60d   : > { %23615 = vst [vmem:[#allocation83_spill] sm:$0xff] %v21771_v25  ;;  %v21773_v63 = vpop.f32.mrf.mxu0 }
 0x60e   : > { %23616 = vst [vmem:[#allocation85_spill] sm:$0xff] %v21773_v63  ;;  %v21775_v36 = vpop.f32.mrf.mxu1 }
 0x60f   : > { %23617 = vst [vmem:[#allocation71_spill] sm:$0xff] %v21775_v36  ;;  %v21777_v5 = vpop.f32.mrf.mxu0  ;;  %v21882_v36 = vld [vmem:[%s16835_s30 + $0x144] sm:$0xff] }
 0x610   : > { %23618 = vst [vmem:[#allocation29_spill] sm:$0xff] %v21777_v5  ;;  %v21779_v3 = vpop.f32.mrf.mxu1 }
 0x611   : > { %23619 = vst [vmem:[#allocation30_spill] sm:$0xff] %v21779_v3  ;;  %v21781_v44 = vpop.f32.mrf.mxu0 }
 0x612   : > { %23620 = vst [vmem:[#allocation48_spill] sm:$0xff] %v21781_v44  ;;  %v21783_v48 = vpop.f32.mrf.mxu1  ;;  %11843 = vmatmul.mubr.bf16.gmra.mxu1 %v23542_v27 }
 0x613   : > { %23621 = vst [vmem:[#allocation49_spill] sm:$0xff] %v21783_v48  ;;  %v21785_v20 = vpop.f32.mrf.mxu0  ;;  %11946 = vmatmul.mubr.bf16.gmra.mxu0 %v23542_v27  ;;  %14699 = vmatprep.mubr.msk.bf16.mxu1 %vm2234_vm0, %v21342_v1 }
 0x614   : > { %23622 = vst [vmem:[#allocation68_spill] sm:$0xff] %v21785_v20  ;;  %14707 = vmatprep.mubr.msk.bf16.mxu0 %vm2234_vm0, %v21342_v1  ;;  %v21793_v28 = vpop.f32.mrf.mxu1 }
 0x615   : > { %23623 = vst [vmem:[#allocation70_spill] sm:$0xff] %v21793_v28  ;;  %v21795_v5 = vpop.f32.mrf.mxu0  ;;  %v21853_v28 = vld [vmem:[%s16835_s30 + $0xb4] sm:$0xff] }
 0x616   : > { %23624 = vst [vmem:[#allocation66_spill] sm:$0xff] %v21795_v5  ;;  %v21797_v44 = vpop.f32.mrf.mxu1 }
 0x617   : > { %23625 = vst [vmem:[#allocation67_spill] sm:$0xff] %v21797_v44  ;;  %v21799_v63 = vpop.f32.mrf.mxu0  ;;  %v21850_v44 = vld [vmem:[%s16835_s30 + $0x90] sm:$0xff] }
 0x618   : > { %23626 = vst [vmem:[#allocation94_spill] sm:$0xff] %v21799_v63  ;;  %v21801_v20 = vpop.f32.mrf.mxu1 }
 0x619   : > { %23627 = vst [vmem:[#allocation47_spill] sm:$0xff] %v21801_v20  ;;  %v21803_v48 = vpop.f32.mrf.mxu0 }
 0x61a   : > { %23628 = vst [vmem:[#allocation36_spill] sm:$0xff] %v21803_v48  ;;  %v21805_v27 = vpop.f32.mrf.mxu1  ;;  %11853 = vmatmul.mubr.bf16.gmra.mxu1 %v23543_v57 }
 0x61b   : > { %23629 = vst [vmem:[#allocation38_spill] sm:$0xff] %v21805_v27  ;;  %v21807_v3 = vpop.f32.mrf.mxu0  ;;  %11954 = vmatmul.mubr.bf16.gmra.mxu0 %v23543_v57  ;;  %14700 = vmatprep.mubr.msk.bf16.mxu1 %vm2234_vm0, %v21366_v17  ;;  %v21826_v57 = vld [vmem:[%s23155_s11] sm:$0xff] }
 0x61c   : > { %23630 = vst [vmem:[#allocation91_spill] sm:$0xff] %v21807_v3  ;;  %14708 = vmatprep.mubr.msk.bf16.mxu0 %vm2234_vm0, %v21366_v17  ;;  %v21815_v1 = vpop.f32.mrf.mxu1  ;;  %v21829_v3 = vld [vmem:[%s16835_s30] sm:$0xff]  ;;  %vm13271_vm0 = vcmask 519168  }
 0x61d   : > { %23631 = vst [vmem:[#allocation93_spill] sm:$0xff] %v21815_v1  ;;  %v21817_v48 = vpop.f32.mrf.mxu0  ;;  %v21832_v27 = vld [vmem:[%s16835_s30 + $0x24] sm:$0xff]  ;;  %v23664_v35 = vunpack.c.l.bf16 %v21829_v3 }
 0x61e   : > { %23632 = vst [vmem:[#allocation13_spill] sm:$0xff] %v21817_v48  ;;  %v21819_v63 = vpop.f32.mrf.mxu1  ;;  %v21839_v48 = vld [vmem:[%s16835_s30 + $0x48] sm:$0xff]  ;;  %v21879_v1 = vld [vmem:[%s16835_s30 + $0x120] sm:$0xff] }
 0x61f   : > { %23633 = vst [vmem:[#allocation90_spill] sm:$0xff] %v21819_v63  ;;  %v21821_v5 = vpop.f32.mrf.mxu0  ;;  %v21842_v63 = vld [vmem:[%s16835_s30 + $0x6c] sm:$0xff] }
 0x620   : > { %23634 = vst [vmem:[#allocation99_spill] sm:$0xff] %v21821_v5  ;;  %v21834_v20 = vpop.f32.mrf.mxu1  ;;  %v21846_v5 = vrot.slane %v21826_v57, %v23397_v26  ;;  %v21863_v26 = vrot.slane %v21826_v57, %v23398_v23  ;;  %v21896_v23 = vld [vmem:[%s16835_s30 + $0x18c] sm:$0xff] }
 0x621   : > { %23635 = vst [vmem:[#allocation55_spill] sm:$0xff] %v21834_v20  ;;  %v21836_v17 = vpop.f32.mrf.mxu0 }
 0x622   : > { %23636 = vst [vmem:[#allocation56_spill] sm:$0xff] %v21836_v17  ;;  %v21855_v20 = vpop.f32.mrf.mxu1  ;;  %11863 = vmatmul.mubr.bf16.gmra.mxu1 %v23544_v40 }
 0x623   : > { %23637 = vst [vmem:[#allocation88_spill] sm:$0xff] %v21855_v20  ;;  %v21857_v17 = vpop.f32.mrf.mxu0  ;;  %11962 = vmatmul.mubr.bf16.gmra.mxu0 %v23544_v40  ;;  %v21872_v20 = vld [vmem:[%s16835_s30 + $0xfc] sm:$0xff] }
 0x624   : > { %23638 = vst [vmem:[#allocation89_spill] sm:$0xff] %v21857_v17  ;;  %v21884_v13 = vpop.f32.mrf.mxu1  ;;  %v21893_v17 = vld [vmem:[%s16835_s30 + $0x168] sm:$0xff] }
 0x625   : > { %23639 = vst [vmem:[#allocation33_spill] sm:$0xff] %v21884_v13  ;;  %v21886_v25 = vpop.f32.mrf.mxu0 }
 0x626   : > { %23640 = vst [vmem:[#allocation35_spill] sm:$0xff] %v21886_v25  ;;  %v21905_v6 = vpop.f32.mrf.mxu1  ;;  %v21917_v25 = vld [vmem:[%s16835_s30 + $0x1f8] sm:$0xff] }
 0x627   : > { %23641 = vst [vmem:[#allocation53_spill] sm:$0xff] %v21905_v6  ;;  %v21907_v40 = vpop.f32.mrf.mxu0  ;;  %23643 = vst [vmem:[#allocation76_spill] sm:$0xff] %v21917_v25  ;;  %v21951_v6 = vrot.slane %v21826_v57, %v23651_v11  ;;  %v21973_v25 = vrot.slane %v21826_v57, %v11988_v43  ;;  %v21987_v43 = vld [vmem:[%s16835_s30 + $0x7c] sm:$0xff] }
 0x628   : > { %23642 = vst [vmem:[#allocation54_spill] sm:$0xff] %v21907_v40  ;;  %v21926_v53 = vpop.f32.mrf.mxu1  ;;  %v11996_v40 = vsub.s32 5, %v23648_v2  ;;  %23661 = vst [vmem:[#allocation16_spill] sm:$0xff] %v21987_v43 }
 0x629   : > { %23645 = vst [vmem:[#allocation72_spill] sm:$0xff] %v21926_v53  ;;  %v21928_v32 = vpop.f32.mrf.mxu0  ;;  %23652 = vst [vmem:[#allocation15_spill] sm:$0xff] %v21951_v6  ;;  %v21957_v53 = vld [vmem:[%s16835_s30 + $0x34] sm:$0xff]  ;;  %v21970_v6 = vrot.slane %v21826_v57, %v11992_v62 }
 0x62a   : > { %23646 = vst [vmem:[#allocation74_spill] sm:$0xff] %v21928_v32  ;;  %v21944_v14 = vpop.f32.mrf.mxu1  ;;  %23654 = vst [vmem:[#allocation95_spill] sm:$0xff] %v21957_v53  ;;  %v21984_v32 = vld [vmem:[%s16835_s30 + $0x74] sm:$0xff] }
 0x62b   : > { %23650 = vst [vmem:[#allocation69_spill] sm:$0xff] %v21944_v14  ;;  %v11455_v33 = vpop.f32.mrf.mxu0  ;;  %v21964_v14 = vld [vmem:[%s16835_s30 + $0x50] sm:$0xff]  ;;  %23657 = vst [vmem:[#allocation26_spill] sm:$0xff] %v21970_v6 }
 0x62c   : > { %v11456_v13 = vadd.f32 %v11455_v33, %v21387_v15  ;;  %23655 = vst [vmem:[#allocation97_spill] sm:$0xff] %v21964_v14  ;;  %v10784_v11 = vpop.f32.mrf.mxu1  ;;  %23658 = vst [vmem:[#allocation98_spill] sm:$0xff] %v21973_v25  ;;  %v21976_v15 = vrot.slane %v21826_v57, %v11996_v40  ;;  %v22014_v25 = vld [vmem:[%s16835_s30 + $0xbc] sm:$0xff] }
 0x62d   : > { %v11457_v55 = vpop.f32.mrf.mxu0  ;;  %23660 = vst [vmem:[#allocation14_spill] sm:$0xff] %v21984_v32 }
 0x62e   : > { %23659 = vst [vmem:[#allocation27_spill] sm:$0xff] %v21976_v15  ;;  %v12019_v0 = vadd.f32 %v21846_v5, %v11456_v13  ;;  %v11458_v49 = vadd.f32 %v11457_v55, %v21400_v24  ;;  %v21989_v12 = vpop.f32.mrf.mxu1  ;;  %v22003_v15 = vld [vmem:[%s16835_s30 + $0xa0] sm:$0xff] }
 0x62f   : > { %23662 = vst [vmem:[#allocation21_spill] sm:$0xff] %v21989_v12  ;;  %v11459_v40 = vpop.f32.mrf.mxu0  ;;  %23663 = vst [vmem:[#allocation41_spill] sm:$0xff] %v22003_v15 }
 0x630   : > { %v12387_v55 = vmul.f32 0.17, %v12019_v0  ;;  %v12020_v62 = vadd.f32 %v21863_v26, %v11458_v49  ;;  %v11460_v11 = vadd.f32 %v11459_v40, %v21410_v16  ;;  %v10787_v33 = vpop.f32.mrf.mxu1 }
 0x631   : > { %v11461_v53 = vpop.f32.mrf.mxu0  ;;  %v22017_v33 = vld [vmem:[%s16835_s30 + $0xc4] sm:$0xff] }
 0x632   : > { %v12531_v16 = vadd.f32 %v12387_v55, %v23664_v35  ;;  %v12388_v40 = vmul.f32 0.17, %v12020_v62  ;;  %v12028_v12 = vadd.f32 %v21846_v5, %v11460_v11  ;;  %v11462_v14 = vadd.f32 %v11461_v53, %v21418_v19  ;;  %v22023_v0 = vpop.f32.mrf.mxu1  ;;  %v22040_v11 = vld [vmem:[%s16835_s30 + $0xe8] sm:$0xff] }
 0x633   : > { %23665 = vst [vmem:[#allocation129_spill] sm:$0xff] %v22023_v0  ;;  %v11465_v24 = vpop.f32.mrf.mxu0  ;;  %v23666_v19 = vunpack.c.h.bf16 %v21829_v3 }
 0x634   : > { %v12396_v55 = vmul.f32 0.17, %v12028_v12  ;;  %v12029_v13 = vadd.f32 %v21863_v26, %v11462_v14  ;;  %v12675_v0 = vmax.f32 %v12531_v16, 0.0  ;;  %v11466_v6 = vadd.f32 %v11465_v24, %v21428_v9  ;;  %v10792_v49 = vpop.f32.mrf.mxu1 }
 0x635   : > { %v12532_v53 = vadd.f32 %v12388_v40, %v23666_v19  ;;  %v11467_v43 = vpop.f32.mrf.mxu0  ;;  %v23667_v14 = vunpack.c.l.bf16 %v21832_v27 }
 0x636   : > { %v12397_v40 = vmul.f32 0.17, %v12029_v13  ;;  %v11468_v19 = vadd.f32 %v11467_v43, %v21442_v50  ;;  %v12037_v16 = vadd.f32 %v21846_v5, %v11466_v6  ;;  %v22046_v9 = vpop.f32.mrf.mxu1  ;;  %v22056_v43 = vld [vmem:[%s16835_s30 + $0x104] sm:$0xff]  ;;  %v22059_v6 = vld [vmem:[%s16835_s30 + $0x10c] sm:$0xff] }
 0x637   : > { %v12676_v3 = vmax.f32 %v12532_v53, 0.0  ;;  %v12540_v12 = vadd.f32 %v12396_v55, %v23667_v14  ;;  %23668 = vst [vmem:[#allocation130_spill] sm:$0xff] %v22046_v9  ;;  %v11469_v24 = vpop.f32.mrf.mxu0  ;;  %v23669_v53 = vunpack.c.h.bf16 %v21832_v27 }
 0x638   : > { %v12038_v13 = vadd.f32 %v21863_v26, %v11468_v19  ;;  %v12405_v55 = vmul.f32 0.17, %v12037_v16  ;;  %v11470_v14 = vadd.f32 %v11469_v24, %v21452_v21  ;;  %v10795_v49 = vpop.f32.mrf.mxu1  ;;  %v23670_v16 = vunpack.c.l.bf16 %v21839_v48 }
 0x639   : > { %v14827_v32 = vpack.c.bf16 %v12676_v3, %v12675_v0  ;;  %v12541_v15 = vadd.f32 %v12397_v40, %v23669_v53  ;;  %v11471_v9 = vpop.f32.mrf.mxu0  ;;  %v12684_v27 = vmax.f32 %v12540_v12, 0.0  ;;  %v23672_v12 = vunpack.c.h.bf16 %v21839_v48 }
 0x63a   : > { %v12406_v40 = vmul.f32 0.17, %v12038_v13  ;;  %v11472_v19 = vadd.f32 %v11471_v9, %v21460_v10  ;;  %v12549_v21 = vadd.f32 %v12405_v55, %v23670_v16  ;;  %v12046_v24 = vadd.f32 %v21846_v5, %v11470_v14  ;;  %v22072_v49 = vpop.f32.mrf.mxu1  ;;  %v22081_v13 = vld [vmem:[%s16835_s30 + $0x128] sm:$0xff]  ;;  %v22084_v55 = vld [vmem:[%s16835_s30 + $0x130] sm:$0xff] }
 0x63b   : > { %13267 = vst [vmem:[%s22065_s19] sm:$0xff] %v14827_v32  ;;  %v12685_v3 = vmax.f32 %v12541_v15, 0.0  ;;  %23671 = vst [vmem:[#allocation131_spill] sm:$0xff] %v22072_v49  ;;  %v11475_v53 = vpop.f32.mrf.mxu0 }
 0x63c   : > { %v12550_v15 = vadd.f32 %v12406_v40, %v23672_v12  ;;  %v12047_v10 = vadd.f32 %v21863_v26, %v11472_v19  ;;  %v11476_v9 = vadd.f32 %v11475_v53, %v21474_v52  ;;  %v12693_v14 = vmax.f32 %v12549_v21, 0.0  ;;  %v10800_v50 = vpop.f32.mrf.mxu1  ;;  %v22092_v19 = vld [vmem:[%s16835_s30 + $0x14c] sm:$0xff] }
 0x63d   : > { %v14832_v32 = vpack.c.bf16 %v12685_v3, %v12684_v27  ;;  %v12414_v16 = vmul.f32 0.17, %v12046_v24  ;;  %v11477_v35 = vpop.f32.mrf.mxu0  ;;  %v23673_v53 = vunpack.c.l.bf16 %v21842_v63 }
 0x63e   : > { %v12694_v48 = vmax.f32 %v12550_v15, 0.0  ;;  %v12415_v3 = vmul.f32 0.17, %v12047_v10  ;;  %v12055_v40 = vadd.f32 %v21846_v5, %v11476_v9  ;;  %v11478_v52 = vadd.f32 %v11477_v35, %v21484_v45  ;;  %v22096_v24 = vpop.f32.mrf.mxu1  ;;  %v22111_v15 = vld [vmem:[%s16835_s30 + $0x170] sm:$0xff] }
 0x63f   : > { %13273 = vst [vmem:[%s22065_s19 + $0x24] sm:$0xff] %v14832_v32  ;;  %v12558_v21 = vadd.f32 %v12414_v16, %v23673_v53  ;;  %23674 = vst [vmem:[#allocation132_spill] sm:$0xff] %v22096_v24  ;;  %v11479_v50 = vpop.f32.mrf.mxu0  ;;  %v23675_v9 = vunpack.c.h.bf16 %v21842_v63  ;;  %v22105_v16 = vld [vmem:[%s16835_s30 + $0x154] sm:$0xff] }
 0x640   : > { %v14837_v10 = vpack.c.bf16 %v12694_v48, %v12693_v14  ;;  %v12423_v35 = vmul.f32 0.17, %v12055_v40  ;;  %v12056_v27 = vadd.f32 %v21863_v26, %v11478_v52  ;;  %v11480_v0 = vadd.f32 %v11479_v50, %v21498_v42  ;;  %v10803_v62 = vpop.f32.mrf.mxu1  ;;  %v22118_v52 = vld [vmem:[%s16835_s30 + $0x178] sm:$0xff] }
 0x641   : > { %v12559_v45 = vadd.f32 %v12415_v3, %v23675_v9  ;;  %v12702_v53 = vmax.f32 %v12558_v21, 0.0  ;;  %v11481_v24 = vpop.f32.mrf.mxu0  ;;  %v23676_v14 = vunpack.c.l.bf16 %v21850_v44 }
 0x642   : > { %13278 = vst [vmem:[%s22065_s19 + $0x48] sm:$0xff] %v14837_v10  ;;  %v12424_v3 = vmul.f32 0.17, %v12056_v27  ;;  %v11482_v40 = vadd.f32 %v11481_v24, %v21502_v58  ;;  %v12064_v42 = vadd.f32 %v21846_v5, %v11480_v0  ;;  %v22121_v62 = vpop.f32.mrf.mxu1  ;;  %v22131_v0 = vld [vmem:[%s16835_s30 + $0x194] sm:$0xff] }
 0x643   : > { %v12703_v63 = vmax.f32 %v12559_v45, 0.0  ;;  %v12567_v48 = vadd.f32 %v12423_v35, %v23676_v14  ;;  %23677 = vst [vmem:[#allocation133_spill] sm:$0xff] %v22121_v62  ;;  %v11485_v21 = vpop.f32.mrf.mxu0  ;;  %v23678_v35 = vunpack.c.h.bf16 %v21850_v44  ;;  %v22153_v10 = vld [vmem:[%s16835_s30 + $0x1b8] sm:$0xff] }
 0x644   : > { %v12065_v58 = vadd.f32 %v21863_v26, %v11482_v40  ;;  %v12432_v14 = vmul.f32 0.17, %v12064_v42  ;;  %v11486_v32 = vadd.f32 %v11485_v21, %v21516_v29  ;;  %v10808_v12 = vpop.f32.mrf.mxu1  ;;  %v22139_v40 = vld [vmem:[%s16835_s30 + $0x19c] sm:$0xff]  ;;  %v23679_v42 = vunpack.c.l.bf16 %v21853_v28 }
 0x645   : > { %v14842_v45 = vpack.c.bf16 %v12703_v63, %v12702_v53  ;;  %v12568_v27 = vadd.f32 %v12424_v3, %v23678_v35  ;;  %v11487_v50 = vpop.f32.mrf.mxu0  ;;  %v12711_v44 = vmax.f32 %v12567_v48, 0.0 }
 0x646   : > { %v12433_v63 = vmul.f32 0.17, %v12065_v58  ;;  %v11488_v3 = vadd.f32 %v11487_v50, %v21526_v60  ;;  %v12576_v35 = vadd.f32 %v12432_v14, %v23679_v42  ;;  %v12073_v29 = vadd.f32 %v21846_v5, %v11486_v32  ;;  %v22144_v12 = vpop.f32.mrf.mxu1  ;;  %v22156_v14 = vld [vmem:[%s16835_s30 + $0x1c0] sm:$0xff] }
 0x647   : > { %13283 = vst [vmem:[%s22065_s19 + $0x6c] sm:$0xff] %v14842_v45  ;;  %v12712_v53 = vmax.f32 %v12568_v27, 0.0  ;;  %23680 = vst [vmem:[#allocation134_spill] sm:$0xff] %v22144_v12  ;;  %v11489_v21 = vpop.f32.mrf.mxu0  ;;  %v23681_v27 = vunpack.c.h.bf16 %v21853_v28  ;;  %v22190_v45 = vld [vmem:[%s16835_s30 + $0x208] sm:$0xff] }
 0x648   : > { %v12074_v60 = vadd.f32 %v21863_v26, %v11488_v3  ;;  %v11490_v50 = vadd.f32 %v11489_v21, %v21540_v30  ;;  %v12720_v32 = vmax.f32 %v12576_v35, 0.0  ;;  %v12441_v42 = vmul.f32 0.17, %v12073_v29  ;;  %v10811_v24 = vpop.f32.mrf.mxu1 }
 0x649   : > { %v14847_v9 = vpack.c.bf16 %v12712_v53, %v12711_v44  ;;  %v12577_v58 = vadd.f32 %v12433_v63, %v23681_v27  ;;  %v11491_v12 = vpop.f32.mrf.mxu0  ;;  %v23682_v63 = vunpack.c.l.bf16 %v21869_v38 }
 0x64a   : > { %v12442_v44 = vmul.f32 0.17, %v12074_v60  ;;  %v12082_v53 = vadd.f32 %v21846_v5, %v11490_v50  ;;  %v11492_v30 = vadd.f32 %v11491_v12, %v21544_v47  ;;  %v22165_v35 = vpop.f32.mrf.mxu1  ;;  %v22174_v12 = vld [vmem:[%s16835_s30 + $0x1dc] sm:$0xff] }
 0x64b   : > { %13288 = vst [vmem:[%s22065_s19 + $0x90] sm:$0xff] %v14847_v9  ;;  %v12721_v28 = vmax.f32 %v12577_v58, 0.0  ;;  %v12585_v3 = vadd.f32 %v12441_v42, %v23682_v63  ;;  %23683 = vst [vmem:[#allocation135_spill] sm:$0xff] %v22165_v35  ;;  %v11495_v24 = vpop.f32.mrf.mxu0  ;;  %v23684_v58 = vunpack.c.h.bf16 %v21869_v38  ;;  %v22177_v42 = vld [vmem:[%s16835_s30 + $0x1e4] sm:$0xff] }
 0x64c   : > { %v12450_v50 = vmul.f32 0.17, %v12082_v53  ;;  %v12083_v47 = vadd.f32 %v21863_v26, %v11492_v30  ;;  %v11496_v29 = vadd.f32 %v11495_v24, %v21558_v39  ;;  %v10816_v48 = vpop.f32.mrf.mxu1 }
 0x64d   : > { %v14852_v27 = vpack.c.bf16 %v12721_v28, %v12720_v32  ;;  %v12586_v60 = vadd.f32 %v12442_v44, %v23684_v58  ;;  %v12729_v63 = vmax.f32 %v12585_v3, 0.0  ;;  %v11497_v21 = vpop.f32.mrf.mxu0  ;;  %v23685_v28 = vunpack.c.l.bf16 %v21872_v20  ;;  %v22187_v58 = vld [vmem:[%s16835_s30 + $0x200] sm:$0xff] }
 0x64e   : > { %v12451_v53 = vmul.f32 0.17, %v12083_v47  ;;  %v11498_v30 = vadd.f32 %v11497_v21, %v21568_v46  ;;  %v12091_v39 = vadd.f32 %v21846_v5, %v11496_v29  ;;  %v22193_v48 = vpop.f32.mrf.mxu1  ;;  %v23687_v46 = vunpack.c.h.bf16 %v21872_v20 }
 0x64f   : > { %13293 = vst [vmem:[%s22065_s19 + $0xb4] sm:$0xff] %v14852_v27  ;;  %v12730_v38 = vmax.f32 %v12586_v60, 0.0  ;;  %v12594_v44 = vadd.f32 %v12450_v50, %v23685_v28  ;;  %23686 = vst [vmem:[#allocation136_spill] sm:$0xff] %v22193_v48  ;;  %v11499_v3 = vpop.f32.mrf.mxu0 }
 0x650   : > { %v12595_v21 = vadd.f32 %v12451_v53, %v23687_v46  ;;  %v12092_v47 = vadd.f32 %v21863_v26, %v11498_v30  ;;  %v12459_v28 = vmul.f32 0.17, %v12091_v39  ;;  %v11500_v32 = vadd.f32 %v11499_v3, %v21582_v34  ;;  %v10819_v9 = vpop.f32.mrf.mxu1  ;;  %v22208_v53 = vld [vmem:[%s16835_s30 + $0x224] sm:$0xff]  ;;  %v22211_v30 = vld [vmem:[%s16835_s30 + $0x22c] sm:$0xff] }
 0x651   : > { %v14857_v50 = vpack.c.bf16 %v12730_v38, %v12729_v63  ;;  %v11501_v48 = vpop.f32.mrf.mxu0  ;;  %v12738_v60 = vmax.f32 %v12594_v44, 0.0  ;;  %v23688_v39 = vunpack.c.l.bf16 %v21879_v1 }
 0x652   : > { %v12739_v63 = vmax.f32 %v12595_v21, 0.0  ;;  %v12460_v38 = vmul.f32 0.17, %v12092_v47  ;;  %v11502_v20 = vadd.f32 %v11501_v48, %v21586_v18  ;;  %v12100_v34 = vadd.f32 %v21846_v5, %v11500_v32  ;;  %v22216_v9 = vpop.f32.mrf.mxu1 }
 0x653   : > { %13298 = vst [vmem:[%s22065_s19 + $0xd8] sm:$0xff] %v14857_v50  ;;  %v12603_v46 = vadd.f32 %v12459_v28, %v23688_v39  ;;  %23689 = vst [vmem:[#allocation137_spill] sm:$0xff] %v22216_v9  ;;  %v11505_v3 = vpop.f32.mrf.mxu0  ;;  %v23690_v18 = vunpack.c.h.bf16 %v21879_v1 }
 0x654   : > { %v14862_v21 = vpack.c.bf16 %v12739_v63, %v12738_v60  ;;  %v12101_v47 = vadd.f32 %v21863_v26, %v11502_v20  ;;  %v11506_v27 = vadd.f32 %v11505_v3, %v21600_v37  ;;  %v12468_v39 = vmul.f32 0.17, %v12100_v34  ;;  %v10824_v24 = vpop.f32.mrf.mxu1  ;;  %v22230_v63 = vld [vmem:[%s16835_s30 + $0x18] sm:$0xff] }
 0x655   : > { %v12604_v48 = vadd.f32 %v12460_v38, %v23690_v18  ;;  %v12747_v28 = vmax.f32 %v12603_v46, 0.0  ;;  %v11507_v32 = vpop.f32.mrf.mxu0  ;;  %23691 = vst [vmem:[#allocation138_spill] sm:$0xff] %v22230_v63  ;;  %v23692_v37 = vunpack.c.l.bf16 %v21882_v36  ;;  %v12000_v34 = vsub.s32 6, %v23648_v2  ;;  %v23776_v63 = vld [vmem:[#allocation42_spill] sm:$0xff] }
 0x656   : > { %13303 = vst [vmem:[%s22065_s19 + $0xfc] sm:$0xff] %v14862_v21  ;;  %v12469_v50 = vmul.f32 0.17, %v12101_v47  ;;  %v12109_v60 = vadd.f32 %v21846_v5, %v11506_v27  ;;  %v11508_v1 = vadd.f32 %v11507_v32, %v21610_v56  ;;  %v22234_v20 = vpop.f32.mrf.mxu1  ;;  %v12004_v3 = vsub.s32 7, %v23648_v2  ;;  %v22243_v47 = vld [vmem:[%s16835_s30 + $0x20] ss:$36 sps:$4 sm:$0xff]  }
 0x657   : > { %v12748_v44 = vmax.f32 %v12604_v48, 0.0  ;;  %v12612_v38 = vadd.f32 %v12468_v39, %v23692_v37  ;;  %23693 = vst [vmem:[#allocation139_spill] sm:$0xff] %v22234_v20  ;;  %v11509_v24 = vpop.f32.mrf.mxu0  ;;  %v23694_v27 = vunpack.c.h.bf16 %v21882_v36  ;;  %23695 = vst [vmem:[#allocation140_spill] sm:$0xff] %v22243_v47  ;;  %v23696_v36 = vunpack.c.l.bf16 %v21893_v17 }
 0x658   : > { %v12477_v18 = vmul.f32 0.17, %v12109_v60  ;;  %v12110_v48 = vadd.f32 %v21863_v26, %v11508_v1  ;;  %v11510_v32 = vadd.f32 %v11509_v24, %v21621_v22  ;;  %v10827_v37 = vpop.f32.mrf.mxu1  ;;  %v22253_v60 = vld [vmem:[%s16835_s30 + $0x3c] sm:$0xff]  ;;  %v22259_v24 = vrot.slane %v21826_v57, %v12000_v34 }
 0x659   : > { %v14867_v21 = vpack.c.bf16 %v12748_v44, %v12747_v28  ;;  %v12613_v56 = vadd.f32 %v12469_v50, %v23694_v27  ;;  %v12756_v39 = vmax.f32 %v12612_v38, 0.0  ;;  %v11511_v9 = vpop.f32.mrf.mxu0  ;;  %23697 = vst [vmem:[#allocation141_spill] sm:$0xff] %v22253_v60  ;;  %v23765_v60 = vld [vmem:[#allocation77_spill] sm:$0xff] }
 0x65a   : > { %v12621_v50 = vadd.f32 %v12477_v18, %v23696_v36  ;;  %v12478_v44 = vmul.f32 0.17, %v12110_v48  ;;  %v11512_v28 = vadd.f32 %v11511_v9, %v21625_v41  ;;  %v12118_v1 = vadd.f32 %v21846_v5, %v11510_v32  ;;  %v22256_v22 = vpop.f32.mrf.mxu1  ;;  %v22270_v32 = vld [vmem:[%s16835_s30 + $0x60] sm:$0xff] }
 0x65b   : > { %13308 = vst [vmem:[%s22065_s19 + $0x120] sm:$0xff] %v14867_v21  ;;  %v12757_v2 = vmax.f32 %v12613_v56, 0.0  ;;  %23698 = vst [vmem:[#allocation142_spill] sm:$0xff] %v22256_v22  ;;  %v11515_v38 = vpop.f32.mrf.mxu0  ;;  %v23699_v18 = vunpack.c.h.bf16 %v21893_v17  ;;  %v22267_v48 = vrot.slane %v21826_v57, %v12004_v3  ;;  %v22278_v57 = vld [vmem:[%s16835_s30 + $0x68] ss:$36 sps:$4 sm:$0xff]   ;;  %v23703_v3 = vunpack.c.l.bf16 %v21896_v23 }
 0x65c   : > { %v12119_v9 = vadd.f32 %v21863_v26, %v11512_v28  ;;  %23701 = vst [vmem:[#allocation144_spill] sm:$0xff] %v22270_v32  ;;  %v12486_v37 = vmul.f32 0.17, %v12118_v1  ;;  %v11516_v34 = vadd.f32 %v11515_v38, %v21629_v54  ;;  %v10832_v36 = vpop.f32.mrf.mxu1  ;;  %v12765_v17 = vmax.f32 %v12621_v50, 0.0  ;;  %23702 = vst [vmem:[#allocation145_spill] sm:$0xff] %v22278_v57 }
 0x65d   : > { %v14872_v56 = vpack.c.bf16 %v12757_v2, %v12756_v39  ;;  %v12622_v41 = vadd.f32 %v12478_v44, %v23699_v18  ;;  %23700 = vst [vmem:[#allocation143_spill] sm:$0xff] %v22267_v48  ;;  %v11517_v29 = vpop.f32.mrf.mxu0  ;;  %v23713_v36 = vld [vmem:[#allocation128_spill] sm:$0xff] }
 0x65e   : > { %v12487_v44 = vmul.f32 0.17, %v12119_v9  ;;  %v11518_v28 = vadd.f32 %v11517_v29, %v21639_v59  ;;  %v12630_v1 = vadd.f32 %v12486_v37, %v23703_v3  ;;  %v12127_v54 = vadd.f32 %v21846_v5, %v11516_v34  ;;  %v22283_v38 = vpop.f32.mrf.mxu1  ;;  %v22292_v37 = vld [vmem:[%s16835_s30 + $0x84] sm:$0xff] }
 0x65f   : > { %13313 = vst [vmem:[%s22065_s19 + $0x144] sm:$0xff] %v14872_v56  ;;  %v12766_v2 = vmax.f32 %v12622_v41, 0.0  ;;  %23704 = vst [vmem:[#allocation146_spill] sm:$0xff] %v22283_v38  ;;  %v11519_v18 = vpop.f32.mrf.mxu0  ;;  %v23705_v41 = vunpack.c.h.bf16 %v21896_v23 }
 0x660   : > { %v12128_v29 = vadd.f32 %v21863_v26, %v11518_v28  ;;  %v11520_v9 = vadd.f32 %v11519_v18, %v21643_v51  ;;  %23706 = vst [vmem:[#allocation147_spill] sm:$0xff] %v22292_v37  ;;  %v12774_v34 = vmax.f32 %v12630_v1, 0.0  ;;  %v12495_v3 = vmul.f32 0.17, %v12127_v54  ;;  %v10835_v39 = vpop.f32.mrf.mxu1  ;;  %v22300_v28 = vld [vmem:[%s16835_s30 + $0xa8] sm:$0xff]  ;;  %v23751_v37 = vld [vmem:[#allocation95_spill] sm:$0xff] }
 0x661   : > { %v14877_v50 = vpack.c.bf16 %v12766_v2, %v12765_v17  ;;  %v12631_v59 = vadd.f32 %v12487_v44, %v23705_v41  ;;  %v11521_v21 = vpop.f32.mrf.mxu0  ;;  %23707 = vst [vmem:[#allocation148_spill] sm:$0xff] %v22300_v28  ;;  %v22303_v51 = vld [vmem:[%s16835_s30 + $0xb0] ss:$36 sps:$4 sm:$0xff]   ;;  %v23709_v1 = vunpack.c.l.bf16 %v21903_v7 }
 0x662   : > { %v12496_v23 = vmul.f32 0.17, %v12128_v29  ;;  %v12136_v2 = vadd.f32 %v21846_v5, %v11520_v9  ;;  %v11522_v44 = vadd.f32 %v11521_v21, %v21647_v61  ;;  %23708 = vst [vmem:[#allocation149_spill] sm:$0xff] %v22303_v51  ;;  %v22307_v54 = vpop.f32.mrf.mxu1  ;;  %v23711_v61 = vunpack.c.h.bf16 %v21903_v7 }
 0x663   : > { %13318 = vst [vmem:[%s22065_s19 + $0x168] sm:$0xff] %v14877_v50  ;;  %v12775_v17 = vmax.f32 %v12631_v59, 0.0  ;;  %v12639_v39 = vadd.f32 %v12495_v3, %v23709_v1  ;;  %23710 = vst [vmem:[#allocation150_spill] sm:$0xff] %v22307_v54  ;;  %v11525_v18 = vpop.f32.mrf.mxu0  ;;  %v22316_v3 = vld [vmem:[%s16835_s30 + $0xcc] sm:$0xff]  ;;  %v23714_v7 = vunpack.c.l.bf16 %v21914_v4  ;;  %v22329_v54 = vld [vmem:[%s16835_s30 + $0xf8] ss:$36 sps:$4 sm:$0xff]  }
 0x664   : > { %v12640_v21 = vadd.f32 %v12496_v23, %v23711_v61  ;;  %v12504_v9 = vmul.f32 0.17, %v12136_v2  ;;  %v12137_v56 = vadd.f32 %v21863_v26, %v11522_v44  ;;  %23712 = vst [vmem:[#allocation151_spill] sm:$0xff] %v22316_v3  ;;  %v11526_v27 = vadd.f32 %v11525_v18, %v23713_v36  ;;  %v10840_v46 = vpop.f32.mrf.mxu1  ;;  %v23715_v2 = vld [vmem:[#allocation84_spill] sm:$0xff]  ;;  %v22326_v44 = vld [vmem:[%s16835_s30 + $0xf0] sm:$0xff]  ;;  %v23736_v3 = vld [vmem:[#allocation27_spill] sm:$0xff] }
 0x665   : > { %v14882_v29 = vpack.c.bf16 %v12775_v17, %v12774_v34  ;;  %v12783_v1 = vmax.f32 %v12639_v39, 0.0  ;;  %v11527_v50 = vpop.f32.mrf.mxu0  ;;  %23716 = vst [vmem:[#allocation128_spill] sm:$0xff] %v22326_v44  ;;  %23717 = vst [vmem:[#allocation84_spill] sm:$0xff] %v22329_v54 }
 0x666   : > { %v12784_v34 = vmax.f32 %v12640_v21, 0.0  ;;  %v12648_v17 = vadd.f32 %v12504_v9, %v23714_v7  ;;  %v12505_v23 = vmul.f32 0.17, %v12137_v56  ;;  %v11528_v61 = vadd.f32 %v11527_v50, %v23715_v2  ;;  %v22332_v46 = vpop.f32.mrf.mxu1 }
 0x667   : > { %13323 = vst [vmem:[%s22065_s19 + $0x18c] sm:$0xff] %v14882_v29  ;;  %v12145_v36 = vadd.f32 %v21846_v5, %v11526_v27  ;;  %23718 = vst [vmem:[#allocation152_spill] sm:$0xff] %v22332_v46  ;;  %v11529_v39 = vpop.f32.mrf.mxu0  ;;  %v23719_v56 = vunpack.c.h.bf16 %v21914_v4  ;;  %v23720_v27 = vld [vmem:[#allocation17_spill] sm:$0xff]  ;;  %v23721_v4 = vld [vmem:[#allocation40_spill] sm:$0xff] }
 0x668   : > { %v14887_v9 = vpack.c.bf16 %v12784_v34, %v12783_v1  ;;  %v12146_v7 = vadd.f32 %v21863_v26, %v11528_v61  ;;  %v11530_v41 = vadd.f32 %v11529_v39, %v23720_v27  ;;  %v10843_v46 = vpop.f32.mrf.mxu1  ;;  %v12792_v21 = vmax.f32 %v12648_v17, 0.0  ;;  %v22351_v27 = vld [vmem:[%s16835_s30 + $0x114] sm:$0xff] }
 0x669   : > { %v12649_v50 = vadd.f32 %v12505_v23, %v23719_v56  ;;  %v12513_v59 = vmul.f32 0.17, %v12145_v36  ;;  %v11531_v38 = vpop.f32.mrf.mxu0  ;;  %v23722_v56 = vld [vmem:[#allocation76_spill] sm:$0xff]  ;;  %23724 = vst [vmem:[#allocation17_spill] sm:$0xff] %v22351_v27  ;;  %v23728_v29 = vld [vmem:[#allocation15_spill] sm:$0xff] }
 0x66a   : > { %13328 = vst [vmem:[%s22065_s19 + $0x1b0] sm:$0xff] %v14887_v9  ;;  %v12514_v34 = vmul.f32 0.17, %v12146_v7  ;;  %v11532_v23 = vadd.f32 %v11531_v38, %v23721_v4  ;;  %v23723_v61 = vunpack.c.l.bf16 %v23722_v56  ;;  %v12154_v36 = vadd.f32 %v21846_v5, %v11530_v41  ;;  %v11568_v2 = vpop.f32.mrf.mxu1  ;;  %v23726_v7 = vld [vmem:[#allocation117_spill] sm:$0xff] }
 0x66b   : > { %v12793_v1 = vmax.f32 %v12649_v50, 0.0  ;;  %v11681_v39 = vpop.f32.mrf.mxu0  ;;  %v23725_v17 = vunpack.c.h.bf16 %v23722_v56  ;;  %v11569_v4 = vadd.f32 %v11568_v2, %v23726_v7  ;;  %v23727_v5 = vld [vmem:[#allocation37_spill] sm:$0xff] }
 0x66c   : > { %v12657_v22 = vadd.f32 %v12513_v59, %v23723_v61  ;;  %v12155_v38 = vadd.f32 %v21863_v26, %v11532_v23  ;;  %v12522_v61 = vmul.f32 0.17, %v12154_v36  ;;  %v11682_v41 = vadd.f32 %v11681_v39, %v23727_v5  ;;  %v11570_v18 = vpop.f32.mrf.mxu1  ;;  %v23732_v23 = vld [vmem:[#allocation26_spill] sm:$0xff]  ;;  %v23733_v2 = vld [vmem:[#allocation61_spill] sm:$0xff] }
 0x66d   : > { %v14892_v9 = vpack.c.bf16 %v12793_v1, %v12792_v21  ;;  %v12658_v50 = vadd.f32 %v12514_v34, %v23725_v17  ;;  %v11683_v20 = vpop.f32.mrf.mxu0  ;;  %v12021_v21 = vadd.f32 %v23728_v29, %v11569_v4  ;;  %v23729_v1 = vld [vmem:[#allocation116_spill] sm:$0xff]  ;;  %v23730_v34 = vld [vmem:[#allocation78_spill] sm:$0xff] }
 0x66e   : > { %v12801_v59 = vmax.f32 %v12657_v22, 0.0  ;;  %v12523_v44 = vmul.f32 0.17, %v12155_v38  ;;  %v11571_v56 = vadd.f32 %v11570_v18, %v23729_v1  ;;  %v23731_v17 = vunpack.c.l.bf16 %v23730_v34  ;;  %v11572_v39 = vpop.f32.mrf.mxu1  ;;  %v23735_v4 = vld [vmem:[#allocation98_spill] sm:$0xff] }
 0x66f   : > { %13333 = vst [vmem:[%s22065_s19 + $0x1d4] sm:$0xff] %v14892_v9  ;;  %v12802_v35 = vmax.f32 %v12658_v50, 0.0  ;;  %v12023_v22 = vadd.f32 %v23732_v23, %v11682_v41  ;;  %v11684_v36 = vadd.f32 %v11683_v20, %v23733_v2  ;;  %v11685_v7 = vpop.f32.mrf.mxu0  ;;  %v23734_v9 = vunpack.c.h.bf16 %v23730_v34  ;;  %v23738_v2 = vld [vmem:[#allocation75_spill] sm:$0xff] }
 0x670   : > { %v12666_v26 = vadd.f32 %v12522_v61, %v23731_v17  ;;  %v12389_v38 = vmul.f32 0.17, %v12021_v21  ;;  %v12022_v54 = vadd.f32 %v23735_v4, %v11571_v56  ;;  %v23737_v17 = vld [vmem:[#allocation24_spill] sm:$0xff]  ;;  %v11574_v41 = vpop.f32.mrf.mxu1  ;;  %v23739_v28 = vunpack.c.l.bf16 %v23738_v2 }
 0x671   : > { %v14897_v46 = vpack.c.bf16 %v12802_v35, %v12801_v59  ;;  %v12667_v50 = vadd.f32 %v12523_v44, %v23734_v9  ;;  %v12391_v1 = vmul.f32 0.17, %v12023_v22  ;;  %v12024_v61 = vadd.f32 %v23736_v3, %v11684_v36  ;;  %v11687_v51 = vpop.f32.mrf.mxu0  ;;  %v23740_v59 = vld [vmem:[#allocation59_spill] sm:$0xff]  ;;  %v23741_v44 = vld [vmem:[#allocation57_spill] sm:$0xff] }
 0x672   : > { %v12810_v18 = vmax.f32 %v12666_v26, 0.0  ;;  %v11573_v62 = vadd.f32 %v11572_v39, %v23737_v17  ;;  %v12533_v5 = vadd.f32 %v12389_v38, %v23739_v28  ;;  %v12390_v35 = vmul.f32 0.17, %v12022_v54  ;;  %v23743_v22 = vld [vmem:[#allocation23_spill] sm:$0xff]  ;;  %v11578_v39 = vpop.f32.mrf.mxu1 }
 0x673   : > { %13338 = vst [vmem:[%s22065_s19 + $0x1f8] sm:$0xff] %v14897_v46  ;;  %v12811_v20 = vmax.f32 %v12667_v50, 0.0  ;;  %v11686_v34 = vadd.f32 %v11685_v7, %v23740_v59  ;;  %v23742_v21 = vunpack.c.l.bf16 %v23741_v44  ;;  %v12392_v56 = vmul.f32 0.17, %v12024_v61  ;;  %v11691_v17 = vpop.f32.mrf.mxu0 }
 0x674   : > { %v12030_v26 = vadd.f32 %v23728_v29, %v11573_v62  ;;  %v11575_v36 = vadd.f32 %v11574_v41, %v23743_v22  ;;  %v12677_v46 = vmax.f32 %v12533_v5, 0.0  ;;  %v23744_v50 = vunpack.c.h.bf16 %v23738_v2  ;;  %v11580_v59 = vpop.f32.mrf.mxu1  ;;  %v23746_v22 = vld [vmem:[#allocation50_spill] sm:$0xff]  ;;  %v23747_v5 = vld [vmem:[#allocation107_spill] sm:$0xff] }
 0x675   : > { %v12535_v9 = vadd.f32 %v12391_v1, %v23742_v21  ;;  %v14902_v27 = vpack.c.bf16 %v12811_v20, %v12810_v18  ;;  %v12032_v28 = vadd.f32 %v23732_v23, %v11686_v34  ;;  %v23745_v7 = vunpack.c.h.bf16 %v23741_v44  ;;  %v11693_v62 = vpop.f32.mrf.mxu0  ;;  %v23750_v44 = vld [vmem:[#allocation82_spill] sm:$0xff] }
 0x676   : > { %v12534_v49 = vadd.f32 %v12390_v35, %v23744_v50  ;;  %v12398_v1 = vmul.f32 0.17, %v12030_v26  ;;  %v12031_v61 = vadd.f32 %v23735_v4, %v11575_v36  ;;  %v11688_v18 = vadd.f32 %v11687_v51, %v23746_v22  ;;  %v23748_v35 = vld [vmem:[#allocation45_spill] sm:$0xff]  ;;  %v11582_v26 = vpop.f32.mrf.mxu1 }
 0x677   : > { %v12679_v54 = vmax.f32 %v12535_v9, 0.0  ;;  %v12536_v38 = vadd.f32 %v12392_v56, %v23745_v7  ;;  %13343 = vst [vmem:[%s22065_s19 + $0x21c] sm:$0xff] %v14902_v27  ;;  %v12400_v21 = vmul.f32 0.17, %v12032_v28  ;;  %v11579_v20 = vadd.f32 %v11578_v39, %v23747_v5  ;;  %v11695_v7 = vpop.f32.mrf.mxu0 }
 0x678   : > { %v12678_v41 = vmax.f32 %v12534_v49, 0.0  ;;  %v23749_v50 = vunpack.c.l.bf16 %v23748_v35  ;;  %v12399_v9 = vmul.f32 0.17, %v12031_v61  ;;  %v11692_v56 = vadd.f32 %v11691_v17, %v23750_v44  ;;  %v11584_v61 = vpop.f32.mrf.mxu1 }
 0x679   : > { %v12680_v2 = vmax.f32 %v12536_v38, 0.0  ;;  %v23752_v27 = vunpack.c.l.bf16 %v23751_v37  ;;  %v12033_v28 = vadd.f32 %v23736_v3, %v11688_v18  ;;  %v12039_v51 = vadd.f32 %v23728_v29, %v11579_v20  ;;  %v11697_v17 = vpop.f32.mrf.mxu0 }
 0x67a   : > { %v12542_v34 = vadd.f32 %v12398_v1, %v23749_v50  ;;  %v14828_v36 = vpack.c.bf16 %v12678_v41, %v12677_v46  ;;  %v23753_v22 = vunpack.c.h.bf16 %v23748_v35  ;;  %v12041_v1 = vadd.f32 %v23732_v23, %v11692_v56  ;;  %v23754_v41 = vld [vmem:[#allocation118_spill] sm:$0xff] }
 0x67b   : > { %v12544_v49 = vadd.f32 %v12400_v21, %v23752_v27  ;;  %v14829_v39 = vpack.c.bf16 %v12680_v2, %v12679_v54  ;;  %v12401_v44 = vmul.f32 0.17, %v12033_v28  ;;  %v12407_v46 = vmul.f32 0.17, %v12039_v51  ;;  %v23755_v27 = vld [vmem:[#allocation20_spill] sm:$0xff]  ;;  %v23756_v54 = vld [vmem:[#allocation109_spill] sm:$0xff]  ;;  %v11701_v35 = vpop.f32.mrf.mxu0 }
 0x67c   : > { %v12686_v38 = vmax.f32 %v12542_v34, 0.0  ;;  %v12543_v5 = vadd.f32 %v12399_v9, %v23753_v22  ;;  %13268 = vst [vmem:[%s22065_s19 + $0x8] sm:$0xff] %v14828_v36  ;;  %v11581_v57 = vadd.f32 %v11580_v59, %v23754_v41  ;;  %v12409_v18 = vmul.f32 0.17, %v12041_v1  ;;  %v11588_v34 = vpop.f32.mrf.mxu1  ;;  %v23758_v22 = vld [vmem:[#allocation97_spill] sm:$0xff]  ;;  %v23760_v51 = vld [vmem:[#allocation44_spill] sm:$0xff] }
 0x67d   : > { %v12688_v50 = vmax.f32 %v12544_v49, 0.0  ;;  %13269 = vst [vmem:[%s22065_s19 + $0x10] sm:$0xff] %v14829_v39  ;;  %v11694_v20 = vadd.f32 %v11693_v62, %v23755_v27  ;;  %v11583_v2 = vadd.f32 %v11582_v26, %v23756_v54  ;;  %v23757_v9 = vunpack.c.h.bf16 %v23751_v37  ;;  %v11703_v54 = vpop.f32.mrf.mxu0 }
 0x67e   : > { %v12687_v21 = vmax.f32 %v12543_v5, 0.0  ;;  %v23759_v36 = vunpack.c.l.bf16 %v23758_v22  ;;  %v12040_v28 = vadd.f32 %v23735_v4, %v11581_v57  ;;  %v11696_v59 = vadd.f32 %v11695_v7, %v23760_v51  ;;  %v23761_v5 = vld [vmem:[#allocation73_spill] sm:$0xff]  ;;  %v11590_v27 = vpop.f32.mrf.mxu1 }
 0x67f   : > { %v12545_v56 = vadd.f32 %v12401_v44, %v23757_v9  ;;  %v23762_v1 = vunpack.c.l.bf16 %v23761_v5  ;;  %v12042_v62 = vadd.f32 %v23736_v3, %v11694_v20  ;;  %v12048_v26 = vadd.f32 %v23728_v29, %v11583_v2 }
 0x680   : > { %v12551_v49 = vadd.f32 %v12407_v46, %v23759_v36  ;;  %v14833_v39 = vpack.c.bf16 %v12687_v21, %v12686_v38  ;;  %v12408_v44 = vmul.f32 0.17, %v12040_v28  ;;  %v12050_v9 = vadd.f32 %v23732_v23, %v11696_v59  ;;  %v23763_v38 = vld [vmem:[#allocation120_spill] sm:$0xff]  ;;  %v11592_v36 = vpop.f32.mrf.mxu1  ;;  %v23767_v59 = vld [vmem:[#allocation14_spill] sm:$0xff] }
 0x681   : > { %v12553_v41 = vadd.f32 %v12409_v18, %v23762_v1  ;;  %v12689_v32 = vmax.f32 %v12545_v56, 0.0  ;;  %v12410_v57 = vmul.f32 0.17, %v12042_v62  ;;  %v12416_v7 = vmul.f32 0.17, %v12048_v26  ;;  %v11705_v18 = vpop.f32.mrf.mxu0  ;;  %v23769_v26 = vld [vmem:[#allocation119_spill] sm:$0xff] }
 0x682   : > { %v12695_v37 = vmax.f32 %v12551_v49, 0.0  ;;  %13274 = vst [vmem:[%s22065_s19 + $0x2c] sm:$0xff] %v14833_v39  ;;  %v11585_v21 = vadd.f32 %v11584_v61, %v23763_v38  ;;  %v23764_v20 = vunpack.c.h.bf16 %v23758_v22  ;;  %v12418_v1 = vmul.f32 0.17, %v12050_v9  ;;  %v11594_v61 = vpop.f32.mrf.mxu1 }
 0x683   : > { %v12697_v46 = vmax.f32 %v12553_v41, 0.0  ;;  %v14834_v51 = vpack.c.bf16 %v12689_v32, %v12688_v50  ;;  %v11698_v56 = vadd.f32 %v11697_v17, %v23765_v60  ;;  %v23766_v49 = vunpack.c.h.bf16 %v23761_v5  ;;  %v11707_v38 = vpop.f32.mrf.mxu0  ;;  %v23770_v50 = vld [vmem:[#allocation16_spill] sm:$0xff]  ;;  %v23772_v60 = vld [vmem:[#allocation18_spill] sm:$0xff] }
 0x684   : > { %v12552_v2 = vadd.f32 %v12408_v44, %v23764_v20  ;;  %v23768_v39 = vunpack.c.l.bf16 %v23767_v59  ;;  %v12049_v62 = vadd.f32 %v23735_v4, %v11585_v21  ;;  %v11589_v48 = vadd.f32 %v11588_v34, %v23769_v26  ;;  %v11598_v21 = vpop.f32.mrf.mxu1 }
 0x685   : > { %v12554_v28 = vadd.f32 %v12410_v57, %v23766_v49  ;;  %13275 = vst [vmem:[%s22065_s19 + $0x34] sm:$0xff] %v14834_v51  ;;  %v23771_v22 = vunpack.c.l.bf16 %v23770_v50  ;;  %v12051_v9 = vadd.f32 %v23736_v3, %v11698_v56  ;;  %v11702_v17 = vadd.f32 %v11701_v35, %v23772_v60  ;;  %v11711_v49 = vpop.f32.mrf.mxu0  ;;  %v23774_v35 = vld [vmem:[#allocation102_spill] sm:$0xff] }
 0x686   : > { %v12560_v41 = vadd.f32 %v12416_v7, %v23768_v39  ;;  %v12696_v32 = vmax.f32 %v12552_v2, 0.0  ;;  %v12417_v20 = vmul.f32 0.17, %v12049_v62  ;;  %v12057_v7 = vadd.f32 %v23728_v29, %v11589_v48  ;;  %v11600_v60 = vpop.f32.mrf.mxu1 }
 0x687   : > { %v12562_v44 = vadd.f32 %v12418_v1, %v23771_v22  ;;  %v12698_v5 = vmax.f32 %v12554_v28, 0.0  ;;  %v12419_v51 = vmul.f32 0.17, %v12051_v9  ;;  %v12059_v2 = vadd.f32 %v23732_v23, %v11702_v17 }
 0x688   : > { %v12704_v57 = vmax.f32 %v12560_v41, 0.0  ;;  %v14838_v34 = vpack.c.bf16 %v12696_v32, %v12695_v37  ;;  %v23773_v1 = vunpack.c.h.bf16 %v23767_v59  ;;  %v12425_v22 = vmul.f32 0.17, %v12057_v7  ;;  %v11713_v41 = vpop.f32.mrf.mxu0  ;;  %v23777_v32 = vld [vmem:[#allocation101_spill] sm:$0xff] }
 0x689   : > { %v12706_v39 = vmax.f32 %v12562_v44, 0.0  ;;  %v14839_v26 = vpack.c.bf16 %v12698_v5, %v12697_v46  ;;  %v11591_v28 = vadd.f32 %v11590_v27, %v23774_v35  ;;  %v23775_v48 = vunpack.c.h.bf16 %v23770_v50  ;;  %v23779_v5 = vld [vmem:[#allocation64_spill] sm:$0xff]  ;;  %v23780_v50 = vld [vmem:[#allocation41_spill] sm:$0xff] }
 0x68a   : > { %v12561_v56 = vadd.f32 %v12417_v20, %v23773_v1  ;;  %13279 = vst [vmem:[%s22065_s19 + $0x50] sm:$0xff] %v14838_v34  ;;  %v12427_v47 = vmul.f32 0.17, %v12059_v2  ;;  %v11704_v37 = vadd.f32 %v11703_v54, %v23776_v63  ;;  %v11593_v44 = vadd.f32 %v11592_v36, %v23777_v32  ;;  %v11602_v20 = vpop.f32.mrf.mxu1  ;;  %v11715_v7 = vpop.f32.mrf.mxu0 }
 0x68b   : > { %v12563_v62 = vadd.f32 %v12419_v51, %v23775_v48  ;;  %13280 = vst [vmem:[%s22065_s19 + $0x58] sm:$0xff] %v14839_v26  ;;  %v23778_v46 = vunpack.c.l.bf16 %v22000_v31  ;;  %v12058_v17 = vadd.f32 %v23735_v4, %v11591_v28  ;;  %v11706_v27 = vadd.f32 %v11705_v18, %v23779_v5 }
 0x68c   : > { %v12705_v9 = vmax.f32 %v12561_v56, 0.0  ;;  %v23781_v51 = vunpack.c.l.bf16 %v23780_v50  ;;  %v12060_v63 = vadd.f32 %v23736_v3, %v11704_v37  ;;  %v12066_v54 = vadd.f32 %v23728_v29, %v11593_v44  ;;  %v22454_v18 = vpop.f32.mrf.mxu0  ;;  %v23783_v44 = vld [vmem:[#allocation108_spill] sm:$0xff] }
 0x68d   : > { %v12569_v59 = vadd.f32 %v12425_v22, %v23778_v46  ;;  %v12707_v34 = vmax.f32 %v12563_v62, 0.0  ;;  %v12426_v1 = vmul.f32 0.17, %v12058_v17  ;;  %v12068_v56 = vadd.f32 %v23732_v23, %v11706_v27  ;;  %v22452_v22 = vpop.f32.mrf.mxu1 }
 0x68e   : > { %v12571_v2 = vadd.f32 %v12427_v47, %v23781_v51  ;;  %v14843_v36 = vpack.c.bf16 %v12705_v9, %v12704_v57  ;;  %v12428_v48 = vmul.f32 0.17, %v12060_v63  ;;  %v12434_v62 = vmul.f32 0.17, %v12066_v54  ;;  %v23784_v9 = vld [vmem:[#allocation62_spill] sm:$0xff]  ;;  %v22463_v17 = vpop.f32.mrf.mxu0  ;;  %v23787_v51 = vld [vmem:[#allocation121_spill] sm:$0xff] }
 0x68f   : > { %v12713_v26 = vmax.f32 %v12569_v59, 0.0  ;;  %v14844_v35 = vpack.c.bf16 %v12707_v34, %v12706_v39  ;;  %v23782_v47 = vunpack.c.h.bf16 %v22000_v31  ;;  %v12436_v32 = vmul.f32 0.17, %v12068_v56  ;;  %v22461_v59 = vpop.f32.mrf.mxu1  ;;  %v23788_v31 = vld [vmem:[#allocation96_spill] sm:$0xff] }
 0x690   : > { %v12715_v28 = vmax.f32 %v12571_v2, 0.0  ;;  %13284 = vst [vmem:[%s22065_s19 + $0x74] sm:$0xff] %v14843_v36  ;;  %v11595_v57 = vadd.f32 %v11594_v61, %v23783_v44  ;;  %v11708_v46 = vadd.f32 %v11707_v38, %v23784_v9  ;;  %v23785_v5 = vunpack.c.h.bf16 %v23780_v50  ;;  %v22478_v50 = vpop.f32.mrf.mxu0 }
 0x691   : > { %v12570_v37 = vadd.f32 %v12426_v1, %v23782_v47  ;;  %13285 = vst [vmem:[%s22065_s19 + $0x7c] sm:$0xff] %v14844_v35  ;;  %v23786_v27 = vunpack.c.l.bf16 %v22014_v25  ;;  %v11599_v2 = vadd.f32 %v11598_v21, %v23787_v51  ;;  %v11712_v63 = vadd.f32 %v11711_v49, %v23788_v31  ;;  %v22476_v56 = vpop.f32.mrf.mxu1  ;;  %v23793_v31 = vld [vmem:[#allocation86_spill] sm:$0xff] }
 0x692   : > { %v12572_v39 = vadd.f32 %v12428_v48, %v23785_v5  ;;  %v23789_v61 = vunpack.c.l.bf16 %v22017_v33  ;;  %v12067_v38 = vadd.f32 %v23735_v4, %v11595_v57  ;;  %v12069_v1 = vadd.f32 %v23736_v3, %v11708_v46  ;;  %v22484_v57 = vpop.f32.mrf.mxu0 }
 0x693   : > { %v12578_v34 = vadd.f32 %v12434_v62, %v23786_v27  ;;  %v12714_v54 = vmax.f32 %v12570_v37, 0.0  ;;  %v12075_v62 = vadd.f32 %v23728_v29, %v11599_v2  ;;  %v12077_v21 = vadd.f32 %v23732_v23, %v11712_v63  ;;  %v22482_v44 = vpop.f32.mrf.mxu1  ;;  %v23790_v27 = vld [vmem:[#allocation122_spill] sm:$0xff] }
 0x694   : > { %v12580_v36 = vadd.f32 %v12436_v32, %v23789_v61  ;;  %v12716_v35 = vmax.f32 %v12572_v39, 0.0  ;;  %v12435_v37 = vmul.f32 0.17, %v12067_v38  ;;  %v12437_v32 = vmul.f32 0.17, %v12069_v1  ;;  %v22496_v38 = vpop.f32.mrf.mxu0 }
 0x695   : > { %v12722_v48 = vmax.f32 %v12578_v34, 0.0  ;;  %v14848_v49 = vpack.c.bf16 %v12714_v54, %v12713_v26  ;;  %v12443_v46 = vmul.f32 0.17, %v12075_v62  ;;  %v12445_v5 = vmul.f32 0.17, %v12077_v21  ;;  %v23794_v54 = vld [vmem:[#allocation104_spill] sm:$0xff] }
 0x696   : > { %v12724_v47 = vmax.f32 %v12580_v36, 0.0  ;;  %v14849_v9 = vpack.c.bf16 %v12716_v35, %v12715_v28  ;;  %v11601_v51 = vadd.f32 %v11600_v60, %v23790_v27  ;;  %v23791_v39 = vunpack.c.h.bf16 %v22014_v25  ;;  %v22494_v36 = vpop.f32.mrf.mxu1  ;;  %v23797_v62 = vld [vmem:[#allocation92_spill] sm:$0xff] }
 0x697   : > { %13289 = vst [vmem:[%s22065_s19 + $0x98] sm:$0xff] %v14848_v49  ;;  %v23792_v2 = vunpack.c.h.bf16 %v22017_v33  ;;  %v11714_v63 = vadd.f32 %v11713_v41, %v23793_v31  ;;  %v11603_v61 = vadd.f32 %v11602_v20, %v23794_v54  ;;  %v23795_v28 = vunpack.c.l.bf16 %v22034_v8 }
 0x698   : > { %v12579_v34 = vadd.f32 %v12435_v37, %v23791_v39  ;;  %13290 = vst [vmem:[%s22065_s19 + $0xa0] sm:$0xff] %v14849_v9  ;;  %v23796_v60 = vunpack.c.l.bf16 %v22040_v11  ;;  %v12076_v25 = vadd.f32 %v23735_v4, %v11601_v51  ;;  %v11716_v33 = vadd.f32 %v11715_v7, %v23797_v62  ;;  %v22507_v37 = vpop.f32.mrf.mxu1  ;;  %v23803_v62 = vld [vmem:[#allocation111_spill] sm:$0xff] }
 0x699   : > { %v12581_v26 = vadd.f32 %v12437_v32, %v23792_v2  ;;  %v12587_v1 = vadd.f32 %v12443_v46, %v23795_v28  ;;  %v12078_v41 = vadd.f32 %v23736_v3, %v11714_v63  ;;  %v12084_v20 = vadd.f32 %v23728_v29, %v11603_v61  ;;  %v22509_v32 = vpop.f32.mrf.mxu0  ;;  %v23799_v61 = vld [vmem:[#allocation103_spill] sm:$0xff] }
 0x69a   : > { %v12589_v35 = vadd.f32 %v12445_v5, %v23796_v60  ;;  %v12723_v21 = vmax.f32 %v12579_v34, 0.0  ;;  %v12444_v27 = vmul.f32 0.17, %v12076_v25  ;;  %v12086_v5 = vadd.f32 %v23732_v23, %v11716_v33  ;;  %v22512_v2 = vpop.f32.mrf.mxu1 }
 0x69b   : > { %v12725_v49 = vmax.f32 %v12581_v26, 0.0  ;;  %v12731_v9 = vmax.f32 %v12587_v1, 0.0  ;;  %v12446_v7 = vmul.f32 0.17, %v12078_v41  ;;  %v12452_v34 = vmul.f32 0.17, %v12084_v20  ;;  %v22514_v26 = vpop.f32.mrf.mxu0 }
 0x69c   : > { %v12733_v46 = vmax.f32 %v12589_v35, 0.0  ;;  %v14853_v51 = vpack.c.bf16 %v12723_v21, %v12722_v48  ;;  %v23798_v31 = vunpack.c.h.bf16 %v22034_v8  ;;  %v12454_v54 = vmul.f32 0.17, %v12086_v5  ;;  %v23800_v1 = vld [vmem:[#allocation31_spill] sm:$0xff] }
 0x69d   : > { %v14854_v39 = vpack.c.bf16 %v12725_v49, %v12724_v47  ;;  %v11605_v28 = vadd.f32 %v22452_v22, %v23799_v61  ;;  %v11718_v60 = vadd.f32 %v22454_v18, %v23800_v1  ;;  %v23801_v48 = vunpack.c.h.bf16 %v22040_v11  ;;  %v23804_v8 = vld [vmem:[#allocation51_spill] sm:$0xff]  ;;  %v22532_v49 = vpop.f32.mrf.mxu1  ;;  %v22534_v22 = vpop.f32.mrf.mxu0 }
 0x69e   : > { %v12588_v63 = vadd.f32 %v12444_v27, %v23798_v31  ;;  %13294 = vst [vmem:[%s22065_s19 + $0xbc] sm:$0xff] %v14853_v51  ;;  %v23802_v35 = vunpack.c.l.bf16 %v22056_v43  ;;  %v11609_v33 = vadd.f32 %v22461_v59, %v23803_v62  ;;  %v11722_v21 = vadd.f32 %v22463_v17, %v23804_v8  ;;  %v23809_v8 = vld [vmem:[#allocation83_spill] sm:$0xff] }
 0x69f   : > { %13295 = vst [vmem:[%s22065_s19 + $0xc4] sm:$0xff] %v14854_v39  ;;  %v12590_v47 = vadd.f32 %v12446_v7, %v23801_v48  ;;  %v23805_v18 = vunpack.c.l.bf16 %v22059_v6  ;;  %v12085_v11 = vadd.f32 %v23735_v4, %v11605_v28  ;;  %v12087_v27 = vadd.f32 %v23736_v3, %v11718_v60  ;;  %v22542_v17 = vpop.f32.mrf.mxu1  ;;  %v22544_v7 = vpop.f32.mrf.mxu0  ;;  %v23806_v60 = vld [vmem:[#allocation123_spill] sm:$0xff] }
 0x6a0   : > { %v12596_v25 = vadd.f32 %v12452_v34, %v23802_v35  ;;  %v12732_v41 = vmax.f32 %v12588_v63, 0.0  ;;  %v12093_v59 = vadd.f32 %v23728_v29, %v11609_v33  ;;  %v12095_v39 = vadd.f32 %v23732_v23, %v11722_v21 }
 0x6a1   : > { %v12598_v20 = vadd.f32 %v12454_v54, %v23805_v18  ;;  %v12734_v5 = vmax.f32 %v12590_v47, 0.0  ;;  %v12453_v63 = vmul.f32 0.17, %v12085_v11  ;;  %v12455_v54 = vmul.f32 0.17, %v12087_v27  ;;  %v22548_v47 = vpop.f32.mrf.mxu1  ;;  %v22550_v35 = vpop.f32.mrf.mxu0 }
 0x6a2   : > { %v12740_v51 = vmax.f32 %v12596_v25, 0.0  ;;  %v14858_v34 = vpack.c.bf16 %v12732_v41, %v12731_v9  ;;  %v12461_v28 = vmul.f32 0.17, %v12093_v59  ;;  %v12463_v1 = vmul.f32 0.17, %v12095_v39 }
 0x6a3   : > { %v12742_v31 = vmax.f32 %v12598_v20, 0.0  ;;  %v14859_v61 = vpack.c.bf16 %v12734_v5, %v12733_v46  ;;  %v11611_v48 = vadd.f32 %v22476_v56, %v23806_v60  ;;  %v23807_v25 = vunpack.c.h.bf16 %v22056_v43  ;;  %v23810_v46 = vld [vmem:[#allocation110_spill] sm:$0xff]  ;;  %v23813_v43 = vld [vmem:[#allocation71_spill] sm:$0xff]  ;;  %v22571_v59 = vpop.f32.mrf.mxu0 }
 0x6a4   : > { %13299 = vst [vmem:[%s22065_s19 + $0xe0] sm:$0xff] %v14858_v34  ;;  %v23808_v33 = vunpack.c.h.bf16 %v22059_v6  ;;  %v11724_v21 = vadd.f32 %v22478_v50, %v23809_v8  ;;  %v11613_v41 = vadd.f32 %v22482_v44, %v23810_v46  ;;  %v23811_v56 = vunpack.c.l.bf16 %v22081_v13  ;;  %v22569_v6 = vpop.f32.mrf.mxu1 }
 0x6a5   : > { %v12597_v62 = vadd.f32 %v12453_v63, %v23807_v25  ;;  %13300 = vst [vmem:[%s22065_s19 + $0xe8] sm:$0xff] %v14859_v61  ;;  %v23812_v20 = vunpack.c.l.bf16 %v22084_v55  ;;  %v12094_v27 = vadd.f32 %v23735_v4, %v11611_v48  ;;  %v11726_v5 = vadd.f32 %v22484_v57, %v23813_v43  ;;  %v22578_v57 = vpop.f32.mrf.mxu0 }
 0x6a6   : > { %v12599_v9 = vadd.f32 %v12455_v54, %v23808_v33  ;;  %v12605_v18 = vadd.f32 %v12461_v28, %v23811_v56  ;;  %v12096_v44 = vadd.f32 %v23736_v3, %v11724_v21  ;;  %v12102_v34 = vadd.f32 %v23728_v29, %v11613_v41  ;;  %v23815_v21 = vld [vmem:[#allocation113_spill] sm:$0xff]  ;;  %v23816_v41 = vld [vmem:[#allocation30_spill] sm:$0xff] }
 0x6a7   : > { %v12607_v11 = vadd.f32 %v12463_v1, %v23812_v20  ;;  %v12741_v50 = vmax.f32 %v12597_v62, 0.0  ;;  %v12462_v61 = vmul.f32 0.17, %v12094_v27  ;;  %v12104_v28 = vadd.f32 %v23732_v23, %v11726_v5  ;;  %v22576_v1 = vpop.f32.mrf.mxu1  ;;  %v22588_v20 = vpop.f32.mrf.mxu0  ;;  %v23819_v27 = vld [vmem:[#allocation124_spill] sm:$0xff]  ;;  %v23820_v5 = vld [vmem:[#allocation49_spill] sm:$0xff] }
 0x6a8   : > { %v12743_v39 = vmax.f32 %v12599_v9, 0.0  ;;  %v12749_v63 = vmax.f32 %v12605_v18, 0.0  ;;  %v12464_v25 = vmul.f32 0.17, %v12096_v44  ;;  %v12470_v62 = vmul.f32 0.17, %v12102_v34 }
 0x6a9   : > { %v12751_v54 = vmax.f32 %v12607_v11, 0.0  ;;  %v14863_v60 = vpack.c.bf16 %v12741_v50, %v12740_v51  ;;  %v23814_v33 = vunpack.c.h.bf16 %v22081_v13  ;;  %v12472_v8 = vmul.f32 0.17, %v12104_v28  ;;  %v22586_v18 = vpop.f32.mrf.mxu1 }
 0x6aa   : > { %v14864_v48 = vpack.c.bf16 %v12743_v39, %v12742_v31  ;;  %v11615_v46 = vadd.f32 %v22494_v36, %v23815_v21  ;;  %v11728_v56 = vadd.f32 %v22496_v38, %v23816_v41  ;;  %v23817_v51 = vunpack.c.h.bf16 %v22084_v55  ;;  %v22606_v55 = vpop.f32.mrf.mxu0 }
 0x6ab   : > { %v12606_v9 = vadd.f32 %v12462_v61, %v23814_v33  ;;  %13304 = vst [vmem:[%s22065_s19 + $0x104] sm:$0xff] %v14863_v60  ;;  %v23818_v11 = vunpack.c.l.bf16 %v22092_v19  ;;  %v11619_v43 = vadd.f32 %v22507_v37, %v23819_v27  ;;  %v11732_v36 = vadd.f32 %v22509_v32, %v23820_v5  ;;  %v22604_v61 = vpop.f32.mrf.mxu1  ;;  %v23825_v27 = vld [vmem:[#allocation70_spill] sm:$0xff]  ;;  %v23826_v5 = vld [vmem:[#allocation125_spill] sm:$0xff] }
 0x6ac   : > { %13305 = vst [vmem:[%s22065_s19 + $0x10c] sm:$0xff] %v14864_v48  ;;  %v12608_v31 = vadd.f32 %v12464_v25, %v23817_v51  ;;  %v23821_v38 = vunpack.c.l.bf16 %v22105_v16  ;;  %v12103_v44 = vadd.f32 %v23735_v4, %v11615_v46  ;;  %v12105_v34 = vadd.f32 %v23736_v3, %v11728_v56  ;;  %v23822_v56 = vld [vmem:[#allocation126_spill] sm:$0xff] }
 0x6ad   : > { %v12614_v13 = vadd.f32 %v12470_v62, %v23818_v11  ;;  %v12750_v50 = vmax.f32 %v12606_v9, 0.0  ;;  %v12111_v37 = vadd.f32 %v23728_v29, %v11619_v43  ;;  %v12113_v48 = vadd.f32 %v23732_v23, %v11732_v36  ;;  %v22610_v9 = vpop.f32.mrf.mxu1 }
 0x6ae   : > { %v12616_v39 = vadd.f32 %v12472_v8, %v23821_v38  ;;  %v12752_v28 = vmax.f32 %v12608_v31, 0.0  ;;  %v12471_v62 = vmul.f32 0.17, %v12103_v44  ;;  %v12473_v33 = vmul.f32 0.17, %v12105_v34  ;;  %v22612_v8 = vpop.f32.mrf.mxu0  ;;  %v23829_v44 = vld [vmem:[#allocation67_spill] sm:$0xff] }
 0x6af   : > { %v12758_v60 = vmax.f32 %v12614_v13, 0.0  ;;  %v14868_v32 = vpack.c.bf16 %v12750_v50, %v12749_v63  ;;  %v12479_v46 = vmul.f32 0.17, %v12111_v37  ;;  %v12481_v41 = vmul.f32 0.17, %v12113_v48  ;;  %v22625_v50 = vpop.f32.mrf.mxu1 }
 0x6b0   : > { %v12760_v25 = vmax.f32 %v12616_v39, 0.0  ;;  %v14869_v21 = vpack.c.bf16 %v12752_v28, %v12751_v54  ;;  %v11621_v51 = vadd.f32 %v22512_v2, %v23822_v56  ;;  %v23823_v31 = vunpack.c.h.bf16 %v22092_v19  ;;  %v22627_v54 = vpop.f32.mrf.mxu0 }
 0x6b1   : > { %13309 = vst [vmem:[%s22065_s19 + $0x128] sm:$0xff] %v14868_v32  ;;  %v23824_v63 = vunpack.c.h.bf16 %v22105_v16  ;;  %v11734_v43 = vadd.f32 %v22514_v26, %v23825_v27  ;;  %v11623_v36 = vadd.f32 %v22532_v49, %v23826_v5  ;;  %v23827_v2 = vunpack.c.l.bf16 %v22111_v15  ;;  %v22639_v48 = vpop.f32.mrf.mxu1 }
 0x6b2   : > { %v12615_v11 = vadd.f32 %v12471_v62, %v23823_v31  ;;  %13310 = vst [vmem:[%s22065_s19 + $0x130] sm:$0xff] %v14869_v21  ;;  %v23828_v19 = vunpack.c.l.bf16 %v22118_v52  ;;  %v12112_v16 = vadd.f32 %v23735_v4, %v11621_v51  ;;  %v11736_v34 = vadd.f32 %v22534_v22, %v23829_v44  ;;  %v22641_v32 = vpop.f32.mrf.mxu0 }
 0x6b3   : > { %v12617_v13 = vadd.f32 %v12473_v33, %v23824_v63  ;;  %v12623_v38 = vadd.f32 %v12479_v46, %v23827_v2  ;;  %v12114_v49 = vadd.f32 %v23736_v3, %v11734_v43  ;;  %v12120_v37 = vadd.f32 %v23728_v29, %v11623_v36  ;;  %v22644_v31 = vpop.f32.mrf.mxu1  ;;  %v23831_v43 = vld [vmem:[#allocation106_spill] sm:$0xff]  ;;  %v23832_v36 = vld [vmem:[#allocation47_spill] sm:$0xff] }
 0x6b4   : > { %v12625_v39 = vadd.f32 %v12481_v41, %v23828_v19  ;;  %v12759_v26 = vmax.f32 %v12615_v11, 0.0  ;;  %v12480_v21 = vmul.f32 0.17, %v12112_v16  ;;  %v12122_v46 = vadd.f32 %v23732_v23, %v11736_v34  ;;  %v22646_v11 = vpop.f32.mrf.mxu0 }
 0x6b5   : > { %v12761_v28 = vmax.f32 %v12617_v13, 0.0  ;;  %v12767_v62 = vmax.f32 %v12623_v38, 0.0  ;;  %v12482_v22 = vmul.f32 0.17, %v12114_v49  ;;  %v12488_v51 = vmul.f32 0.17, %v12120_v37  ;;  %v22664_v34 = vpop.f32.mrf.mxu1 }
 0x6b6   : > { %v12769_v33 = vmax.f32 %v12625_v39, 0.0  ;;  %v14873_v41 = vpack.c.bf16 %v12759_v26, %v12758_v60  ;;  %v23830_v63 = vunpack.c.h.bf16 %v22111_v15  ;;  %v12490_v27 = vmul.f32 0.17, %v12122_v46  ;;  %v23835_v39 = vld [vmem:[#allocation105_spill] sm:$0xff]  ;;  %v23836_v15 = vld [vmem:[#allocation38_spill] sm:$0xff] }
 0x6b7   : > { %v14874_v56 = vpack.c.bf16 %v12761_v28, %v12760_v25  ;;  %v11625_v5 = vadd.f32 %v22542_v17, %v23831_v43  ;;  %v11738_v2 = vadd.f32 %v22544_v7, %v23832_v36  ;;  %v23833_v60 = vunpack.c.h.bf16 %v22118_v52  ;;  %v11909_v17 = vpop.f32.mrf.mxu0 }
 0x6b8   : > { %v12624_v13 = vadd.f32 %v12480_v21, %v23830_v63  ;;  %13314 = vst [vmem:[%s22065_s19 + $0x14c] sm:$0xff] %v14873_v41  ;;  %v23834_v38 = vunpack.c.l.bf16 %v22131_v0  ;;  %v11629_v16 = vadd.f32 %v22548_v47, %v23835_v39  ;;  %v11742_v44 = vadd.f32 %v22550_v35, %v23836_v15  ;;  %v22672_v41 = vpop.f32.mrf.mxu1  ;;  %v23842_v15 = vld [vmem:[#allocation127_spill] sm:$0xff] }
 0x6b9   : > { %13315 = vst [vmem:[%s22065_s19 + $0x154] sm:$0xff] %v14874_v56  ;;  %v12626_v25 = vadd.f32 %v12482_v22, %v23833_v60  ;;  %v23837_v7 = vunpack.c.l.bf16 %v22139_v40  ;;  %v12121_v49 = vadd.f32 %v23735_v4, %v11625_v5  ;;  %v12123_v52 = vadd.f32 %v23736_v3, %v11738_v2  ;;  %v22674_v35 = vpop.f32.mrf.mxu0  ;;  %v23838_v5 = vld [vmem:[#allocation112_spill] sm:$0xff] }
 0x6ba   : > { %v12632_v19 = vadd.f32 %v12488_v51, %v23834_v38  ;;  %v12768_v26 = vmax.f32 %v12624_v13, 0.0  ;;  %v12129_v46 = vadd.f32 %v23728_v29, %v11629_v16  ;;  %v12131_v47 = vadd.f32 %v23732_v23, %v11742_v44  ;;  %v22678_v2 = vpop.f32.mrf.mxu1 }
 0x6bb   : > { %v12634_v28 = vadd.f32 %v12490_v27, %v23837_v7  ;;  %v12770_v37 = vmax.f32 %v12626_v25, 0.0  ;;  %v12489_v51 = vmul.f32 0.17, %v12121_v49  ;;  %v12491_v63 = vmul.f32 0.17, %v12123_v52  ;;  %v11912_v60 = vpop.f32.mrf.mxu0 }
 0x6bc   : > { %v12776_v21 = vmax.f32 %v12632_v19, 0.0  ;;  %v14878_v56 = vpack.c.bf16 %v12768_v26, %v12767_v62  ;;  %v12497_v27 = vmul.f32 0.17, %v12129_v46  ;;  %v12499_v43 = vmul.f32 0.17, %v12131_v47  ;;  %v23841_v62 = vld [vmem:[#allocation93_spill] sm:$0xff] }
 0x6bd   : > { %v12778_v22 = vmax.f32 %v12634_v28, 0.0  ;;  %v14879_v13 = vpack.c.bf16 %v12770_v37, %v12769_v33  ;;  %v11631_v36 = vadd.f32 %v22569_v6, %v23838_v5  ;;  %v23839_v25 = vunpack.c.h.bf16 %v22131_v0  ;;  %v23845_v0 = vld [vmem:[#allocation90_spill] sm:$0xff]  ;;  %v22699_v49 = vpop.f32.mrf.mxu0 }
 0x6be   : > { %13319 = vst [vmem:[%s22065_s19 + $0x170] sm:$0xff] %v14878_v56  ;;  %v23840_v19 = vunpack.c.h.bf16 %v22139_v40  ;;  %v11744_v16 = vadd.f32 %v22571_v59, %v23841_v62  ;;  %v11633_v33 = vadd.f32 %v22576_v1, %v23842_v15  ;;  %v23843_v44 = vunpack.c.l.bf16 %v22153_v10  ;;  %v22697_v40 = vpop.f32.mrf.mxu1 }
 0x6bf   : > { %v12633_v38 = vadd.f32 %v12489_v51, %v23839_v25  ;;  %13320 = vst [vmem:[%s22065_s19 + $0x178] sm:$0xff] %v14879_v13  ;;  %v23844_v17 = vunpack.c.l.bf16 %v22156_v14  ;;  %v12130_v7 = vadd.f32 %v23735_v4, %v11631_v36  ;;  %v11746_v28 = vadd.f32 %v22578_v57, %v23845_v0  ;;  %v11917_v57 = vpop.f32.mrf.mxu0 }
 0x6c0   : > { %v12635_v39 = vadd.f32 %v12491_v63, %v23840_v19  ;;  %v12641_v6 = vadd.f32 %v12497_v27, %v23843_v44  ;;  %v12132_v1 = vadd.f32 %v23736_v3, %v11744_v16  ;;  %v12138_v37 = vadd.f32 %v23728_v29, %v11633_v33  ;;  %v22704_v63 = vpop.f32.mrf.mxu1  ;;  %v23851_v44 = vld [vmem:[#allocation114_spill] sm:$0xff] }
 0x6c1   : > { %v12643_v26 = vadd.f32 %v12499_v43, %v23844_v17  ;;  %v12777_v59 = vmax.f32 %v12633_v38, 0.0  ;;  %v12498_v56 = vmul.f32 0.17, %v12130_v7  ;;  %v12140_v51 = vadd.f32 %v23732_v23, %v11746_v28  ;;  %v23847_v38 = vld [vmem:[#allocation115_spill] sm:$0xff]  ;;  %v22714_v15 = vpop.f32.mrf.mxu0  ;;  %v23852_v17 = vld [vmem:[#allocation88_spill] sm:$0xff] }
 0x6c2   : > { %v12779_v52 = vmax.f32 %v12635_v39, 0.0  ;;  %v12785_v46 = vmax.f32 %v12641_v6, 0.0  ;;  %v12500_v43 = vmul.f32 0.17, %v12132_v1  ;;  %v12506_v5 = vmul.f32 0.17, %v12138_v37  ;;  %v22712_v16 = vpop.f32.mrf.mxu1 }
 0x6c3   : > { %v12787_v47 = vmax.f32 %v12643_v26, 0.0  ;;  %v14883_v13 = vpack.c.bf16 %v12777_v59, %v12776_v21  ;;  %v23846_v36 = vunpack.c.h.bf16 %v22153_v10  ;;  %v12508_v25 = vmul.f32 0.17, %v12140_v51  ;;  %v23848_v39 = vld [vmem:[#allocation55_spill] sm:$0xff] }
 0x6c4   : > { %v14884_v27 = vpack.c.bf16 %v12779_v52, %v12778_v22  ;;  %v11635_v19 = vadd.f32 %v22586_v18, %v23847_v38  ;;  %v11748_v62 = vadd.f32 %v22588_v20, %v23848_v39  ;;  %v23849_v21 = vunpack.c.h.bf16 %v22156_v14  ;;  %v22730_v59 = vpop.f32.mrf.mxu1  ;;  %v11920_v14 = vpop.f32.mrf.mxu0 }
 0x6c5   : > { %v12642_v60 = vadd.f32 %v12498_v56, %v23846_v36  ;;  %13324 = vst [vmem:[%s22065_s19 + $0x194] sm:$0xff] %v14883_v13  ;;  %v23850_v33 = vunpack.c.l.bf16 %v22174_v12  ;;  %v11639_v6 = vadd.f32 %v22604_v61, %v23851_v44  ;;  %v11752_v18 = vadd.f32 %v22606_v55, %v23852_v17 }
 0x6c6   : > { %13325 = vst [vmem:[%s22065_s19 + $0x19c] sm:$0xff] %v14884_v27  ;;  %v12644_v22 = vadd.f32 %v12500_v43, %v23849_v21  ;;  %v23853_v20 = vunpack.c.l.bf16 %v22177_v42  ;;  %v12139_v0 = vadd.f32 %v23735_v4, %v11635_v19  ;;  %v12141_v28 = vadd.f32 %v23736_v3, %v11748_v62  ;;  %v22734_v13 = vpop.f32.mrf.mxu1  ;;  %v22736_v27 = vpop.f32.mrf.mxu0  ;;  %v23857_v62 = vld [vmem:[#allocation33_spill] sm:$0xff] }
 0x6c7   : > { %v12650_v10 = vadd.f32 %v12506_v5, %v23850_v33  ;;  %v12786_v26 = vmax.f32 %v12642_v60, 0.0  ;;  %v12147_v37 = vadd.f32 %v23728_v29, %v11639_v6  ;;  %v12149_v61 = vadd.f32 %v23732_v23, %v11752_v18  ;;  %v23854_v60 = vld [vmem:[#allocation22_spill] sm:$0xff] }
 0x6c8   : > { %v12652_v7 = vadd.f32 %v12508_v25, %v23853_v20  ;;  %v12788_v52 = vmax.f32 %v12644_v22, 0.0  ;;  %v12507_v51 = vmul.f32 0.17, %v12139_v0  ;;  %v12509_v57 = vmul.f32 0.17, %v12141_v28  ;;  %v23858_v22 = vld [vmem:[#allocation39_spill] sm:$0xff] }
 0x6c9   : > { %v12794_v1 = vmax.f32 %v12650_v10, 0.0  ;;  %v14888_v56 = vpack.c.bf16 %v12786_v26, %v12785_v46  ;;  %v12515_v5 = vmul.f32 0.17, %v12147_v37  ;;  %v12517_v36 = vmul.f32 0.17, %v12149_v61  ;;  %v22749_v10 = vpop.f32.mrf.mxu1 }
 0x6ca   : > { %v12796_v55 = vmax.f32 %v12652_v7, 0.0  ;;  %v14889_v43 = vpack.c.bf16 %v12788_v52, %v12787_v47  ;;  %v11641_v25 = vadd.f32 %v22610_v9, %v23854_v60  ;;  %v23855_v38 = vunpack.c.h.bf16 %v22174_v12  ;;  %v11925_v47 = vpop.f32.mrf.mxu0  ;;  %v23863_v60 = vld [vmem:[#allocation34_spill] sm:$0xff] }
 0x6cb   : > { %13329 = vst [vmem:[%s22065_s19 + $0x1b8] sm:$0xff] %v14888_v56  ;;  %v23856_v46 = vunpack.c.h.bf16 %v22177_v42  ;;  %v11754_v21 = vadd.f32 %v22612_v8, %v23857_v62  ;;  %v11643_v33 = vadd.f32 %v22625_v50, %v23858_v22  ;;  %v23859_v44 = vunpack.c.l.bf16 %v22187_v58  ;;  %v23861_v42 = vld [vmem:[#allocation53_spill] sm:$0xff]  ;;  %v22761_v7 = vpop.f32.mrf.mxu1 }
 0x6cc   : > { %v12651_v19 = vadd.f32 %v12507_v51, %v23855_v38  ;;  %13330 = vst [vmem:[%s22065_s19 + $0x1c0] sm:$0xff] %v14889_v43  ;;  %v23860_v6 = vunpack.c.l.bf16 %v22190_v45  ;;  %v12148_v17 = vadd.f32 %v23735_v4, %v11641_v25  ;;  %v11756_v18 = vadd.f32 %v22627_v54, %v23861_v42  ;;  %v22763_v0 = vpop.f32.mrf.mxu0  ;;  %v23864_v38 = vld [vmem:[#allocation72_spill] sm:$0xff] }
 0x6cd   : > { %v12653_v39 = vadd.f32 %v12509_v57, %v23856_v46  ;;  %v12659_v9 = vadd.f32 %v12515_v5, %v23859_v44  ;;  %v12150_v20 = vadd.f32 %v23736_v3, %v11754_v21  ;;  %v12156_v50 = vadd.f32 %v23728_v29, %v11643_v33  ;;  %v22766_v57 = vpop.f32.mrf.mxu1 }
 0x6ce   : > { %v12661_v12 = vadd.f32 %v12517_v36, %v23860_v6  ;;  %v12795_v26 = vmax.f32 %v12651_v19, 0.0  ;;  %v12516_v52 = vmul.f32 0.17, %v12148_v17  ;;  %v12158_v37 = vadd.f32 %v23732_v23, %v11756_v18  ;;  %v11928_v43 = vpop.f32.mrf.mxu0  ;;  %v22777_v23 = vld [vmem:[%s23155_s11 + $0x8] ss:$0 sm:$0xff] }
 0x6cf   : > { %v12797_v8 = vmax.f32 %v12653_v39, 0.0  ;;  %v12803_v28 = vmax.f32 %v12659_v9, 0.0  ;;  %v12518_v54 = vmul.f32 0.17, %v12150_v20  ;;  %v12524_v51 = vmul.f32 0.17, %v12156_v50 }
 0x6d0   : > { %v12805_v14 = vmax.f32 %v12661_v12, 0.0  ;;  %v14893_v61 = vpack.c.bf16 %v12795_v26, %v12794_v1  ;;  %v23862_v29 = vunpack.c.h.bf16 %v22187_v58  ;;  %v12526_v36 = vmul.f32 0.17, %v12158_v37  ;;  %v23867_v39 = vld [vmem:[#allocation60_spill] sm:$0xff]  ;;  %v22791_v22 = vpop.f32.mrf.mxu0 }
 0x6d1   : > { %v14894_v56 = vpack.c.bf16 %v12797_v8, %v12796_v55  ;;  %v11645_v25 = vadd.f32 %v22639_v48, %v23863_v60  ;;  %v11758_v19 = vadd.f32 %v22641_v32, %v23864_v38  ;;  %v23865_v1 = vunpack.c.h.bf16 %v22190_v45  ;;  %v23868_v48 = vld [vmem:[#allocation69_spill] sm:$0xff]  ;;  %v22789_v32 = vpop.f32.mrf.mxu1  ;;  %v23875_v60 = vld [vmem:[#allocation138_spill] sm:$0xff]  ;;  %v23877_v38 = vld [vmem:[#allocation140_spill] sm:$0xff] }
 0x6d2   : > { %v12660_v5 = vadd.f32 %v12516_v52, %v23862_v29  ;;  %13334 = vst [vmem:[%s22065_s19 + $0x1dc] sm:$0xff] %v14893_v61  ;;  %v23866_v58 = vunpack.c.l.bf16 %v22208_v53  ;;  %v11795_v62 = vadd.f32 %v22644_v31, %v23867_v39  ;;  %v11908_v21 = vadd.f32 %v22646_v11, %v23868_v48  ;;  %v11933_v42 = vpop.f32.mrf.mxu0  ;;  %v23873_v29 = vld [vmem:[#allocation25_spill] sm:$0xff] }
 0x6d3   : > { %13335 = vst [vmem:[%s22065_s19 + $0x1e4] sm:$0xff] %v14894_v56  ;;  %v12662_v55 = vadd.f32 %v12518_v54, %v23865_v1  ;;  %v23869_v47 = vunpack.c.l.bf16 %v22211_v30  ;;  %v12157_v45 = vadd.f32 %v23735_v4, %v11645_v25  ;;  %v12159_v9 = vadd.f32 %v23736_v3, %v11758_v19  ;;  %v22799_v17 = vpop.f32.mrf.mxu1  ;;  %v23870_v3 = vld [vmem:[#allocation58_spill] sm:$0xff] }
 0x6d4   : > { %v12668_v46 = vadd.f32 %v12524_v51, %v23866_v58  ;;  %v12804_v33 = vmax.f32 %v12660_v5, 0.0  ;;  %v12025_v31 = vadd.f32 %v22259_v24, %v11795_v62  ;;  %v12027_v11 = vadd.f32 %v22777_v23, %v11908_v21  ;;  %v22805_v56 = vpop.f32.mrf.mxu0 }
 0x6d5   : > { %v12670_v44 = vadd.f32 %v12526_v36, %v23869_v47  ;;  %v12806_v6 = vmax.f32 %v12662_v55, 0.0  ;;  %v12525_v8 = vmul.f32 0.17, %v12157_v45  ;;  %v12527_v20 = vmul.f32 0.17, %v12159_v9  ;;  %v22803_v61 = vpop.f32.mrf.mxu1  ;;  %v23879_v55 = vld [vmem:[#allocation143_spill] sm:$0xff] }
 0x6d6   : > { %v12812_v12 = vmax.f32 %v12668_v46, 0.0  ;;  %v14898_v18 = vpack.c.bf16 %v12804_v33, %v12803_v28  ;;  %v12393_v4 = vmul.f32 0.17, %v12025_v31  ;;  %v12395_v52 = vmul.f32 0.17, %v12027_v11 }
 0x6d7   : > { %v12814_v26 = vmax.f32 %v12670_v44, 0.0  ;;  %v14899_v50 = vpack.c.bf16 %v12806_v6, %v12805_v14  ;;  %v11797_v37 = vadd.f32 %v22664_v34, %v23870_v3  ;;  %v23871_v54 = vunpack.c.h.bf16 %v22208_v53  ;;  %v23874_v14 = vld [vmem:[#allocation21_spill] sm:$0xff] }
 0x6d8   : > { %13339 = vst [vmem:[%s22065_s19 + $0x200] sm:$0xff] %v14898_v18  ;;  %v23872_v43 = vunpack.c.h.bf16 %v22211_v30  ;;  %v11799_v5 = vadd.f32 %v22672_v41, %v23873_v29  ;;  %v11911_v36 = vadd.f32 %v22674_v35, %v23874_v14  ;;  %v23876_v34 = vunpack.c.l.bf16 %v23875_v60  ;;  %v23880_v53 = vld [vmem:[#allocation81_spill] sm:$0xff]  ;;  %v11936_v30 = vpop.f32.mrf.mxu0  ;;  %v22826_v35 = vpop.f32.mrf.mxu1 }
 0x6d9   : > { %v12669_v51 = vadd.f32 %v12525_v8, %v23871_v54  ;;  %13340 = vst [vmem:[%s22065_s19 + $0x208] sm:$0xff] %v14899_v50  ;;  %v23878_v19 = vunpack.c.l.bf16 %v23877_v38  ;;  %v12026_v58 = vadd.f32 %v23879_v55, %v11797_v37  ;;  %v11801_v46 = vadd.f32 %v22678_v2, %v23880_v53 }
 0x6da   : > { %v12671_v28 = vadd.f32 %v12527_v20, %v23872_v43  ;;  %v12537_v25 = vadd.f32 %v12393_v4, %v23876_v34  ;;  %v12034_v41 = vadd.f32 %v22259_v24, %v11799_v5  ;;  %v12036_v48 = vadd.f32 %v22777_v23, %v11911_v36  ;;  %v22829_v45 = vpop.f32.mrf.mxu0  ;;  %v23882_v20 = vld [vmem:[#allocation80_spill] sm:$0xff]  ;;  %v22845_v29 = vpop.f32.mrf.mxu1 }
 0x6db   : > { %v12539_v1 = vadd.f32 %v12395_v52, %v23878_v19  ;;  %v12813_v39 = vmax.f32 %v12669_v51, 0.0  ;;  %v12394_v47 = vmul.f32 0.17, %v12026_v58  ;;  %v12035_v44 = vadd.f32 %v23879_v55, %v11801_v46  ;;  %v23883_v52 = vld [vmem:[#allocation141_spill] sm:$0xff]  ;;  %v23887_v43 = vld [vmem:[#allocation28_spill] sm:$0xff] }
 0x6dc   : > { %v12815_v62 = vmax.f32 %v12671_v28, 0.0  ;;  %v12681_v21 = vmax.f32 %v12537_v25, 0.0  ;;  %v12402_v6 = vmul.f32 0.17, %v12034_v41  ;;  %v12404_v31 = vmul.f32 0.17, %v12036_v48  ;;  %v11941_v4 = vpop.f32.mrf.mxu0 }
 0x6dd   : > { %v12683_v33 = vmax.f32 %v12539_v1, 0.0  ;;  %v14903_v9 = vpack.c.bf16 %v12813_v39, %v12812_v12  ;;  %v23881_v42 = vunpack.c.h.bf16 %v23875_v60  ;;  %v12403_v8 = vmul.f32 0.17, %v12035_v44  ;;  %v23889_v60 = vld [vmem:[#allocation46_spill] sm:$0xff]  ;;  %v23891_v44 = vld [vmem:[#allocation144_spill] sm:$0xff]  ;;  %v23897_v4 = vld [vmem:[#allocation19_spill] sm:$0xff] }
 0x6de   : > { %v14904_v2 = vpack.c.bf16 %v12815_v62, %v12814_v26  ;;  %v11805_v50 = vadd.f32 %v22697_v40, %v23882_v20  ;;  %v23884_v3 = vunpack.c.l.bf16 %v23883_v52  ;;  %v23885_v12 = vunpack.c.h.bf16 %v23877_v38  ;;  %v23886_v26 = vld [vmem:[#allocation129_spill] sm:$0xff]  ;;  %v22854_v25 = vpop.f32.mrf.mxu0  ;;  %v23890_v41 = vld [vmem:[#allocation130_spill] sm:$0xff] }
 0x6df   : > { %v14831_v11 = vpack.c.bf16 %v12683_v33, %v12683_v33  ;;  %v12538_v18 = vadd.f32 %v12394_v47, %v23881_v42  ;;  %13344 = vst [vmem:[%s22065_s19 + $0x224] sm:$0xff] %v14903_v9  ;;  %v11916_v51 = vadd.f32 %v22699_v49, %v23886_v26  ;;  %v11807_v28 = vadd.f32 %v22704_v63, %v23887_v43  ;;  %v22861_v33 = vpop.f32.mrf.mxu1  ;;  %v23894_v42 = vld [vmem:[#allocation145_spill] sm:$0xff]  ;;  %v23900_v26 = vld [vmem:[#allocation131_spill] sm:$0xff] }
 0x6e0   : > { %13345 = vst [vmem:[%s22065_s19 + $0x22c] sm:$0xff] %v14904_v2  ;;  %v12546_v37 = vadd.f32 %v12402_v6, %v23884_v3  ;;  %v12548_v54 = vadd.f32 %v12404_v31, %v23885_v12  ;;  %v23888_v5 = vunpack.c.h.bf16 %v23883_v52  ;;  %v12043_v36 = vadd.f32 %v22259_v24, %v11805_v50  ;;  %v11944_v30 = vpop.f32.mrf.mxu0  ;;  %v23893_v6 = vld [vmem:[#allocation79_spill] sm:$0xff] }
 0x6e1   : > { %13272 = vst.msk [vmem:[%s22065_s19 + $0x20] sm:$0xf] %vm13271_vm0, %v14831_v11  ;;  %v12682_v40 = vmax.f32 %v12538_v18, 0.0  ;;  %v11809_v34 = vadd.f32 %v22712_v16, %v23889_v60  ;;  %v12045_v63 = vadd.f32 %v22777_v23, %v11916_v51  ;;  %v12044_v19 = vadd.f32 %v23879_v55, %v11807_v28 }
 0x6e2   : > { %v12547_v14 = vadd.f32 %v12403_v8, %v23888_v5  ;;  %v12690_v49 = vmax.f32 %v12546_v37, 0.0  ;;  %v12692_v38 = vmax.f32 %v12548_v54, 0.0  ;;  %v12411_v53 = vmul.f32 0.17, %v12043_v36  ;;  %v22868_v11 = vpop.f32.mrf.mxu0  ;;  %v23898_v37 = vld [vmem:[#allocation147_spill] sm:$0xff]  ;;  %v22886_v36 = vpop.f32.mrf.mxu1 }
 0x6e3   : > { %v14830_v1 = vpack.c.bf16 %v12682_v40, %v12681_v21  ;;  %v12052_v46 = vadd.f32 %v22259_v24, %v11809_v34  ;;  %v12413_v62 = vmul.f32 0.17, %v12045_v63  ;;  %v12412_v16 = vmul.f32 0.17, %v12044_v19 }
 0x6e4   : > { %v12691_v58 = vmax.f32 %v12547_v14, 0.0  ;;  %v14836_v39 = vpack.c.bf16 %v12692_v38, %v12692_v38  ;;  %v11919_v48 = vadd.f32 %v22714_v15, %v23890_v41  ;;  %v23892_v9 = vunpack.c.l.bf16 %v23891_v44  ;;  %v11949_v43 = vpop.f32.mrf.mxu0 }
 0x6e5   : > { %13270 = vst [vmem:[%s22065_s19 + $0x18] sm:$0xff] %v14830_v1  ;;  %v12420_v2 = vmul.f32 0.17, %v12052_v46  ;;  %v11811_v31 = vadd.f32 %v22730_v59, %v23893_v6  ;;  %v23895_v18 = vunpack.c.l.bf16 %v23894_v42  ;;  %v23896_v15 = vunpack.c.h.bf16 %v23891_v44  ;;  %v23908_v6 = vld [vmem:[#allocation63_spill] sm:$0xff] }
 0x6e6   : > { %v14835_v47 = vpack.c.bf16 %v12691_v58, %v12690_v49  ;;  %v12555_v21 = vadd.f32 %v12411_v53, %v23892_v9  ;;  %13277 = vst.msk [vmem:[%s22065_s19 + $0x44] sm:$0xf] %vm13271_vm0, %v14836_v39  ;;  %v12054_v50 = vadd.f32 %v22777_v23, %v11919_v48  ;;  %v11815_v52 = vadd.f32 %v22734_v13, %v23897_v4  ;;  %v23901_v49 = vld [vmem:[#allocation43_spill] sm:$0xff]  ;;  %v22891_v63 = vpop.f32.mrf.mxu0 }
 0x6e7   : > { %v12557_v8 = vadd.f32 %v12413_v62, %v23895_v18  ;;  %v12556_v20 = vadd.f32 %v12412_v16, %v23896_v15  ;;  %v23899_v12 = vunpack.c.l.bf16 %v23898_v37  ;;  %v12053_v54 = vadd.f32 %v23879_v55, %v11811_v31  ;;  %v23904_v16 = vld [vmem:[#allocation65_spill] sm:$0xff] }
 0x6e8   : > { %13276 = vst [vmem:[%s22065_s19 + $0x3c] sm:$0xff] %v14835_v47  ;;  %v12699_v3 = vmax.f32 %v12555_v21, 0.0  ;;  %v11924_v51 = vadd.f32 %v22736_v27, %v23900_v26  ;;  %v12422_v5 = vmul.f32 0.17, %v12054_v50  ;;  %v12061_v14 = vadd.f32 %v22259_v24, %v11815_v52  ;;  %v11952_v48 = vpop.f32.mrf.mxu0  ;;  %v23905_v47 = vld [vmem:[#allocation148_spill] sm:$0xff] }
 0x6e9   : > { %v12564_v59 = vadd.f32 %v12420_v2, %v23899_v12  ;;  %v12701_v28 = vmax.f32 %v12557_v8, 0.0  ;;  %v12700_v40 = vmax.f32 %v12556_v20, 0.0  ;;  %v12421_v60 = vmul.f32 0.17, %v12053_v54  ;;  %v23907_v21 = vld [vmem:[#allocation132_spill] sm:$0xff]  ;;  %v23909_v8 = vld [vmem:[#allocation149_spill] sm:$0xff] }
 0x6ea   : > { %v12063_v34 = vadd.f32 %v22777_v23, %v11924_v51  ;;  %v11817_v38 = vadd.f32 %v22749_v10, %v23901_v49  ;;  %v23902_v1 = vunpack.c.h.bf16 %v23894_v42  ;;  %v12429_v53 = vmul.f32 0.17, %v12061_v14  ;;  %v22909_v42 = vpop.f32.mrf.mxu1  ;;  %v22914_v4 = vpop.f32.mrf.mxu0  ;;  %v23913_v14 = vld [vmem:[#allocation133_spill] sm:$0xff]  ;;  %v23919_v48 = vld [vmem:[#allocation100_spill] sm:$0xff] }
 0x6eb   : > { %v12708_v13 = vmax.f32 %v12564_v59, 0.0  ;;  %v14841_v27 = vpack.c.bf16 %v12701_v28, %v12701_v28  ;;  %v14840_v19 = vpack.c.bf16 %v12700_v40, %v12699_v3  ;;  %v23903_v46 = vunpack.c.h.bf16 %v23898_v37  ;;  %v23912_v40 = vld [vmem:[#allocation12_spill] sm:$0xff] }
 0x6ec   : > { %v12566_v58 = vadd.f32 %v12422_v5, %v23902_v1  ;;  %v12431_v39 = vmul.f32 0.17, %v12063_v34  ;;  %v12062_v62 = vadd.f32 %v23879_v55, %v11817_v38  ;;  %v11819_v41 = vadd.f32 %v22761_v7, %v23904_v16  ;;  %v11957_v51 = vpop.f32.mrf.mxu0  ;;  %v22926_v34 = vpop.f32.mrf.mxu1  ;;  %v23914_v38 = vld [vmem:[#allocation151_spill] sm:$0xff] }
 0x6ed   : > { %v12565_v30 = vadd.f32 %v12421_v60, %v23903_v46  ;;  %13282 = vst.msk [vmem:[%s22065_s19 + $0x68] sm:$0xf] %vm13271_vm0, %v14841_v27  ;;  %13281 = vst [vmem:[%s22065_s19 + $0x60] sm:$0xff] %v14840_v19  ;;  %v23906_v44 = vunpack.c.l.bf16 %v23905_v47  ;;  %v11927_v2 = vadd.f32 %v22763_v0, %v23907_v21  ;;  %v11821_v31 = vadd.f32 %v22766_v57, %v23908_v6  ;;  %v23916_v1 = vld [vmem:[#allocation87_spill] sm:$0xff] }
 0x6ee   : > { %v12710_v10 = vmax.f32 %v12566_v58, 0.0  ;;  %v23910_v7 = vunpack.c.l.bf16 %v23909_v8  ;;  %v12430_v20 = vmul.f32 0.17, %v12062_v62  ;;  %v12070_v50 = vadd.f32 %v22259_v24, %v11819_v41  ;;  %v22946_v6 = vpop.f32.mrf.mxu1 }
 0x6ef   : > { %v12573_v9 = vadd.f32 %v12429_v53, %v23906_v44  ;;  %v12709_v18 = vmax.f32 %v12565_v30, 0.0  ;;  %v12072_v0 = vadd.f32 %v22777_v23, %v11927_v2  ;;  %v12071_v37 = vadd.f32 %v23879_v55, %v11821_v31  ;;  %v22933_v53 = vpop.f32.mrf.mxu0 }
 0x6f0   : > { %v12575_v15 = vadd.f32 %v12431_v39, %v23910_v7  ;;  %v14846_v52 = vpack.c.bf16 %v12710_v10, %v12710_v10  ;;  %v23911_v59 = vunpack.c.h.bf16 %v23905_v47  ;;  %v12438_v26 = vmul.f32 0.17, %v12070_v50 }
 0x6f1   : > { %v12717_v3 = vmax.f32 %v12573_v9, 0.0  ;;  %v14845_v57 = vpack.c.bf16 %v12709_v18, %v12708_v13  ;;  %v12440_v43 = vmul.f32 0.17, %v12072_v0  ;;  %v12439_v28 = vmul.f32 0.17, %v12071_v37  ;;  %v11960_v47 = vpop.f32.mrf.mxu0  ;;  %v23922_v0 = vld [vmem:[#allocation128_spill] sm:$0xff] }
 0x6f2   : > { %v12719_v12 = vmax.f32 %v12575_v15, 0.0  ;;  %v12574_v54 = vadd.f32 %v12430_v20, %v23911_v59  ;;  %13287 = vst.msk [vmem:[%s22065_s19 + $0x8c] sm:$0xf] %vm13271_vm0, %v14846_v52  ;;  %v11825_v5 = vadd.f32 %v22789_v32, %v23912_v40  ;;  %v11932_v60 = vadd.f32 %v22791_v22, %v23913_v14  ;;  %v23921_v15 = vld [vmem:[#allocation32_spill] sm:$0xff]  ;;  %v22955_v20 = vld [vmem:[%s16835_s30 + $0x138] sm:$0xff] }
 0x6f3   : > { %13286 = vst [vmem:[%s22065_s19 + $0x84] sm:$0xff] %v14845_v57  ;;  %v23915_v27 = vunpack.c.l.bf16 %v23914_v38  ;;  %v11827_v58 = vadd.f32 %v22799_v17, %v23916_v1  ;;  %v23917_v46 = vunpack.c.h.bf16 %v23909_v8  ;;  %v23918_v30 = vunpack.c.h.bf16 %v23914_v38  ;;  %v23920_v8 = vld [vmem:[#allocation134_spill] sm:$0xff]  ;;  %v22957_v50 = vpop.f32.mrf.mxu0  ;;  %v22976_v38 = vpop.f32.mrf.mxu1 }
 0x6f4   : > { %v14851_v13 = vpack.c.bf16 %v12719_v12, %v12719_v12  ;;  %v12718_v49 = vmax.f32 %v12574_v54, 0.0  ;;  %v12079_v39 = vadd.f32 %v22259_v24, %v11825_v5  ;;  %v12081_v62 = vadd.f32 %v22777_v23, %v11932_v60  ;;  %v23924_v12 = vld [vmem:[#allocation84_spill] sm:$0xff] }
 0x6f5   : > { %v12582_v19 = vadd.f32 %v12438_v26, %v23915_v27  ;;  %v12584_v32 = vadd.f32 %v12440_v43, %v23917_v46  ;;  %v12583_v22 = vadd.f32 %v12439_v28, %v23918_v30  ;;  %v12080_v17 = vadd.f32 %v23879_v55, %v11827_v58  ;;  %v22968_v28 = vld [vmem:[%s16835_s30 + $0x140] ss:$36 sps:$4 sm:$0xff]   ;;  %v11965_v40 = vpop.f32.mrf.mxu0 }
 0x6f6   : > { %13292 = vst.msk [vmem:[%s22065_s19 + $0xb0] sm:$0xf] %vm13271_vm0, %v14851_v13  ;;  %v14850_v16 = vpack.c.bf16 %v12718_v49, %v12717_v3  ;;  %v11829_v10 = vadd.f32 %v22803_v61, %v23919_v48  ;;  %v12447_v21 = vmul.f32 0.17, %v12079_v39  ;;  %v12449_v2 = vmul.f32 0.17, %v12081_v62 }
 0x6f7   : > { %v12726_v41 = vmax.f32 %v12582_v19, 0.0  ;;  %v12728_v44 = vmax.f32 %v12584_v32, 0.0  ;;  %v12727_v9 = vmax.f32 %v12583_v22, 0.0  ;;  %v12448_v31 = vmul.f32 0.17, %v12080_v17  ;;  %v23927_v60 = vld [vmem:[#allocation52_spill] sm:$0xff]  ;;  %v22980_v30 = vpop.f32.mrf.mxu0 }
 0x6f8   : > { %13291 = vst [vmem:[%s22065_s19 + $0xa8] sm:$0xff] %v14850_v16  ;;  %v12088_v18 = vadd.f32 %v22259_v24, %v11829_v10  ;;  %v11935_v7 = vadd.f32 %v22805_v56, %v23920_v8  ;;  %v11831_v61 = vadd.f32 %v22826_v35, %v23921_v15  ;;  %v23923_v37 = vunpack.c.l.bf16 %v23922_v0  ;;  %v23928_v19 = vld [vmem:[#allocation17_spill] sm:$0xff]  ;;  %v23930_v62 = vld [vmem:[#allocation135_spill] sm:$0xff] }
 0x6f9   : > { %v14856_v52 = vpack.c.bf16 %v12728_v44, %v12728_v44  ;;  %v14855_v3 = vpack.c.bf16 %v12727_v9, %v12726_v41  ;;  %v23925_v59 = vunpack.c.l.bf16 %v23924_v12  ;;  %v23926_v26 = vunpack.c.h.bf16 %v23922_v0  ;;  %v12211_v41 = vld [vmem:[%s16835_s30 + $0x15c] sm:$0xff] }
 0x6fa   : > { %v12591_v57 = vadd.f32 %v12447_v21, %v23923_v37  ;;  %v12456_v43 = vmul.f32 0.17, %v12088_v18  ;;  %v12090_v56 = vadd.f32 %v22777_v23, %v11935_v7  ;;  %v12089_v35 = vadd.f32 %v23879_v55, %v11831_v61  ;;  %v11968_v21 = vpop.f32.mrf.mxu0  ;;  %v23933_v18 = vld [vmem:[#allocation85_spill] sm:$0xff]  ;;  %v22997_v7 = vpop.f32.mrf.mxu1 }
 0x6fb   : > { %v12593_v54 = vadd.f32 %v12449_v2, %v23925_v59  ;;  %v12592_v51 = vadd.f32 %v12448_v31, %v23926_v26  ;;  %13297 = vst.msk [vmem:[%s22065_s19 + $0xd4] sm:$0xf] %vm13271_vm0, %v14856_v52  ;;  %13296 = vst [vmem:[%s22065_s19 + $0xcc] sm:$0xff] %v14855_v3  ;;  %v11835_v13 = vadd.f32 %v22845_v29, %v23927_v60  ;;  %v12321_v49 = vunpack.c.l.bf16 %v22955_v20  ;;  %v23934_v52 = vld [vmem:[#allocation29_spill] sm:$0xff]  ;;  %v23935_v59 = vld [vmem:[#allocation136_spill] sm:$0xff] }
 0x6fc   : > { %v12735_v5 = vmax.f32 %v12591_v57, 0.0  ;;  %v23929_v1 = vunpack.c.l.bf16 %v23928_v19  ;;  %v12458_v46 = vmul.f32 0.17, %v12090_v56  ;;  %v12457_v32 = vmul.f32 0.17, %v12089_v35  ;;  %v23936_v60 = vld [vmem:[#allocation48_spill] sm:$0xff] }
 0x6fd   : > { %v12737_v14 = vmax.f32 %v12593_v54, 0.0  ;;  %v12736_v27 = vmax.f32 %v12592_v51, 0.0  ;;  %v12097_v39 = vadd.f32 %v22259_v24, %v11835_v13  ;;  %v11940_v29 = vadd.f32 %v22829_v45, %v23930_v62  ;;  %v23938_v62 = vld [vmem:[#allocation137_spill] sm:$0xff] }
 0x6fe   : > { %v12600_v58 = vadd.f32 %v12456_v43, %v23929_v1  ;;  %v12323_v16 = vunpack.c.l.bf16 %v22968_v28  ;;  %v23931_v10 = vunpack.c.h.bf16 %v23924_v12  ;;  %v23932_v44 = vunpack.c.h.bf16 %v23928_v19  ;;  %v12216_v43 = vld [vmem:[%s16835_s30 + $0x180] sm:$0xff]  ;;  %v12217_v19 = vld [vmem:[%s16835_s30 + $0x188] ss:$36 sps:$4 sm:$0xff]  }
 0x6ff   : > { %v14861_v22 = vpack.c.bf16 %v12737_v14, %v12737_v14  ;;  %v14860_v17 = vpack.c.bf16 %v12736_v27, %v12735_v5  ;;  %v12465_v2 = vmul.f32 0.17, %v12097_v39  ;;  %v12099_v31 = vadd.f32 %v22777_v23, %v11940_v29  ;;  %v11854_v5 = vpop.f32.mrf.mxu1 }
 0x700   : > { %v12744_v48 = vmax.f32 %v12600_v58, 0.0  ;;  %v12602_v47 = vadd.f32 %v12458_v46, %v23931_v10  ;;  %v12601_v9 = vadd.f32 %v12457_v32, %v23932_v44  ;;  %v11837_v45 = vadd.f32 %v22861_v33, %v23933_v18 }
 0x701   : > { %13302 = vst.msk [vmem:[%s22065_s19 + $0xf8] sm:$0xf] %vm13271_vm0, %v14861_v22  ;;  %v12322_v8 = vunpack.c.h.bf16 %v22955_v20  ;;  %13301 = vst [vmem:[%s22065_s19 + $0xf0] sm:$0xff] %v14860_v17  ;;  %v11839_v3 = vadd.f32 %v22886_v36, %v23934_v52  ;;  %v12330_v0 = vunpack.c.l.bf16 %v12211_v41  ;;  %v12609_v37 = vadd.f32 %v12465_v2, %v12321_v49  ;;  %v23937_v49 = vld [vmem:[#allocation68_spill] sm:$0xff] }
 0x702   : > { %v12746_v15 = vmax.f32 %v12602_v47, 0.0  ;;  %v12745_v61 = vmax.f32 %v12601_v9, 0.0  ;;  %v12467_v57 = vmul.f32 0.17, %v12099_v31  ;;  %v12098_v12 = vadd.f32 %v23879_v55, %v11837_v45  ;;  %v12221_v9 = vld [vmem:[%s16835_s30 + $0x1a4] sm:$0xff]  ;;  %v23939_v31 = vld [vmem:[#allocation66_spill] sm:$0xff] }
 0x703   : > { %v11943_v33 = vadd.f32 %v22854_v25, %v23935_v59  ;;  %v12106_v26 = vadd.f32 %v22259_v24, %v11839_v3  ;;  %v12332_v51 = vunpack.c.h.bf16 %v22968_v28  ;;  %v12753_v56 = vmax.f32 %v12609_v37, 0.0 }
 0x704   : > { %v14866_v54 = vpack.c.bf16 %v12746_v15, %v12746_v15  ;;  %v14865_v20 = vpack.c.bf16 %v12745_v61, %v12744_v48  ;;  %v12611_v36 = vadd.f32 %v12467_v57, %v12323_v16  ;;  %v12466_v35 = vmul.f32 0.17, %v12098_v12  ;;  %v23940_v61 = vld [vmem:[#allocation94_spill] sm:$0xff]  ;;  %v23941_v57 = vld [vmem:[#allocation139_spill] sm:$0xff] }
 0x705   : > { %v12108_v40 = vadd.f32 %v22777_v23, %v11943_v33  ;;  %v12474_v14 = vmul.f32 0.17, %v12106_v26  ;;  %v11841_v25 = vadd.f32 %v22909_v42, %v23936_v60  ;;  %v12331_v13 = vunpack.c.h.bf16 %v12211_v41 }
 0x706   : > { %13307 = vst.msk [vmem:[%s22065_s19 + $0x11c] sm:$0xf] %vm13271_vm0, %v14866_v54  ;;  %13306 = vst [vmem:[%s22065_s19 + $0x114] sm:$0xff] %v14865_v20  ;;  %v11845_v27 = vadd.f32 %v22926_v34, %v23937_v49  ;;  %v12755_v28 = vmax.f32 %v12611_v36, 0.0  ;;  %v12610_v1 = vadd.f32 %v12466_v35, %v12322_v8  ;;  %v12339_v46 = vunpack.c.l.bf16 %v12216_v43  ;;  %v11856_v34 = vpop.f32.mrf.mxu1  ;;  %v12226_v36 = vld [vmem:[%s16835_s30 + $0x1c8] sm:$0xff]  ;;  %v23943_v49 = vld [vmem:[#allocation91_spill] sm:$0xff] }
 0x707   : > { %v12476_v58 = vmul.f32 0.17, %v12108_v40  ;;  %v12618_v32 = vadd.f32 %v12474_v14, %v12330_v0  ;;  %v12107_v22 = vadd.f32 %v23879_v55, %v11841_v25  ;;  %v11948_v29 = vadd.f32 %v22868_v11, %v23938_v62 }
 0x708   : > { %v12115_v39 = vadd.f32 %v22259_v24, %v11845_v27  ;;  %v14871_v42 = vpack.c.bf16 %v12755_v28, %v12755_v28  ;;  %v12754_v16 = vmax.f32 %v12610_v1, 0.0  ;;  %v12341_v17 = vunpack.c.l.bf16 %v12217_v19  ;;  %v11858_v59 = vpop.f32.mrf.mxu1  ;;  %v12227_v28 = vld [vmem:[%s16835_s30 + $0x1d0] ss:$36 sps:$4 sm:$0xff]  }
 0x709   : > { %v12620_v41 = vadd.f32 %v12476_v58, %v12332_v51  ;;  %v12762_v48 = vmax.f32 %v12618_v32, 0.0  ;;  %v12475_v10 = vmul.f32 0.17, %v12107_v22  ;;  %v12117_v44 = vadd.f32 %v22777_v23, %v11948_v29  ;;  %v23944_v32 = vld [vmem:[#allocation142_spill] sm:$0xff] }
 0x70a   : > { %v12483_v47 = vmul.f32 0.17, %v12115_v39  ;;  %13312 = vst.msk [vmem:[%s22065_s19 + $0x140] sm:$0xf] %vm13271_vm0, %v14871_v42  ;;  %v14870_v21 = vpack.c.bf16 %v12754_v16, %v12753_v56  ;;  %v11847_v18 = vadd.f32 %v22946_v6, %v23939_v31  ;;  %v12340_v11 = vunpack.c.h.bf16 %v12216_v43  ;;  %v23942_v43 = vld [vmem:[#allocation36_spill] sm:$0xff]  ;;  %v11860_v1 = vpop.f32.mrf.mxu1  ;;  %v23945_v16 = vld [vmem:[#allocation13_spill] sm:$0xff] }
 0x70b   : > { %v12764_v2 = vmax.f32 %v12620_v41, 0.0  ;;  %v12619_v45 = vadd.f32 %v12475_v10, %v12331_v13  ;;  %v12485_v15 = vmul.f32 0.17, %v12117_v44  ;;  %v11849_v52 = vadd.f32 %v22976_v38, %v23940_v61 }
 0x70c   : > { %v12627_v8 = vadd.f32 %v12483_v47, %v12339_v46  ;;  %13311 = vst [vmem:[%s22065_s19 + $0x138] sm:$0xff] %v14870_v21  ;;  %v12116_v0 = vadd.f32 %v23879_v55, %v11847_v18  ;;  %v12348_v37 = vunpack.c.l.bf16 %v12221_v9  ;;  %v11951_v12 = vadd.f32 %v22891_v63, %v23941_v57  ;;  %v12231_v18 = vld [vmem:[%s16835_s30 + $0x1ec] sm:$0xff] }
 0x70d   : > { %v14876_v3 = vpack.c.bf16 %v12764_v2, %v12764_v2  ;;  %v12763_v33 = vmax.f32 %v12619_v45, 0.0  ;;  %v12629_v54 = vadd.f32 %v12485_v15, %v12341_v17  ;;  %v12124_v20 = vadd.f32 %v22259_v24, %v11849_v52  ;;  %v23946_v2 = vld [vmem:[#allocation99_spill] sm:$0xff] }
 0x70e   : > { %v12771_v6 = vmax.f32 %v12627_v8, 0.0  ;;  %v12484_v38 = vmul.f32 0.17, %v12116_v0  ;;  %v12126_v26 = vadd.f32 %v22777_v23, %v11951_v12  ;;  %v12350_v51 = vunpack.c.h.bf16 %v12217_v19 }
 0x70f   : > { %13317 = vst.msk [vmem:[%s22065_s19 + $0x164] sm:$0xf] %vm13271_vm0, %v14876_v3  ;;  %v11851_v56 = vadd.f32 %v22997_v7, %v23942_v43  ;;  %v14875_v35 = vpack.c.bf16 %v12763_v33, %v12762_v48  ;;  %v12773_v63 = vmax.f32 %v12629_v54, 0.0  ;;  %v12492_v40 = vmul.f32 0.17, %v12124_v20  ;;  %v23947_v3 = vld [vmem:[#allocation146_spill] sm:$0xff] }
 0x710   : > { %v12349_v14 = vunpack.c.h.bf16 %v12221_v9  ;;  %v12628_v60 = vadd.f32 %v12484_v38, %v12340_v11  ;;  %v12494_v25 = vmul.f32 0.17, %v12126_v26  ;;  %v11855_v27 = vadd.f32 %v11854_v5, %v23943_v49 }
 0x711   : > { %v12125_v13 = vadd.f32 %v23879_v55, %v11851_v56  ;;  %13316 = vst [vmem:[%s22065_s19 + $0x15c] sm:$0xff] %v14875_v35  ;;  %v14881_v58 = vpack.c.bf16 %v12773_v63, %v12773_v63  ;;  %v12636_v19 = vadd.f32 %v12492_v40, %v12348_v37  ;;  %v12357_v46 = vunpack.c.l.bf16 %v12226_v36 }
 0x712   : > { %v11956_v7 = vadd.f32 %v22914_v4, %v23944_v32  ;;  %v12772_v22 = vmax.f32 %v12628_v60, 0.0  ;;  %v12638_v39 = vadd.f32 %v12494_v25, %v12350_v51  ;;  %v12133_v29 = vadd.f32 %v22259_v24, %v11855_v27  ;;  %v11864_v4 = vpop.f32.mrf.mxu1  ;;  %v12237_v60 = vld [vmem:[%s16835_s30 + $0x218] ss:$36 sps:$4 sm:$0xff]   ;;  %v23950_v27 = vld [vmem:[#allocation150_spill] sm:$0xff] }
 0x713   : > { %v12493_v62 = vmul.f32 0.17, %v12125_v13  ;;  %13322 = vst.msk [vmem:[%s22065_s19 + $0x188] sm:$0xf] %vm13271_vm0, %v14881_v58  ;;  %v12359_v42 = vunpack.c.l.bf16 %v12227_v28  ;;  %v11857_v41 = vadd.f32 %v11856_v34, %v23945_v16  ;;  %v12358_v21 = vunpack.c.h.bf16 %v12226_v36  ;;  %v12236_v36 = vld [vmem:[%s16835_s30 + $0x210] sm:$0xff]  ;;  %v23951_v32 = vld [vmem:[#allocation35_spill] sm:$0xff] }
 0x714   : > { %v12135_v5 = vadd.f32 %v22777_v23, %v11956_v7  ;;  %v14880_v17 = vpack.c.bf16 %v12772_v22, %v12771_v6  ;;  %v12782_v48 = vmax.f32 %v12638_v39, 0.0  ;;  %v12501_v47 = vmul.f32 0.17, %v12133_v29  ;;  %v11866_v6 = vpop.f32.mrf.mxu1 }
 0x715   : > { %v12637_v10 = vadd.f32 %v12493_v62, %v12349_v14  ;;  %v12134_v9 = vadd.f32 %v23879_v55, %v11857_v41  ;;  %v11859_v31 = vadd.f32 %v11858_v59, %v23946_v2  ;;  %v12780_v11 = vmax.f32 %v12636_v19, 0.0  ;;  %v23948_v59 = vld [vmem:[#allocation56_spill] sm:$0xff] }
 0x716   : > { %v12503_v44 = vmul.f32 0.17, %v12135_v5  ;;  %13321 = vst [vmem:[%s22065_s19 + $0x180] sm:$0xff] %v14880_v17  ;;  %v14886_v45 = vpack.c.bf16 %v12782_v48, %v12782_v48  ;;  %v12645_v15 = vadd.f32 %v12501_v47, %v12357_v46  ;;  %v11959_v0 = vadd.f32 %v22933_v53, %v23947_v3  ;;  %v23949_v53 = vld [vmem:[#allocation89_spill] sm:$0xff]  ;;  %v12241_v47 = vld [vmem:[%s16835_s30 + $0x234] sm:$0xff]  ;;  %s15209_s30 = smul.u32 9216, %s16651_s25 }
 0x717   : > { %v12781_v8 = vmax.f32 %v12637_v10, 0.0  ;;  %v12502_v61 = vmul.f32 0.17, %v12134_v9  ;;  %v12142_v52 = vadd.f32 %v22259_v24, %v11859_v31  ;;  %v12366_v57 = vunpack.c.l.bf16 %v12231_v18  ;;  %v23954_v3 = vld [vmem:[#allocation74_spill] sm:$0xff]  ;;  %s23104_s25 = scalar_lea.sflag [#allocation6], %s422_s23 }
 0x718   : > { %v12647_v34 = vadd.f32 %v12503_v44, %v12359_v42  ;;  %13327 = vst.msk [vmem:[%s22065_s19 + $0x1ac] sm:$0xf] %vm13271_vm0, %v14886_v45  ;;  %v12368_v12 = vunpack.c.h.bf16 %v12227_v28  ;;  %v11861_v33 = vadd.f32 %v11860_v1, %v23948_v59  ;;  %v12144_v26 = vadd.f32 %v22777_v23, %v11959_v0  ;;  %v11868_v1 = vpop.f32.mrf.mxu1  ;;  %s23097_s16 = scalar_lea.hbm %s23156_s12, %s15209_s30 }
 0x719   : > { %v14885_v37 = vpack.c.bf16 %v12781_v8, %v12780_v11  ;;  %v12646_v20 = vadd.f32 %v12502_v61, %v12358_v21  ;;  %v12510_v38 = vmul.f32 0.17, %v12142_v52  ;;  %v12367_v43 = vunpack.c.h.bf16 %v12231_v18 }
 0x71a   : > { %v12791_v54 = vmax.f32 %v12647_v34, 0.0  ;;  %v12143_v51 = vadd.f32 %v23879_v55, %v11861_v33  ;;  %v11865_v56 = vadd.f32 %v11864_v4, %v23949_v53  ;;  %v12789_v35 = vmax.f32 %v12645_v15, 0.0  ;;  %v23953_v4 = vld [vmem:[#allocation152_spill] sm:$0xff]  ;;  %v11870_v9 = vpop.f32.mrf.mxu1 }
 0x71b   : > { %13326 = vst [vmem:[%s22065_s19 + $0x1a4] sm:$0xff] %v14885_v37  ;;  %v12790_v40 = vmax.f32 %v12646_v20, 0.0  ;;  %v12512_v14 = vmul.f32 0.17, %v12144_v26  ;;  %v12654_v25 = vadd.f32 %v12510_v38, %v12366_v57  ;;  %v11964_v28 = vadd.f32 %v22957_v50, %v23950_v27  ;;  %v23952_v50 = vld [vmem:[#allocation54_spill] sm:$0xff] }
 0x71c   : > { %v14891_v63 = vpack.c.bf16 %v12791_v54, %v12791_v54  ;;  %v12511_v13 = vmul.f32 0.17, %v12143_v51  ;;  %v12151_v49 = vadd.f32 %v22259_v24, %v11865_v56  ;;  %v12375_v46 = vunpack.c.l.bf16 %v12236_v36 }
 0x71d   : > { %v14890_v58 = vpack.c.bf16 %v12790_v40, %v12789_v35  ;;  %v12656_v19 = vadd.f32 %v12512_v14, %v12368_v12  ;;  %v11867_v7 = vadd.f32 %v11866_v6, %v23951_v32  ;;  %v12153_v62 = vadd.f32 %v22777_v23, %v11964_v28 }
 0x71e   : > { %13332 = vst.msk [vmem:[%s22065_s19 + $0x1d0] sm:$0xf] %vm13271_vm0, %v14891_v63  ;;  %v12655_v22 = vadd.f32 %v12511_v13, %v12367_v43  ;;  %v12519_v39 = vmul.f32 0.17, %v12151_v49  ;;  %v12377_v29 = vunpack.c.l.bf16 %v12237_v60  ;;  %v12376_v16 = vunpack.c.h.bf16 %v12236_v36 }
 0x71f   : > { %13331 = vst [vmem:[%s22065_s19 + $0x1c8] sm:$0xff] %v14890_v58  ;;  %v12800_v5 = vmax.f32 %v12656_v19, 0.0  ;;  %v12152_v42 = vadd.f32 %v23879_v55, %v11867_v7  ;;  %v11869_v41 = vadd.f32 %v11868_v1, %v23952_v50  ;;  %v12798_v17 = vmax.f32 %v12654_v25, 0.0 }
 0x720   : > { %v12799_v48 = vmax.f32 %v12655_v22, 0.0  ;;  %v12521_v10 = vmul.f32 0.17, %v12153_v62  ;;  %v11967_v44 = vadd.f32 %v22980_v30, %v23953_v4  ;;  %v12663_v2 = vadd.f32 %v12519_v39, %v12375_v46 }
 0x721   : > { %v14896_v21 = vpack.c.bf16 %v12800_v5, %v12800_v5  ;;  %v12520_v31 = vmul.f32 0.17, %v12152_v42  ;;  %v12160_v18 = vadd.f32 %v22259_v24, %v11869_v41  ;;  %v12386_v15 = vunpack.c.h.bf16 %v12237_v60 }
 0x722   : > { %v14895_v11 = vpack.c.bf16 %v12799_v48, %v12798_v17  ;;  %v12665_v45 = vadd.f32 %v12521_v10, %v12377_v29  ;;  %v12162_v8 = vadd.f32 %v22777_v23, %v11967_v44  ;;  %v12384_v61 = vunpack.c.l.bf16 %v12241_v47 }
 0x723   : > { %13337 = vst.msk [vmem:[%s22065_s19 + $0x1f4] sm:$0xf] %vm13271_vm0, %v14896_v21  ;;  %v12664_v34 = vadd.f32 %v12520_v31, %v12376_v16  ;;  %v12528_v52 = vmul.f32 0.17, %v12160_v18  ;;  %v11871_v30 = vadd.f32 %v11870_v9, %v23954_v3  ;;  %v12807_v24 = vmax.f32 %v12663_v2, 0.0 }
 0x724   : > { %13336 = vst [vmem:[%s22065_s19 + $0x1ec] sm:$0xff] %v14895_v11  ;;  %v12809_v0 = vmax.f32 %v12665_v45, 0.0  ;;  %v12530_v37 = vmul.f32 0.17, %v12162_v8  ;;  %v12385_v23 = vunpack.c.h.bf16 %v12241_v47 }
 0x725   : > { %v12808_v57 = vmax.f32 %v12664_v34, 0.0  ;;  %v12161_v12 = vadd.f32 %v23879_v55, %v11871_v30  ;;  %v12672_v54 = vadd.f32 %v12528_v52, %v12384_v61 }
 0x726   : > { %v14901_v59 = vpack.c.bf16 %v12809_v0, %v12809_v0  ;;  %v12674_v33 = vadd.f32 %v12530_v37, %v12386_v15 }
 0x727   : > { %v14900_v6 = vpack.c.bf16 %v12808_v57, %v12807_v24  ;;  %v12529_v20 = vmul.f32 0.17, %v12161_v12  ;;  %v12816_v43 = vmax.f32 %v12672_v54, 0.0 }
 0x728   : > { %13342 = vst.msk [vmem:[%s22065_s19 + $0x218] sm:$0xf] %vm13271_vm0, %v14901_v59  ;;  %v12818_v38 = vmax.f32 %v12674_v33, 0.0 }
 0x729   : > { %13341 = vst [vmem:[%s22065_s19 + $0x210] sm:$0xff] %v14900_v6  ;;  %v12673_v26 = vadd.f32 %v12529_v20, %v12385_v23 }
 0x72a   : > { %v14906_v51 = vpack.c.bf16 %v12818_v38, %v12818_v38 }
 0x72b   : > { %v12817_v55 = vmax.f32 %v12673_v26, 0.0 }
 0x72c   : > { %13347 = vst.msk [vmem:[%s22065_s19 + $0x23c] sm:$0xf] %vm13271_vm0, %v14906_v51 }
 0x72d   : > { %v14905_v53 = vpack.c.bf16 %v12817_v55, %v12816_v43 }
 0x72f   : > { %13346 = vst [vmem:[%s22065_s19 + $0x234] sm:$0xff] %v14905_v53 }
 0x730   : > { %16505 = shalt.err (!%p16502_p0)
}
 0x731   : > { %s16506_s23 = scalar_lea.hbm %s23097_s16, 9216  ;;  %s16510_s30 = scalar_lea.hbm %s23156_s12, 18432 }
 0x732   : > { %p16507_p1 = scmp.ne.s32.totalorder %s23097_s16, %s16506_s23  ;;  %p16511_p4 = scmp.lt.s32.totalorder %s23097_s16, %s23156_s12 }
 0x733   : > { %p16512_p7 = scmp.lt.s32.totalorder %s16510_s30, %s16506_s23 }
 0x734   : > { %p16508_p2 = pnand %p16507_p1, %p16668_p5 }
 0x735   : > { %p16513_p6 = por %p16512_p7, %p16511_p4 }
 0x736   : > { %p16509_p3 = pneg %p16508_p2 }
 0x738   : > { %p16514_p8 = pnand %p16513_p6, %p16509_p3 }
 0x73a   : > { %16517 = shalt.err (!%p16514_p8)
}
 0x73b   : > { %s16563_s26 = smov 576   ;;  %s16564_s17 = smov 36  }
 0x73c   : > { %15214 = dma.vmem_to_hbm [thread:$0]  (%p16668_p5), %s23099_s28, 9216, %s23097_s16, %s23104_s25, %s16563_s26, %s16563_s26, %s16564_s17  }
 0x73d PF: > { %p15226_p9 = scmp.ge.s32.totalorder %s16556_s24, 2  ;;  %s13378_s15 = sand.u32 1, %s16544_s21  }
 0x73e   : > { %p23955_p10 = scmp.ne.s32.totalorder %s23239_s14, 0  ;;  %s13379_s20 = scalar_lea.sflag [#allocation6], %s13378_s15 }
 0x740   : > { %p15221_p11 = pnand %p15226_p9, %p23955_p10 }
 0x742   : > { %p15222_p12 = pneg %p15221_p11 }
 0x744   : > { %16539 = dma.done.wait (%p15222_p12), %s13379_s20, 9216  }
 0x745   : > { %16541 = vsyncadd (%p15222_p12), %s13379_s20, 4294958080  ;;  %s23956_s23 = sld [smem:[#allocation10_spill]]  ;;  %p23_p13 = scmp.ge.s32.totalorder %s16655_s27, 4  }
 0x746   : > { %s23957_s19 = sld [smem:[#allocation11_spill]]  ;;  %s23958_s21 = smov %s16548_s22 }
 0x747   : > { %s23961_s24 = smov %s16655_s27 }
 0x748   :  { %25 = sbr.rel (!%p23_p13) target bundleno = 6 (0x6), region = 122 }
 0x74b   : > { %s23959_s22 = smov %s23956_s23 }
 0x74c   : > { %s23960_s23 = smov %s23957_s19 }
 0x74d   :  { %13384 = vsyncpa [#allocation5], 1 }
 0x74e   :  { %13386 = vsyncpa [#allocation5 + $0x1], 1 }
 0x74f   :  { %13387 = vsyncpa [#allocation6], 1 }
 0x750   :  { %13389 = vsyncpa [#allocation6 + $0x1], 1 }

</bundles_post_ra>
